<compile_context>
chip_gen: v6e
topology: v6e:2x2x1
jax: 0.10.0
libtpu: 0.0.40
codegen_flags: <defaults>
</compile_context>

<pallas_src>
import jax
import jax.numpy as jnp
from jax import lax
from jax.experimental import pallas as pl
from jax.experimental.pallas import tpu as pltpu


# ------------------------------ fused Pallas kernel ------------------------------

def convnet_fused_kernel(x_ref, w1_ref, b1_ref, w2_ref, b2_ref, w3_ref, b3_ref,
                         wf3_ref, bf3_ref, wf4_ref, bf4_ref,
                         o_ref,
                         padA_ref, padB_ref):
    # x_ref:   (B, H, W, 1)             input
    # w1_ref:  (9, 32)   conv1 weight rows in (kh, kw) order, b1_ref: (1, 32)
    # w2_ref:  (288, 32) conv2 im2col weight, b2_ref: (1, 32)
    # w3_ref:  (288, 32) conv3 im2col weight, b3_ref: (1, 32)
    # wf3_ref: (128, 512)  bf3_ref: (1, 512)  wf4_ref: (512, A)  bf4_ref: (1, A)
    # o_ref:   (B, A)
    # padA_ref: (B, H+2,  W+2,  32) shared padded scratch for conv1 AND conv2 inputs
    # padB_ref: (B, H2+2, W2+2, 32) padded scratch for conv3 input
    B, Hp, Wp, C = padA_ref.shape
    H, W = Hp - 2, Wp - 2
    H2, W2 = padB_ref.shape[1] - 2, padB_ref.shape[2] - 2

    def conv3x3_im2col_relu(pad_ref, w_ref, b_ref, h, w):
        # im2col: concat the 9 shifted windows along the channel (lane) axis and do a
        # single MXU matmul with K = 9*Cin = 288.
        cin = pad_ref.shape[-1]
        taps = [pad_ref[:, kh:kh + h, kw:kw + w, :]
                for kh in range(3) for kw in range(3)]          # 9 x (B, h, w, cin)
        patches = jnp.concatenate(taps, axis=-1)                # (B, h, w, 9*cin)
        p2 = patches.reshape(B * h * w, 9 * cin)
        y = jnp.dot(p2, w_ref[...], preferred_element_type=jnp.float32) + b_ref[...]
        return jnp.maximum(y, 0.0)                              # (B*h*w, Cout), rows in (b,h,w) order

    def maxpool2x2(x):
        # floor 2x2/2 max-pool on an NHWC value (PyTorch MaxPool2d default).
        b, h, w, c = x.shape
        ho, wo = h // 2, w // 2
        if (2 * ho, 2 * wo) != (h, w):
            x = x[:, :2 * ho, :2 * wo, :]                       # drop odd remainder rows/cols
        x = x.reshape(b, 2 * ho, wo, 2, c)
        x = jnp.max(x, axis=3)                                  # pool along W
        x = x.reshape(b, ho, 2, wo, c)
        x = jnp.max(x, axis=2)                                  # pool along H
        return x                                                # (b, ho, wo, c)

    # ---- conv1 + relu  (Cin=1: pure-VPU multiply-accumulate over the 9 taps of a
    #      lane-broadcast padded input; drop1 is identity in eval mode) ----
    padA_ref[...] = jnp.zeros(padA_ref.shape, jnp.float32)      # zero border, written once
    padA_ref[:, 1:H + 1, 1:W + 1, :] = jnp.broadcast_to(x_ref[...], (B, H, W, C))
    w1 = w1_ref[...]                                            # (9, 32)
    acc = jnp.broadcast_to(b1_ref[...], (B, H, W, C))           # start from bias
    for k in range(9):
        kh, kw = k // 3, k % 3
        acc = acc + padA_ref[:, kh:kh + H, kw:kw + W, :] * w1[k:k + 1, :]
    y1 = jnp.maximum(acc, 0.0)                                  # (B, H, W, 32)

    # ---- conv2 + relu  (single K=288 im2col MXU matmul; reuse padA's zero border) ----
    padA_ref[:, 1:H + 1, 1:W + 1, :] = y1
    y2 = conv3x3_im2col_relu(padA_ref, w2_ref, b2_ref, H, W)    # (B*H*W, 32)

    # ---- pool2 ----
    p2 = maxpool2x2(y2.reshape(B, H, W, C))                     # (B, H2, W2, 32)

    # ---- conv3 + relu ----
    padB_ref[...] = jnp.zeros(padB_ref.shape, jnp.float32)
    padB_ref[:, 1:H2 + 1, 1:W2 + 1, :] = p2
    y3 = conv3x3_im2col_relu(padB_ref, w3_ref, b3_ref, H2, W2)  # (B*H2*W2, 32)

    # ---- pool3 + flatten (in (h, w, c) order; fc3 weight is pre-permuted to match) ----
    p3 = maxpool2x2(y3.reshape(B, H2, W2, C))                   # (B, H3, W3, 32)
    H3, W3 = H2 // 2, W2 // 2
    flat = jnp.concatenate(
        [p3[:, i, j, :] for i in range(H3) for j in range(W3)], axis=-1)   # (B, H3*W3*32)

    # ---- fc3 + relu  (drop3 identity in eval mode)  ;  fc4 ----
    # TODO(synk): train-mode dropout would use pltpu.prng_seed / pltpu.prng_random_bits
    # to build the masks in-kernel; eval-mode dropout is identity.
    h = jnp.dot(flat, wf3_ref[...], preferred_element_type=jnp.float32) + bf3_ref[...]
    h = jnp.maximum(h, 0.0)
    o_ref[...] = jnp.dot(h, wf4_ref[...], preferred_element_type=jnp.float32) + bf4_ref[...]


# ------------------------------ wrapper ------------------------------

def _vmem_spec():
    return pl.BlockSpec(memory_space=pltpu.MemorySpace.VMEM)


def convnet_pallas(params, x):
    # x: (B, length, width) float32, same input as the PyTorch module (which
    # unsqueezes/permutes to (B, 1, H, W)); here we use NHWC internally.
    B, H, W = x.shape
    A = params["b_fc4"].shape[0]
    H2, W2 = H // 2, W // 2
    return pl.pallas_call(
        convnet_fused_kernel,
        out_shape=jax.ShapeDtypeStruct((B, A), jnp.float32),
        in_specs=[_vmem_spec() for _ in range(11)],
        out_specs=_vmem_spec(),
        scratch_shapes=[
            pltpu.VMEM((B, H + 2, W + 2, 32), jnp.float32),     # shared padded conv1/conv2 input
            pltpu.VMEM((B, H2 + 2, W2 + 2, 32), jnp.float32),   # padded conv3 input
        ],
    )(
        x[..., None].astype(jnp.float32),
        params["w1"], params["b1"].reshape(1, -1),
        params["w2"], params["b2"].reshape(1, -1),
        params["w3"], params["b3"].reshape(1, -1),
        params["w_fc3"], params["b_fc3"].reshape(1, -1),
        params["w_fc4"], params["b_fc4"].reshape(1, -1),
    )


# ------------------------------ parameters ------------------------------

def init_params(key, length, width, num_actions):
    ks = jax.random.split(key, 10)

    def conv_w(k, cin, cout):
        # PyTorch layout (cout, cin, 3, 3) -> im2col layout (9*cin, cout), rows in (kh, kw, cin) order.
        w = 0.05 * jax.random.normal(k, (cout, cin, 3, 3), jnp.float32)
        return jnp.transpose(w, (2, 3, 1, 0)).reshape(9 * cin, cout)

    linear_dims = (width - 2) * (length - 2) * 2
    Hf, Wf = length // 4, width // 4        # spatial size after two floor 2x2 maxpools
    assert 32 * Hf * Wf == linear_dims, "pick length/width so fc3 dims line up (e.g. 10x10)"

    params = dict(
        w1=conv_w(ks[0], 1, 32),  b1=0.01 * jax.random.normal(ks[1], (32,), jnp.float32),
        w2=conv_w(ks[2], 32, 32), b2=0.01 * jax.random.normal(ks[3], (32,), jnp.float32),
        w3=conv_w(ks[4], 32, 32), b3=0.01 * jax.random.normal(ks[5], (32,), jnp.float32),
    )
    # fc3: PyTorch weight (512, linear_dims), input flattened in (C, H, W) order.
    w_fc3 = 0.05 * jax.random.normal(ks[6], (512, linear_dims), jnp.float32)
    # permute to our (H, W, C)-flatten order and transpose to (in, out)
    w_fc3 = w_fc3.reshape(512, 32, Hf, Wf).transpose(0, 2, 3, 1).reshape(512, linear_dims).T
    params["w_fc3"] = w_fc3
    params["b_fc3"] = 0.01 * jax.random.normal(ks[7], (512,), jnp.float32)
    params["w_fc4"] = 0.05 * jax.random.normal(ks[8], (num_actions, 512), jnp.float32).T
    params["b_fc4"] = 0.01 * jax.random.normal(ks[9], (num_actions,), jnp.float32)
    return params


# ------------------------------ forward ------------------------------

@jax.jit
def convnet_forward(params, x):
    return convnet_pallas(params, x)


# Pure-JAX reference (same params / same layout conventions) to validate the kernel.
def convnet_reference(params, x):
    h = x[..., None].astype(jnp.float32)

    def conv(h, w, b):
        cout = w.shape[-1]
        cin = w.shape[0] // 9
        w4 = w.reshape(3, 3, cin, cout)                       # HWIO
        y = lax.conv_general_dilated(h, w4, (1, 1), ((1, 1), (1, 1)),
                                     dimension_numbers=("NHWC", "HWIO", "NHWC"))
        return jnp.maximum(y + b, 0.0)

    def pool(h):
        return lax.reduce_window(h, -jnp.inf, lax.max, (1, 2, 2, 1), (1, 2, 2, 1), "VALID")

    h = conv(h, params["w1"], params["b1"])
    h = conv(h, params["w2"], params["b2"])
    h = pool(h)
    h = conv(h, params["w3"], params["b3"])
    h = pool(h)
    h = h.reshape(h.shape[0], -1)                             # (H, W, C)-order flatten
    h = jnp.maximum(h @ params["w_fc3"] + params["b_fc3"], 0.0)
    return h @ params["w_fc4"] + params["b_fc4"]


if __name__ == "__main__":
    length, width, num_actions = 10, 10, 4
    batch = 2

    key = jax.random.PRNGKey(0)
    kp, kx = jax.random.split(key)
    params = init_params(kp, length, width, num_actions)
    x = jax.random.normal(kx, (batch, length, width), jnp.float32)

    out = convnet_forward(params, x)
    out = jax.block_until_ready(out)

    ref = convnet_reference(params, x)
    assert out.shape == (batch, num_actions), out.shape
    assert jnp.allclose(out, ref, rtol=1e-4, atol=1e-4), (out, ref)

    print("KERNEL_OK")
</pallas_src>

<mosaic_0001>
module attributes {stable_mosaic.version = 11 : i64} {
  func.func @convnet_fused_kernel(%arg0: memref<2x10x10x1xf32, #tpu.memory_space<vmem>>, %arg1: memref<9x32xf32, #tpu.memory_space<vmem>>, %arg2: memref<1x32xf32, #tpu.memory_space<vmem>>, %arg3: memref<288x32xf32, #tpu.memory_space<vmem>>, %arg4: memref<1x32xf32, #tpu.memory_space<vmem>>, %arg5: memref<288x32xf32, #tpu.memory_space<vmem>>, %arg6: memref<1x32xf32, #tpu.memory_space<vmem>>, %arg7: memref<128x512xf32, #tpu.memory_space<vmem>>, %arg8: memref<1x512xf32, #tpu.memory_space<vmem>>, %arg9: memref<512x4xf32, #tpu.memory_space<vmem>>, %arg10: memref<1x4xf32, #tpu.memory_space<vmem>>, %arg11: memref<2x4xf32, #tpu.memory_space<vmem>>, %arg12: memref<2x12x12x32xf32, #tpu.memory_space<vmem>>, %arg13: memref<2x7x7x32xf32, #tpu.memory_space<vmem>>) attributes {dimension_semantics = [], scalar_prefetch = 0 : i64, scratch_operands = 2 : i64, tpu.core_type = #tpu.core_type<tc>} {
    %cst = arith.constant 0.000000e+00 : f32
    %0 = vector.broadcast %cst : f32 to vector<2x12x12x32xf32>
    %c0 = arith.constant 0 : index
    %c0_0 = arith.constant 0 : index
    %c0_1 = arith.constant 0 : index
    %c0_2 = arith.constant 0 : index
    %1 = vector.load %arg12[%c0, %c0_0, %c0_1, %c0_2] : memref<2x12x12x32xf32, #tpu.memory_space<vmem>>, vector<2x12x12x32xf32>
    tpu.vector_store %arg12[%c0, %c0_0, %c0_1, %c0_2], %0 {strides = array<i32>} : memref<2x12x12x32xf32, #tpu.memory_space<vmem>>, vector<2x12x12x32xf32>,
    %c0_3 = arith.constant 0 : index
    %c0_4 = arith.constant 0 : index
    %c0_5 = arith.constant 0 : index
    %c0_6 = arith.constant 0 : index
    %2 = vector.load %arg0[%c0_3, %c0_4, %c0_5, %c0_6] : memref<2x10x10x1xf32, #tpu.memory_space<vmem>>, vector<2x10x10x1xf32>
    %3 = vector.shape_cast %2 : vector<2x10x10x1xf32> to vector<2x10x10x1xf32>
    %4 = vector.broadcast %3 : vector<2x10x10x1xf32> to vector<2x10x10x32xf32>
    %c0_7 = arith.constant 0 : index
    %c1 = arith.constant 1 : index
    %c1_8 = arith.constant 1 : index
    %c0_9 = arith.constant 0 : index
    %5 = vector.load %arg12[%c0_7, %c1, %c1_8, %c0_9] : memref<2x12x12x32xf32, #tpu.memory_space<vmem>>, vector<2x10x10x32xf32>
    tpu.vector_store %arg12[%c0_7, %c1, %c1_8, %c0_9], %4 {strides = array<i32>} : memref<2x12x12x32xf32, #tpu.memory_space<vmem>>, vector<2x10x10x32xf32>,
    %c0_10 = arith.constant 0 : index
    %c0_11 = arith.constant 0 : index
    %6 = vector.load %arg1[%c0_10, %c0_11] : memref<9x32xf32, #tpu.memory_space<vmem>>, vector<9x32xf32>
    %c0_12 = arith.constant 0 : index
    %c0_13 = arith.constant 0 : index
    %7 = vector.load %arg2[%c0_12, %c0_13] : memref<1x32xf32, #tpu.memory_space<vmem>>, vector<1x32xf32>
    %8 = vector.shape_cast %7 : vector<1x32xf32> to vector<1x1x1x32xf32>
    %9 = vector.broadcast %8 : vector<1x1x1x32xf32> to vector<2x10x10x32xf32>
    %c0_14 = arith.constant 0 : index
    %c0_15 = arith.constant 0 : index
    %c0_16 = arith.constant 0 : index
    %c0_17 = arith.constant 0 : index
    %10 = vector.load %arg12[%c0_14, %c0_15, %c0_16, %c0_17] : memref<2x12x12x32xf32, #tpu.memory_space<vmem>>, vector<2x10x10x32xf32>
    %11 = vector.extract_strided_slice %6 {offsets = [0, 0], sizes = [1, 32], strides = [1, 1]} : vector<9x32xf32> to vector<1x32xf32>
    %12 = vector.shape_cast %11 : vector<1x32xf32> to vector<1x1x1x32xf32>
    %13 = vector.broadcast %12 : vector<1x1x1x32xf32> to vector<2x10x10x32xf32>
    %14 = arith.mulf %10, %13 : vector<2x10x10x32xf32>
    %15 = arith.addf %9, %14 : vector<2x10x10x32xf32>
    %c0_18 = arith.constant 0 : index
    %c0_19 = arith.constant 0 : index
    %c1_20 = arith.constant 1 : index
    %c0_21 = arith.constant 0 : index
    %16 = vector.load %arg12[%c0_18, %c0_19, %c1_20, %c0_21] : memref<2x12x12x32xf32, #tpu.memory_space<vmem>>, vector<2x10x10x32xf32>
    %17 = vector.extract_strided_slice %6 {offsets = [1, 0], sizes = [1, 32], strides = [1, 1]} : vector<9x32xf32> to vector<1x32xf32>
    %18 = vector.shape_cast %17 : vector<1x32xf32> to vector<1x1x1x32xf32>
    %19 = vector.broadcast %18 : vector<1x1x1x32xf32> to vector<2x10x10x32xf32>
    %20 = arith.mulf %16, %19 : vector<2x10x10x32xf32>
    %21 = arith.addf %15, %20 : vector<2x10x10x32xf32>
    %c0_22 = arith.constant 0 : index
    %c0_23 = arith.constant 0 : index
    %c2 = arith.constant 2 : index
    %c0_24 = arith.constant 0 : index
    %22 = vector.load %arg12[%c0_22, %c0_23, %c2, %c0_24] : memref<2x12x12x32xf32, #tpu.memory_space<vmem>>, vector<2x10x10x32xf32>
    %23 = vector.extract_strided_slice %6 {offsets = [2, 0], sizes = [1, 32], strides = [1, 1]} : vector<9x32xf32> to vector<1x32xf32>
    %24 = vector.shape_cast %23 : vector<1x32xf32> to vector<1x1x1x32xf32>
    %25 = vector.broadcast %24 : vector<1x1x1x32xf32> to vector<2x10x10x32xf32>
    %26 = arith.mulf %22, %25 : vector<2x10x10x32xf32>
    %27 = arith.addf %21, %26 : vector<2x10x10x32xf32>
    %c0_25 = arith.constant 0 : index
    %c1_26 = arith.constant 1 : index
    %c0_27 = arith.constant 0 : index
    %c0_28 = arith.constant 0 : index
    %28 = vector.load %arg12[%c0_25, %c1_26, %c0_27, %c0_28] : memref<2x12x12x32xf32, #tpu.memory_space<vmem>>, vector<2x10x10x32xf32>
    %29 = vector.extract_strided_slice %6 {offsets = [3, 0], sizes = [1, 32], strides = [1, 1]} : vector<9x32xf32> to vector<1x32xf32>
    %30 = vector.shape_cast %29 : vector<1x32xf32> to vector<1x1x1x32xf32>
    %31 = vector.broadcast %30 : vector<1x1x1x32xf32> to vector<2x10x10x32xf32>
    %32 = arith.mulf %28, %31 : vector<2x10x10x32xf32>
    %33 = arith.addf %27, %32 : vector<2x10x10x32xf32>
    %c0_29 = arith.constant 0 : index
    %c1_30 = arith.constant 1 : index
    %c1_31 = arith.constant 1 : index
    %c0_32 = arith.constant 0 : index
    %34 = vector.load %arg12[%c0_29, %c1_30, %c1_31, %c0_32] : memref<2x12x12x32xf32, #tpu.memory_space<vmem>>, vector<2x10x10x32xf32>
    %35 = vector.extract_strided_slice %6 {offsets = [4, 0], sizes = [1, 32], strides = [1, 1]} : vector<9x32xf32> to vector<1x32xf32>
    %36 = vector.shape_cast %35 : vector<1x32xf32> to vector<1x1x1x32xf32>
    %37 = vector.broadcast %36 : vector<1x1x1x32xf32> to vector<2x10x10x32xf32>
    %38 = arith.mulf %34, %37 : vector<2x10x10x32xf32>
    %39 = arith.addf %33, %38 : vector<2x10x10x32xf32>
    %c0_33 = arith.constant 0 : index
    %c1_34 = arith.constant 1 : index
    %c2_35 = arith.constant 2 : index
    %c0_36 = arith.constant 0 : index
    %40 = vector.load %arg12[%c0_33, %c1_34, %c2_35, %c0_36] : memref<2x12x12x32xf32, #tpu.memory_space<vmem>>, vector<2x10x10x32xf32>
    %41 = vector.extract_strided_slice %6 {offsets = [5, 0], sizes = [1, 32], strides = [1, 1]} : vector<9x32xf32> to vector<1x32xf32>
    %42 = vector.shape_cast %41 : vector<1x32xf32> to vector<1x1x1x32xf32>
    %43 = vector.broadcast %42 : vector<1x1x1x32xf32> to vector<2x10x10x32xf32>
    %44 = arith.mulf %40, %43 : vector<2x10x10x32xf32>
    %45 = arith.addf %39, %44 : vector<2x10x10x32xf32>
    %c0_37 = arith.constant 0 : index
    %c2_38 = arith.constant 2 : index
    %c0_39 = arith.constant 0 : index
    %c0_40 = arith.constant 0 : index
    %46 = vector.load %arg12[%c0_37, %c2_38, %c0_39, %c0_40] : memref<2x12x12x32xf32, #tpu.memory_space<vmem>>, vector<2x10x10x32xf32>
    %47 = vector.extract_strided_slice %6 {offsets = [6, 0], sizes = [1, 32], strides = [1, 1]} : vector<9x32xf32> to vector<1x32xf32>
    %48 = vector.shape_cast %47 : vector<1x32xf32> to vector<1x1x1x32xf32>
    %49 = vector.broadcast %48 : vector<1x1x1x32xf32> to vector<2x10x10x32xf32>
    %50 = arith.mulf %46, %49 : vector<2x10x10x32xf32>
    %51 = arith.addf %45, %50 : vector<2x10x10x32xf32>
    %c0_41 = arith.constant 0 : index
    %c2_42 = arith.constant 2 : index
    %c1_43 = arith.constant 1 : index
    %c0_44 = arith.constant 0 : index
    %52 = vector.load %arg12[%c0_41, %c2_42, %c1_43, %c0_44] : memref<2x12x12x32xf32, #tpu.memory_space<vmem>>, vector<2x10x10x32xf32>
    %53 = vector.extract_strided_slice %6 {offsets = [7, 0], sizes = [1, 32], strides = [1, 1]} : vector<9x32xf32> to vector<1x32xf32>
    %54 = vector.shape_cast %53 : vector<1x32xf32> to vector<1x1x1x32xf32>
    %55 = vector.broadcast %54 : vector<1x1x1x32xf32> to vector<2x10x10x32xf32>
    %56 = arith.mulf %52, %55 : vector<2x10x10x32xf32>
    %57 = arith.addf %51, %56 : vector<2x10x10x32xf32>
    %c0_45 = arith.constant 0 : index
    %c2_46 = arith.constant 2 : index
    %c2_47 = arith.constant 2 : index
    %c0_48 = arith.constant 0 : index
    %58 = vector.load %arg12[%c0_45, %c2_46, %c2_47, %c0_48] : memref<2x12x12x32xf32, #tpu.memory_space<vmem>>, vector<2x10x10x32xf32>
    %59 = vector.extract_strided_slice %6 {offsets = [8, 0], sizes = [1, 32], strides = [1, 1]} : vector<9x32xf32> to vector<1x32xf32>
    %60 = vector.shape_cast %59 : vector<1x32xf32> to vector<1x1x1x32xf32>
    %61 = vector.broadcast %60 : vector<1x1x1x32xf32> to vector<2x10x10x32xf32>
    %62 = arith.mulf %58, %61 : vector<2x10x10x32xf32>
    %63 = arith.addf %57, %62 : vector<2x10x10x32xf32>
    %cst_49 = arith.constant 0.000000e+00 : f32
    %64 = vector.broadcast %cst_49 : f32 to vector<2x10x10x32xf32>
    %65 = arith.maximumf %63, %64 : vector<2x10x10x32xf32>
    %c0_50 = arith.constant 0 : index
    %c1_51 = arith.constant 1 : index
    %c1_52 = arith.constant 1 : index
    %c0_53 = arith.constant 0 : index
    %66 = vector.load %arg12[%c0_50, %c1_51, %c1_52, %c0_53] : memref<2x12x12x32xf32, #tpu.memory_space<vmem>>, vector<2x10x10x32xf32>
    tpu.vector_store %arg12[%c0_50, %c1_51, %c1_52, %c0_53], %65 {strides = array<i32>} : memref<2x12x12x32xf32, #tpu.memory_space<vmem>>, vector<2x10x10x32xf32>,
    %c0_54 = arith.constant 0 : index
    %c0_55 = arith.constant 0 : index
    %c0_56 = arith.constant 0 : index
    %c0_57 = arith.constant 0 : index
    %67 = vector.load %arg12[%c0_54, %c0_55, %c0_56, %c0_57] : memref<2x12x12x32xf32, #tpu.memory_space<vmem>>, vector<2x10x10x32xf32>
    %c0_58 = arith.constant 0 : index
    %c0_59 = arith.constant 0 : index
    %c1_60 = arith.constant 1 : index
    %c0_61 = arith.constant 0 : index
    %68 = vector.load %arg12[%c0_58, %c0_59, %c1_60, %c0_61] : memref<2x12x12x32xf32, #tpu.memory_space<vmem>>, vector<2x10x10x32xf32>
    %c0_62 = arith.constant 0 : index
    %c0_63 = arith.constant 0 : index
    %c2_64 = arith.constant 2 : index
    %c0_65 = arith.constant 0 : index
    %69 = vector.load %arg12[%c0_62, %c0_63, %c2_64, %c0_65] : memref<2x12x12x32xf32, #tpu.memory_space<vmem>>, vector<2x10x10x32xf32>
    %c0_66 = arith.constant 0 : index
    %c1_67 = arith.constant 1 : index
    %c0_68 = arith.constant 0 : index
    %c0_69 = arith.constant 0 : index
    %70 = vector.load %arg12[%c0_66, %c1_67, %c0_68, %c0_69] : memref<2x12x12x32xf32, #tpu.memory_space<vmem>>, vector<2x10x10x32xf32>
    %c0_70 = arith.constant 0 : index
    %c1_71 = arith.constant 1 : index
    %c1_72 = arith.constant 1 : index
    %c0_73 = arith.constant 0 : index
    %71 = vector.load %arg12[%c0_70, %c1_71, %c1_72, %c0_73] : memref<2x12x12x32xf32, #tpu.memory_space<vmem>>, vector<2x10x10x32xf32>
    %c0_74 = arith.constant 0 : index
    %c1_75 = arith.constant 1 : index
    %c2_76 = arith.constant 2 : index
    %c0_77 = arith.constant 0 : index
    %72 = vector.load %arg12[%c0_74, %c1_75, %c2_76, %c0_77] : memref<2x12x12x32xf32, #tpu.memory_space<vmem>>, vector<2x10x10x32xf32>
    %c0_78 = arith.constant 0 : index
    %c2_79 = arith.constant 2 : index
    %c0_80 = arith.constant 0 : index
    %c0_81 = arith.constant 0 : index
    %73 = vector.load %arg12[%c0_78, %c2_79, %c0_80, %c0_81] : memref<2x12x12x32xf32, #tpu.memory_space<vmem>>, vector<2x10x10x32xf32>
    %c0_82 = arith.constant 0 : index
    %c2_83 = arith.constant 2 : index
    %c1_84 = arith.constant 1 : index
    %c0_85 = arith.constant 0 : index
    %74 = vector.load %arg12[%c0_82, %c2_83, %c1_84, %c0_85] : memref<2x12x12x32xf32, #tpu.memory_space<vmem>>, vector<2x10x10x32xf32>
    %c0_86 = arith.constant 0 : index
    %c2_87 = arith.constant 2 : index
    %c2_88 = arith.constant 2 : index
    %c0_89 = arith.constant 0 : index
    %75 = vector.load %arg12[%c0_86, %c2_87, %c2_88, %c0_89] : memref<2x12x12x32xf32, #tpu.memory_space<vmem>>, vector<2x10x10x32xf32>
    %76 = tpu.concatenate %67, %68, %69, %70, %71, %72, %73, %74, %75 in 3 : vector<2x10x10x32xf32>, vector<2x10x10x32xf32>, vector<2x10x10x32xf32>, vector<2x10x10x32xf32>, vector<2x10x10x32xf32>, vector<2x10x10x32xf32>, vector<2x10x10x32xf32>, vector<2x10x10x32xf32>, vector<2x10x10x32xf32> -> vector<2x10x10x288xf32>
    %77 = vector.shape_cast %76 : vector<2x10x10x288xf32> to vector<200x288xf32>
    %c0_90 = arith.constant 0 : index
    %c0_91 = arith.constant 0 : index
    %78 = vector.load %arg3[%c0_90, %c0_91] : memref<288x32xf32, #tpu.memory_space<vmem>>, vector<288x32xf32>
    %cst_92 = arith.constant dense<0.000000e+00> : vector<200x32xf32>
    %79 = tpu.matmul %77, %78, %cst_92 {dimension_numbers = #tpu.dot_dimension_numbers<[1], [0], [0], [1], [0, 0, 1, 1], [], []>} : vector<200x288xf32>, vector<288x32xf32>, vector<200x32xf32> -> vector<200x32xf32>
    %c0_93 = arith.constant 0 : index
    %c0_94 = arith.constant 0 : index
    %80 = vector.load %arg4[%c0_93, %c0_94] : memref<1x32xf32, #tpu.memory_space<vmem>>, vector<1x32xf32>
    %81 = vector.broadcast %80 : vector<1x32xf32> to vector<200x32xf32>
    %82 = arith.addf %79, %81 : vector<200x32xf32>
    %cst_95 = arith.constant 0.000000e+00 : f32
    %83 = vector.broadcast %cst_95 : f32 to vector<200x32xf32>
    %84 = arith.maximumf %82, %83 : vector<200x32xf32>
    %85 = vector.shape_cast %84 : vector<200x32xf32> to vector<2x10x10x32xf32>
    %86 = vector.shape_cast %85 : vector<2x10x10x32xf32> to vector<2x10x5x2x32xf32>
    %cst_96 = arith.constant dense<0xFF800000> : vector<2x10x5x32xf32>
    %87 = vector.multi_reduction <maximumf>, %86, %cst_96 [3] : vector<2x10x5x2x32xf32> to vector<2x10x5x32xf32>
    %88 = vector.shape_cast %87 : vector<2x10x5x32xf32> to vector<2x5x2x5x32xf32>
    %cst_97 = arith.constant dense<0xFF800000> : vector<2x5x5x32xf32>
    %89 = vector.multi_reduction <maximumf>, %88, %cst_97 [2] : vector<2x5x2x5x32xf32> to vector<2x5x5x32xf32>
    %cst_98 = arith.constant 0.000000e+00 : f32
    %90 = vector.broadcast %cst_98 : f32 to vector<2x7x7x32xf32>
    %c0_99 = arith.constant 0 : index
    %c0_100 = arith.constant 0 : index
    %c0_101 = arith.constant 0 : index
    %c0_102 = arith.constant 0 : index
    %91 = vector.load %arg13[%c0_99, %c0_100, %c0_101, %c0_102] : memref<2x7x7x32xf32, #tpu.memory_space<vmem>>, vector<2x7x7x32xf32>
    tpu.vector_store %arg13[%c0_99, %c0_100, %c0_101, %c0_102], %90 {strides = array<i32>} : memref<2x7x7x32xf32, #tpu.memory_space<vmem>>, vector<2x7x7x32xf32>,
    %c0_103 = arith.constant 0 : index
    %c1_104 = arith.constant 1 : index
    %c1_105 = arith.constant 1 : index
    %c0_106 = arith.constant 0 : index
    %92 = vector.load %arg13[%c0_103, %c1_104, %c1_105, %c0_106] : memref<2x7x7x32xf32, #tpu.memory_space<vmem>>, vector<2x5x5x32xf32>
    tpu.vector_store %arg13[%c0_103, %c1_104, %c1_105, %c0_106], %89 {strides = array<i32>} : memref<2x7x7x32xf32, #tpu.memory_space<vmem>>, vector<2x5x5x32xf32>,
    %c0_107 = arith.constant 0 : index
    %c0_108 = arith.constant 0 : index
    %c0_109 = arith.constant 0 : index
    %c0_110 = arith.constant 0 : index
    %93 = vector.load %arg13[%c0_107, %c0_108, %c0_109, %c0_110] : memref<2x7x7x32xf32, #tpu.memory_space<vmem>>, vector<2x5x5x32xf32>
    %c0_111 = arith.constant 0 : index
    %c0_112 = arith.constant 0 : index
    %c1_113 = arith.constant 1 : index
    %c0_114 = arith.constant 0 : index
    %94 = vector.load %arg13[%c0_111, %c0_112, %c1_113, %c0_114] : memref<2x7x7x32xf32, #tpu.memory_space<vmem>>, vector<2x5x5x32xf32>
    %c0_115 = arith.constant 0 : index
    %c0_116 = arith.constant 0 : index
    %c2_117 = arith.constant 2 : index
    %c0_118 = arith.constant 0 : index
    %95 = vector.load %arg13[%c0_115, %c0_116, %c2_117, %c0_118] : memref<2x7x7x32xf32, #tpu.memory_space<vmem>>, vector<2x5x5x32xf32>
    %c0_119 = arith.constant 0 : index
    %c1_120 = arith.constant 1 : index
    %c0_121 = arith.constant 0 : index
    %c0_122 = arith.constant 0 : index
    %96 = vector.load %arg13[%c0_119, %c1_120, %c0_121, %c0_122] : memref<2x7x7x32xf32, #tpu.memory_space<vmem>>, vector<2x5x5x32xf32>
    %c0_123 = arith.constant 0 : index
    %c1_124 = arith.constant 1 : index
    %c1_125 = arith.constant 1 : index
    %c0_126 = arith.constant 0 : index
    %97 = vector.load %arg13[%c0_123, %c1_124, %c1_125, %c0_126] : memref<2x7x7x32xf32, #tpu.memory_space<vmem>>, vector<2x5x5x32xf32>
    %c0_127 = arith.constant 0 : index
    %c1_128 = arith.constant 1 : index
    %c2_129 = arith.constant 2 : index
    %c0_130 = arith.constant 0 : index
    %98 = vector.load %arg13[%c0_127, %c1_128, %c2_129, %c0_130] : memref<2x7x7x32xf32, #tpu.memory_space<vmem>>, vector<2x5x5x32xf32>
    %c0_131 = arith.constant 0 : index
    %c2_132 = arith.constant 2 : index
    %c0_133 = arith.constant 0 : index
    %c0_134 = arith.constant 0 : index
    %99 = vector.load %arg13[%c0_131, %c2_132, %c0_133, %c0_134] : memref<2x7x7x32xf32, #tpu.memory_space<vmem>>, vector<2x5x5x32xf32>
    %c0_135 = arith.constant 0 : index
    %c2_136 = arith.constant 2 : index
    %c1_137 = arith.constant 1 : index
    %c0_138 = arith.constant 0 : index
    %100 = vector.load %arg13[%c0_135, %c2_136, %c1_137, %c0_138] : memref<2x7x7x32xf32, #tpu.memory_space<vmem>>, vector<2x5x5x32xf32>
    %c0_139 = arith.constant 0 : index
    %c2_140 = arith.constant 2 : index
    %c2_141 = arith.constant 2 : index
    %c0_142 = arith.constant 0 : index
    %101 = vector.load %arg13[%c0_139, %c2_140, %c2_141, %c0_142] : memref<2x7x7x32xf32, #tpu.memory_space<vmem>>, vector<2x5x5x32xf32>
    %102 = tpu.concatenate %93, %94, %95, %96, %97, %98, %99, %100, %101 in 3 : vector<2x5x5x32xf32>, vector<2x5x5x32xf32>, vector<2x5x5x32xf32>, vector<2x5x5x32xf32>, vector<2x5x5x32xf32>, vector<2x5x5x32xf32>, vector<2x5x5x32xf32>, vector<2x5x5x32xf32>, vector<2x5x5x32xf32> -> vector<2x5x5x288xf32>
    %103 = vector.shape_cast %102 : vector<2x5x5x288xf32> to vector<50x288xf32>
    %c0_143 = arith.constant 0 : index
    %c0_144 = arith.constant 0 : index
    %104 = vector.load %arg5[%c0_143, %c0_144] : memref<288x32xf32, #tpu.memory_space<vmem>>, vector<288x32xf32>
    %cst_145 = arith.constant dense<0.000000e+00> : vector<50x32xf32>
    %105 = tpu.matmul %103, %104, %cst_145 {dimension_numbers = #tpu.dot_dimension_numbers<[1], [0], [0], [1], [0, 0, 1, 1], [], []>} : vector<50x288xf32>, vector<288x32xf32>, vector<50x32xf32> -> vector<50x32xf32>
    %c0_146 = arith.constant 0 : index
    %c0_147 = arith.constant 0 : index
    %106 = vector.load %arg6[%c0_146, %c0_147] : memref<1x32xf32, #tpu.memory_space<vmem>>, vector<1x32xf32>
    %107 = vector.broadcast %106 : vector<1x32xf32> to vector<50x32xf32>
    %108 = arith.addf %105, %107 : vector<50x32xf32>
    %cst_148 = arith.constant 0.000000e+00 : f32
    %109 = vector.broadcast %cst_148 : f32 to vector<50x32xf32>
    %110 = arith.maximumf %108, %109 : vector<50x32xf32>
    %111 = vector.shape_cast %110 : vector<50x32xf32> to vector<2x5x5x32xf32>
    %112 = vector.extract_strided_slice %111 {offsets = [0, 0, 0, 0], sizes = [2, 4, 4, 32], strides = [1, 1, 1, 1]} : vector<2x5x5x32xf32> to vector<2x4x4x32xf32>
    %113 = vector.shape_cast %112 : vector<2x4x4x32xf32> to vector<2x4x2x2x32xf32>
    %cst_149 = arith.constant dense<0xFF800000> : vector<2x4x2x32xf32>
    %114 = vector.multi_reduction <maximumf>, %113, %cst_149 [3] : vector<2x4x2x2x32xf32> to vector<2x4x2x32xf32>
    %115 = vector.shape_cast %114 : vector<2x4x2x32xf32> to vector<2x2x2x2x32xf32>
    %cst_150 = arith.constant dense<0xFF800000> : vector<2x2x2x32xf32>
    %116 = vector.multi_reduction <maximumf>, %115, %cst_150 [2] : vector<2x2x2x2x32xf32> to vector<2x2x2x32xf32>
    %117 = vector.extract_strided_slice %116 {offsets = [0, 0, 0, 0], sizes = [2, 1, 1, 32], strides = [1, 1, 1, 1]} : vector<2x2x2x32xf32> to vector<2x1x1x32xf32>
    %118 = vector.shape_cast %117 : vector<2x1x1x32xf32> to vector<2x32xf32>
    %119 = vector.extract_strided_slice %116 {offsets = [0, 0, 1, 0], sizes = [2, 1, 1, 32], strides = [1, 1, 1, 1]} : vector<2x2x2x32xf32> to vector<2x1x1x32xf32>
    %120 = vector.shape_cast %119 : vector<2x1x1x32xf32> to vector<2x32xf32>
    %121 = vector.extract_strided_slice %116 {offsets = [0, 1, 0, 0], sizes = [2, 1, 1, 32], strides = [1, 1, 1, 1]} : vector<2x2x2x32xf32> to vector<2x1x1x32xf32>
    %122 = vector.shape_cast %121 : vector<2x1x1x32xf32> to vector<2x32xf32>
    %123 = vector.extract_strided_slice %116 {offsets = [0, 1, 1, 0], sizes = [2, 1, 1, 32], strides = [1, 1, 1, 1]} : vector<2x2x2x32xf32> to vector<2x1x1x32xf32>
    %124 = vector.shape_cast %123 : vector<2x1x1x32xf32> to vector<2x32xf32>
    %125 = tpu.concatenate %118, %120, %122, %124 in 1 : vector<2x32xf32>, vector<2x32xf32>, vector<2x32xf32>, vector<2x32xf32> -> vector<2x128xf32>
    %c0_151 = arith.constant 0 : index
    %c0_152 = arith.constant 0 : index
    %126 = vector.load %arg7[%c0_151, %c0_152] : memref<128x512xf32, #tpu.memory_space<vmem>>, vector<128x512xf32>
    %cst_153 = arith.constant dense<0.000000e+00> : vector<2x512xf32>
    %127 = tpu.matmul %125, %126, %cst_153 {dimension_numbers = #tpu.dot_dimension_numbers<[1], [0], [0], [1], [0, 0, 1, 1], [], []>} : vector<2x128xf32>, vector<128x512xf32>, vector<2x512xf32> -> vector<2x512xf32>
    %c0_154 = arith.constant 0 : index
    %c0_155 = arith.constant 0 : index
    %128 = vector.load %arg8[%c0_154, %c0_155] : memref<1x512xf32, #tpu.memory_space<vmem>>, vector<1x512xf32>
    %129 = vector.broadcast %128 : vector<1x512xf32> to vector<2x512xf32>
    %130 = arith.addf %127, %129 : vector<2x512xf32>
    %cst_156 = arith.constant 0.000000e+00 : f32
    %131 = vector.broadcast %cst_156 : f32 to vector<2x512xf32>
    %132 = arith.maximumf %130, %131 : vector<2x512xf32>
    %c0_157 = arith.constant 0 : index
    %c0_158 = arith.constant 0 : index
    %133 = vector.load %arg9[%c0_157, %c0_158] : memref<512x4xf32, #tpu.memory_space<vmem>>, vector<512x4xf32>
    %cst_159 = arith.constant dense<0.000000e+00> : vector<2x4xf32>
    %134 = tpu.matmul %132, %133, %cst_159 {dimension_numbers = #tpu.dot_dimension_numbers<[1], [0], [0], [1], [0, 0, 1, 1], [], []>} : vector<2x512xf32>, vector<512x4xf32>, vector<2x4xf32> -> vector<2x4xf32>
    %c0_160 = arith.constant 0 : index
    %c0_161 = arith.constant 0 : index
    %135 = vector.load %arg10[%c0_160, %c0_161] : memref<1x4xf32, #tpu.memory_space<vmem>>, vector<1x4xf32>
    %136 = vector.broadcast %135 : vector<1x4xf32> to vector<2x4xf32>
    %137 = arith.addf %134, %136 : vector<2x4xf32>
    %c0_162 = arith.constant 0 : index
    %c0_163 = arith.constant 0 : index
    %138 = vector.load %arg11[%c0_162, %c0_163] : memref<2x4xf32, #tpu.memory_space<vmem>>, vector<2x4xf32>
    tpu.vector_store %arg11[%c0_162, %c0_163], %137 {strides = array<i32>} : memref<2x4xf32, #tpu.memory_space<vmem>>, vector<2x4xf32>,
    return
  }
}

</mosaic_0001>

<bundles_post_ra>
// kernel: convnet_forward.1
= control target key start
LH: loop header
LB: loop body
LE: loop exit
PB: predicated region body
PF: predicated region fallthrough
CT: control target
= control target key end

     0   :  { %vm39_vm0 = vcmask 261120   ;;  %v10524_v2 = vmov 0   ;;  %v10525_v3 = vmov 0.0   ;;  %vm41_vm1 = vcmask 257024   ;;  %s14895_s0 = inlined_call_operand.vmem [shape: f32[2,10,10,1], index: 0, kind: input, shape index: {}]   ;;  %s14896_s1 = inlined_call_operand.vmem [shape: f32[9,32], index: 1, kind: input, shape index: {}]   ;;  %s14897_s2 = inlined_call_operand.vmem [shape: f32[1,32], index: 2, kind: input, shape index: {}]   ;;  %s14898_s3 = inlined_call_operand.vmem [shape: f32[288,32], index: 3, kind: input, shape index: {}]   ;;  %s14899_s4 = inlined_call_operand.vmem [shape: f32[1,32], index: 4, kind: input, shape index: {}]   ;;  %s14900_s5 = inlined_call_operand.vmem [shape: f32[288,32], index: 5, kind: input, shape index: {}]   ;;  %s14901_s6 = inlined_call_operand.vmem [shape: f32[1,32], index: 6, kind: input, shape index: {}]   ;;  %s14902_s7 = inlined_call_operand.vmem [shape: f32[128,512], index: 7, kind: input, shape index: {}]   ;;  %s14903_s8 = inlined_call_operand.vmem [shape: f32[1,512], index: 8, kind: input, shape index: {}]   ;;  %s14904_s9 = inlined_call_operand.vmem [shape: f32[512,4], index: 9, kind: input, shape index: {}]   ;;  %s14905_s10 = inlined_call_operand.vmem [shape: f32[1,4], index: 10, kind: input, shape index: {}]   ;;  %s14906_s11 = inlined_call_operand.hbm [shape: f32[2,4], index: 11, kind: output, shape index: {}]  }
   0x1   :  { %v91_v0 = vld [vmem:[%s14895_s0 + $0x10] sm:$0xff]  ;;  %v89_v1 = vld [vmem:[%s14895_s0] sm:$0xff]  ;;  %10458 = vset.pattern.permute.xlu1 %v10524_v2  ;;  %10457 = vset.pattern.permute.xlu0 %v10524_v2  ;;  %45 = vst.msk [vmem:[#allocation2 + $0x20] sm:$0xff] %vm39_vm0, %v10525_v3  ;;  %40 = vst.msk [vmem:[#allocation2] sm:$0xff] %vm39_vm0, %v10525_v3  ;;  %v420_v10 = vlaneseq }
   0x2   :  { %141 = vperm.xlu1 %10458, %v91_v0   ;;  %131 = vperm.xlu0 %10457, %v89_v1   ;;  %43 = vst.msk [vmem:[#allocation2 + $0x10] sm:$0xff] %vm39_vm0, %v10525_v3  ;;  %47 = vst.msk [vmem:[#allocation2 + $0x30] sm:$0xff] %vm39_vm0, %v10525_v3  ;;  %v92_v4 = vld [vmem:[%s14895_s0 + $0x18] sm:$0x3]  ;;  %v90_v5 = vld [vmem:[%s14895_s0 + $0x8] sm:$0x3] }
   0x3   :  { %49 = vst.msk [vmem:[#allocation2 + $0x40] sm:$0xff] %vm39_vm0, %v10525_v3  ;;  %51 = vst.msk [vmem:[#allocation2 + $0x50] sm:$0xff] %vm39_vm0, %v10525_v3  ;;  %10336 = vmatprep.subr.mxu1 %v10525_v3  ;;  %5297 = vmatprep.subr.mxu0 %v10525_v3  ;;  %v94_v6 = vld [vmem:[%s14895_s0 + $0x28] sm:$0x3]  ;;  %v93_v7 = vld [vmem:[%s14895_s0 + $0x20] sm:$0xff] }
   0x4   :  { %53 = vst.msk [vmem:[#allocation2 + $0x60] sm:$0xff] %vm39_vm0, %v10525_v3  ;;  %55 = vst.msk [vmem:[#allocation2 + $0x70] sm:$0xff] %vm39_vm0, %v10525_v3  ;;  %v96_v8 = vld [vmem:[%s14895_s0 + $0x38] sm:$0x3]  ;;  %v95_v9 = vld [vmem:[%s14895_s0 + $0x30] sm:$0xff] }
   0x5   :  { %57 = vst.msk [vmem:[#allocation2 + $0x80] sm:$0xff] %vm39_vm0, %v10525_v3  ;;  %59 = vst.msk [vmem:[#allocation2 + $0x90] sm:$0xff] %vm39_vm0, %v10525_v3  ;;  %v98_v11 = vld [vmem:[%s14895_s0 + $0x48] sm:$0x3]  ;;  %v97_v12 = vld [vmem:[%s14895_s0 + $0x40] sm:$0xff] }
   0x6   :  { %61 = vst.msk [vmem:[#allocation2 + $0xa0] sm:$0xff] %vm39_vm0, %v10525_v3  ;;  %63 = vst.msk [vmem:[#allocation2 + $0xb0] sm:$0xff] %vm39_vm0, %v10525_v3  ;;  %146 = vperm.xlu1 %10458, %v92_v4   ;;  %136 = vperm.xlu0 %10457, %v90_v5  }
   0x7   :  { %65 = vst.msk [vmem:[#allocation2 + $0xc0] sm:$0xff] %vm39_vm0, %v10525_v3  ;;  %67 = vst.msk [vmem:[#allocation2 + $0xd0] sm:$0xff] %vm39_vm0, %v10525_v3 }
   0x8   :  { %69 = vst.msk [vmem:[#allocation2 + $0xe0] sm:$0xff] %vm39_vm0, %v10525_v3  ;;  %71 = vst.msk [vmem:[#allocation2 + $0xf0] sm:$0xff] %vm39_vm0, %v10525_v3 }
   0x9   :  { %73 = vst.msk [vmem:[#allocation2 + $0x100] sm:$0xff] %vm39_vm0, %v10525_v3  ;;  %75 = vst.msk [vmem:[#allocation2 + $0x110] sm:$0xff] %vm39_vm0, %v10525_v3 }
   0xa   :  { %77 = vst.msk [vmem:[#allocation2 + $0x120] sm:$0xff] %vm39_vm0, %v10525_v3  ;;  %79 = vst.msk [vmem:[#allocation2 + $0x130] sm:$0xff] %vm39_vm0, %v10525_v3  ;;  %156 = vperm.xlu1 %10458, %v94_v6   ;;  %151 = vperm.xlu0 %10457, %v93_v7  }
   0xb   :  { %81 = vst.msk [vmem:[#allocation2 + $0x140] sm:$0xff] %vm39_vm0, %v10525_v3  ;;  %83 = vst.msk [vmem:[#allocation2 + $0x150] sm:$0xff] %vm39_vm0, %v10525_v3 }
   0xc   :  { %85 = vst.msk [vmem:[#allocation2 + $0x160] sm:$0xff] %vm39_vm0, %v10525_v3  ;;  %87 = vst.msk [vmem:[#allocation2 + $0x170] sm:$0xff] %vm39_vm0, %v10525_v3 }
   0xd   :  { %46 = vst.msk [vmem:[#allocation2 + $0x28] sm:$0xf] %vm41_vm1, %v10525_v3  ;;  %42 = vst.msk [vmem:[#allocation2 + $0x8] sm:$0xf] %vm41_vm1, %v10525_v3 }
   0xe   :  { %44 = vst.msk [vmem:[#allocation2 + $0x18] sm:$0xf] %vm41_vm1, %v10525_v3  ;;  %48 = vst.msk [vmem:[#allocation2 + $0x38] sm:$0xf] %vm41_vm1, %v10525_v3  ;;  %166 = vperm.xlu1 %10458, %v96_v8   ;;  %161 = vperm.xlu0 %10457, %v95_v9  }
   0xf   :  { %50 = vst.msk [vmem:[#allocation2 + $0x48] sm:$0xf] %vm41_vm1, %v10525_v3  ;;  %52 = vst.msk [vmem:[#allocation2 + $0x58] sm:$0xf] %vm41_vm1, %v10525_v3 }
  0x10   :  { %54 = vst.msk [vmem:[#allocation2 + $0x68] sm:$0xf] %vm41_vm1, %v10525_v3  ;;  %56 = vst.msk [vmem:[#allocation2 + $0x78] sm:$0xf] %vm41_vm1, %v10525_v3 }
  0x11   :  { %58 = vst.msk [vmem:[#allocation2 + $0x88] sm:$0xf] %vm41_vm1, %v10525_v3  ;;  %60 = vst.msk [vmem:[#allocation2 + $0x98] sm:$0xf] %vm41_vm1, %v10525_v3 }
  0x12   :  { %62 = vst.msk [vmem:[#allocation2 + $0xa8] sm:$0xf] %vm41_vm1, %v10525_v3  ;;  %64 = vst.msk [vmem:[#allocation2 + $0xb8] sm:$0xf] %vm41_vm1, %v10525_v3 }
  0x13   :  { %66 = vst.msk [vmem:[#allocation2 + $0xc8] sm:$0xf] %vm41_vm1, %v10525_v3  ;;  %68 = vst.msk [vmem:[#allocation2 + $0xd8] sm:$0xf] %vm41_vm1, %v10525_v3 }
  0x14   :  { %70 = vst.msk [vmem:[#allocation2 + $0xe8] sm:$0xf] %vm41_vm1, %v10525_v3  ;;  %72 = vst.msk [vmem:[#allocation2 + $0xf8] sm:$0xf] %vm41_vm1, %v10525_v3 }
  0x15   :  { %74 = vst.msk [vmem:[#allocation2 + $0x108] sm:$0xf] %vm41_vm1, %v10525_v3  ;;  %76 = vst.msk [vmem:[#allocation2 + $0x118] sm:$0xf] %vm41_vm1, %v10525_v3 }
  0x16   :  { %78 = vst.msk [vmem:[#allocation2 + $0x128] sm:$0xf] %vm41_vm1, %v10525_v3  ;;  %80 = vst.msk [vmem:[#allocation2 + $0x138] sm:$0xf] %vm41_vm1, %v10525_v3 }
  0x17   :  { %82 = vst.msk [vmem:[#allocation2 + $0x148] sm:$0xf] %vm41_vm1, %v10525_v3  ;;  %84 = vst.msk [vmem:[#allocation2 + $0x158] sm:$0xf] %vm41_vm1, %v10525_v3 }
  0x18   :  { %86 = vst.msk [vmem:[#allocation2 + $0x168] sm:$0xf] %vm41_vm1, %v10525_v3  ;;  %88 = vst.msk [vmem:[#allocation2 + $0x178] sm:$0xf] %vm41_vm1, %v10525_v3 }
  0x19   :  { %16 = vsyncpa [#allocation5], 0  ;;  %v10721_v13 = vshrl.u32 %v420_v10, 7  ;;  %176 = vperm.xlu1 %10458, %v98_v11   ;;  %171 = vperm.xlu0 %10457, %v97_v12   ;;  %v100_v14 = vld [vmem:[%s14895_s0 + $0x58] sm:$0x3]  ;;  %v99_v15 = vld [vmem:[%s14895_s0 + $0x50] sm:$0xff] }
  0x1a   :  { %v10733_v17 = vld [vmem:[%s14896_s1] sm:$0xff]  ;;  %v102_v18 = vld [vmem:[%s14895_s0 + $0x68] sm:$0x3]  ;;  %v104_v23 = vld [vmem:[%s14895_s0 + $0x78] sm:$0x3]  ;;  %s10526_s25 = smov 32  }
  0x1b   :  { %v422_v16 = vsub.s32 0, %v10721_v13  ;;  %v101_v19 = vld [vmem:[%s14895_s0 + $0x60] sm:$0xff]  ;;  %v14908_v20 = vsub.s32 1, %v10721_v13  ;;  %v670_v22 = vsub.s32 2, %v10721_v13  ;;  %v103_v24 = vld [vmem:[%s14895_s0 + $0x70] sm:$0xff]  ;;  %s10527_s26 = smov 64  }
  0x1c   :  { %v10762_v26 = vld [vmem:[%s14897_s2] ss:$0 sm:$0xff]  ;;  %v1617_v30 = vld [vmem:[#allocation2 + $0x1] sm:$0xff]  ;;  %v108_v38 = vld [vmem:[%s14895_s0 + $0x98] sm:$0x3]  ;;  %vm10528_vm2 = vmmov 0  }
  0x1d   :  { %186 = vperm.xlu1 %10458, %v100_v14   ;;  %181 = vperm.xlu0 %10457, %v99_v15   ;;  %v10745_v21 = vrot.slane %v10733_v17, %v422_v16  ;;  %v10757_v25 = vrot.slane %v10733_v17, %v14908_v20  ;;  %v380_v27 = vld [vmem:[#allocation2] sm:$0xff]  ;;  %v10767_v28 = vrot.slane %v10733_v17, %v670_v22  ;;  %v106_v31 = vld [vmem:[%s14895_s0 + $0x88] sm:$0x3]  ;;  %v107_v39 = vld [vmem:[%s14895_s0 + $0x90] sm:$0xff]  ;;  %vm331_vm3 = vcmask 254976   ;;  %s10530_s19 = smov 96  }
  0x1e   :  { %v105_v32 = vld [vmem:[%s14895_s0 + $0x80] sm:$0xff]  ;;  %v110_v41 = vld [vmem:[%s14895_s0 + $0xa8] sm:$0x3]  ;;  %v112_v43 = vld [vmem:[%s14895_s0 + $0xb8] sm:$0x3]  ;;  %10344 = vmatprep.mubr.msk.f32.mxu1 %vm10528_vm2, %v10525_v3  ;;  %v14907_v12 = vsub.s32 3, %v10721_v13 }
  0x1f   :  { %v424_v29 = vmul.f32 %v10745_v21, %v380_v27  ;;  %v548_v34 = vmul.f32 %v1617_v30, %v10757_v25  ;;  %v628_v35 = vld [vmem:[#allocation2 + $0x2] sm:$0xff]  ;;  %v111_v44 = vld [vmem:[%s14895_s0 + $0xb0] sm:$0xff]  ;;  %v116_v47 = vld [vmem:[%s14895_s0 + $0xd8] sm:$0x3]  ;;  %v918_v14 = vsub.s32 4, %v10721_v13  ;;  %v1167_v15 = vsub.s32 6, %v10721_v13 }
  0x20   :  { %v672_v37 = vmul.f32 %v10767_v28, %v628_v35  ;;  %v109_v42 = vld [vmem:[%s14895_s0 + $0xa0] sm:$0xff]  ;;  %v114_v45 = vld [vmem:[%s14895_s0 + $0xc8] sm:$0x3]  ;;  %v115_v48 = vld [vmem:[%s14895_s0 + $0xd0] sm:$0xff]  ;;  %vm2937_vm4 = vcmask 523264   ;;  %vm2978_vm5 = vcmask 785408  }
  0x21   :  { %196 = vperm.xlu1 %10458, %v102_v18   ;;  %191 = vperm.xlu0 %10457, %v101_v19   ;;  %v464_v33 = vadd.f32 %v10762_v26, %v424_v29  ;;  %v113_v46 = vld [vmem:[%s14895_s0 + $0xc0] sm:$0xff]  ;;  %v118_v49 = vld [vmem:[%s14895_s0 + $0xe8] sm:$0x3]  ;;  %v120_v51 = vld [vmem:[%s14895_s0 + $0xf8] sm:$0x3]  ;;  %v1291_v18 = vsub.s32 7, %v10721_v13 }
  0x22   :  { %v117_v50 = vld [vmem:[%s14895_s0 + $0xe0] sm:$0xff]  ;;  %v119_v52 = vld [vmem:[%s14895_s0 + $0xf0] sm:$0xff]  ;;  %v122_v53 = vld [vmem:[%s14895_s0 + $0x108] sm:$0x3]  ;;  %vm7102_vm6 = vcmask 260096   ;;  %vm7167_vm7 = vcmask 1041409  }
  0x23   :  { %v588_v36 = vadd.f32 %v548_v34, %v464_v33  ;;  %v121_v54 = vld [vmem:[%s14895_s0 + $0x100] sm:$0xff]  ;;  %v124_v55 = vld [vmem:[%s14895_s0 + $0x118] sm:$0x3]  ;;  %v123_v56 = vld [vmem:[%s14895_s0 + $0x110] sm:$0xff]  ;;  %v10884_v34 = vrot.slane %v10733_v17, %v14907_v12  ;;  %7104 = vst.msk [vmem:[#allocation3 + $0x8] sm:$0x7f] %vm7102_vm6, %v10525_v3 }
  0x24   :  { %v126_v57 = vld [vmem:[%s14895_s0 + $0x128] sm:$0x3]  ;;  %v125_v58 = vld [vmem:[%s14895_s0 + $0x120] sm:$0xff]  ;;  %v128_v59 = vld [vmem:[%s14895_s0 + $0x138] sm:$0x3]  ;;  %vm7169_vm8 = vcmask 1042434  }
  0x25   :  { %206 = vperm.xlu1 %10458, %v104_v23   ;;  %201 = vperm.xlu0 %10457, %v103_v24   ;;  %v10785_v40 = vadd.f32 %v672_v37, %v588_v36  ;;  %v127_v60 = vld [vmem:[%s14895_s0 + $0x130] sm:$0xff]  ;;  %v1618_v61 = vld [vmem:[#allocation2 + $0x9] sm:$0x3]  ;;  %v4314_v63 = vld [vmem:[%s14898_s3 + $0x118] sm:$0xff]  ;;  %v1042_v24 = vsub.s32 5, %v10721_v13  ;;  %v10890_v36 = vrot.slane %v10733_v17, %v1167_v15  ;;  %v10893_v37 = vrot.slane %v10733_v17, %v1291_v18 }
  0x26   :  { %v1658_v62 = vld [vmem:[#allocation2 + $0xa] sm:$0x3]  ;;  %10337 = vmatpush3.msra.mxu1 %v4314_v63  ;;  %v4313_v0 = vld [vmem:[%s14898_s3 + $0x110] sm:$0xff]  ;;  %v4311_v2 = vld [vmem:[%s14898_s3 + $0x100] sm:$0xff]  ;;  %7103 = vst.msk [vmem:[#allocation3] sm:$0x7f] %vm7102_vm6, %v10525_v3 }
  0x27   :  { %10338 = vmatprep.subr.mxu1 %v10525_v3  ;;  %v4312_v1 = vld [vmem:[%s14898_s3 + $0x108] sm:$0xff]  ;;  %v1268_v33 = vld [vmem:[#allocation2 + $0xb9] sm:$0x3]  ;;  %7105 = vst.msk [vmem:[#allocation3 + $0x10] sm:$0x7f] %vm7102_vm6, %v10525_v3  ;;  %vm7171_vm9 = vcmask 1043459  }
  0x28   :  { %10339 = vmatpush3.msra.mxu1 %v4313_v0  ;;  %v381_v4 = vld [vmem:[#allocation2 + $0x8] sm:$0x3]  ;;  %v629_v11 = vld [vmem:[#allocation2 + $0xa] sm:$0x3]  ;;  %7106 = vst.msk [vmem:[#allocation3 + $0x18] sm:$0x7f] %vm7102_vm6, %v10525_v3 }
  0x29   :  { %216 = vperm.xlu1 %10458, %v106_v31   ;;  %211 = vperm.xlu0 %10457, %v105_v32   ;;  %v425_v5 = vmul.f32 %v10745_v21, %v381_v4  ;;  %v505_v6 = vld [vmem:[#allocation2 + $0x9] sm:$0x3]  ;;  %v673_v29 = vmul.f32 %v10767_v28, %v629_v11  ;;  %v1144_v31 = vld [vmem:[#allocation2 + $0xb8] sm:$0x3]  ;;  %v10934_v4 = vld [vmem:[%s14896_s1 + $0x8] ss:$0 sm:$0xff] }
  0x2a   :  { %10340 = vmatprep.subr.mxu1 %v10525_v3  ;;  %v549_v10 = vmul.f32 %v10757_v25, %v505_v6  ;;  %v1267_v32 = vld [vmem:[#allocation2 + $0xb1] sm:$0xff]  ;;  %7107 = vst.msk [vmem:[#allocation3 + $0x20] sm:$0x7f] %vm7102_vm6, %v10525_v3  ;;  %7108 = vst.msk [vmem:[#allocation3 + $0x28] sm:$0x7f] %vm7102_vm6, %v10525_v3  ;;  %vm7173_vm10 = vcmask 1044484  }
  0x2b   :  { %10341 = vmatpush3.msra.mxu1 %v4312_v1  ;;  %v465_v9 = vadd.f32 %v10762_v26, %v425_v5  ;;  %7109 = vst.msk [vmem:[#allocation3 + $0x30] sm:$0x7f] %vm7102_vm6, %v10525_v3  ;;  %7110 = vst.msk [vmem:[#allocation3 + $0x38] sm:$0x7f] %vm7102_vm6, %v10525_v3  ;;  %vm7222_vm11 = vcmask 258048   ;;  %vm10031_vm12 = vcmask 25600  }
  0x2c   :  { %10342 = vmatprep.subr.mxu1 %v10525_v3  ;;  %7111 = vst.msk [vmem:[#allocation3 + $0x40] sm:$0x7f] %vm7102_vm6, %v10525_v3  ;;  %7112 = vst.msk [vmem:[#allocation3 + $0x48] sm:$0x7f] %vm7102_vm6, %v10525_v3 }
  0x2d   :  { %226 = vperm.xlu1 %10458, %v108_v38   ;;  %221 = vperm.xlu0 %10457, %v107_v39   ;;  %v589_v27 = vadd.f32 %v549_v10, %v465_v9  ;;  %7113 = vst.msk [vmem:[#allocation3 + $0x50] sm:$0x7f] %vm7102_vm6, %v10525_v3  ;;  %7114 = vst.msk [vmem:[#allocation3 + $0x58] sm:$0x7f] %vm7102_vm6, %v10525_v3 }
  0x2e   :  { %10343 = vmatpush3.msra.mxu1 %v4311_v2  ;;  %7115 = vst.msk [vmem:[#allocation3 + $0x60] sm:$0x7f] %vm7102_vm6, %v10525_v3  ;;  %7116 = vst.msk [vmem:[#allocation3 + $0x68] sm:$0x7f] %vm7102_vm6, %v10525_v3 }
  0x31   :  { %236 = vperm.xlu1 %10458, %v110_v41   ;;  %231 = vperm.xlu0 %10457, %v109_v42  }
  0x35   :  { %246 = vperm.xlu1 %10458, %v112_v43   ;;  %241 = vperm.xlu0 %10457, %v111_v44  }
  0x39   :  { %256 = vperm.xlu1 %10458, %v114_v45   ;;  %251 = vperm.xlu0 %10457, %v113_v46  }
  0x3d   :  { %266 = vperm.xlu1 %10458, %v116_v47   ;;  %261 = vperm.xlu0 %10457, %v115_v48   ;;  %v10898_v47 = vrot.slane %v10733_v17, %v1042_v24  ;;  %v10900_v48 = vadd.f32 %v673_v29, %v589_v27 }
  0x41   :  { %276 = vperm.xlu1 %10458, %v118_v49   ;;  %271 = vperm.xlu0 %10457, %v117_v50   ;;  %v10529_v50 = vmov 1983009808  }
  0x45   :  { %286 = vperm.xlu1 %10458, %v120_v51   ;;  %281 = vperm.xlu0 %10457, %v119_v52   ;;  %v10905_v51 = vunpack.c.l.s4 %v10529_v50 }
  0x49   :  { %296 = vperm.xlu1 %10458, %v122_v53   ;;  %291 = vperm.xlu0 %10457, %v121_v54   ;;  %v10911_v53 = vmul.f32 %v10890_v36, %v1144_v31 }
  0x4d   :  { %306 = vperm.xlu1 %10458, %v124_v55   ;;  %301 = vperm.xlu0 %10457, %v123_v56   ;;  %v10918_v55 = vmul.f32 %v10893_v37, %v1267_v32  ;;  %v10921_v56 = vmul.f32 %v10893_v37, %v1268_v33 }
  0x51   :  { %316 = vperm.xlu1 %10458, %v126_v57   ;;  %311 = vperm.xlu0 %10457, %v125_v58  }
  0x55   :  { %326 = vperm.xlu1 %10458, %v128_v59   ;;  %321 = vperm.xlu0 %10457, %v127_v60  }
  0x59   :  { %1977 = vrot.lane.b32.xlu0 %v1617_v30, %s10526_s25  ;;  %v1143_v30 = vld [vmem:[#allocation2 + $0xb0] sm:$0xff] }
  0x5a   :  { %v10908_v52 = vmul.f32 %v10890_v36, %v1143_v30 }
  0x5d   :  { %2137 = vrot.lane.b32.xlu0 %v628_v35, %s10527_s26  ;;  %v10887_v35 = vrot.slane %v10733_v17, %v918_v14 }
  0x61   :  { %1979 = vrot.lane.b32.xlu0 %v1618_v61, %s10526_s25 }
  0x65   :  { %2139 = vrot.lane.b32.xlu0 %v1658_v62, %s10527_s26 }
  0x7d   :  { %v142_v7 = vpop.permute.xlu1 %141  ;;  %v132_v8 = vpop.permute.xlu0 %131 }
  0x7e   :  { %333 = vst.msk [vmem:[#allocation2 + $0x21] sm:$0xff] %vm39_vm0, %v142_v7  ;;  %330 = vst.msk [vmem:[#allocation2 + $0x11] sm:$0xff] %vm39_vm0, %v132_v8 }
  0x81   :  { %v147_v19 = vpop.permute.xlu1 %146  ;;  %v137_v23 = vpop.permute.xlu0 %136 }
  0x82   :  { %334 = vst.msk [vmem:[#allocation2 + $0x29] sm:$0x3] %vm331_vm3, %v147_v19  ;;  %332 = vst.msk [vmem:[#allocation2 + $0x19] sm:$0x3] %vm331_vm3, %v137_v23 }
  0x85   :  { %v384_v38 = vld [vmem:[#allocation2 + $0x20] sm:$0xff]  ;;  %v382_v41 = vld [vmem:[#allocation2 + $0x10] sm:$0xff]  ;;  %v157_v42 = vpop.permute.xlu1 %156  ;;  %v152_v43 = vpop.permute.xlu0 %151 }
  0x86   :  { %v508_v39 = vld [vmem:[#allocation2 + $0x21] sm:$0xff]  ;;  %v428_v44 = vmul.f32 %v10745_v21, %v384_v38  ;;  %v506_v46 = vld [vmem:[#allocation2 + $0x11] sm:$0xff]  ;;  %336 = vst.msk [vmem:[#allocation2 + $0x39] sm:$0x3] %vm331_vm3, %v157_v42  ;;  %v426_v49 = vmul.f32 %v10745_v21, %v382_v41  ;;  %v10915_v54 = vmul.f32 %v10884_v34, %v384_v38  ;;  %v10927_v58 = vmul.f32 %v10890_v36, %v384_v38 }
  0x87   :  { %v552_v45 = vmul.f32 %v10757_v25, %v508_v39  ;;  %335 = vst.msk [vmem:[#allocation2 + $0x31] sm:$0xff] %vm39_vm0, %v152_v43  ;;  %v10924_v57 = vmul.f32 %v10887_v35, %v508_v39  ;;  %v550_v60 = vmul.f32 %v10757_v25, %v506_v46  ;;  %v10942_v11 = vmul.f32 %v10893_v37, %v508_v39 }
  0x88   :  { %v468_v17 = vadd.f32 %v10762_v26, %v428_v44  ;;  %v466_v59 = vadd.f32 %v10762_v26, %v426_v49  ;;  %v10945_v15 = vmul.f32 %v10884_v34, %v382_v41  ;;  %v10948_v18 = vmul.f32 %v10887_v35, %v506_v46 }
  0x89   :  { %v385_v61 = vld [vmem:[#allocation2 + $0x28] sm:$0x3]  ;;  %v167_v0 = vpop.permute.xlu1 %166  ;;  %v162_v1 = vpop.permute.xlu0 %161  ;;  %v633_v7 = vld [vmem:[#allocation2 + $0x2a] sm:$0x3]  ;;  %v383_v33 = vld [vmem:[#allocation2 + $0x18] sm:$0x3] }
  0x8a   :  { %v509_v62 = vld [vmem:[#allocation2 + $0x29] sm:$0x3]  ;;  %v592_v2 = vadd.f32 %v552_v45, %v468_v17  ;;  %v429_v5 = vmul.f32 %v10745_v21, %v385_v61  ;;  %338 = vst.msk [vmem:[#allocation2 + $0x49] sm:$0x3] %vm331_vm3, %v167_v0  ;;  %v590_v14 = vadd.f32 %v550_v60, %v466_v59  ;;  %v677_v29 = vmul.f32 %v10767_v28, %v633_v7  ;;  %v507_v38 = vld [vmem:[#allocation2 + $0x19] sm:$0x3] }
  0x8b   :  { %v632_v63 = vld [vmem:[#allocation2 + $0x22] sm:$0xff]  ;;  %v553_v6 = vmul.f32 %v10757_v25, %v509_v62  ;;  %337 = vst.msk [vmem:[#allocation2 + $0x41] sm:$0xff] %vm39_vm0, %v162_v1  ;;  %v1003_v19 = vld [vmem:[#allocation2 + $0x2a] sm:$0x3]  ;;  %v630_v44 = vld [vmem:[#allocation2 + $0x12] sm:$0xff]  ;;  %v427_v60 = vmul.f32 %v10745_v21, %v383_v33 }
  0x8c   :  { %v676_v8 = vmul.f32 %v10767_v28, %v632_v63  ;;  %v755_v9 = vld [vmem:[#allocation2 + $0x28] sm:$0x3]  ;;  %v469_v27 = vadd.f32 %v10762_v26, %v429_v5  ;;  %v1374_v32 = vld [vmem:[#allocation2 + $0x2a] sm:$0x3]  ;;  %v10961_v41 = vmul.f32 %v10898_v47, %v632_v63  ;;  %v10964_v42 = vmul.f32 %v10898_v47, %v1003_v19  ;;  %v631_v45 = vld [vmem:[#allocation2 + $0x1a] sm:$0x3] }
  0x8d   :  { %v879_v10 = vld [vmem:[#allocation2 + $0x29] sm:$0x3]  ;;  %v10953_v30 = vmul.f32 %v10884_v34, %v755_v9  ;;  %v753_v46 = vld [vmem:[#allocation2 + $0x18] sm:$0x3]  ;;  %v674_v61 = vmul.f32 %v10767_v28, %v630_v44  ;;  %v1001_v0 = vld [vmem:[#allocation2 + $0x1a] sm:$0x3]  ;;  %v10977_v1 = vmul.f32 %v10934_v4, %v632_v63  ;;  %v551_v5 = vmul.f32 %v10757_v25, %v507_v38 }
  0x8e   :  { %v1126_v23 = vld [vmem:[#allocation2 + $0x28] sm:$0x3]  ;;  %v10956_v31 = vmul.f32 %v10887_v35, %v879_v10  ;;  %v10958_v39 = vadd.f32 %v676_v8, %v592_v2  ;;  %v593_v17 = vadd.f32 %v553_v6, %v469_v27  ;;  %v877_v62 = vld [vmem:[#allocation2 + $0x19] sm:$0x3]  ;;  %v10980_v2 = vmul.f32 %v10934_v4, %v1374_v32  ;;  %v386_v27 = vld [vmem:[#allocation2 + $0x30] sm:$0xff] }
  0x8f   :  { %v1250_v24 = vld [vmem:[#allocation2 + $0x29] sm:$0x3]  ;;  %v10967_v43 = vmul.f32 %v10890_v36, %v1126_v23  ;;  %v797_v6 = vmul.f32 %v10884_v34, %v753_v46  ;;  %v511_v7 = vld [vmem:[#allocation2 + $0x39] sm:$0x3]  ;;  %v467_v9 = vadd.f32 %v10762_v26, %v427_v60  ;;  %v675_v10 = vmul.f32 %v10767_v28, %v631_v45 }
  0x90   :  { %v10970_v59 = vmul.f32 %v10893_v37, %v1250_v24  ;;  %v635_v8 = vld [vmem:[#allocation2 + $0x3a] sm:$0x3]  ;;  %v714_v19 = vadd.f32 %v674_v61, %v590_v14  ;;  %v921_v23 = vmul.f32 %v10887_v35, %v877_v62  ;;  %v717_v63 = vadd.f32 %v677_v29, %v593_v17  ;;  %v510_v29 = vld [vmem:[#allocation2 + $0x31] sm:$0xff] }
  0x91   :  { %v881_v24 = vld [vmem:[#allocation2 + $0x39] sm:$0x3]  ;;  %v837_v33 = vadd.f32 %v797_v6, %v10900_v48  ;;  %v10989_v32 = vmul.f32 %v10898_v47, %v630_v44  ;;  %v1045_v38 = vmul.f32 %v10898_v47, %v1001_v0  ;;  %v591_v20 = vadd.f32 %v551_v5, %v467_v9 }
  0x92   :  { %v1005_v46 = vld [vmem:[#allocation2 + $0x3a] sm:$0x3]  ;;  %v838_v14 = vadd.f32 %v10915_v54, %v714_v19  ;;  %v555_v45 = vmul.f32 %v10757_v25, %v511_v7  ;;  %v10995_v61 = vmul.f32 %v10767_v28, %v635_v8  ;;  %v925_v44 = vmul.f32 %v10887_v35, %v881_v24  ;;  %v757_v5 = vld [vmem:[#allocation2 + $0x38] sm:$0x3] }
  0x93   :  { %v961_v48 = vadd.f32 %v921_v23, %v837_v33  ;;  %v1376_v17 = vld [vmem:[#allocation2 + $0x3a] sm:$0x3]  ;;  %v430_v62 = vmul.f32 %v10745_v21, %v386_v27  ;;  %v715_v54 = vadd.f32 %v675_v10, %v591_v20  ;;  %v11004_v7 = vmul.f32 %v10898_v47, %v1005_v46  ;;  %v634_v10 = vld [vmem:[#allocation2 + $0x32] sm:$0xff] }
  0x94   :  { %v177_v49 = vpop.permute.xlu1 %176  ;;  %v172_v50 = vpop.permute.xlu0 %171  ;;  %v962_v6 = vadd.f32 %v10924_v57, %v838_v14  ;;  %v554_v19 = vmul.f32 %v10757_v25, %v510_v29  ;;  %v800_v23 = vmul.f32 %v10884_v34, %v386_v27  ;;  %v1420_v20 = vmul.f32 %v10934_v4, %v1376_v17 }
  0x95   :  { %340 = vst.msk [vmem:[#allocation2 + $0x59] sm:$0x3] %vm331_vm3, %v177_v49  ;;  %v1252_v49 = vld [vmem:[#allocation2 + $0x39] sm:$0x3]  ;;  %v470_v9 = vadd.f32 %v10762_v26, %v430_v62  ;;  %v801_v46 = vmul.f32 %v10884_v34, %v757_v5  ;;  %v924_v14 = vmul.f32 %v10887_v35, %v510_v29 }
  0x96   :  { %339 = vst.msk [vmem:[#allocation2 + $0x51] sm:$0xff] %vm39_vm0, %v172_v50  ;;  %v387_v50 = vld [vmem:[#allocation2 + $0x38] sm:$0x3]  ;;  %v1296_v8 = vmul.f32 %v10893_v37, %v1252_v49  ;;  %v1086_v62 = vadd.f32 %v10961_v41, %v962_v6  ;;  %v637_v41 = vld [vmem:[#allocation2 + $0x4a] sm:$0x3] }
  0x97   :  { %v431_v0 = vmul.f32 %v10745_v21, %v387_v50  ;;  %v839_v50 = vadd.f32 %v10953_v30, %v715_v54  ;;  %v594_v49 = vadd.f32 %v554_v19, %v470_v9  ;;  %v841_v17 = vadd.f32 %v801_v46, %v717_v63  ;;  %v513_v63 = vld [vmem:[#allocation2 + $0x49] sm:$0x3]  ;;  %v388_v46 = vld [vmem:[#allocation2 + $0x40] sm:$0xff] }
  0x98   :  { %v187_v12 = vpop.permute.xlu1 %186  ;;  %v182_v60 = vpop.permute.xlu0 %181  ;;  %v678_v54 = vmul.f32 %v10767_v28, %v634_v10  ;;  %v883_v6 = vld [vmem:[#allocation2 + $0x49] sm:$0x3] }
  0x99   :  { %342 = vst.msk [vmem:[#allocation2 + $0x69] sm:$0x3] %vm331_vm3, %v187_v12  ;;  %v1085_v12 = vadd.f32 %v1045_v38, %v961_v48  ;;  %v471_v57 = vadd.f32 %v10762_v26, %v431_v0  ;;  %v1128_v48 = vld [vmem:[#allocation2 + $0x38] sm:$0x3]  ;;  %v963_v30 = vadd.f32 %v10956_v31, %v839_v50  ;;  %v1171_v0 = vmul.f32 %v10890_v36, %v386_v27 }
  0x9a   :  { %341 = vst.msk [vmem:[#allocation2 + $0x61] sm:$0xff] %vm39_vm0, %v182_v60  ;;  %v840_v60 = vadd.f32 %v800_v23, %v10958_v39  ;;  %v1172_v19 = vmul.f32 %v10890_v36, %v1128_v48  ;;  %v1295_v31 = vmul.f32 %v10893_v37, %v510_v29  ;;  %v965_v50 = vadd.f32 %v925_v44, %v841_v17  ;;  %v1007_v29 = vld [vmem:[#allocation2 + $0x4a] sm:$0x3] }
  0x9b   :  { %v1210_v38 = vadd.f32 %v10967_v43, %v1085_v12  ;;  %v1048_v43 = vmul.f32 %v10898_v47, %v634_v10  ;;  %v1087_v39 = vadd.f32 %v10964_v42, %v963_v30  ;;  %v1211_v23 = vadd.f32 %v1171_v0, %v1086_v62  ;;  %v512_v30 = vld [vmem:[#allocation2 + $0x41] sm:$0xff]  ;;  %v1254_v17 = vld [vmem:[#allocation2 + $0x49] sm:$0x3] }
  0x9c   :  { %v197_v24 = vpop.permute.xlu1 %196  ;;  %v192_v33 = vpop.permute.xlu0 %191  ;;  %v595_v27 = vadd.f32 %v555_v45, %v471_v57  ;;  %v1419_v48 = vmul.f32 %v10934_v4, %v634_v10  ;;  %v557_v0 = vmul.f32 %v10757_v25, %v513_v63  ;;  %v759_v10 = vld [vmem:[#allocation2 + $0x48] sm:$0x3] }
  0x9d   :  { %344 = vst.msk [vmem:[#allocation2 + $0x79] sm:$0x3] %vm331_vm3, %v197_v24  ;;  %v1334_v5 = vadd.f32 %v10970_v59, %v1210_v38  ;;  %v964_v24 = vadd.f32 %v924_v14, %v840_v60  ;;  %v389_v38 = vld [vmem:[#allocation2 + $0x48] sm:$0x3]  ;;  %v1212_v60 = vadd.f32 %v1172_v19, %v1087_v39  ;;  %v1335_v14 = vadd.f32 %v1295_v31, %v1211_v23 }
  0x9e   :  { %343 = vst.msk [vmem:[#allocation2 + $0x71] sm:$0xff] %vm39_vm0, %v192_v33  ;;  %v718_v33 = vadd.f32 %v678_v54, %v594_v49  ;;  %v433_v54 = vmul.f32 %v10745_v21, %v389_v38  ;;  %v802_v39 = vmul.f32 %v10884_v34, %v388_v46  ;;  %v803_v38 = vmul.f32 %v10884_v34, %v759_v10 }
  0x9f   :  { %v1458_v59 = vadd.f32 %v10980_v2, %v1334_v5  ;;  %v1088_v42 = vadd.f32 %v1048_v43, %v964_v24  ;;  %v927_v2 = vmul.f32 %v10887_v35, %v883_v6  ;;  %v1336_v44 = vadd.f32 %v1296_v8, %v1212_v60 }
  0xa0   :  { %v207_v12 = vpop.permute.xlu1 %206  ;;  %v202_v9 = vpop.permute.xlu0 %201  ;;  %v1459_v49 = vadd.f32 %v1419_v48, %v1335_v14  ;;  %v432_v5 = vmul.f32 %v10745_v21, %v388_v46  ;;  %v11043_v24 = vmul.f32 %v10898_v47, %v1007_v29  ;;  %v556_v43 = vmul.f32 %v10757_v25, %v512_v30 }
  0xa1   :  { %346 = vst.msk [vmem:[#allocation2 + $0x89] sm:$0x3] %vm331_vm3, %v207_v12  ;;  %v1498_v62 = vmax.f32 %v1458_v59, 0.0  ;;  %v11034_v12 = vmul.f32 %v10767_v28, %v637_v41  ;;  %v719_v8 = vadd.f32 %v10995_v61, %v595_v27  ;;  %v1460_v19 = vadd.f32 %v1420_v20, %v1336_v44  ;;  %v1130_v41 = vld [vmem:[#allocation2 + $0x48] sm:$0x3] }
  0xa2   :  { %345 = vst.msk [vmem:[#allocation2 + $0x81] sm:$0xff] %vm39_vm0, %v202_v9  ;;  %v636_v9 = vld [vmem:[#allocation2 + $0x42] sm:$0xff]  ;;  %v1499_v23 = vmax.f32 %v1459_v49, 0.0  ;;  %v472_v31 = vadd.f32 %v10762_v26, %v432_v5  ;;  %v473_v63 = vadd.f32 %v10762_v26, %v433_v54  ;;  %v1298_v6 = vmul.f32 %v10893_v37, %v1254_v17  ;;  %v1378_v59 = vld [vmem:[#allocation2 + $0x4a] sm:$0x3] }
  0xa3   :  { %1538 = vst.msk [vmem:[#allocation2 + $0x19] sm:$0x3] %vm331_vm3, %v1498_v62  ;;  %v842_v60 = vadd.f32 %v802_v39, %v718_v33  ;;  %v926_v14 = vmul.f32 %v10887_v35, %v512_v30  ;;  %v1500_v61 = vmax.f32 %v1460_v19, 0.0  ;;  %v680_v27 = vmul.f32 %v10767_v28, %v636_v9  ;;  %v515_v49 = vld [vmem:[#allocation2 + $0x59] sm:$0x3] }
  0xa4   :  { %v217_v45 = vpop.permute.xlu1 %216  ;;  %v212_v57 = vpop.permute.xlu0 %211  ;;  %1539 = vst.msk [vmem:[#allocation2 + $0x21] sm:$0xff] %vm39_vm0, %v1499_v23  ;;  %v596_v20 = vadd.f32 %v556_v43, %v472_v31  ;;  %v1089_v62 = vadd.f32 %v11004_v7, %v965_v50  ;;  %v1173_v33 = vmul.f32 %v10890_v36, %v388_v46  ;;  %v1174_v44 = vmul.f32 %v10890_v36, %v1130_v41  ;;  %v639_v17 = vld [vmem:[#allocation2 + $0x5a] sm:$0x3]  ;;  %v390_v43 = vld [vmem:[#allocation2 + $0x50] sm:$0xff]  ;;  %v391_v31 = vld [vmem:[#allocation2 + $0x58] sm:$0x3] }
  0xa5   :  { %348 = vst.msk [vmem:[#allocation2 + $0x99] sm:$0x3] %vm331_vm3, %v217_v45  ;;  %v843_v45 = vadd.f32 %v803_v38, %v719_v8  ;;  %1540 = vst.msk [vmem:[#allocation2 + $0x29] sm:$0x3] %vm331_vm3, %v1500_v61  ;;  %v1422_v5 = vmul.f32 %v10934_v4, %v1378_v59  ;;  %v597_v54 = vadd.f32 %v557_v0, %v473_v63  ;;  %v885_v50 = vld [vmem:[#allocation2 + $0x59] sm:$0x3] }
  0xa6   :  { %347 = vst.msk [vmem:[#allocation2 + $0x91] sm:$0xff] %vm39_vm0, %v212_v57  ;;  %v966_v57 = vadd.f32 %v926_v14, %v842_v60  ;;  %v720_v10 = vadd.f32 %v680_v27, %v596_v20  ;;  %v1050_v7 = vmul.f32 %v10898_v47, %v636_v9  ;;  %v1213_v39 = vadd.f32 %v1173_v33, %v1088_v42  ;;  %v1009_v23 = vld [vmem:[#allocation2 + $0x5a] sm:$0x3]  ;;  %v514_v41 = vld [vmem:[#allocation2 + $0x51] sm:$0xff] }
  0xa7   :  { %v1214_v19 = vadd.f32 %v1174_v44, %v1089_v62  ;;  %v1297_v8 = vmul.f32 %v10893_v37, %v512_v30  ;;  %v1421_v46 = vmul.f32 %v10934_v4, %v636_v9  ;;  %v967_v14 = vadd.f32 %v927_v2, %v843_v45  ;;  %v1256_v59 = vld [vmem:[#allocation2 + $0x59] sm:$0x3] }
  0xa8   :  { %v227_v48 = vpop.permute.xlu1 %226  ;;  %v222_v29 = vpop.permute.xlu0 %221  ;;  %v559_v0 = vmul.f32 %v10757_v25, %v515_v49  ;;  %v11067_v63 = vmul.f32 %v10767_v28, %v639_v17  ;;  %v929_v9 = vmul.f32 %v10887_v35, %v885_v50  ;;  %v761_v61 = vld [vmem:[#allocation2 + $0x58] sm:$0x3]  ;;  %v11074_v2 = vmul.f32 %v10898_v47, %v1009_v23  ;;  %v1380_v50 = vld [vmem:[#allocation2 + $0x5a] sm:$0x3] }
  0xa9   :  { %350 = vst.msk [vmem:[#allocation2 + $0xa9] sm:$0x3] %vm331_vm3, %v227_v48  ;;  %v1090_v48 = vadd.f32 %v1050_v7, %v966_v57  ;;  %v1337_v42 = vadd.f32 %v1297_v8, %v1213_v39  ;;  %v1338_v30 = vadd.f32 %v1298_v6, %v1214_v19  ;;  %v435_v20 = vmul.f32 %v10745_v21, %v391_v31  ;;  %v638_v6 = vld [vmem:[#allocation2 + $0x52] sm:$0xff] }
  0xaa   :  { %349 = vst.msk [vmem:[#allocation2 + $0xa1] sm:$0xff] %vm39_vm0, %v222_v29  ;;  %v434_v29 = vmul.f32 %v10745_v21, %v390_v43  ;;  %v558_v27 = vmul.f32 %v10757_v25, %v514_v41  ;;  %v721_v62 = vadd.f32 %v11034_v12, %v597_v54  ;;  %v804_v44 = vmul.f32 %v10884_v34, %v390_v43  ;;  %v1132_v23 = vld [vmem:[#allocation2 + $0x58] sm:$0x3] }
  0xab   :  { %v1461_v45 = vadd.f32 %v1421_v46, %v1337_v42  ;;  %v1462_v57 = vadd.f32 %v1422_v5, %v1338_v30  ;;  %v1300_v7 = vmul.f32 %v10893_v37, %v1256_v59  ;;  %v475_v39 = vadd.f32 %v10762_v26, %v435_v20  ;;  %v517_v30 = vld [vmem:[#allocation2 + $0x69] sm:$0x3] }
  0xac   :  { %v237_v38 = vpop.permute.xlu1 %236  ;;  %v232_v60 = vpop.permute.xlu0 %231  ;;  %v474_v33 = vadd.f32 %v10762_v26, %v434_v29  ;;  %v805_v19 = vmul.f32 %v10884_v34, %v761_v61  ;;  %v928_v8 = vmul.f32 %v10887_v35, %v514_v41  ;;  %v844_v46 = vadd.f32 %v804_v44, %v720_v10  ;;  %v641_v10 = vld [vmem:[#allocation2 + $0x6a] sm:$0x3]  ;;  %v392_v44 = vld [vmem:[#allocation2 + $0x60] sm:$0xff] }
  0xad   :  { %352 = vst.msk [vmem:[#allocation2 + $0xd9] sm:$0x3] %vm331_vm3, %v237_v38  ;;  %v1501_v12 = vmax.f32 %v1461_v45, 0.0  ;;  %v1502_v5 = vmax.f32 %v1462_v57, 0.0  ;;  %v682_v31 = vmul.f32 %v10767_v28, %v638_v6  ;;  %v1175_v42 = vmul.f32 %v10890_v36, %v390_v43 }
  0xae   :  { %351 = vst.msk [vmem:[#allocation2 + $0xd1] sm:$0xff] %vm39_vm0, %v232_v60  ;;  %v598_v54 = vadd.f32 %v558_v27, %v474_v33  ;;  %v845_v38 = vadd.f32 %v805_v19, %v721_v62  ;;  %v1091_v60 = vadd.f32 %v11043_v24, %v967_v14  ;;  %v1424_v59 = vmul.f32 %v10934_v4, %v1380_v50  ;;  %v887_v27 = vld [vmem:[#allocation2 + $0x69] sm:$0x3] }
  0xaf   :  { %1541 = vst.msk [vmem:[#allocation2 + $0x31] sm:$0xff] %vm39_vm0, %v1501_v12  ;;  %v968_v29 = vadd.f32 %v928_v8, %v844_v46  ;;  %v1052_v61 = vmul.f32 %v10898_v47, %v638_v6  ;;  %v1176_v20 = vmul.f32 %v10890_v36, %v1132_v23  ;;  %v599_v57 = vadd.f32 %v559_v0, %v475_v39  ;;  %v1011_v33 = vld [vmem:[#allocation2 + $0x6a] sm:$0x3]  ;;  %v516_v23 = vld [vmem:[#allocation2 + $0x61] sm:$0xff] }
  0xb0   :  { %v247_v49 = vpop.permute.xlu1 %246  ;;  %v242_v17 = vpop.permute.xlu0 %241  ;;  %1542 = vst.msk [vmem:[#allocation2 + $0x39] sm:$0x3] %vm331_vm3, %v1502_v5  ;;  %v722_v24 = vadd.f32 %v682_v31, %v598_v54  ;;  %v1215_v14 = vadd.f32 %v1175_v42, %v1090_v48  ;;  %v1299_v43 = vmul.f32 %v10893_v37, %v514_v41  ;;  %v1423_v19 = vmul.f32 %v10934_v4, %v638_v6  ;;  %v763_v39 = vld [vmem:[#allocation2 + $0x68] sm:$0x3] }
  0xb1   :  { %354 = vst.msk [vmem:[#allocation2 + $0xe9] sm:$0x3] %vm331_vm3, %v247_v49  ;;  %v393_v49 = vld [vmem:[#allocation2 + $0x68] sm:$0x3]  ;;  %v1216_v50 = vadd.f32 %v1176_v20, %v1091_v60  ;;  %v561_v8 = vmul.f32 %v10757_v25, %v517_v30  ;;  %v1092_v12 = vadd.f32 %v1052_v61, %v968_v29  ;;  %v11101_v48 = vmul.f32 %v10767_v28, %v641_v10 }
  0xb2   :  { %353 = vst.msk [vmem:[#allocation2 + $0xe1] sm:$0xff] %vm39_vm0, %v242_v17  ;;  %v969_v17 = vadd.f32 %v929_v9, %v845_v38  ;;  %v1339_v0 = vadd.f32 %v1299_v43, %v1215_v14  ;;  %v931_v41 = vmul.f32 %v10887_v35, %v887_v27  ;;  %v11105_v54 = vmul.f32 %v10898_v47, %v1011_v33  ;;  %v1258_v46 = vld [vmem:[#allocation2 + $0x69] sm:$0x3] }
  0xb3   :  { %v1340_v5 = vadd.f32 %v1300_v7, %v1216_v50  ;;  %v436_v9 = vmul.f32 %v10745_v21, %v392_v44  ;;  %v437_v6 = vmul.f32 %v10745_v21, %v393_v49  ;;  %v560_v42 = vmul.f32 %v10757_v25, %v516_v23  ;;  %v640_v30 = vld [vmem:[#allocation2 + $0x62] sm:$0xff]  ;;  %v1382_v43 = vld [vmem:[#allocation2 + $0x6a] sm:$0x3] }
  0xb4   :  { %v257_v45 = vpop.permute.xlu1 %256  ;;  %v252_v62 = vpop.permute.xlu0 %251  ;;  %v1463_v60 = vadd.f32 %v1423_v19, %v1339_v0  ;;  %v723_v29 = vadd.f32 %v11067_v63, %v599_v57  ;;  %v806_v61 = vmul.f32 %v10884_v34, %v392_v44  ;;  %v807_v27 = vmul.f32 %v10884_v34, %v763_v39 }
  0xb5   :  { %356 = vst.msk [vmem:[#allocation2 + $0xf9] sm:$0x3] %vm331_vm3, %v257_v45  ;;  %v1464_v7 = vadd.f32 %v1424_v59, %v1340_v5  ;;  %v476_v20 = vadd.f32 %v10762_v26, %v436_v9  ;;  %v477_v10 = vadd.f32 %v10762_v26, %v437_v6  ;;  %v1134_v45 = vld [vmem:[#allocation2 + $0x68] sm:$0x3]  ;;  %v1302_v14 = vmul.f32 %v10893_v37, %v1258_v46  ;;  %v519_v6 = vld [vmem:[#allocation2 + $0x79] sm:$0x3] }
  0xb6   :  { %355 = vst.msk [vmem:[#allocation2 + $0xf1] sm:$0xff] %vm39_vm0, %v252_v62  ;;  %v1503_v62 = vmax.f32 %v1463_v60, 0.0  ;;  %v846_v33 = vadd.f32 %v806_v61, %v722_v24  ;;  %v930_v63 = vmul.f32 %v10887_v35, %v516_v23  ;;  %v684_v50 = vmul.f32 %v10767_v28, %v640_v30 }
  0xb7   :  { %v1504_v57 = vmax.f32 %v1464_v7, 0.0  ;;  %v600_v49 = vadd.f32 %v560_v42, %v476_v20  ;;  %v847_v19 = vadd.f32 %v807_v27, %v723_v29  ;;  %v1093_v39 = vadd.f32 %v11074_v2, %v969_v17  ;;  %v643_v42 = vld [vmem:[#allocation2 + $0x7a] sm:$0x3]  ;;  %v394_v20 = vld [vmem:[#allocation2 + $0x70] sm:$0xff]  ;;  %v395_v27 = vld [vmem:[#allocation2 + $0x78] sm:$0x3] }
  0xb8   :  { %v267_v31 = vpop.permute.xlu1 %266  ;;  %v262_v38 = vpop.permute.xlu0 %261  ;;  %1543 = vst.msk [vmem:[#allocation2 + $0x41] sm:$0xff] %vm39_vm0, %v1503_v62  ;;  %v970_v5 = vadd.f32 %v930_v63, %v846_v33  ;;  %v1177_v9 = vmul.f32 %v10890_v36, %v392_v44  ;;  %v1178_v46 = vmul.f32 %v10890_v36, %v1134_v45  ;;  %v1426_v24 = vmul.f32 %v10934_v4, %v1382_v43  ;;  %v889_v29 = vld [vmem:[#allocation2 + $0x79] sm:$0x3]  ;;  %v11136_v43 = vld [vmem:[#allocation2 + $0x71] sm:$0xff] }
  0xb9   :  { %358 = vst.msk [vmem:[#allocation2 + $0x109] sm:$0x3] %vm331_vm3, %v267_v31  ;;  %1544 = vst.msk [vmem:[#allocation2 + $0x49] sm:$0x3] %vm331_vm3, %v1504_v57  ;;  %v601_v31 = vadd.f32 %v561_v8, %v477_v10  ;;  %v1054_v60 = vmul.f32 %v10898_v47, %v640_v30  ;;  %v1301_v44 = vmul.f32 %v10893_v37, %v516_v23  ;;  %v1013_v7 = vld [vmem:[#allocation2 + $0x7a] sm:$0x3] }
  0xba   :  { %357 = vst.msk [vmem:[#allocation2 + $0x101] sm:$0xff] %vm39_vm0, %v262_v38  ;;  %v724_v38 = vadd.f32 %v684_v50, %v600_v49  ;;  %v1217_v2 = vadd.f32 %v1177_v9, %v1092_v12  ;;  %v1218_v17 = vadd.f32 %v1178_v46, %v1093_v39  ;;  %v836_v61 = vadd.f32 %v10945_v15, %v10785_v40  ;;  %v765_v50 = vld [vmem:[#allocation2 + $0x78] sm:$0x3] }
  0xbb   :  { %v971_v45 = vadd.f32 %v931_v41, %v847_v19  ;;  %v11132_v62 = vadd.f32 %v1054_v60, %v970_v5  ;;  %v1425_v8 = vmul.f32 %v10934_v4, %v640_v30  ;;  %v563_v10 = vmul.f32 %v10757_v25, %v519_v6  ;;  %v642_v9 = vld [vmem:[#allocation2 + $0x72] sm:$0xff] }
  0xbc   :  { %v277_v59 = vpop.permute.xlu1 %276  ;;  %v272_v0 = vpop.permute.xlu0 %271  ;;  %v1341_v63 = vadd.f32 %v1301_v44, %v1217_v2  ;;  %v1342_v57 = vadd.f32 %v1302_v14, %v1218_v17  ;;  %v960_v23 = vadd.f32 %v10948_v18, %v836_v61  ;;  %v11140_v40 = vmul.f32 %v10767_v28, %v643_v42  ;;  %v1136_v44 = vld [vmem:[#allocation2 + $0x78] sm:$0x3] }
  0xbd   :  { %360 = vst.msk [vmem:[#allocation2 + $0x119] sm:$0x3] %vm331_vm3, %v277_v59  ;;  %v933_v15 = vmul.f32 %v10887_v35, %v889_v29  ;;  %v11146_v41 = vmul.f32 %v10898_v47, %v1013_v7  ;;  %v438_v30 = vmul.f32 %v10745_v21, %v394_v20  ;;  %v439_v49 = vmul.f32 %v10745_v21, %v395_v27  ;;  %v1260_v59 = vld [vmem:[#allocation2 + $0x79] sm:$0x3] }
  0xbe   :  { %359 = vst.msk [vmem:[#allocation2 + $0x111] sm:$0xff] %vm39_vm0, %v272_v0  ;;  %v1465_v14 = vadd.f32 %v1425_v8, %v1341_v63  ;;  %v1466_v19 = vadd.f32 %v1426_v24, %v1342_v57  ;;  %v1084_v18 = vadd.f32 %v10989_v32, %v960_v23  ;;  %v562_v0 = vmul.f32 %v10757_v25, %v11136_v43  ;;  %v1384_v32 = vld [vmem:[#allocation2 + $0x7a] sm:$0x3]  ;;  %v521_v57 = vld [vmem:[#allocation2 + $0x89] sm:$0x3] }
  0xbf   :  { %v478_v5 = vadd.f32 %v10762_v26, %v438_v30  ;;  %v479_v39 = vadd.f32 %v10762_v26, %v439_v49  ;;  %v725_v46 = vadd.f32 %v11101_v48, %v601_v31  ;;  %v808_v6 = vmul.f32 %v10884_v34, %v394_v20 }
  0xc0   :  { %v287_v33 = vpop.permute.xlu1 %286  ;;  %v282_v12 = vpop.permute.xlu0 %281  ;;  %v1505_v29 = vmax.f32 %v1465_v14, 0.0  ;;  %v1506_v2 = vmax.f32 %v1466_v19, 0.0  ;;  %v1209_v24 = vadd.f32 %v10927_v58, %v1084_v18  ;;  %v809_v17 = vmul.f32 %v10884_v34, %v765_v50  ;;  %v645_v19 = vld [vmem:[#allocation2 + $0x8a] sm:$0x3] }
  0xc1   :  { %362 = vst.msk [vmem:[#allocation2 + $0x129] sm:$0x3] %vm331_vm3, %v287_v33  ;;  %v1304_v26 = vmul.f32 %v10893_v37, %v1260_v59  ;;  %v602_v61 = vadd.f32 %v562_v0, %v478_v5  ;;  %v848_v48 = vadd.f32 %v808_v6, %v724_v38  ;;  %v932_v31 = vmul.f32 %v10887_v35, %v11136_v43  ;;  %v891_v18 = vld [vmem:[#allocation2 + $0x89] sm:$0x3]  ;;  %v396_v59 = vld [vmem:[#allocation2 + $0x80] sm:$0xff] }
  0xc2   :  { %361 = vst.msk [vmem:[#allocation2 + $0x121] sm:$0xff] %vm39_vm0, %v282_v12  ;;  %1545 = vst.msk [vmem:[#allocation2 + $0x51] sm:$0xff] %vm39_vm0, %v1505_v29  ;;  %v1333_v58 = vadd.f32 %v10942_v11, %v1209_v24  ;;  %v686_v7 = vmul.f32 %v10767_v28, %v642_v9  ;;  %v849_v27 = vadd.f32 %v809_v17, %v725_v46  ;;  %v1015_v5 = vld [vmem:[#allocation2 + $0x8a] sm:$0x3]  ;;  %v767_v24 = vld [vmem:[#allocation2 + $0x88] sm:$0x3] }
  0xc3   :  { %1546 = vst.msk [vmem:[#allocation2 + $0x59] sm:$0x3] %vm331_vm3, %v1506_v2  ;;  %v1095_v8 = vadd.f32 %v11105_v54, %v971_v45  ;;  %v1428_v33 = vmul.f32 %v10934_v4, %v1384_v32  ;;  %v972_v12 = vadd.f32 %v932_v31, %v848_v48  ;;  %v1179_v63 = vmul.f32 %v10890_v36, %v394_v20  ;;  %v644_v31 = vld [vmem:[#allocation2 + $0x82] sm:$0xff] }
  0xc4   :  { %v297_v60 = vpop.permute.xlu1 %296  ;;  %v292_v42 = vpop.permute.xlu0 %291  ;;  %v1180_v38 = vmul.f32 %v10890_v36, %v1136_v44  ;;  %v1457_v49 = vadd.f32 %v10977_v1, %v1333_v58  ;;  %v603_v50 = vadd.f32 %v563_v10, %v479_v39  ;;  %v726_v14 = vadd.f32 %v686_v7, %v602_v61  ;;  %v1262_v1 = vld [vmem:[#allocation2 + $0x89] sm:$0x3] }
  0xc5   :  { %364 = vst.msk [vmem:[#allocation2 + $0x139] sm:$0x3] %vm331_vm3, %v297_v60  ;;  %v1056_v11 = vmul.f32 %v10898_v47, %v642_v9  ;;  %v973_v54 = vadd.f32 %v933_v15, %v849_v27  ;;  %v1219_v20 = vadd.f32 %v1179_v63, %v11132_v62  ;;  %v1303_v0 = vmul.f32 %v10893_v37, %v11136_v43  ;;  %v397_v10 = vld [vmem:[#allocation2 + $0x88] sm:$0x3]  ;;  %v1386_v27 = vld [vmem:[#allocation2 + $0x8a] sm:$0x3] }
  0xc6   :  { %363 = vst.msk [vmem:[#allocation2 + $0x131] sm:$0xff] %vm39_vm0, %v292_v42  ;;  %v1220_v45 = vadd.f32 %v1180_v38, %v1095_v8  ;;  %v1497_v39 = vmax.f32 %v1457_v49, 0.0  ;;  %v1427_v6 = vmul.f32 %v10934_v4, %v642_v9  ;;  %v565_v60 = vmul.f32 %v10757_v25, %v521_v57  ;;  %v520_v15 = vld [vmem:[#allocation2 + $0x81] sm:$0xff]  ;;  %v11199_v8 = vld [vmem:[%s14897_s2] ss:$0 sm:$0xff] }
  0xc7   :  { %v1096_v46 = vadd.f32 %v1056_v11, %v972_v12  ;;  %v1343_v42 = vadd.f32 %v1303_v0, %v1219_v20  ;;  %v11182_v2 = vmul.f32 %v10767_v28, %v645_v19  ;;  %v935_v62 = vmul.f32 %v10887_v35, %v891_v18 }
  0xc8   :  { %v307_v23 = vpop.permute.xlu1 %306  ;;  %v302_v30 = vpop.permute.xlu0 %301  ;;  %v1344_v29 = vadd.f32 %v1304_v26, %v1220_v45  ;;  %1537 = vst.msk [vmem:[#allocation2 + $0x11] sm:$0xff] %vm39_vm0, %v1497_v39  ;;  %v11187_v17 = vmul.f32 %v10898_v47, %v1015_v5  ;;  %v1306_v9 = vmul.f32 %v10893_v37, %v1262_v1  ;;  %v440_v44 = vmul.f32 %v10745_v21, %v396_v59  ;;  %v647_v39 = vld [vmem:[#allocation2 + $0x9a] sm:$0x3] }
  0xc9   :  { %366 = vst.msk [vmem:[#allocation2 + $0x149] sm:$0x3] %vm331_vm3, %v307_v23  ;;  %v441_v26 = vmul.f32 %v10745_v21, %v397_v10  ;;  %v1467_v61 = vadd.f32 %v1427_v6, %v1343_v42  ;;  %v727_v58 = vadd.f32 %v11140_v40, %v603_v50  ;;  %v810_v7 = vmul.f32 %v10884_v34, %v396_v59  ;;  %v523_v10 = vld [vmem:[#allocation2 + $0x99] sm:$0x3] }
  0xca   :  { %365 = vst.msk [vmem:[#allocation2 + $0x141] sm:$0xff] %vm39_vm0, %v302_v30  ;;  %v1468_v48 = vadd.f32 %v1428_v33, %v1344_v29  ;;  %v480_v12 = vadd.f32 %v11199_v8, %v440_v44  ;;  %v564_v38 = vmul.f32 %v10757_v25, %v520_v15  ;;  %v811_v57 = vmul.f32 %v10884_v34, %v767_v24  ;;  %v1138_v33 = vld [vmem:[#allocation2 + $0x88] sm:$0x3]  ;;  %v893_v6 = vld [vmem:[#allocation2 + $0x99] sm:$0x3] }
  0xcb   :  { %v481_v63 = vadd.f32 %v11199_v8, %v441_v26  ;;  %v1507_v23 = vmax.f32 %v1467_v61, 0.0  ;;  %v850_v40 = vadd.f32 %v810_v7, %v726_v14  ;;  %v934_v49 = vmul.f32 %v10887_v35, %v520_v15  ;;  %v1017_v24 = vld [vmem:[#allocation2 + $0x9a] sm:$0x3] }
  0xcc   :  { %v317_v32 = vpop.permute.xlu1 %316  ;;  %v312_v43 = vpop.permute.xlu0 %311  ;;  %v1508_v30 = vmax.f32 %v1468_v48, 0.0  ;;  %v604_v19 = vadd.f32 %v564_v38, %v480_v12  ;;  %v688_v18 = vmul.f32 %v10767_v28, %v644_v31  ;;  %v851_v20 = vadd.f32 %v811_v57, %v727_v58  ;;  %v646_v57 = vld [vmem:[#allocation2 + $0x92] sm:$0xff] }
  0xcd   :  { %368 = vst.msk [vmem:[#allocation2 + $0x159] sm:$0x3] %vm331_vm3, %v317_v32  ;;  %v1097_v45 = vadd.f32 %v11146_v41, %v973_v54  ;;  %v1430_v14 = vmul.f32 %v10934_v4, %v1386_v27  ;;  %v974_v0 = vadd.f32 %v934_v49, %v850_v40  ;;  %v1181_v5 = vmul.f32 %v10890_v36, %v396_v59  ;;  %v398_v32 = vld [vmem:[#allocation2 + $0x90] sm:$0xff] }
  0xce   :  { %367 = vst.msk [vmem:[#allocation2 + $0x151] sm:$0xff] %vm39_vm0, %v312_v43  ;;  %1547 = vst.msk [vmem:[#allocation2 + $0x61] sm:$0xff] %vm39_vm0, %v1507_v23  ;;  %v1182_v1 = vmul.f32 %v10890_v36, %v1138_v33  ;;  %v605_v42 = vadd.f32 %v565_v60, %v481_v63  ;;  %v728_v41 = vadd.f32 %v688_v18, %v604_v19  ;;  %v399_v43 = vld [vmem:[#allocation2 + $0x98] sm:$0x3]  ;;  %v1388_v18 = vld [vmem:[#allocation2 + $0x9a] sm:$0x3] }
  0xcf   :  { %1548 = vst.msk [vmem:[#allocation2 + $0x69] sm:$0x3] %vm331_vm3, %v1508_v30  ;;  %v1058_v54 = vmul.f32 %v10898_v47, %v644_v31  ;;  %v1305_v29 = vmul.f32 %v10893_v37, %v520_v15  ;;  %v975_v44 = vadd.f32 %v935_v62, %v851_v20  ;;  %v1221_v26 = vadd.f32 %v1181_v5, %v1096_v46  ;;  %v522_v59 = vld [vmem:[#allocation2 + $0x91] sm:$0xff] }
  0xd0   :  { %v327_v50 = vpop.permute.xlu1 %326  ;;  %v322_v11 = vpop.permute.xlu0 %321  ;;  %v1222_v61 = vadd.f32 %v1182_v1, %v1097_v45  ;;  %v1429_v48 = vmul.f32 %v10934_v4, %v644_v31  ;;  %v1619_v58 = vld [vmem:[#allocation2 + $0x11] sm:$0xff]  ;;  %v567_v12 = vmul.f32 %v10757_v25, %v523_v10  ;;  %v691_v60 = vmul.f32 %v10767_v28, %v647_v39 }
  0xd1   :  { %370 = vst.msk [vmem:[#allocation2 + $0x169] sm:$0x3] %vm331_vm3, %v327_v50  ;;  %v1777_v7 = vld [vmem:[#allocation2 + $0x12] sm:$0xff]  ;;  %v1098_v27 = vadd.f32 %v1058_v54, %v974_v0  ;;  %v937_v63 = vmul.f32 %v10887_v35, %v893_v6  ;;  %1981 = vrot.lane.b32.xlu1 %v1619_v58, %s10526_s25  ;;  %v1345_v15 = vadd.f32 %v1305_v29, %v1221_v26  ;;  %v770_v58 = vld [vmem:[#allocation2 + $0xa0] sm:$0xff] }
  0xd2   :  { %369 = vst.msk [vmem:[#allocation2 + $0x161] sm:$0xff] %vm39_vm0, %v322_v11  ;;  %v1346_v38 = vadd.f32 %v1306_v9, %v1222_v61  ;;  %v442_v62 = vmul.f32 %v10745_v21, %v398_v32  ;;  %v443_v46 = vmul.f32 %v10745_v21, %v399_v43  ;;  %v769_v31 = vld [vmem:[#allocation2 + $0x98] sm:$0x3]  ;;  %2457 = vrot.lane.b32.xlu0 %v1777_v7, %s10526_s25 }
  0xd3   :  { %v1061_v33 = vmul.f32 %v10898_v47, %v1017_v24  ;;  %v566_v23 = vmul.f32 %v10757_v25, %v522_v59  ;;  %v729_v30 = vadd.f32 %v11182_v2, %v605_v42  ;;  %v812_v40 = vmul.f32 %v10884_v34, %v398_v32  ;;  %v1264_v11 = vld [vmem:[#allocation2 + $0x99] sm:$0x3] }
  0xd4   :  { %v1469_v49 = vadd.f32 %v1429_v48, %v1345_v15  ;;  %v1470_v50 = vadd.f32 %v1430_v14, %v1346_v38  ;;  %v482_v9 = vadd.f32 %v11199_v8, %v442_v62  ;;  %v483_v19 = vadd.f32 %v11199_v8, %v443_v46  ;;  %v1140_v1 = vld [vmem:[#allocation2 + $0x98] sm:$0x3]  ;;  %v1019_v38 = vld [vmem:[#allocation2 + $0xaa] sm:$0x3]  ;;  %v894_v62 = vld [vmem:[#allocation2 + $0xa1] sm:$0xff] }
  0xd5   :  { %v690_v20 = vmul.f32 %v10767_v28, %v646_v57  ;;  %v813_v45 = vmul.f32 %v10884_v34, %v769_v31  ;;  %v852_v0 = vadd.f32 %v812_v40, %v728_v41  ;;  %v936_v5 = vmul.f32 %v10887_v35, %v522_v59  ;;  %2141 = vrot.lane.b32.xlu1 %v1777_v7, %s10527_s26  ;;  %v1698_v2 = vld [vmem:[#allocation2 + $0x18] sm:$0x3]  ;;  %v895_v41 = vld [vmem:[#allocation2 + $0xa9] sm:$0x3] }
  0xd6   :  { %v1509_v10 = vmax.f32 %v1469_v49, 0.0  ;;  %v1510_v39 = vmax.f32 %v1470_v50, 0.0  ;;  %v606_v14 = vadd.f32 %v566_v23, %v482_v9  ;;  %v607_v6 = vadd.f32 %v567_v12, %v483_v19  ;;  %2299 = vrot.lane.b32.xlu0 %v1698_v2, %s10530_s19  ;;  %v771_v7 = vld [vmem:[#allocation2 + $0xa8] sm:$0x3]  ;;  %v1697_v12 = vld [vmem:[#allocation2 + $0x10] sm:$0xff] }
  0xd7   :  { %v853_v42 = vadd.f32 %v813_v45, %v729_v30  ;;  %v976_v54 = vadd.f32 %v936_v5, %v852_v0  ;;  %v1099_v29 = vadd.f32 %v11187_v17, %v975_v44  ;;  %v1183_v24 = vmul.f32 %v10890_v36, %v398_v32  ;;  %v1620_v46 = vld [vmem:[#allocation2 + $0x19] sm:$0x3] }
  0xd8   :  { %1549 = vst.msk [vmem:[#allocation2 + $0x71] sm:$0xff] %vm39_vm0, %v1509_v10  ;;  %v1308_v43 = vmul.f32 %v10893_v37, %v1264_v11  ;;  %v1432_v26 = vmul.f32 %v10934_v4, %v1388_v18  ;;  %v1060_v61 = vmul.f32 %v10898_v47, %v646_v57  ;;  %v1184_v48 = vmul.f32 %v10890_v36, %v1140_v1  ;;  %v1142_v11 = vld [vmem:[#allocation2 + $0xa8] sm:$0x3]  ;;  %v1778_v45 = vld [vmem:[#allocation2 + $0x1a] sm:$0x3] }
  0xd9   :  { %1550 = vst.msk [vmem:[#allocation2 + $0x79] sm:$0x3] %vm331_vm3, %v1510_v39  ;;  %v730_v15 = vadd.f32 %v690_v20, %v606_v14  ;;  %v977_v17 = vadd.f32 %v937_v63, %v853_v42  ;;  %v1223_v44 = vadd.f32 %v1183_v24, %v1098_v27  ;;  %v1307_v32 = vmul.f32 %v10893_v37, %v522_v59  ;;  %v1018_v59 = vld [vmem:[#allocation2 + $0xa2] sm:$0xff]  ;;  %v1660_v2 = vld [vmem:[#allocation2 + $0x1a] sm:$0x3] }
  0xda   :  { %2297 = vrot.lane.b32.xlu1 %v1697_v12, %s10530_s19  ;;  %v1100_v31 = vadd.f32 %v1060_v61, %v976_v54  ;;  %v1224_v23 = vadd.f32 %v1184_v48, %v1099_v29  ;;  %v1431_v30 = vmul.f32 %v10934_v4, %v646_v57  ;;  %v939_v40 = vmul.f32 %v10887_v35, %v895_v41  ;;  %v1266_v57 = vld [vmem:[#allocation2 + $0xa9] sm:$0x3]  ;;  %v402_v41 = vld [vmem:[#allocation2 + $0xd0] sm:$0xff] }
  0xdb   :  { %1983 = vrot.lane.b32.xlu0 %v1620_v46, %s10526_s25  ;;  %v1347_v49 = vadd.f32 %v1307_v32, %v1223_v44  ;;  %v731_v50 = vadd.f32 %v691_v60, %v607_v6  ;;  %v814_v63 = vmul.f32 %v10884_v34, %v770_v58  ;;  %v815_v27 = vmul.f32 %v10884_v34, %v771_v7  ;;  %v1391_v60 = vld [vmem:[#allocation2 + $0xb2] sm:$0xff]  ;;  %v1390_v42 = vld [vmem:[#allocation2 + $0xaa] sm:$0x3]  ;;  %v11263_v7 = vld [vmem:[%s14896_s1 + $0x8] ss:$0 sm:$0xff] }
  0xdc   :  { %v1348_v9 = vadd.f32 %v1308_v43, %v1224_v23  ;;  %v1063_v19 = vmul.f32 %v10898_v47, %v1019_v38  ;;  %v938_v18 = vmul.f32 %v10887_v35, %v894_v62  ;;  %v1101_v20 = vadd.f32 %v1061_v33, %v977_v17  ;;  %v403_v43 = vld [vmem:[#allocation2 + $0xd8] sm:$0x3]  ;;  %v1817_v46 = vld [vmem:[#allocation2 + $0x20] sm:$0xff] }
  0xdd   :  { %v1471_v4 = vadd.f32 %v1431_v30, %v1347_v49  ;;  %v854_v0 = vadd.f32 %v814_v63, %v730_v15  ;;  %v855_v5 = vadd.f32 %v815_v27, %v731_v50  ;;  %v1185_v1 = vmul.f32 %v10890_v36, %v770_v58  ;;  %v11266_v15 = vld [vmem:[#allocation2 + $0x22] sm:$0xff]  ;;  %v527_v30 = vld [vmem:[#allocation2 + $0xd9] sm:$0x3] }
  0xde   :  { %2459 = vrot.lane.b32.xlu1 %v1778_v45, %s10526_s25  ;;  %v1472_v10 = vadd.f32 %v1432_v26, %v1348_v9  ;;  %v1062_v39 = vmul.f32 %v10898_v47, %v1018_v59  ;;  %v1186_v14 = vmul.f32 %v10890_v36, %v1142_v11  ;;  %v1309_v6 = vmul.f32 %v10893_v37, %v894_v62  ;;  %v1392_v26 = vld [vmem:[#allocation2 + $0xba] sm:$0x3]  ;;  %v526_v62 = vld [vmem:[#allocation2 + $0xd1] sm:$0xff] }
  0xdf   :  { %2143 = vrot.lane.b32.xlu0 %v1660_v2, %s10527_s26  ;;  %v1511_v33 = vmax.f32 %v1471_v4, 0.0  ;;  %v978_v54 = vadd.f32 %v938_v18, %v854_v0  ;;  %v979_v29 = vadd.f32 %v939_v40, %v855_v5  ;;  %v1225_v24 = vadd.f32 %v1185_v1, %v1100_v31  ;;  %v11283_v45 = vld [vmem:[#allocation2 + $0x30] sm:$0xff]  ;;  %v4294_v0 = vld [vmem:[%s14898_s3 + $0x78] sm:$0xff] }
  0xe0   :  { %v1512_v61 = vmax.f32 %v1472_v10, 0.0  ;;  %v1310_v48 = vmul.f32 %v10893_v37, %v1266_v57  ;;  %v1226_v58 = vadd.f32 %v1186_v14, %v1101_v20  ;;  %v1435_v12 = vmul.f32 %v11263_v7, %v1391_v60  ;;  %v650_v20 = vld [vmem:[#allocation2 + $0xd2] sm:$0xff]  ;;  %v651_v60 = vld [vmem:[#allocation2 + $0xda] sm:$0x3]  ;;  %5298 = vmatpush1.msra.mxu0 %v4294_v0 }
  0xe1   :  { %1551 = vst.msk [vmem:[#allocation2 + $0x81] sm:$0xff] %vm39_vm0, %v1511_v33  ;;  %v1102_v17 = vadd.f32 %v1062_v39, %v978_v54  ;;  %v1103_v44 = vadd.f32 %v1063_v19, %v979_v29  ;;  %v1349_v32 = vadd.f32 %v1309_v6, %v1225_v24  ;;  %v1433_v38 = vmul.f32 %v11263_v7, %v1018_v59  ;;  %v529_v6 = vld [vmem:[#allocation2 + $0xe9] sm:$0x3]  ;;  %v11300_v33 = vld [vmem:[#allocation2 + $0xe0] sm:$0xff]  ;;  %v11304_v54 = vld [vmem:[#allocation2 + $0x31] sm:$0xff] }
  0xe2   :  { %2461 = vrot.lane.b32.xlu1 %v11266_v15, %s10526_s25  ;;  %1552 = vst.msk [vmem:[#allocation2 + $0x89] sm:$0x3] %vm331_vm3, %v1512_v61  ;;  %v1434_v31 = vmul.f32 %v11263_v7, %v1390_v42  ;;  %v1350_v23 = vadd.f32 %v1310_v48, %v1226_v58  ;;  %v446_v40 = vmul.f32 %v10745_v21, %v402_v41  ;;  %v3264_v5 = vunpack.c.0.s8 %v10905_v51  ;;  %v405_v51 = vld [vmem:[#allocation2 + $0xe8] sm:$0x3]  ;;  %v653_v48 = vld [vmem:[#allocation2 + $0xea] sm:$0x3] }
  0xe3   :  { %v447_v49 = vmul.f32 %v10745_v21, %v403_v43  ;;  %2617 = vrot.lane.b32.xlu0 %v1817_v46, %s10527_s26  ;;  %v1227_v50 = vadd.f32 %v10908_v52, %v1102_v17  ;;  %v1228_v63 = vadd.f32 %v10911_v53, %v1103_v44  ;;  %v1436_v27 = vmul.f32 %v11263_v7, %v1392_v26  ;;  %v775_v42 = vld [vmem:[#allocation2 + $0xe8] sm:$0x3] }
  0xe4   :  { %v1473_v59 = vadd.f32 %v1433_v38, %v1349_v32  ;;  %v1474_v11 = vadd.f32 %v1434_v31, %v1350_v23  ;;  %v486_v9 = vadd.f32 %v11199_v8, %v446_v40  ;;  %v570_v18 = vmul.f32 %v10757_v25, %v526_v62  ;;  %5299 = vmatprep.subr.mxu0 %v10525_v3  ;;  %v4292_v29 = vld [vmem:[%s14898_s3 + $0x68] sm:$0xff] }
  0xe5   :  { %v487_v19 = vadd.f32 %v11199_v8, %v447_v49  ;;  %v1351_v4 = vadd.f32 %v10918_v55, %v1227_v50  ;;  %v1352_v57 = vadd.f32 %v10921_v56, %v1228_v63  ;;  %v571_v53 = vmul.f32 %v10757_v25, %v527_v30  ;;  %v4293_v55 = vld [vmem:[%s14898_s3 + $0x70] sm:$0xff]  ;;  %v11310_v58 = vld [vmem:[#allocation2 + $0xe1] sm:$0xff]  ;;  %v899_v17 = vld [vmem:[#allocation2 + $0xe9] sm:$0x3] }
  0xe6   :  { %v1513_v52 = vmax.f32 %v1473_v59, 0.0  ;;  %2621 = vrot.lane.b32.xlu1 %v11283_v45, %s10527_s26  ;;  %v1514_v1 = vmax.f32 %v1474_v11, 0.0  ;;  %v610_v2 = vadd.f32 %v570_v18, %v486_v9  ;;  %v694_v14 = vmul.f32 %v10767_v28, %v650_v20  ;;  %5300 = vmatpush1.msra.mxu0 %v4293_v55  ;;  %v1857_v26 = vld [vmem:[#allocation2 + $0x21] sm:$0xff]  ;;  %v1023_v62 = vld [vmem:[#allocation2 + $0xea] sm:$0x3] }
  0xe7   :  { %2301 = vrot.lane.b32.xlu0 %v1817_v46, %s10530_s19  ;;  %v1475_v56 = vadd.f32 %v1435_v12, %v1351_v4  ;;  %v1476_v10 = vadd.f32 %v1436_v27, %v1352_v57  ;;  %v611_v39 = vadd.f32 %v571_v53, %v487_v19  ;;  %v695_v43 = vmul.f32 %v10767_v28, %v651_v60  ;;  %v11325_v46 = vld [vmem:[#allocation2 + $0xe2] sm:$0xff]  ;;  %v531_v27 = vld [vmem:[#allocation2 + $0xf9] sm:$0x3] }
  0xe8   :  { %1553 = vst.msk [vmem:[#allocation2 + $0x91] sm:$0xff] %vm39_vm0, %v1513_v52  ;;  %v734_v61 = vadd.f32 %v694_v14, %v610_v2  ;;  %5301 = vmatprep.subr.mxu0 %v10525_v3  ;;  %v11316_v12 = vsub.s32 %v3264_v5, %v10721_v13  ;;  %v448_v44 = vmul.f32 %v10745_v21, %v11300_v33  ;;  %v1818_v59 = vld [vmem:[#allocation2 + $0x28] sm:$0x3]  ;;  %v4291_v11 = vld [vmem:[%s14898_s3 + $0x60] sm:$0xff]  ;;  %v655_v4 = vld [vmem:[#allocation2 + $0xfa] sm:$0x3] }
  0xe9   :  { %1554 = vst.msk [vmem:[#allocation2 + $0x99] sm:$0x3] %vm331_vm3, %v1514_v1  ;;  %v1515_v24 = vmax.f32 %v1475_v56, 0.0  ;;  %v1516_v41 = vmax.f32 %v1476_v10, 0.0  ;;  %v449_v32 = vmul.f32 %v10745_v21, %v405_v51  ;;  %v573_v38 = vmul.f32 %v10757_v25, %v529_v6  ;;  %5302 = vmatpush1.msra.mxu0 %v4292_v29  ;;  %v901_v57 = vld [vmem:[#allocation2 + $0xf9] sm:$0x3] }
  0xea   :  { %2781 = vrot.lane.b32.xlu1 %v11304_v54, %s10530_s19  ;;  %v735_v31 = vadd.f32 %v695_v43, %v611_v39  ;;  %v818_v23 = vmul.f32 %v10884_v34, %v11300_v33  ;;  %v819_v30 = vmul.f32 %v10884_v34, %v775_v42  ;;  %v697_v40 = vmul.f32 %v10767_v28, %v653_v48  ;;  %v1025_v52 = vld [vmem:[#allocation2 + $0xfa] sm:$0x3]  ;;  %v406_v2 = vld [vmem:[#allocation2 + $0xf0] sm:$0xff]  ;;  %v407_v55 = vld [vmem:[#allocation2 + $0xf8] sm:$0x3] }
  0xeb   :  { %2777 = vrot.lane.b32.xlu0 %v1857_v26, %s10530_s19  ;;  %1555 = vst.msk [vmem:[#allocation2 + $0xa1] sm:$0xff] %vm39_vm0, %v1515_v24  ;;  %v488_v49 = vadd.f32 %v11199_v8, %v448_v44  ;;  %v489_v50 = vadd.f32 %v11199_v8, %v449_v32  ;;  %v572_v63 = vmul.f32 %v10757_v25, %v11310_v58  ;;  %v1272_v60 = vld [vmem:[#allocation2 + $0xf9] sm:$0x3]  ;;  %v530_v51 = vld [vmem:[#allocation2 + $0xf1] sm:$0xff]  ;;  %v1858_v48 = vld [vmem:[#allocation2 + $0x29] sm:$0x3] }
  0xec   :  { %1556 = vst.msk [vmem:[#allocation2 + $0xa9] sm:$0x3] %vm331_vm3, %v1516_v41  ;;  %5303 = vmatprep.subr.mxu0 %v10525_v3  ;;  %v943_v9 = vmul.f32 %v10887_v35, %v899_v17  ;;  %v858_v19 = vadd.f32 %v818_v23, %v734_v61  ;;  %v859_v18 = vadd.f32 %v819_v30, %v735_v31  ;;  %v1396_v6 = vld [vmem:[#allocation2 + $0xfa] sm:$0x3]  ;;  %v654_v42 = vld [vmem:[#allocation2 + $0xf2] sm:$0xff] }
  0xed   :  { %v942_v20 = vmul.f32 %v10887_v35, %v11310_v58  ;;  %v1067_v53 = vmul.f32 %v10898_v47, %v1023_v62  ;;  %v612_v0 = vadd.f32 %v572_v63, %v488_v49  ;;  %v613_v5 = vadd.f32 %v573_v38, %v489_v50  ;;  %5304 = vmatpush1.msra.mxu0 %v4291_v11  ;;  %v777_v61 = vld [vmem:[#allocation2 + $0xf8] sm:$0x3] }
  0xee   :  { %2619 = vrot.lane.b32.xlu1 %v1818_v59, %s10527_s26  ;;  %v696_v1 = vmul.f32 %v10767_v28, %v11325_v46  ;;  %v983_v10 = vadd.f32 %v943_v9, %v859_v18  ;;  %v1066_v39 = vmul.f32 %v10898_v47, %v11325_v46  ;;  %v575_v14 = vmul.f32 %v10757_v25, %v531_v27  ;;  %v11365_v62 = vld [vmem:[#allocation2 + $0x32] sm:$0xff] }
  0xef   :  { %1985 = vrot.lane.b32.xlu0 %v1857_v26, %s10526_s25  ;;  %v982_v56 = vadd.f32 %v942_v20, %v858_v19  ;;  %v11351_v24 = vmul.f32 %v10767_v28, %v655_v4  ;;  %v945_v41 = vmul.f32 %v10887_v35, %v901_v57  ;;  %v11355_v43 = vmul.f32 %v10898_v47, %v1025_v52  ;;  %v4290_v26 = vld [vmem:[%s14898_s3 + $0x58] sm:$0xff]  ;;  %v1780_v20 = vld [vmem:[#allocation2 + $0x2a] sm:$0x3]  ;;  %v4289_v4 = vld [vmem:[%s14898_s3 + $0x50] sm:$0xff] }
  0xf0   :  { %v736_v29 = vadd.f32 %v696_v1, %v612_v0  ;;  %5305 = vmatprep.subr.mxu0 %v10525_v3  ;;  %v1316_v44 = vmul.f32 %v10893_v37, %v1272_v60  ;;  %v450_v32 = vmul.f32 %v10745_v21, %v406_v2  ;;  %v451_v38 = vmul.f32 %v10745_v21, %v407_v55  ;;  %v1148_v50 = vld [vmem:[#allocation2 + $0xf8] sm:$0x3]  ;;  %v533_v55 = vld [vmem:[#allocation2 + $0x109] sm:$0x3] }
  0xf1   :  { %v1106_v17 = vadd.f32 %v1066_v39, %v982_v56  ;;  %v1440_v31 = vmul.f32 %v11263_v7, %v1396_v6  ;;  %v574_v23 = vmul.f32 %v10757_v25, %v530_v51  ;;  %v737_v30 = vadd.f32 %v697_v40, %v613_v5  ;;  %5306 = vmatpush1.msra.mxu0 %v4290_v26  ;;  %v657_v56 = vld [vmem:[#allocation2 + $0x10a] sm:$0x3] }
  0xf2   :  { %2779 = vrot.lane.b32.xlu1 %v1858_v48, %s10530_s19  ;;  %v820_v49 = vmul.f32 %v10884_v34, %v406_v2  ;;  %v490_v63 = vadd.f32 %v11199_v8, %v450_v32  ;;  %v491_v27 = vadd.f32 %v11199_v8, %v451_v38  ;;  %v698_v59 = vmul.f32 %v10767_v28, %v654_v42  ;;  %v1027_v48 = vld [vmem:[#allocation2 + $0x10a] sm:$0x3] }
  0xf3   :  { %2465 = vrot.lane.b32.xlu0 %v11365_v62, %s10526_s25  ;;  %v821_v11 = vmul.f32 %v10884_v34, %v777_v61  ;;  %v944_v19 = vmul.f32 %v10887_v35, %v530_v51  ;;  %v1107_v18 = vadd.f32 %v1067_v53, %v983_v10  ;;  %v1191_v40 = vmul.f32 %v10890_v36, %v406_v2  ;;  %v903_v10 = vld [vmem:[#allocation2 + $0x109] sm:$0x3] }
  0xf4   :  { %v860_v9 = vadd.f32 %v820_v49, %v736_v29  ;;  %5307 = vmatprep.subr.mxu0 %v10525_v3  ;;  %v614_v57 = vadd.f32 %v574_v23, %v490_v63  ;;  %v1068_v0 = vmul.f32 %v10898_v47, %v654_v42  ;;  %v1192_v5 = vmul.f32 %v10890_v36, %v1148_v50  ;;  %v1398_v26 = vld [vmem:[#allocation2 + $0x10a] sm:$0x3]  ;;  %v408_v23 = vld [vmem:[#allocation2 + $0x100] sm:$0xff] }
  0xf5   :  { %v861_v52 = vadd.f32 %v821_v11, %v737_v30  ;;  %v615_v1 = vadd.f32 %v575_v14, %v491_v27  ;;  %v1231_v53 = vadd.f32 %v1191_v40, %v1106_v17  ;;  %v1315_v2 = vmul.f32 %v10893_v37, %v530_v51  ;;  %v1274_v14 = vld [vmem:[#allocation2 + $0x109] sm:$0x3]  ;;  %5308 = vmatpush1.msra.mxu0 %v4289_v4  ;;  %v1820_v30 = vld [vmem:[#allocation2 + $0x38] sm:$0x3] }
  0xf6   :  { %2463 = vrot.lane.b32.xlu1 %v1780_v20, %s10526_s25  ;;  %v984_v60 = vadd.f32 %v944_v19, %v860_v9  ;;  %v11388_v39 = vadd.f32 %v698_v59, %v614_v57  ;;  %v1232_v6 = vadd.f32 %v1192_v5, %v1107_v18  ;;  %v1439_v29 = vmul.f32 %v11263_v7, %v654_v42  ;;  %v4288_v42 = vld [vmem:[%s14898_s3 + $0x48] sm:$0xff] }
  0xf7   :  { %2145 = vrot.lane.b32.xlu0 %v11266_v15, %s10527_s26  ;;  %v3261_v61 = vcombine.high %v11266_v15, %v11266_v15  ;;  %v985_v17 = vadd.f32 %v945_v41, %v861_v52  ;;  %v1355_v32 = vadd.f32 %v1315_v2, %v1231_v53  ;;  %v3282_v38 = vrot.slane %v11266_v15, %v11316_v12  ;;  %v409_v27 = vld [vmem:[#allocation2 + $0x108] sm:$0x3] }
  0xf8   :  { %v11393_v51 = vadd.f32 %v1068_v0, %v984_v60  ;;  %5309 = vmatprep.subr.mxu0 %v10525_v3  ;;  %v1356_v49 = vadd.f32 %v1316_v44, %v1232_v6  ;;  %v577_v63 = vmul.f32 %v10757_v25, %v533_v55  ;;  %v11404_v41 = vmul.f32 %v10767_v28, %v657_v56  ;;  %v532_v59 = vld [vmem:[#allocation2 + $0x101] sm:$0xff]  ;;  %v1622_v15 = vld [vmem:[#allocation2 + $0x29] sm:$0x3] }
  0xf9   :  { %v3289_v50 = vrot.slane %v3261_v61, %v11316_v12  ;;  %v1479_v11 = vadd.f32 %v1439_v29, %v1355_v32  ;;  %v4339_v9 = vrot.slane %v3282_v38, %v11316_v12  ;;  %v947_v19 = vmul.f32 %v10887_v35, %v903_v10  ;;  %v4287_v44 = vld [vmem:[%s14898_s3 + $0x40] sm:$0xff]  ;;  %v779_v0 = vld [vmem:[#allocation2 + $0x108] sm:$0x3]  ;;  %5310 = vmatpush1.msra.mxu0 %v4288_v42 }
  0xfa   :  { %2623 = vrot.lane.b32.xlu1 %v1820_v30, %s10527_s26  ;;  %v11410_v18 = vmul.f32 %v10898_v47, %v1027_v48  ;;  %v1480_v40 = vadd.f32 %v1440_v31, %v1356_v49  ;;  %v11418_v4 = vmul.f32 %v10893_v37, %v1274_v14  ;;  %v452_v57 = vmul.f32 %v10745_v21, %v408_v23  ;;  %v656_v52 = vld [vmem:[#allocation2 + $0x102] sm:$0xff]  ;;  %v11434_v14 = vld [vmem:[#allocation2 + $0xea] sm:$0x3] }
  0xfb   :  { %1987 = vrot.lane.b32.xlu0 %v1622_v15, %s10526_s25  ;;  %v4353_v20 = vrot.slane %v3289_v50, %v11316_v12  ;;  %v1519_v5 = vmax.f32 %v1479_v11, 0.0  ;;  %v11422_v60 = vmul.f32 %v11263_v7, %v1398_v26  ;;  %v453_v53 = vmul.f32 %v10745_v21, %v409_v27  ;;  %v1700_v55 = vld [vmem:[#allocation2 + $0x28] sm:$0x3]  ;;  %5311 = vmatprep.subr.mxu0 %v10525_v3  ;;  %v535_v50 = vld [vmem:[#allocation2 + $0x119] sm:$0x3] }
  0xfc   :  { %v576_v2 = vmul.f32 %v10757_v25, %v532_v59  ;;  %v11427_v31 = vld [vmem:[#allocation2 + $0xe8] sm:$0x3]  ;;  %v1520_v56 = vmax.f32 %v1480_v40, 0.0  ;;  %v492_v6 = vadd.f32 %v11199_v8, %v452_v57  ;;  %v739_v29 = vadd.f32 %v11351_v24, %v615_v1  ;;  %5312 = vmatpush1.msra.mxu0 %v4287_v44  ;;  %v659_v27 = vld [vmem:[#allocation2 + $0x11a] sm:$0x3] }
  0xfd   :  { %v4356_v10 = vcombine.low %v4339_v9, %v4353_v20  ;;  %v1150_v61 = vld [vmem:[#allocation2 + $0x108] sm:$0x3]  ;;  %1559 = vst.msk [vmem:[#allocation2 + $0xe1] sm:$0xff] %vm39_vm0, %v1519_v5  ;;  %v493_v26 = vadd.f32 %v11199_v8, %v453_v53  ;;  %v700_v32 = vmul.f32 %v10767_v28, %v656_v52  ;;  %v822_v38 = vmul.f32 %v10884_v34, %v408_v23  ;;  %v905_v44 = vld [vmem:[#allocation2 + $0x119] sm:$0x3] }
  0xfe   :  { %2303 = vrot.lane.b32.xlu1 %v1700_v55, %s10530_s19  ;;  %v11432_v48 = vld [vmem:[#allocation2 + $0xe9] sm:$0x3]  ;;  %v823_v30 = vmul.f32 %v10884_v34, %v779_v0  ;;  %v616_v24 = vadd.f32 %v576_v2, %v492_v6  ;;  %v946_v1 = vmul.f32 %v10887_v35, %v532_v59  ;;  %v1109_v42 = vadd.f32 %v11355_v43, %v985_v17  ;;  %v1860_v40 = vld [vmem:[#allocation2 + $0x39] sm:$0x3]  ;;  %v410_v6 = vld [vmem:[#allocation2 + $0x110] sm:$0xff] }
  0xff   :  { %2305 = vrot.lane.b32.xlu0 %v11283_v45, %s10530_s19  ;;  %1560 = vst.msk [vmem:[#allocation2 + $0xe9] sm:$0x3] %vm331_vm3, %v1520_v56  ;;  %10345 = vmatmul.mubr.msk.f32.vlgmr.msra.gmra.mxu1 %vm39_vm0, %v4356_v10  ;;  %v1193_v49 = vmul.f32 %v10890_v36, %v408_v23  ;;  %v862_v15 = vadd.f32 %v822_v38, %v11388_v39  ;;  %v4286_v20 = vld [vmem:[%s14898_s3 + $0x38] sm:$0xff]  ;;  %v11458_v5 = vld [vmem:[#allocation2 + $0x42] sm:$0xff] }
 0x100   :  { %v863_v11 = vadd.f32 %v823_v30, %v739_v29  ;;  %v1070_v9 = vmul.f32 %v10898_v47, %v656_v52  ;;  %v1194_v45 = vmul.f32 %v10890_v36, %v1150_v61  ;;  %5313 = vmatprep.subr.mxu0 %v10525_v3  ;;  %v617_v43 = vadd.f32 %v577_v63, %v493_v26  ;;  %v1029_v39 = vld [vmem:[#allocation2 + $0x11a] sm:$0x3]  ;;  %v411_v29 = vld [vmem:[#allocation2 + $0x118] sm:$0x3] }
 0x101   :  { %v740_v17 = vadd.f32 %v700_v32, %v616_v24  ;;  %v1233_v23 = vadd.f32 %v1193_v49, %v11393_v51  ;;  %v1317_v57 = vmul.f32 %v10893_v37, %v532_v59  ;;  %v1276_v0 = vld [vmem:[#allocation2 + $0x119] sm:$0x3]  ;;  %v986_v53 = vadd.f32 %v946_v1, %v862_v15  ;;  %v534_v26 = vld [vmem:[#allocation2 + $0x111] sm:$0xff]  ;;  %5314 = vmatpush1.msra.mxu0 %v4286_v20  ;;  %v11475_v24 = vld [vmem:[#allocation2 + $0x40] sm:$0xff] }
 0x102   :  { %2783 = vrot.lane.b32.xlu1 %v1860_v40, %s10530_s19  ;;  %v987_v2 = vadd.f32 %v947_v19, %v863_v11  ;;  %v1234_v55 = vadd.f32 %v1194_v45, %v1109_v42  ;;  %v1441_v56 = vmul.f32 %v11263_v7, %v656_v52  ;;  %v1400_v10 = vld [vmem:[#allocation2 + $0x11a] sm:$0x3]  ;;  %v579_v63 = vmul.f32 %v10757_v25, %v535_v50  ;;  %v781_v30 = vld [vmem:[#allocation2 + $0x118] sm:$0x3]  ;;  %v4285_v1 = vld [vmem:[%s14898_s3 + $0x30] sm:$0xff] }
 0x103   :  { %2469 = vrot.lane.b32.xlu0 %v11458_v5, %s10526_s25  ;;  %v1357_v51 = vadd.f32 %v1317_v57, %v1233_v23  ;;  %v11465_v59 = vmul.f32 %v10767_v28, %v659_v27  ;;  %v949_v61 = vmul.f32 %v10887_v35, %v905_v44  ;;  %v1110_v19 = vadd.f32 %v1070_v9, %v986_v53  ;;  %v658_v27 = vld [vmem:[#allocation2 + $0x112] sm:$0xff]  ;;  %v1662_v15 = vld [vmem:[#allocation2 + $0x2a] sm:$0x3] }
 0x104   :  { %v1358_v32 = vadd.f32 %v11418_v4, %v1234_v55  ;;  %v11470_v52 = vmul.f32 %v10898_v47, %v1029_v39  ;;  %v11473_v38 = vmul.f32 %v10893_v37, %v1276_v0  ;;  %5315 = vmatprep.subr.mxu0 %v10525_v3  ;;  %v11482_v49 = vmul.f32 %v11263_v7, %v1400_v10  ;;  %v1152_v39 = vld [vmem:[#allocation2 + $0x118] sm:$0x3]  ;;  %v4284_v53 = vld [vmem:[%s14898_s3 + $0x28] sm:$0xff] }
 0x105   :  { %v1481_v42 = vadd.f32 %v1441_v56, %v1357_v51  ;;  %v454_v4 = vmul.f32 %v10745_v21, %v410_v6  ;;  %v455_v50 = vmul.f32 %v10745_v21, %v411_v29  ;;  %v578_v9 = vmul.f32 %v10757_v25, %v534_v26  ;;  %5316 = vmatpush1.msra.mxu0 %v4285_v1  ;;  %v537_v51 = vld [vmem:[#allocation2 + $0x129] sm:$0x3] }
 0x106   :  { %2625 = vrot.lane.b32.xlu1 %v11475_v24, %s10527_s26  ;;  %v1482_v11 = vadd.f32 %v11422_v60, %v1358_v32  ;;  %v741_v45 = vadd.f32 %v11404_v41, %v617_v43  ;;  %v824_v44 = vmul.f32 %v10884_v34, %v410_v6  ;;  %v825_v57 = vmul.f32 %v10884_v34, %v781_v30  ;;  %v661_v32 = vld [vmem:[#allocation2 + $0x12a] sm:$0x3] }
 0x107   :  { %2147 = vrot.lane.b32.xlu0 %v1662_v15, %s10527_s26  ;;  %v1521_v40 = vmax.f32 %v1481_v42, 0.0  ;;  %v494_v20 = vadd.f32 %v11199_v8, %v454_v4  ;;  %v495_v23 = vadd.f32 %v11199_v8, %v455_v50  ;;  %10347 = vmatprep.mubr.msk.f32.mxu1 %vm10528_vm2, %v10525_v3  ;;  %v702_v0 = vmul.f32 %v10767_v28, %v658_v27  ;;  %v907_v50 = vld [vmem:[#allocation2 + $0x129] sm:$0x3] }
 0x108   :  { %v1522_v60 = vmax.f32 %v1482_v11, 0.0  ;;  %v864_v41 = vadd.f32 %v824_v44, %v740_v17  ;;  %v948_v43 = vmul.f32 %v10887_v35, %v534_v26  ;;  %5317 = vmatprep.subr.mxu0 %v10525_v3  ;;  %v865_v56 = vadd.f32 %v825_v57, %v741_v45  ;;  %v1822_v17 = vld [vmem:[#allocation2 + $0x48] sm:$0x3]  ;;  %v1031_v15 = vld [vmem:[#allocation2 + $0x12a] sm:$0x3]  ;;  %v412_v44 = vld [vmem:[#allocation2 + $0x120] sm:$0xff] }
 0x109   :  { %1561 = vst.msk [vmem:[#allocation2 + $0xf1] sm:$0xff] %vm39_vm0, %v1521_v40  ;;  %v618_v55 = vadd.f32 %v578_v9, %v494_v20  ;;  %v1072_v10 = vmul.f32 %v10898_v47, %v658_v27  ;;  %v1111_v29 = vadd.f32 %v11410_v18, %v987_v2  ;;  %v619_v30 = vadd.f32 %v579_v63, %v495_v23  ;;  %v1278_v11 = vld [vmem:[#allocation2 + $0x129] sm:$0x3]  ;;  %v536_v57 = vld [vmem:[#allocation2 + $0x121] sm:$0xff] }
 0x10a   :  { %1989 = vrot.lane.b32.xlu1 %v11304_v54, %s10526_s25  ;;  %1562 = vst.msk [vmem:[#allocation2 + $0xf9] sm:$0x3] %vm331_vm3, %v1522_v60  ;;  %v988_v1 = vadd.f32 %v948_v43, %v864_v41  ;;  %v1195_v42 = vmul.f32 %v10890_v36, %v410_v6  ;;  %v1196_v4 = vmul.f32 %v10890_v36, %v1152_v39  ;;  %v1402_v45 = vld [vmem:[#allocation2 + $0x12a] sm:$0x3]  ;;  %v413_v40 = vld [vmem:[#allocation2 + $0x128] sm:$0x3] }
 0x10b   :  { %2627 = vrot.lane.b32.xlu0 %v1822_v17, %s10527_s26  ;;  %v742_v18 = vadd.f32 %v702_v0, %v618_v55  ;;  %v989_v2 = vadd.f32 %v949_v61, %v865_v56  ;;  %v1319_v9 = vmul.f32 %v10893_v37, %v534_v26  ;;  %v1443_v54 = vmul.f32 %v11263_v7, %v658_v27  ;;  %v1782_v39 = vld [vmem:[#allocation2 + $0x3a] sm:$0x3]  ;;  %v4283_v61 = vld [vmem:[%s14898_s3 + $0x20] sm:$0xff]  ;;  %v1702_v0 = vld [vmem:[#allocation2 + $0x38] sm:$0x3] }
 0x10c   :  { %5318 = vmatpush1.msra.mxu0 %v4284_v53  ;;  %v11515_v63 = vadd.f32 %v1072_v10, %v988_v1  ;;  %v1235_v6 = vadd.f32 %v1195_v42, %v1110_v19  ;;  %v1236_v20 = vadd.f32 %v1196_v4, %v1111_v29  ;;  %v581_v23 = vmul.f32 %v10757_v25, %v537_v51  ;;  %v660_v56 = vld [vmem:[#allocation2 + $0x122] sm:$0xff] }
 0x10d   :  { %5319 = vmatprep.subr.mxu0 %v10525_v3  ;;  %v11523_v26 = vmul.f32 %v10767_v28, %v661_v32  ;;  %v951_v27 = vmul.f32 %v10887_v35, %v907_v50  ;;  %v11527_v60 = vmul.f32 %v10898_v47, %v1031_v15  ;;  %v11530_v19 = vmul.f32 %v10893_v37, %v1278_v11  ;;  %v783_v10 = vld [vmem:[#allocation2 + $0x128] sm:$0x3] }
 0x10e   :  { %2467 = vrot.lane.b32.xlu1 %v1782_v39, %s10526_s25  ;;  %v1359_v41 = vadd.f32 %v1319_v9, %v1235_v6  ;;  %v1360_v43 = vadd.f32 %v11473_v38, %v1236_v20  ;;  %v456_v53 = vmul.f32 %v10745_v21, %v412_v44  ;;  %v457_v55 = vmul.f32 %v10745_v21, %v413_v40  ;;  %v4282_v38 = vld [vmem:[%s14898_s3 + $0x18] sm:$0xff]  ;;  %v11549_v15 = vld [vmem:[#allocation2 + $0x41] sm:$0xff] }
 0x10f   :  { %2307 = vrot.lane.b32.xlu0 %v1702_v0, %s10530_s19  ;;  %v11538_v29 = vmul.f32 %v11263_v7, %v1402_v45  ;;  %v580_v51 = vmul.f32 %v10757_v25, %v536_v57  ;;  %v743_v32 = vadd.f32 %v11465_v59, %v619_v30  ;;  %v826_v17 = vmul.f32 %v10884_v34, %v412_v44  ;;  %v1154_v45 = vld [vmem:[#allocation2 + $0x128] sm:$0x3]  ;;  %v539_v39 = vld [vmem:[#allocation2 + $0x139] sm:$0x3] }
 0x110   :  { %5320 = vmatpush1.msra.mxu0 %v4283_v61  ;;  %v1483_v1 = vadd.f32 %v1443_v54, %v1359_v41  ;;  %v1484_v42 = vadd.f32 %v11482_v49, %v1360_v43  ;;  %v496_v4 = vadd.f32 %v11199_v8, %v456_v53  ;;  %v497_v50 = vadd.f32 %v11199_v8, %v457_v55  ;;  %v1862_v49 = vld [vmem:[#allocation2 + $0x49] sm:$0x3]  ;;  %v4281_v8 = vld [vmem:[%s14898_s3 + $0x10] sm:$0xff]  ;;  %v663_v61 = vld [vmem:[#allocation2 + $0x13a] sm:$0x3] }
 0x111   :  { %5321 = vmatprep.subr.mxu0 %v10525_v3  ;;  %v704_v59 = vmul.f32 %v10767_v28, %v660_v56  ;;  %v827_v30 = vmul.f32 %v10884_v34, %v783_v10  ;;  %v866_v11 = vadd.f32 %v826_v17, %v742_v18  ;;  %v950_v9 = vmul.f32 %v10887_v35, %v536_v57  ;;  %v909_v53 = vld [vmem:[#allocation2 + $0x139] sm:$0x3] }
 0x112   :  { %2785 = vrot.lane.b32.xlu1 %v11549_v15, %s10530_s19  ;;  %v1523_v54 = vmax.f32 %v1483_v1, 0.0  ;;  %v1524_v40 = vmax.f32 %v1484_v42, 0.0  ;;  %v620_v6 = vadd.f32 %v580_v51, %v496_v4  ;;  %v1074_v20 = vmul.f32 %v10898_v47, %v660_v56  ;;  %5322 = vmatpush1.msra.mxu0 %v4282_v38  ;;  %v1033_v55 = vld [vmem:[#allocation2 + $0x13a] sm:$0x3]  ;;  %v414_v42 = vld [vmem:[#allocation2 + $0x130] sm:$0xff] }
 0x113   :  { %2787 = vrot.lane.b32.xlu0 %v1862_v49, %s10530_s19  ;;  %v867_v18 = vadd.f32 %v827_v30, %v743_v32  ;;  %v990_v0 = vadd.f32 %v950_v9, %v866_v11  ;;  %v1113_v41 = vadd.f32 %v11470_v52, %v989_v2  ;;  %v1197_v43 = vmul.f32 %v10890_v36, %v412_v44  ;;  %v1280_v10 = vld [vmem:[#allocation2 + $0x139] sm:$0x3]  ;;  %v538_v11 = vld [vmem:[#allocation2 + $0x131] sm:$0xff] }
 0x114   :  { %5323 = vmatprep.subr.mxu0 %v10525_v3  ;;  %1563 = vst.msk [vmem:[#allocation2 + $0x101] sm:$0xff] %vm39_vm0, %v1523_v54  ;;  %v621_v51 = vadd.f32 %v581_v23, %v497_v50  ;;  %v744_v17 = vadd.f32 %v704_v59, %v620_v6  ;;  %v1198_v1 = vmul.f32 %v10890_v36, %v1154_v45  ;;  %v1404_v38 = vld [vmem:[#allocation2 + $0x13a] sm:$0x3]  ;;  %v415_v52 = vld [vmem:[#allocation2 + $0x138] sm:$0x3] }
 0x115   :  { %1564 = vst.msk [vmem:[#allocation2 + $0x109] sm:$0x3] %vm331_vm3, %v1524_v40  ;;  %v1321_v32 = vmul.f32 %v10893_v37, %v536_v57  ;;  %5324 = vmatpush1.msra.mxu0 %v4281_v8  ;;  %v991_v2 = vadd.f32 %v951_v27, %v867_v18  ;;  %v11569_v44 = vadd.f32 %v1074_v20, %v990_v0  ;;  %v1624_v23 = vld [vmem:[#allocation2 + $0x39] sm:$0x3]  ;;  %v4280_v57 = vld [vmem:[%s14898_s3 + $0x8] sm:$0xff] }
 0x116   :  { %v1237_v4 = vadd.f32 %v1197_v43, %v11515_v63  ;;  %v1445_v30 = vmul.f32 %v11263_v7, %v660_v56  ;;  %2149 = vrot.lane.b32.xlu1 %v11365_v62, %s10527_s26  ;;  %v1238_v50 = vadd.f32 %v1198_v1, %v1113_v41  ;;  %v583_v59 = vmul.f32 %v10757_v25, %v539_v39  ;;  %v662_v49 = vld [vmem:[#allocation2 + $0x132] sm:$0xff]  ;;  %v11603_v18 = vld [vmem:[%s14897_s2] ss:$0 sm:$0xff]  ;;  %v1664_v43 = vld [vmem:[#allocation2 + $0x3a] sm:$0x3] }
 0x117   :  { %v11580_v27 = vmul.f32 %v10767_v28, %v663_v61  ;;  %v953_v9 = vmul.f32 %v10887_v35, %v909_v53  ;;  %1991 = vrot.lane.b32.xlu0 %v1624_v23, %s10526_s25  ;;  %v11585_v56 = vmul.f32 %v10898_v47, %v1033_v55  ;;  %v11588_v62 = vmul.f32 %v10893_v37, %v1280_v10  ;;  %v785_v8 = vld [vmem:[#allocation2 + $0x138] sm:$0x3]  ;;  %v11598_v39 = vld [vmem:[#allocation2 + $0x50] sm:$0xff]  ;;  %v4279_v53 = vld [vmem:[%s14898_s3] sm:$0xff] }
 0x118   :  { %v1361_v63 = vadd.f32 %v1321_v32, %v1237_v4  ;;  %v458_v45 = vmul.f32 %v10745_v21, %v414_v42  ;;  %5325 = vmatprep.subr.mxu0 %v10525_v3  ;;  %v1362_v54 = vadd.f32 %v11530_v19, %v1238_v50  ;;  %v11594_v40 = vmul.f32 %v11263_v7, %v1404_v38  ;;  %v1156_v38 = vld [vmem:[#allocation2 + $0x138] sm:$0x3]  ;;  %v665_v23 = vld [vmem:[#allocation2 + $0x14a] sm:$0x3] }
 0x119   :  { %v459_v6 = vmul.f32 %v10745_v21, %v415_v52  ;;  %v582_v20 = vmul.f32 %v10757_v25, %v538_v11  ;;  %5326 = vmatpush1.msra.mxu0 %v4280_v57  ;;  %v745_v19 = vadd.f32 %v11523_v26, %v621_v51  ;;  %v828_v41 = vmul.f32 %v10884_v34, %v414_v42 }
 0x11a   :  { %v1485_v61 = vadd.f32 %v1445_v30, %v1361_v63  ;;  %v498_v0 = vadd.f32 %v11603_v18, %v458_v45  ;;  %2629 = vrot.lane.b32.xlu1 %v11598_v39, %s10527_s26  ;;  %v1486_v55 = vadd.f32 %v11538_v29, %v1362_v54  ;;  %v706_v1 = vmul.f32 %v10767_v28, %v662_v49  ;;  %v541_v30 = vld [vmem:[#allocation2 + $0x149] sm:$0x3] }
 0x11b   :  { %v499_v10 = vadd.f32 %v11603_v18, %v459_v6  ;;  %v829_v32 = vmul.f32 %v10884_v34, %v785_v8  ;;  %2151 = vrot.lane.b32.xlu0 %v1664_v43, %s10527_s26  ;;  %v868_v52 = vadd.f32 %v828_v41, %v744_v17  ;;  %v952_v4 = vmul.f32 %v10887_v35, %v538_v11  ;;  %v911_v45 = vld [vmem:[#allocation2 + $0x149] sm:$0x3] }
 0x11c   :  { %v1525_v26 = vmax.f32 %v1485_v61, 0.0  ;;  %v622_v51 = vadd.f32 %v582_v20, %v498_v0  ;;  %5327 = vmatprep.subr.mxu0 %v10525_v3  ;;  %v1526_v57 = vmax.f32 %v1486_v55, 0.0  ;;  %v1076_v50 = vmul.f32 %v10898_v47, %v662_v49  ;;  %v1035_v8 = vld [vmem:[#allocation2 + $0x14a] sm:$0x3]  ;;  %v1704_v0 = vld [vmem:[#allocation2 + $0x48] sm:$0x3] }
 0x11d   :  { %v869_v29 = vadd.f32 %v829_v32, %v745_v19  ;;  %v1115_v63 = vadd.f32 %v11527_v60, %v991_v2  ;;  %5328 = vmatpush1.msra.mxu0 %v4279_v53  ;;  %v623_v54 = vadd.f32 %v583_v59, %v499_v10  ;;  %v992_v6 = vadd.f32 %v952_v4, %v868_v52  ;;  %v1282_v61 = vld [vmem:[#allocation2 + $0x149] sm:$0x3]  ;;  %v4310_v60 = vld [vmem:[%s14898_s3 + $0xf8] sm:$0xff] }
 0x11e   :  { %1565 = vst.msk [vmem:[#allocation2 + $0x111] sm:$0xff] %vm39_vm0, %v1525_v26  ;;  %v1199_v17 = vmul.f32 %v10890_v36, %v414_v42  ;;  %v1200_v20 = vmul.f32 %v10890_v36, %v1156_v38  ;;  %2309 = vrot.lane.b32.xlu1 %v11475_v24, %s10530_s19  ;;  %v746_v2 = vadd.f32 %v706_v1, %v622_v51  ;;  %v416_v42 = vld [vmem:[#allocation2 + $0x140] sm:$0xff]  ;;  %v417_v43 = vld [vmem:[#allocation2 + $0x148] sm:$0x3]  ;;  %v1406_v32 = vld [vmem:[#allocation2 + $0x14a] sm:$0x3] }
 0x11f   :  { %1566 = vst.msk [vmem:[#allocation2 + $0x119] sm:$0x3] %vm331_vm3, %v1526_v57  ;;  %v993_v19 = vadd.f32 %v953_v9, %v869_v29  ;;  %v1323_v59 = vmul.f32 %v10893_v37, %v538_v11  ;;  %v1447_v41 = vmul.f32 %v11263_v7, %v662_v49  ;;  %2311 = vrot.lane.b32.xlu0 %v1704_v0, %s10530_s19  ;;  %v540_v38 = vld [vmem:[#allocation2 + $0x141] sm:$0xff]  ;;  %v11649_v26 = vld [vmem:[#allocation2 + $0x51] sm:$0xff]  ;;  %v543_v0 = vld [vmem:[#allocation2 + $0x159] sm:$0x3] }
 0x120   :  { %v11634_v53 = vadd.f32 %v1076_v50, %v992_v6  ;;  %v1239_v24 = vadd.f32 %v1199_v17, %v11569_v44  ;;  %v1240_v55 = vadd.f32 %v1200_v20, %v1115_v63  ;;  %v585_v10 = vmul.f32 %v10757_v25, %v541_v30  ;;  %5329 = vmatprep.subr.mxu0 %v10525_v3  ;;  %v664_v30 = vld [vmem:[#allocation2 + $0x142] sm:$0xff]  ;;  %v4309_v57 = vld [vmem:[%s14898_s3 + $0xf0] sm:$0xff] }
 0x121   :  { %v11640_v9 = vmul.f32 %v10767_v28, %v665_v23  ;;  %v955_v11 = vmul.f32 %v10887_v35, %v911_v45  ;;  %v11644_v49 = vmul.f32 %v10898_v47, %v1035_v8  ;;  %v11647_v1 = vmul.f32 %v10893_v37, %v1282_v61  ;;  %5330 = vmatpush2.msra.mxu0 %v4310_v60  ;;  %v787_v23 = vld [vmem:[#allocation2 + $0x148] sm:$0x3]  ;;  %v1784_v60 = vld [vmem:[#allocation2 + $0x4a] sm:$0x3] }
 0x122   :  { %v1363_v44 = vadd.f32 %v1323_v59, %v1239_v24  ;;  %v1364_v51 = vadd.f32 %v11588_v62, %v1240_v55  ;;  %v460_v52 = vmul.f32 %v10745_v21, %v416_v42  ;;  %v461_v4 = vmul.f32 %v10745_v21, %v417_v43  ;;  %2789 = vrot.lane.b32.xlu1 %v11649_v26, %s10530_s19  ;;  %v1158_v20 = vld [vmem:[#allocation2 + $0x148] sm:$0x3]  ;;  %v667_v24 = vld [vmem:[#allocation2 + $0x15a] sm:$0x3]  ;;  %v11679_v55 = vld [vmem:[#allocation2 + $0x52] sm:$0xff] }
 0x123   :  { %v11660_v29 = vmul.f32 %v11263_v7, %v1406_v32  ;;  %v584_v50 = vmul.f32 %v10757_v25, %v540_v38  ;;  %v747_v62 = vadd.f32 %v11580_v27, %v623_v54  ;;  %v830_v63 = vmul.f32 %v10884_v34, %v416_v42  ;;  %1993 = vrot.lane.b32.xlu0 %v11549_v15, %s10526_s25  ;;  %v4308_v15 = vld [vmem:[%s14898_s3 + $0xe8] sm:$0xff] }
 0x124   :  { %v1487_v45 = vadd.f32 %v1447_v41, %v1363_v44  ;;  %v1488_v8 = vadd.f32 %v11594_v40, %v1364_v51  ;;  %v500_v6 = vadd.f32 %v11603_v18, %v460_v52  ;;  %v501_v17 = vadd.f32 %v11603_v18, %v461_v4  ;;  %5331 = vmatprep.subr.mxu0 %v10525_v3  ;;  %v913_v52 = vld [vmem:[#allocation2 + $0x159] sm:$0x3] }
 0x125   :  { %v708_v7 = vmul.f32 %v10767_v28, %v664_v30  ;;  %v831_v61 = vmul.f32 %v10884_v34, %v787_v23  ;;  %v870_v27 = vadd.f32 %v830_v63, %v746_v2  ;;  %v954_v54 = vmul.f32 %v10887_v35, %v540_v38  ;;  %5332 = vmatpush2.msra.mxu0 %v4309_v57  ;;  %v1037_v4 = vld [vmem:[#allocation2 + $0x15a] sm:$0x3] }
 0x126   :  { %v1527_v40 = vmax.f32 %v1487_v45, 0.0  ;;  %v1528_v59 = vmax.f32 %v1488_v8, 0.0  ;;  %v624_v41 = vadd.f32 %v584_v50, %v500_v6  ;;  %v1078_v43 = vmul.f32 %v10898_v47, %v664_v30  ;;  %2471 = vrot.lane.b32.xlu1 %v1784_v60, %s10526_s25  ;;  %5333 = vmatprep.subr.mxu0 %v10525_v3  ;;  %v1284_v23 = vld [vmem:[#allocation2 + $0x159] sm:$0x3] }
 0x127   :  { %v871_v2 = vadd.f32 %v831_v61, %v747_v62  ;;  %v994_v32 = vadd.f32 %v954_v54, %v870_v27  ;;  %v1117_v44 = vadd.f32 %v11585_v56, %v993_v19  ;;  %v1201_v51 = vmul.f32 %v10890_v36, %v416_v42  ;;  %2473 = vrot.lane.b32.xlu0 %v11679_v55, %s10526_s25  ;;  %v1408_v45 = vld [vmem:[#allocation2 + $0x15a] sm:$0x3]  ;;  %v418_v56 = vld [vmem:[#allocation2 + $0x150] sm:$0xff]  ;;  %v419_v19 = vld [vmem:[#allocation2 + $0x158] sm:$0x3] }
 0x128   :  { %1567 = vst.msk [vmem:[#allocation2 + $0x121] sm:$0xff] %vm39_vm0, %v1527_v40  ;;  %v625_v57 = vadd.f32 %v585_v10, %v501_v17  ;;  %v748_v50 = vadd.f32 %v708_v7, %v624_v41  ;;  %v1202_v63 = vmul.f32 %v10890_v36, %v1158_v20  ;;  %v1325_v62 = vmul.f32 %v10893_v37, %v540_v38  ;;  %v11696_v61 = vld [vmem:[%s14896_s1 + $0x8] ss:$0 sm:$0xff]  ;;  %v542_v17 = vld [vmem:[#allocation2 + $0x151] sm:$0xff]  ;;  %v4307_v38 = vld [vmem:[%s14898_s3 + $0xe0] sm:$0xff] }
 0x129   :  { %1568 = vst.msk [vmem:[#allocation2 + $0x129] sm:$0x3] %vm331_vm3, %v1528_v59  ;;  %5334 = vmatpush2.msra.mxu0 %v4308_v15  ;;  %v995_v42 = vadd.f32 %v955_v11, %v871_v2  ;;  %v11690_v8 = vadd.f32 %v1078_v43, %v994_v32  ;;  %v1241_v6 = vadd.f32 %v1201_v51, %v11634_v53  ;;  %v1824_v20 = vld [vmem:[#allocation2 + $0x58] sm:$0x3] }
 0x12a   :  { %v1449_v10 = vmul.f32 %v11696_v61, %v664_v30  ;;  %5335 = vmatprep.subr.mxu0 %v10525_v3  ;;  %v1242_v11 = vadd.f32 %v1202_v63, %v1117_v44  ;;  %v587_v7 = vmul.f32 %v10757_v25, %v543_v0  ;;  %v11705_v53 = vmul.f32 %v10767_v28, %v667_v24  ;;  %v666_v40 = vld [vmem:[#allocation2 + $0x152] sm:$0xff] }
 0x12b   :  { %v957_v27 = vmul.f32 %v10887_v35, %v913_v52  ;;  %2631 = vrot.lane.b32.xlu1 %v1824_v20, %s10527_s26  ;;  %v1365_v54 = vadd.f32 %v1325_v62, %v1241_v6  ;;  %v11710_v30 = vmul.f32 %v10898_v47, %v1037_v4  ;;  %v11713_v60 = vmul.f32 %v10893_v37, %v1284_v23  ;;  %v789_v59 = vld [vmem:[#allocation2 + $0x158] sm:$0x3]  ;;  %v11730_v4 = vpop.permute.xlu0 %1977  ;;  %v11738_v6 = vld [vmem:[#allocation2 + $0x60] sm:$0xff] }
 0x12c   :  { %v462_v15 = vmul.f32 %v10745_v21, %v418_v56  ;;  %2153 = vrot.lane.b32.xlu0 %v11458_v5, %s10527_s26  ;;  %v1366_v0 = vadd.f32 %v11647_v1, %v1242_v11  ;;  %v11720_v41 = vmul.f32 %v11696_v61, %v1408_v45  ;;  %v463_v43 = vmul.f32 %v10745_v21, %v419_v19  ;;  %v4306_v2 = vld [vmem:[%s14898_s3 + $0xd8] sm:$0xff] }
 0x12d   :  { %v586_v24 = vmul.f32 %v10757_v25, %v542_v17  ;;  %5336 = vmatpush2.msra.mxu0 %v4307_v38  ;;  %v1489_v32 = vadd.f32 %v1449_v10, %v1365_v54  ;;  %v749_v51 = vadd.f32 %v11640_v9, %v625_v57  ;;  %v832_v52 = vmul.f32 %v10884_v34, %v418_v56  ;;  %v1864_v1 = vld [vmem:[#allocation2 + $0x59] sm:$0x3]  ;;  %v4305_v9 = vld [vmem:[%s14898_s3 + $0xd0] sm:$0xff] }
 0x12e   :  { %v502_v44 = vadd.f32 %v11603_v18, %v462_v15  ;;  %5337 = vmatprep.subr.mxu0 %v10525_v3  ;;  %v1490_v23 = vadd.f32 %v11660_v29, %v1366_v0  ;;  %v503_v63 = vadd.f32 %v11603_v18, %v463_v43  ;;  %v710_v62 = vmul.f32 %v10767_v28, %v666_v40  ;;  %v1160_v19 = vld [vmem:[#allocation2 + $0x158] sm:$0x3]  ;;  %v1039_v0 = vld [vmem:[#allocation2 + $0x16a] sm:$0x3] }
 0x12f   :  { %v833_v45 = vmul.f32 %v10884_v34, %v789_v59  ;;  %2791 = vrot.lane.b32.xlu1 %v1864_v1, %s10530_s19  ;;  %v1529_v57 = vmax.f32 %v1489_v32, 0.0  ;;  %v872_v20 = vadd.f32 %v832_v52, %v748_v50  ;;  %v956_v29 = vmul.f32 %v10887_v35, %v542_v17  ;;  %5338 = vmatpush2.msra.mxu0 %v4306_v2  ;;  %v915_v59 = vld [vmem:[#allocation2 + $0x169] sm:$0x3]  ;;  %v790_v2 = vld [vmem:[#allocation2 + $0x160] sm:$0xff] }
 0x130   :  { %v626_v10 = vadd.f32 %v586_v24, %v502_v44  ;;  %2633 = vrot.lane.b32.xlu0 %v11738_v6, %s10527_s26  ;;  %v1530_v38 = vmax.f32 %v1490_v23, 0.0  ;;  %v627_v11 = vadd.f32 %v587_v7, %v503_v63  ;;  %v1119_v15 = vadd.f32 %v11644_v49, %v995_v42  ;;  %5339 = vmatprep.subr.mxu0 %v10525_v3  ;;  %v1286_v44 = vld [vmem:[#allocation2 + $0x169] sm:$0x3]  ;;  %v914_v1 = vld [vmem:[#allocation2 + $0x161] sm:$0xff] }
 0x131   :  { %v873_v54 = vadd.f32 %v833_v45, %v749_v51  ;;  %1569 = vst.msk [vmem:[#allocation2 + $0x131] sm:$0xff] %vm39_vm0, %v1529_v57  ;;  %v996_v43 = vadd.f32 %v956_v29, %v872_v20  ;;  %v1080_v50 = vmul.f32 %v10898_v47, %v666_v40  ;;  %v1203_v24 = vmul.f32 %v10890_v36, %v418_v56  ;;  %v791_v52 = vld [vmem:[#allocation2 + $0x168] sm:$0x3] }
 0x132   :  { %v1204_v32 = vmul.f32 %v10890_v36, %v1160_v19  ;;  %5340 = vmatpush2.msra.mxu0 %v4305_v9  ;;  %1570 = vst.msk [vmem:[#allocation2 + $0x139] sm:$0x3] %vm331_vm3, %v1530_v38  ;;  %v750_v49 = vadd.f32 %v710_v62, %v626_v10  ;;  %v1327_v7 = vmul.f32 %v10893_v37, %v542_v17  ;;  %v1626_v23 = vld [vmem:[#allocation2 + $0x49] sm:$0x3]  ;;  %v11763_v17 = vpop.permute.xlu0 %2137 }
 0x133   :  { %v997_v42 = vadd.f32 %v957_v27, %v873_v54  ;;  %v1451_v51 = vmul.f32 %v11696_v61, %v666_v40  ;;  %1997 = vrot.lane.b32.xlu1 %v11649_v26, %s10526_s25  ;;  %v4304_v56 = vld [vmem:[%s14898_s3 + $0xc8] sm:$0xff]  ;;  %v1120_v63 = vadd.f32 %v1080_v50, %v996_v43  ;;  %v1243_v45 = vadd.f32 %v1203_v24, %v11690_v8  ;;  %v1163_v54 = vld [vmem:[#allocation2 + $0x170] sm:$0xff] }
 0x134   :  { %v1244_v19 = vadd.f32 %v1204_v32, %v1119_v15  ;;  %v959_v62 = vmul.f32 %v10887_v35, %v915_v59  ;;  %v1038_v27 = vld [vmem:[#allocation2 + $0x162] sm:$0xff]  ;;  %1995 = vrot.lane.b32.xlu0 %v1626_v23, %s10526_s25  ;;  %v1083_v40 = vmul.f32 %v10898_v47, %v1039_v0  ;;  %v1330_v26 = vmul.f32 %v10893_v37, %v1286_v44  ;;  %v1164_v15 = vld [vmem:[#allocation2 + $0x178] sm:$0x3] }
 0x135   :  { %v751_v9 = vadd.f32 %v11705_v53, %v627_v11  ;;  %v834_v57 = vmul.f32 %v10884_v34, %v790_v2  ;;  %v1162_v10 = vld [vmem:[#allocation2 + $0x168] sm:$0x3]  ;;  %5341 = vmatprep.subr.mxu0 %v10525_v3  ;;  %v1367_v8 = vadd.f32 %v1327_v7, %v1243_v45  ;;  %v835_v29 = vmul.f32 %v10884_v34, %v791_v52  ;;  %v1287_v52 = vld [vmem:[#allocation2 + $0x171] sm:$0xff]  ;;  %v1288_v23 = vld [vmem:[#allocation2 + $0x179] sm:$0x3] }
 0x136   :  { %v1368_v20 = vadd.f32 %v11713_v60, %v1244_v19  ;;  %v958_v38 = vmul.f32 %v10887_v35, %v914_v1  ;;  %v11773_v59 = vld [vmem:[#allocation2 + $0x62] sm:$0xff]  ;;  %5342 = vmatpush2.msra.mxu0 %v4304_v56  ;;  %v1082_v53 = vmul.f32 %v10898_v47, %v1038_v27  ;;  %v1121_v11 = vadd.f32 %v11710_v30, %v997_v42  ;;  %v1410_v30 = vld [vmem:[#allocation2 + $0x16a] sm:$0x3]  ;;  %v1411_v19 = vld [vmem:[#allocation2 + $0x172] sm:$0xff] }
 0x137   :  { %v874_v0 = vadd.f32 %v834_v57, %v750_v49  ;;  %v1205_v43 = vmul.f32 %v10890_v36, %v790_v2  ;;  %2477 = vrot.lane.b32.xlu1 %v11773_v59, %s10526_s25  ;;  %v4303_v60 = vld [vmem:[%s14898_s3 + $0xc0] sm:$0xff]  ;;  %v1491_v50 = vadd.f32 %v1451_v51, %v1367_v8  ;;  %v875_v32 = vadd.f32 %v835_v29, %v751_v9  ;;  %v11790_v9 = vpop.permute.xlu0 %1979  ;;  %v1412_v8 = vld [vmem:[#allocation2 + $0x17a] sm:$0x3] }
 0x138   :  { %v1492_v24 = vadd.f32 %v11720_v41, %v1368_v20  ;;  %v1206_v44 = vmul.f32 %v10890_v36, %v1162_v10  ;;  %2317 = vrot.lane.b32.xlu0 %v11738_v6, %s10530_s19  ;;  %v1207_v2 = vmul.f32 %v10890_v36, %v1163_v54  ;;  %v1208_v42 = vmul.f32 %v10890_v36, %v1164_v15 }
 0x139   :  { %v998_v49 = vadd.f32 %v958_v38, %v874_v0  ;;  %v1245_v7 = vadd.f32 %v1205_v43, %v1120_v63  ;;  %5343 = vmatprep.subr.mxu0 %v10525_v3  ;;  %v1531_v51 = vmax.f32 %v1491_v50, 0.0  ;;  %v999_v41 = vadd.f32 %v959_v62, %v875_v32  ;;  %v11796_v63 = vld [vmem:[#allocation2 + $0x61] sm:$0xff]  ;;  %v4302_v62 = vld [vmem:[%s14898_s3 + $0xb8] sm:$0xff]  ;;  %v11811_v50 = vld [vmem:[#allocation2 + $0x70] sm:$0xff] }
 0x13a   :  { %v1532_v56 = vmax.f32 %v1492_v24, 0.0  ;;  %v1246_v45 = vadd.f32 %v1206_v44, %v1121_v11  ;;  %5344 = vmatpush2.msra.mxu0 %v4303_v60  ;;  %v1329_v6 = vmul.f32 %v10893_v37, %v914_v1  ;;  %v1331_v10 = vmul.f32 %v10893_v37, %v1287_v52 }
 0x13b   :  { %v1122_v57 = vadd.f32 %v1082_v53, %v998_v49  ;;  %2157 = vrot.lane.b32.xlu1 %v11679_v55, %s10527_s26  ;;  %1571 = vst.msk [vmem:[#allocation2 + $0x141] sm:$0xff] %vm39_vm0, %v1531_v51  ;;  %v1454_v20 = vmul.f32 %v11696_v61, %v1410_v30  ;;  %v1123_v29 = vadd.f32 %v1083_v40, %v999_v41  ;;  %v4301_v40 = vld [vmem:[%s14898_s3 + $0xb0] sm:$0xff]  ;;  %v11819_v52 = vpop.permute.xlu0 %2139  ;;  %v4300_v30 = vld [vmem:[%s14898_s3 + $0xa8] sm:$0xff]  ;;  %v4299_v51 = vld [vmem:[%s14898_s3 + $0xa0] sm:$0xff] }
 0x13c   :  { %1572 = vst.msk [vmem:[#allocation2 + $0x149] sm:$0x3] %vm331_vm3, %v1532_v56  ;;  %v1332_v1 = vmul.f32 %v10893_v37, %v1288_v23  ;;  %v1370_v38 = vadd.f32 %v1330_v26, %v1246_v45  ;;  %2793 = vrot.lane.b32.xlu0 %v11796_v63, %s10530_s19  ;;  %v1369_v15 = vadd.f32 %v1329_v6, %v1245_v7  ;;  %v400_v7 = vld [vmem:[#allocation2 + $0xc0] sm:$0xff]  ;;  %v401_v45 = vld [vmem:[#allocation2 + $0xc8] sm:$0x3] }
 0x13d   :  { %v1247_v54 = vadd.f32 %v1207_v2, %v1122_v57  ;;  %v1453_v0 = vmul.f32 %v11696_v61, %v1038_v27  ;;  %v1455_v53 = vmul.f32 %v11696_v61, %v1411_v19  ;;  %5345 = vmatprep.subr.mxu0 %v10525_v3  ;;  %v1248_v11 = vadd.f32 %v1208_v42, %v1123_v29  ;;  %v1666_v27 = vld [vmem:[#allocation2 + $0x4a] sm:$0x3]  ;;  %v1706_v42 = vld [vmem:[#allocation2 + $0x58] sm:$0x3]  ;;  %v11836_v19 = vld [vmem:[#allocation2 + $0xc1] sm:$0xff] }
 0x13e   :  { %v1456_v43 = vmul.f32 %v11696_v61, %v1412_v8  ;;  %v1494_v60 = vadd.f32 %v1454_v20, %v1370_v38  ;;  %5346 = vmatpush2.msra.mxu0 %v4302_v62  ;;  %v3363_v56 = vcombine.high %v11458_v5, %v11458_v5  ;;  %v11834_v41 = vrot.slane %v11679_v55, %v11316_v12  ;;  %v10051_v6 = vld.sshfl [vmem:[#allocation2 + $0x4a] sm:$0x3 pattern:$0x76325410]  ;;  %v4298_v5 = vld [vmem:[%s14898_s3 + $0x98] sm:$0xff] }
 0x13f   :  { %v1371_v26 = vadd.f32 %v1331_v10, %v1247_v54  ;;  %v1493_v24 = vadd.f32 %v1453_v0, %v1369_v15  ;;  %2637 = vrot.lane.b32.xlu1 %v11811_v50, %s10527_s26  ;;  %v1372_v32 = vadd.f32 %v1332_v1, %v1248_v11  ;;  %5347 = vmatprep.subr.mxu0 %v10525_v3  ;;  %v525_v29 = vld [vmem:[#allocation2 + $0xc9] sm:$0x3]  ;;  %v773_v1 = vld [vmem:[#allocation2 + $0xd8] sm:$0x3]  ;;  %v1786_v0 = vld [vmem:[#allocation2 + $0x5a] sm:$0x3] }
 0x140   :  { %v1534_v44 = vmax.f32 %v1494_v60, 0.0  ;;  %2155 = vrot.lane.b32.xlu0 %v1666_v27, %s10527_s26  ;;  %5348 = vmatpush2.msra.mxu0 %v4301_v40  ;;  %v3391_v8 = vrot.slane %v3363_v56, %v11316_v12  ;;  %v10077_v62 = vcombine.low %v10051_v6, %v11834_v41  ;;  %v444_v20 = vmul.f32 %v10745_v21, %v400_v7  ;;  %v11855_v15 = vld [vmem:[#allocation2 + $0xc2] sm:$0xff]  ;;  %v4297_v11 = vld [vmem:[%s14898_s3 + $0x90] sm:$0xff]  ;;  %v649_v40 = vld [vmem:[#allocation2 + $0xca] sm:$0x3] }
 0x141   :  { %v1495_v49 = vadd.f32 %v1455_v53, %v1371_v26  ;;  %v1533_v2 = vmax.f32 %v1493_v24, 0.0  ;;  %v1496_v23 = vadd.f32 %v1456_v43, %v1372_v32  ;;  %5349 = vmatprep.subr.mxu0 %v10525_v3  ;;  %v445_v38 = vmul.f32 %v10745_v21, %v401_v45  ;;  %v10484_v26 = vld [vmem:[#allocation2 + $0xd0] sm:$0xff]  ;;  %v1628_v27 = vld [vmem:[#allocation2 + $0x59] sm:$0x3] }
 0x142   :  { %1574 = vst.msk [vmem:[#allocation2 + $0x159] sm:$0x3] %vm331_vm3, %v1534_v44  ;;  %5350 = vmatpush2.msra.mxu0 %v4300_v30  ;;  %v568_v54 = vmul.f32 %v10757_v25, %v11836_v19  ;;  %v4444_v43 = vrot.slane %v3391_v8, %v11316_v12  ;;  %v4458_v21 = vrot.slane %v10077_v62, %v11316_v12  ;;  %v4296_v30 = vld [vmem:[%s14898_s3 + $0x88] sm:$0xff]  ;;  %v11884_v56 = vld [vmem:[#allocation2 + $0x71] sm:$0xff] }
 0x143   :  { %v1535_v57 = vmax.f32 %v1495_v49, 0.0  ;;  %1573 = vst.msk [vmem:[#allocation2 + $0x151] sm:$0xff] %vm39_vm0, %v1533_v2  ;;  %2313 = vrot.lane.b32.xlu1 %v11598_v39, %s10530_s19  ;;  %v1536_v10 = vmax.f32 %v1496_v23, 0.0  ;;  %5351 = vmatprep.subr.mxu0 %v10525_v3  ;;  %v11850_v39 = vpop.permute.xlu1 %1981  ;;  %v484_v60 = vadd.f32 %v11603_v18, %v444_v20  ;;  %v816_v24 = vmul.f32 %v10484_v26, %v10884_v34 }
 0x144   :  { %2315 = vrot.lane.b32.xlu0 %v1706_v42, %s10530_s19  ;;  %5352 = vmatpush2.msra.mxu0 %v4299_v51  ;;  %v11858_v53 = vpop.permute.xlu0 %2457  ;;  %v485_v32 = vadd.f32 %v11603_v18, %v445_v38  ;;  %v569_v44 = vmul.f32 %v10757_v25, %v525_v29  ;;  %v11876_v49 = vcombine.low %v4444_v43, %v4458_v21  ;;  %v897_v51 = vld [vmem:[#allocation2 + $0xd9] sm:$0x3] }
 0x145   :  { %1575 = vst.msk [vmem:[#allocation2 + $0x161] sm:$0xff] %vm39_vm0, %v1535_v57  ;;  %5353 = vmatprep.subr.mxu0 %v10525_v3  ;;  %v608_v2 = vadd.f32 %v568_v54, %v484_v60  ;;  %v692_v42 = vmul.f32 %v10767_v28, %v11855_v15  ;;  %v817_v7 = vmul.f32 %v10884_v34, %v773_v1  ;;  %v4295_v57 = vld [vmem:[%s14898_s3 + $0x80] sm:$0xff]  ;;  %v1668_v34 = vld [vmem:[#allocation2 + $0x5a] sm:$0x3]  ;;  %v10486_v38 = vld [vmem:[#allocation2 + $0xd2] sm:$0xff] }
 0x146   :  { %1576 = vst.msk [vmem:[#allocation2 + $0x169] sm:$0x3] %vm331_vm3, %v1536_v10  ;;  %5354 = vmatpush2.msra.mxu0 %v4298_v5  ;;  %v609_v25 = vadd.f32 %v569_v44, %v485_v32  ;;  %v693_v18 = vmul.f32 %v10767_v28, %v649_v40  ;;  %v1021_v5 = vld [vmem:[#allocation2 + $0xda] sm:$0x3]  ;;  %v10485_v28 = vld [vmem:[#allocation2 + $0xd1] sm:$0xff]  ;;  %v941_v20 = vmul.f32 %v10887_v35, %v897_v51 }
 0x147   :  { %2475 = vrot.lane.b32.xlu1 %v1786_v0, %s10526_s25  ;;  %5355 = vmatprep.subr.mxu0 %v10525_v3  ;;  %v11881_v23 = vpop.permute.xlu1 %2141  ;;  %v732_v6 = vadd.f32 %v692_v42, %v608_v2  ;;  %v940_v8 = vmul.f32 %v10485_v28, %v10887_v35  ;;  %v1064_v54 = vmul.f32 %v10486_v38, %v10898_v47  ;;  %v1826_v0 = vld [vmem:[#allocation2 + $0x68] sm:$0x3]  ;;  %v11920_v2 = vld [vmem:[#allocation2 + $0x72] sm:$0xff] }
 0x148   :  { %1999 = vrot.lane.b32.xlu0 %v1628_v27, %s10526_s25  ;;  %5356 = vmatpush2.msra.mxu0 %v4297_v11  ;;  %v11886_v45 = vpop.permute.xlu0 %2299  ;;  %v733_v10 = vadd.f32 %v693_v18, %v609_v25  ;;  %v1065_v21 = vmul.f32 %v10898_v47, %v1021_v5  ;;  %v1189_v40 = vmul.f32 %v10890_v36, %v11300_v33  ;;  %v1866_v47 = vld [vmem:[#allocation2 + $0x69] sm:$0x3] }
 0x149   :  { %5357 = vmatprep.subr.mxu0 %v10525_v3  ;;  %v856_v62 = vadd.f32 %v816_v24, %v732_v6  ;;  %v1190_v26 = vmul.f32 %v10890_v36, %v11427_v31  ;;  %v1313_v32 = vmul.f32 %v10893_v37, %v11310_v58  ;;  %v1314_v33 = vmul.f32 %v10893_v37, %v11432_v48  ;;  %v1788_v18 = vld [vmem:[#allocation2 + $0x6a] sm:$0x3]  ;;  %v1579_v6 = vld [vmem:[#allocation2 + $0x10] sm:$0xff] }
 0x14a   :  { %5358 = vmatpush2.msra.mxu0 %v4296_v30  ;;  %v857_v1 = vadd.f32 %v817_v7, %v733_v10  ;;  %v1437_v36 = vmul.f32 %v11696_v61, %v11325_v46  ;;  %v1438_v58 = vmul.f32 %v11696_v61, %v11434_v14  ;;  %v2899_v14 = vsel %vm39_vm0, %v1579_v6, %v11850_v39  ;;  %v1828_v61 = vld [vmem:[#allocation2 + $0x78] sm:$0x3] }
 0x14b   :  { %2797 = vrot.lane.b32.xlu1 %v11884_v56, %s10530_s19  ;;  %5359 = vmatprep.subr.mxu0 %v10525_v3  ;;  %v980_v43 = vadd.f32 %v940_v8, %v856_v62  ;;  %v2940_v8 = vsel %vm2937_vm4, %v2899_v14, %v11881_v23  ;;  %v1630_v62 = vld [vmem:[#allocation2 + $0x69] sm:$0x3] }
 0x14c   :  { %2159 = vrot.lane.b32.xlu0 %v1668_v34, %s10527_s26  ;;  %v11898_v29 = vpop.permute.xlu1 %2297  ;;  %5360 = vmatpush2.msra.mxu0 %v4295_v57  ;;  %v981_v60 = vadd.f32 %v941_v20, %v857_v1  ;;  %v1577_v57 = vld [vmem:[#allocation2] sm:$0xff]  ;;  %v1737_v20 = vld [vmem:[#allocation2 + $0x11] sm:$0xff] }
 0x14d   :  { %v11901_v11 = vpop.permute.xlu0 %1983  ;;  %v1104_v35 = vadd.f32 %v1064_v54, %v980_v43  ;;  %v2897_v28 = vsel %vm39_vm0, %v1577_v57, %v11730_v4  ;;  %v10487_v1 = vld [vmem:[#allocation2 + $0x21] sm:$0xff]  ;;  %v3019_v4 = vsel %vm39_vm0, %v1737_v20, %v11858_v53 }
 0x14e   :  { %v1105_v27 = vadd.f32 %v1065_v21, %v981_v60  ;;  %v1578_v54 = vld [vmem:[#allocation2 + $0x8] sm:$0x3]  ;;  %v2938_v60 = vsel %vm2937_vm4, %v2897_v28, %v11763_v17  ;;  %v11987_v20 = vld [vmem:[#allocation2 + $0x80] sm:$0xff] }
 0x14f   :  { %2635 = vrot.lane.b32.xlu1 %v1826_v0, %s10527_s26  ;;  %v1229_v30 = vadd.f32 %v1189_v40, %v1104_v35  ;;  %v10488_v0 = vld [vmem:[#allocation2 + $0x32] sm:$0xff]  ;;  %v2898_v17 = vsel %vm39_vm0, %v1578_v54, %v11790_v9  ;;  %v1670_v54 = vld [vmem:[#allocation2 + $0x6a] sm:$0x3] }
 0x150   :  { %2001 = vrot.lane.b32.xlu0 %v11796_v63, %s10526_s25  ;;  %v11911_v24 = vpop.permute.xlu1 %2459  ;;  %v1230_v42 = vadd.f32 %v1190_v26, %v1105_v27  ;;  %v3312_v43 = vcombine.high %v10488_v0, %v10488_v0  ;;  %v3333_v35 = vrot.slane %v10488_v0, %v11316_v12  ;;  %v1708_v27 = vld [vmem:[#allocation2 + $0x68] sm:$0x3] }
 0x151   :  { %v11915_v44 = vpop.permute.xlu0 %2143  ;;  %v1353_v31 = vadd.f32 %v1313_v32, %v1229_v30 }
 0x152   :  { %v1354_v25 = vadd.f32 %v1314_v33, %v1230_v42 }
 0x153   :  { %2795 = vrot.lane.b32.xlu1 %v1866_v47, %s10530_s19  ;;  %v1477_v37 = vadd.f32 %v1437_v36, %v1353_v31  ;;  %v2979_v47 = vsel %vm2978_vm5, %v2938_v60, %v11898_v29  ;;  %v11960_v31 = vrot.slane %v3312_v43, %v11316_v12 }
 0x154   :  { %2481 = vrot.lane.b32.xlu0 %v11920_v2, %s10526_s25  ;;  %v2462_v7 = vpop.permute.xlu1 %2461  ;;  %v1478_v48 = vadd.f32 %v1438_v58, %v1354_v25  ;;  %v1868_v25 = vld [vmem:[#allocation2 + $0x79] sm:$0x3] }
 0x155   :  { %v2618_v51 = vpop.permute.xlu0 %2617  ;;  %v1517_v46 = vmax.f32 %v1477_v37, 0.0  ;;  %v3021_v39 = vsel %vm39_vm0, %v10487_v1, %v2462_v7  ;;  %v10049_v37 = vld.sshfl [vmem:[#allocation2 + $0x2a] sm:$0x3 pattern:$0x76325410] }
 0x156   :  { %v1518_v10 = vmax.f32 %v1478_v48, 0.0  ;;  %v3059_v40 = vsel %vm2937_vm4, %v3019_v4, %v2618_v51  ;;  %v1738_v48 = vld [vmem:[#allocation2 + $0x19] sm:$0x3]  ;;  %v10071_v6 = vcombine.low %v10049_v37, %v3333_v35 }
 0x157   :  { %2479 = vrot.lane.b32.xlu1 %v1788_v18, %s10526_s25  ;;  %1557 = vst.msk [vmem:[#allocation2 + $0xd1] sm:$0xff] %vm39_vm0, %v1517_v46  ;;  %v11975_v46 = vld [vmem:[#allocation2 + $0x82] sm:$0xff] }
 0x158   :  { %2161 = vrot.lane.b32.xlu0 %v11773_v59, %s10527_s26  ;;  %v2622_v34 = vpop.permute.xlu1 %2621  ;;  %1558 = vst.msk [vmem:[#allocation2 + $0xd9] sm:$0x3] %vm331_vm3, %v1518_v10  ;;  %v4374_v4 = vrot.slane %v10071_v6, %v11316_v12 }
 0x159   :  { %v2302_v5 = vpop.permute.xlu0 %2301  ;;  %v3061_v23 = vsel %vm2937_vm4, %v3021_v39, %v2622_v34  ;;  %v3020_v34 = vsel %vm39_vm0, %v1738_v48, %v11911_v24 }
 0x15a   :  { %v2981_v38 = vsel %vm2978_vm5, %v2940_v8, %v2302_v5 }
 0x15b   :  { %2639 = vrot.lane.b32.xlu1 %v1828_v61, %s10527_s26 }
 0x15c   :  { %2003 = vrot.lane.b32.xlu0 %v1630_v62, %s10526_s25  ;;  %v2782_v21 = vpop.permute.xlu1 %2781 }
 0x15d   :  { %v3101_v26 = vsel %vm2978_vm5, %v3061_v23, %v2782_v21  ;;  %v2778_v32 = vpop.permute.xlu0 %2777 }
 0x15e   :  { %v3310_v53 = vcombine.low %v2981_v38, %v3101_v26  ;;  %v3311_v30 = vcombine.high %v2981_v38, %v3101_v26  ;;  %v3099_v33 = vsel %vm2978_vm5, %v3059_v40, %v2778_v32 }
 0x15f   :  { %2319 = vrot.lane.b32.xlu1 %v1708_v27, %s10530_s19  ;;  %v3259_v42 = vcombine.low %v2979_v47, %v3099_v33  ;;  %v3260_v36 = vcombine.high %v2979_v47, %v3099_v33  ;;  %v1790_v47 = vld [vmem:[#allocation2 + $0x7a] sm:$0x3] }
 0x160   :  { %2321 = vrot.lane.b32.xlu0 %v11811_v50, %s10530_s19  ;;  %v3319_v58 = vrot.slane %v3310_v53, %v11316_v12  ;;  %v11964_v29 = vrot.slane %v3311_v30, %v11316_v12  ;;  %v2620_v7 = vpop.permute.xlu1 %2619  ;;  %v2939_v50 = vsel %vm2937_vm4, %v2898_v17, %v11819_v52  ;;  %v1710_v17 = vld [vmem:[#allocation2 + $0x78] sm:$0x3] }
 0x161   :  { %v11966_v18 = vpop.permute.xlu0 %1985  ;;  %v3268_v51 = vrot.slane %v3259_v42, %v11316_v12  ;;  %v3275_v9 = vrot.slane %v3260_v36, %v11316_v12  ;;  %v3060_v5 = vsel %vm2937_vm4, %v3020_v34, %v2620_v7  ;;  %v2980_v8 = vsel %vm2978_vm5, %v2939_v50, %v11886_v45  ;;  %v12012_v36 = vld [vmem:[#allocation2 + $0x81] sm:$0xff]  ;;  %v1580_v7 = vld [vmem:[#allocation2 + $0x18] sm:$0x3] }
 0x162   :  { %v3343_v57 = vcombine.low %v11964_v29, %v11960_v31  ;;  %v3342_v52 = vcombine.high %v3319_v58, %v3333_v35 }
 0x163   :  { %2799 = vrot.lane.b32.xlu1 %v1868_v25, %s10530_s19  ;;  %v4332_v10 = vrot.slane %v3268_v51, %v11316_v12  ;;  %v4346_v14 = vrot.slane %v3275_v9, %v11316_v12  ;;  %v1740_v25 = vld [vmem:[#allocation2 + $0x29] sm:$0x3]  ;;  %v2900_v9 = vsel %vm39_vm0, %v1580_v7, %v11901_v11  ;;  %v1632_v11 = vld [vmem:[#allocation2 + $0x79] sm:$0x3] }
 0x164   :  { %2485 = vrot.lane.b32.xlu0 %v11975_v46, %s10526_s25  ;;  %v10073_v61 = vcombine.high %v3333_v35, %v3343_v57  ;;  %v2780_v28 = vpop.permute.xlu1 %2779  ;;  %v10072_v21 = vcombine.low %v3342_v52, %v11964_v29  ;;  %v1830_v35 = vld [vmem:[#allocation2 + $0x88] sm:$0x3]  ;;  %v2941_v50 = vsel %vm2937_vm4, %v2900_v9, %v11915_v44  ;;  %v10050_v44 = vld.sshfl [vmem:[#allocation2 + $0x3a] sm:$0x3 pattern:$0x76325410] }
 0x165   :  { %v3100_v62 = vsel %vm2978_vm5, %v3060_v5, %v2780_v28  ;;  %v11989_v24 = vpop.permute.xlu0 %2465  ;;  %v4355_v1 = vcombine.high %v4332_v10, %v4346_v14  ;;  %v4354_v39 = vcombine.low %v4332_v10, %v4346_v14  ;;  %v1870_v51 = vld [vmem:[#allocation2 + $0x89] sm:$0x3]  ;;  %v12031_v5 = vld [vmem:[#allocation2 + $0x90] sm:$0xff] }
 0x166   :  { %v3294_v38 = vcombine.low %v2980_v8, %v3100_v62  ;;  %v4388_v23 = vrot.slane %v10073_v61, %v11316_v12  ;;  %v4381_v32 = vrot.slane %v10072_v21, %v11316_v12  ;;  %v1672_v62 = vld [vmem:[#allocation2 + $0x7a] sm:$0x3]  ;;  %v12046_v21 = vld [vmem:[#allocation2 + $0x91] sm:$0xff] }
 0x167   :  { %2641 = vrot.lane.b32.xlu1 %v11987_v20, %s10527_s26  ;;  %5361 = vmatprep.mubr.f32.mxu0 %v4355_v1  ;;  %v10501_v1 = vld.sshfl [vmem:[#allocation2 + $0x42] sm:$0xff pattern:$0x76325410] }
 0x168   :  { %2163 = vrot.lane.b32.xlu0 %v1670_v54, %s10527_s26  ;;  %v3301_v45 = vrot.slane %v3294_v38, %v11316_v12  ;;  %v2464_v0 = vpop.permute.xlu1 %2463  ;;  %v4391_v43 = vcombine.low %v4374_v4, %v4388_v23  ;;  %5362 = vmatmul.mubr.f32.vlgmr.msra.gmra.mxu0 %v4354_v39  ;;  %v1712_v4 = vld [vmem:[#allocation2 + $0x88] sm:$0x3] }
 0x169   :  { %v11998_v60 = vpop.permute.xlu0 %2145  ;;  %v3022_v37 = vsel %vm39_vm0, %v1740_v25, %v2464_v0 }
 0x16a   :  { %v10070_v40 = vcombine.low %v3301_v45, %v3319_v58  ;;  %10348 = vmatmul.mubr.msk.f32.gmra.mxu1 %vm39_vm0, %v4391_v43  ;;  %v4423_v45 = vrot.slane %v10501_v1, %v11316_v12 }
 0x16b   :  { %2005 = vrot.lane.b32.xlu1 %v11884_v56, %s10526_s25  ;;  %10350 = vmatprep.mubr.msk.f32.mxu1 %vm10528_vm2, %v10525_v3 }
 0x16c   :  { %2643 = vrot.lane.b32.xlu0 %v1830_v35, %s10527_s26  ;;  %v2624_v26 = vpop.permute.xlu1 %2623  ;;  %v4367_v27 = vrot.slane %v10070_v40, %v11316_v12  ;;  %v1581_v35 = vld [vmem:[#allocation2 + $0x20] sm:$0xff] }
 0x16d   :  { %v12008_v53 = vpop.permute.xlu0 %1987  ;;  %v3062_v48 = vsel %vm2937_vm4, %v3022_v37, %v2624_v26  ;;  %v1741_v26 = vld [vmem:[#allocation2 + $0x31] sm:$0xff]  ;;  %v1742_v37 = vld [vmem:[#allocation2 + $0x39] sm:$0x3] }
 0x16e   :  { %v4390_v30 = vcombine.high %v4367_v27, %v4381_v32  ;;  %v4389_v33 = vcombine.low %v4367_v27, %v4381_v32  ;;  %v3023_v27 = vsel %vm39_vm0, %v1741_v26, %v11989_v24  ;;  %v1792_v24 = vld [vmem:[#allocation2 + $0x8a] sm:$0x3] }
 0x16f   :  { %2483 = vrot.lane.b32.xlu1 %v1790_v47, %s10526_s25  ;;  %v3344_v47 = vcombine.high %v11964_v29, %v11960_v31 }
 0x170   :  { %2323 = vrot.lane.b32.xlu0 %v1710_v17, %s10530_s19  ;;  %v2304_v42 = vpop.permute.xlu1 %2303  ;;  %5366 = vmatprep.mubr.f32.mxu0 %v4390_v30 }
 0x171   :  { %5367 = vmatmul.mubr.f32.gmra.mxu0 %v4389_v33  ;;  %v2306_v58 = vpop.permute.xlu0 %2305  ;;  %v2982_v6 = vsel %vm2978_vm5, %v2941_v50, %v2304_v42 }
 0x173   :  { %2801 = vrot.lane.b32.xlu1 %v12012_v36, %s10530_s19 }
 0x174   :  { %2803 = vrot.lane.b32.xlu0 %v1870_v51, %s10530_s19  ;;  %v2784_v57 = vpop.permute.xlu1 %2783 }
 0x175   :  { %v3102_v34 = vsel %vm2978_vm5, %v3062_v48, %v2784_v57  ;;  %v12025_v10 = vpop.permute.xlu0 %2469 }
 0x176   :  { %v3345_v14 = vcombine.low %v2982_v6, %v3102_v34  ;;  %v1872_v34 = vld [vmem:[#allocation2 + $0x99] sm:$0x3] }
 0x177   :  { %2165 = vrot.lane.b32.xlu1 %v11920_v2, %s10527_s26 }
 0x178   :  { %2007 = vrot.lane.b32.xlu0 %v1632_v11, %s10526_s25  ;;  %v3352_v52 = vrot.slane %v3345_v14, %v11316_v12  ;;  %v2626_v61 = vpop.permute.xlu1 %2625  ;;  %v1833_v11 = vld [vmem:[#allocation2 + $0xa0] sm:$0xff] }
 0x179   :  { %v12033_v28 = vpop.permute.xlu0 %2147  ;;  %v3063_v30 = vsel %vm2937_vm4, %v3023_v27, %v2626_v61 }
 0x17a   :  { %v3360_v8 = vcombine.low %v3352_v52, %v10050_v44  ;;  %v10074_v7 = vcombine.low %v3344_v47, %v3352_v52  ;;  %v1582_v52 = vld [vmem:[#allocation2 + $0x28] sm:$0x3] }
 0x17b   :  { %2645 = vrot.lane.b32.xlu1 %v12031_v5, %s10527_s26  ;;  %v12104_v47 = vld [vmem:[#allocation2 + $0xa2] sm:$0xff] }
 0x17c   :  { %2167 = vrot.lane.b32.xlu0 %v1672_v62, %s10527_s26  ;;  %v10075_v39 = vcombine.high %v11960_v31, %v3360_v8  ;;  %v12039_v38 = vpop.permute.xlu1 %1989  ;;  %v4402_v9 = vrot.slane %v10074_v7, %v11316_v12  ;;  %v2902_v8 = vsel %vm39_vm0, %v1582_v52, %v12008_v53  ;;  %v12118_v7 = vld [vmem:[#allocation2 + $0xa1] sm:$0xff] }
 0x17d   :  { %v2628_v54 = vpop.permute.xlu0 %2627 }
 0x17e   :  { %v4409_v23 = vrot.slane %v10075_v39, %v11316_v12  ;;  %v2943_v39 = vsel %vm2937_vm4, %v2902_v8, %v12033_v28 }
 0x17f   :  { %2325 = vrot.lane.b32.xlu1 %v11987_v20, %s10530_s19  ;;  %v2901_v20 = vsel %vm39_vm0, %v1581_v35, %v11966_v18 }
 0x180   :  { %2327 = vrot.lane.b32.xlu0 %v1712_v4, %s10530_s19  ;;  %v2468_v0 = vpop.permute.xlu1 %2467  ;;  %v4426_v43 = vcombine.low %v4409_v23, %v4423_v45  ;;  %v2942_v32 = vsel %vm2937_vm4, %v2901_v20, %v11998_v60  ;;  %v12069_v60 = vld [vmem:[#allocation2 + $0x92] sm:$0xff]  ;;  %v1634_v23 = vld [vmem:[#allocation2 + $0x89] sm:$0x3]  ;;  %v10490_v45 = vld [vmem:[#allocation2 + $0x41] sm:$0xff] }
 0x181   :  { %v2308_v40 = vpop.permute.xlu0 %2307  ;;  %v2983_v18 = vsel %vm2978_vm5, %v2942_v32, %v2306_v58  ;;  %v1832_v58 = vld [vmem:[#allocation2 + $0x98] sm:$0x3]  ;;  %v3024_v6 = vsel %vm39_vm0, %v1742_v37, %v2468_v0  ;;  %v1583_v4 = vld [vmem:[#allocation2 + $0x30] sm:$0xff]  ;;  %v3025_v0 = vsel %vm39_vm0, %v10490_v45, %v12025_v10 }
 0x182   :  { %10351 = vmatmul.mubr.msk.f32.gmra.mxu1 %vm39_vm0, %v4426_v43  ;;  %v3064_v61 = vsel %vm2937_vm4, %v3024_v6, %v2628_v54  ;;  %v2903_v54 = vsel %vm39_vm0, %v1583_v4, %v12039_v38  ;;  %v2984_v53 = vsel %vm2978_vm5, %v2943_v39, %v2308_v40  ;;  %v1584_v37 = vld [vmem:[#allocation2 + $0x38] sm:$0x3] }
 0x183   :  { %2805 = vrot.lane.b32.xlu1 %v12046_v21, %s10530_s19  ;;  %10353 = vmatprep.mubr.msk.f32.mxu1 %vm10528_vm2, %v10525_v3 }
 0x184   :  { %2009 = vrot.lane.b32.xlu0 %v12012_v36, %s10526_s25  ;;  %v2786_v33 = vpop.permute.xlu1 %2785 }
 0x185   :  { %v3103_v17 = vsel %vm2978_vm5, %v3063_v30, %v2786_v33  ;;  %v2788_v42 = vpop.permute.xlu0 %2787 }
 0x186   :  { %v3361_v25 = vcombine.low %v2983_v18, %v3103_v17  ;;  %10354 = vmatmul.mubr.msk.f32.gmra.mxu1 %vm39_vm0, %v11876_v49  ;;  %v3104_v62 = vsel %vm2978_vm5, %v3064_v61, %v2788_v42  ;;  %v3362_v43 = vcombine.high %v2983_v18, %v3103_v17 }
 0x187   :  { %2487 = vrot.lane.b32.xlu1 %v1792_v24, %s10526_s25  ;;  %10356 = vmatprep.mubr.msk.f32.mxu1 %vm10528_vm2, %v10525_v3  ;;  %v3396_v35 = vcombine.low %v2984_v53, %v3104_v62 }
 0x188   :  { %2489 = vrot.lane.b32.xlu0 %v12069_v60, %s10526_s25  ;;  %v3370_v31 = vrot.slane %v3361_v25, %v11316_v12  ;;  %v2150_v29 = vpop.permute.xlu1 %2149  ;;  %v3377_v40 = vrot.slane %v3362_v43, %v11316_v12  ;;  %v1835_v25 = vld [vmem:[#allocation2 + $0xb0] sm:$0xff] }
 0x189   :  { %v12076_v51 = vpop.permute.xlu0 %1991  ;;  %v2944_v28 = vsel %vm2937_vm4, %v2903_v54, %v2150_v29  ;;  %v3403_v30 = vrot.slane %v3396_v35, %v11316_v12  ;;  %v10052_v35 = vld.sshfl [vmem:[#allocation2 + $0x5a] sm:$0x3 pattern:$0x76325410] }
 0x18a   :  { %v4416_v49 = vrot.slane %v3370_v31, %v11316_v12  ;;  %v3414_v31 = vcombine.high %v11679_v55, %v11679_v55 }
 0x18b   :  { %2647 = vrot.lane.b32.xlu1 %v1832_v58, %s10527_s26  ;;  %v4437_v58 = vrot.slane %v3377_v40, %v11316_v12 }
 0x18c   :  { %2169 = vrot.lane.b32.xlu0 %v11975_v46, %s10527_s26  ;;  %v2630_v50 = vpop.permute.xlu1 %2629  ;;  %v4425_v48 = vcombine.high %v4402_v9, %v4416_v49  ;;  %v4424_v57 = vcombine.low %v4402_v9, %v4416_v49  ;;  %v3442_v61 = vrot.slane %v3414_v31, %v11316_v12 }
 0x18d   :  { %v2152_v14 = vpop.permute.xlu0 %2151  ;;  %v3065_v26 = vsel %vm2937_vm4, %v3025_v0, %v2630_v50 }
 0x18e   :  { %5371 = vmatprep.mubr.f32.mxu0 %v4425_v48  ;;  %v1744_v48 = vld [vmem:[#allocation2 + $0x49] sm:$0x3] }
 0x18f   :  { %2807 = vrot.lane.b32.xlu1 %v1872_v34, %s10530_s19  ;;  %5372 = vmatmul.mubr.f32.gmra.mxu0 %v4424_v57  ;;  %v1674_v34 = vld [vmem:[#allocation2 + $0x8a] sm:$0x3] }
 0x190   :  { %2649 = vrot.lane.b32.xlu0 %v1833_v11, %s10527_s26  ;;  %v2310_v44 = vpop.permute.xlu1 %2309 }
 0x191   :  { %v2312_v1 = vpop.permute.xlu0 %2311  ;;  %v2985_v27 = vsel %vm2978_vm5, %v2944_v28, %v2310_v44  ;;  %v1794_v28 = vld [vmem:[#allocation2 + $0x9a] sm:$0x3] }
 0x193   :  { %2013 = vrot.lane.b32.xlu1 %v12046_v21, %s10526_s25 }
 0x194   :  { %2011 = vrot.lane.b32.xlu0 %v1634_v23, %s10526_s25  ;;  %v2790_v20 = vpop.permute.xlu1 %2789 }
 0x195   :  { %v3105_v32 = vsel %vm2978_vm5, %v3065_v26, %v2790_v20  ;;  %v12106_v10 = vpop.permute.xlu0 %1993 }
 0x196   :  { %v3412_v38 = vcombine.low %v2985_v27, %v3105_v32  ;;  %v3413_v24 = vcombine.high %v2985_v27, %v3105_v32  ;;  %v1636_v32 = vld [vmem:[#allocation2 + $0x99] sm:$0x3] }
 0x197   :  { %2493 = vrot.lane.b32.xlu1 %v12104_v47, %s10526_s25 }
 0x198   :  { %2333 = vrot.lane.b32.xlu0 %v1833_v11, %s10530_s19  ;;  %v3421_v33 = vrot.slane %v3412_v38, %v11316_v12  ;;  %v2472_v18 = vpop.permute.xlu1 %2471  ;;  %v3428_v50 = vrot.slane %v3413_v24, %v11316_v12  ;;  %v2904_v11 = vsel %vm39_vm0, %v1584_v37, %v12076_v51  ;;  %v1875_v38 = vld [vmem:[#allocation2 + $0xb1] sm:$0xff] }
 0x199   :  { %v12114_v17 = vpop.permute.xlu0 %2473  ;;  %v3026_v55 = vsel %vm39_vm0, %v1744_v48, %v2472_v18  ;;  %v2945_v52 = vsel %vm2937_vm4, %v2904_v11, %v2152_v14  ;;  %v1714_v14 = vld [vmem:[#allocation2 + $0x98] sm:$0x3] }
 0x19a   :  { %v10076_v42 = vcombine.low %v3403_v30, %v3421_v33  ;;  %v3444_v44 = vcombine.high %v3421_v33, %v11834_v41  ;;  %v2986_v39 = vsel %vm2978_vm5, %v2945_v52, %v2312_v1  ;;  %v3445_v23 = vcombine.low %v3428_v50, %v3442_v61 }
 0x19b   :  { %2173 = vrot.lane.b32.xlu1 %v12069_v60, %s10527_s26  ;;  %v3446_v0 = vcombine.high %v3428_v50, %v3442_v61  ;;  %v3465_v1 = vcombine.high %v11773_v59, %v11773_v59 }
 0x19c   :  { %2809 = vrot.lane.b32.xlu0 %v12118_v7, %s10530_s19  ;;  %v4451_v9 = vrot.slane %v10076_v42, %v11316_v12  ;;  %v10078_v43 = vcombine.low %v3444_v44, %v3428_v50  ;;  %v10079_v20 = vcombine.high %v11834_v41, %v3445_v23  ;;  %v3486_v41 = vrot.slane %v11773_v59, %v11316_v12  ;;  %v10491_v44 = vld [vmem:[#allocation2 + $0x40] sm:$0xff] }
 0x19d   :  { %v2632_v29 = vpop.permute.xlu1 %2631  ;;  %v3493_v24 = vrot.slane %v3465_v1, %v11316_v12 }
 0x19e   :  { %v12126_v49 = vpop.permute.xlu0 %2153  ;;  %v4460_v57 = vcombine.high %v4437_v58, %v4451_v9  ;;  %v4459_v6 = vcombine.low %v4437_v58, %v4451_v9  ;;  %v3066_v8 = vsel %vm2937_vm4, %v3026_v55, %v2632_v29  ;;  %v4472_v33 = vrot.slane %v10078_v43, %v11316_v12  ;;  %v1676_v29 = vld [vmem:[#allocation2 + $0x9a] sm:$0x3]  ;;  %v1874_v55 = vld [vmem:[#allocation2 + $0xa9] sm:$0x3]  ;;  %v1836_v43 = vld [vmem:[#allocation2 + $0xb8] sm:$0x3] }
 0x19f   :  { %2653 = vrot.lane.b32.xlu1 %v1835_v25, %s10527_s26  ;;  %v4479_v58 = vrot.slane %v10079_v20, %v11316_v12  ;;  %v4528_v48 = vrot.slane %v3493_v24, %v11316_v12  ;;  %v4514_v59 = vrot.slane %v3486_v41, %v11316_v12 }
 0x1a0   :  { %2171 = vrot.lane.b32.xlu0 %v1674_v34, %s10527_s26  ;;  %5376 = vmatprep.mubr.f32.mxu0 %v4460_v57  ;;  %v1834_v57 = vld [vmem:[#allocation2 + $0xa8] sm:$0x3] }
 0x1a1   :  { %v2792_v62 = vpop.permute.xlu1 %2791  ;;  %5377 = vmatmul.mubr.f32.gmra.mxu0 %v4459_v6  ;;  %v4531_v11 = vcombine.low %v4514_v59, %v4528_v48  ;;  %v10053_v59 = vld.sshfl [vmem:[#allocation2 + $0x6a] sm:$0x3 pattern:$0x76325410] }
 0x1a2   :  { %v3106_v4 = vsel %vm2978_vm5, %v3066_v8, %v2792_v62  ;;  %v2634_v51 = vpop.permute.xlu0 %2633  ;;  %v2905_v8 = vsel %vm39_vm0, %v10491_v44, %v12106_v10  ;;  %v10492_v62 = vld [vmem:[#allocation2 + $0x51] sm:$0xff] }
 0x1a3   :  { %v3447_v45 = vcombine.low %v2986_v39, %v3106_v4  ;;  %2329 = vrot.lane.b32.xlu1 %v12031_v5, %s10530_s19  ;;  %v3027_v39 = vsel %vm39_vm0, %v10492_v62, %v12114_v17 }
 0x1a4   :  { %2331 = vrot.lane.b32.xlu0 %v1714_v14, %s10530_s19  ;;  %v3067_v4 = vsel %vm2937_vm4, %v3027_v39, %v2634_v51  ;;  %v1796_v14 = vld [vmem:[#allocation2 + $0xaa] sm:$0x3] }
 0x1a5   :  { %v3454_v54 = vrot.slane %v3447_v45, %v11316_v12  ;;  %v12144_v53 = vpop.permute.xlu1 %1997 }
 0x1a6   :  { %v12148_v26 = vpop.permute.xlu0 %1995 }
 0x1a7   :  { %v3462_v27 = vcombine.low %v3454_v54, %v10052_v35  ;;  %v10080_v5 = vcombine.low %v3446_v0, %v3454_v54  ;;  %2491 = vrot.lane.b32.xlu1 %v1794_v28, %s10526_s25  ;;  %v1638_v35 = vld [vmem:[#allocation2 + $0xc9] sm:$0x3]  ;;  %v10493_v28 = vld [vmem:[#allocation2 + $0x50] sm:$0xff] }
 0x1a8   :  { %2015 = vrot.lane.b32.xlu0 %v1636_v32, %s10526_s25  ;;  %v2907_v20 = vsel %vm39_vm0, %v10493_v28, %v12144_v53  ;;  %v3516_v53 = vcombine.high %v11920_v2, %v11920_v2 }
 0x1a9   :  { %v10081_v40 = vcombine.high %v3442_v61, %v3462_v27  ;;  %v2478_v30 = vpop.permute.xlu1 %2477  ;;  %v4486_v18 = vrot.slane %v10080_v5, %v11316_v12  ;;  %v12176_v61 = vld [vmem:[#allocation2 + $0xd2] sm:$0xff] }
 0x1aa   :  { %v12156_v42 = vpop.permute.xlu0 %2317 }
 0x1ab   :  { %2813 = vrot.lane.b32.xlu1 %v1875_v38, %s10530_s19  ;;  %v4495_v25 = vcombine.high %v4472_v33, %v4486_v18  ;;  %v4494_v31 = vcombine.low %v4472_v33, %v4486_v18  ;;  %v4493_v9 = vrot.slane %v10081_v40, %v11316_v12  ;;  %v3029_v38 = vsel %vm39_vm0, %v11796_v63, %v2478_v30 }
 0x1ac   :  { %2175 = vrot.lane.b32.xlu0 %v1676_v29, %s10527_s26  ;;  %v3537_v63 = vrot.slane %v11920_v2, %v11316_v12 }
 0x1ad   :  { %v2158_v37 = vpop.permute.xlu1 %2157  ;;  %5381 = vmatprep.mubr.f32.mxu0 %v4495_v25  ;;  %v4496_v50 = vcombine.low %v4479_v58, %v4493_v9  ;;  %v1717_v9 = vld [vmem:[#allocation2 + $0xd0] sm:$0xff] }
 0x1ae   :  { %5382 = vmatmul.mubr.f32.gmra.mxu0 %v4494_v31  ;;  %v2794_v6 = vpop.permute.xlu0 %2793  ;;  %v2948_v5 = vsel %vm2937_vm4, %v2907_v20, %v2158_v37  ;;  %v1716_v31 = vld [vmem:[#allocation2 + $0xa8] sm:$0x3]  ;;  %v1876_v37 = vld [vmem:[#allocation2 + $0xb9] sm:$0x3]  ;;  %v10083_v62 = vcombine.low %v10053_v59, %v3537_v63 }
 0x1af   :  { %2651 = vrot.lane.b32.xlu1 %v1834_v57, %s10527_s26  ;;  %10357 = vmatmul.mubr.msk.f32.gmra.mxu1 %vm39_vm0, %v4496_v50  ;;  %v3107_v45 = vsel %vm2978_vm5, %v3067_v4, %v2794_v6  ;;  %v2989_v41 = vsel %vm2978_vm5, %v2948_v5, %v12156_v42  ;;  %v12222_v42 = vrot.slane %v3516_v53, %v11316_v12  ;;  %v12256_v5 = vld [vmem:[#allocation2 + $0xd1] sm:$0xff] }
 0x1b0   :  { %10359 = vmatprep.mubr.msk.f32.mxu1 %vm10528_vm2, %v10525_v3  ;;  %2017 = vrot.lane.b32.xlu0 %v11836_v19, %s10526_s25  ;;  %v2946_v19 = vsel %vm2937_vm4, %v2905_v8, %v12126_v49  ;;  %v12233_v8 = vld [vmem:[#allocation2 + $0xe2] sm:$0xff] }
 0x1b1   :  { %v2638_v34 = vpop.permute.xlu1 %2637 }
 0x1b2   :  { %v12172_v52 = vpop.permute.xlu0 %2155  ;;  %v3069_v40 = vsel %vm2937_vm4, %v3029_v38, %v2638_v34  ;;  %v1838_v38 = vld [vmem:[#allocation2 + $0xe8] sm:$0x3] }
 0x1b3   :  { %2811 = vrot.lane.b32.xlu1 %v1874_v55, %s10530_s19  ;;  %10360 = vmatmul.mubr.msk.f32.gmra.mxu1 %vm39_vm0, %v4531_v11  ;;  %v1586_v11 = vld [vmem:[#allocation2 + $0x48] sm:$0x3]  ;;  %v1746_v55 = vld [vmem:[#allocation2 + $0x59] sm:$0x3] }
 0x1b4   :  { %2497 = vrot.lane.b32.xlu0 %v12176_v61, %s10526_s25  ;;  %10362 = vmatprep.mubr.msk.f32.mxu1 %vm10528_vm2, %v10525_v3  ;;  %v2906_v39 = vsel %vm39_vm0, %v1586_v11, %v12148_v26 }
 0x1b5   :  { %v2314_v23 = vpop.permute.xlu1 %2313  ;;  %v2947_v4 = vsel %vm2937_vm4, %v2906_v39, %v12172_v52  ;;  %v4549_v52 = vrot.slane %v10083_v62, %v11316_v12 }
 0x1b6   :  { %v2987_v10 = vsel %vm2978_vm5, %v2946_v19, %v2314_v23  ;;  %v2316_v0 = vpop.permute.xlu0 %2315 }
 0x1b7   :  { %v3463_v54 = vcombine.low %v2987_v10, %v3107_v45  ;;  %v3464_v17 = vcombine.high %v2987_v10, %v3107_v45  ;;  %2495 = vrot.lane.b32.xlu1 %v1796_v14, %s10526_s25 }
 0x1b8   :  { %2177 = vrot.lane.b32.xlu0 %v11855_v15, %s10527_s26 }
 0x1b9   :  { %v3472_v1 = vrot.slane %v3463_v54, %v11316_v12  ;;  %v3479_v49 = vrot.slane %v3464_v17, %v11316_v12  ;;  %v2476_v51 = vpop.permute.xlu1 %2475  ;;  %v1678_v54 = vld [vmem:[#allocation2 + $0xca] sm:$0x3]  ;;  %v2988_v17 = vsel %vm2978_vm5, %v2947_v4, %v2316_v0 }
 0x1ba   :  { %v12198_v27 = vpop.permute.xlu0 %1999  ;;  %v3028_v19 = vsel %vm39_vm0, %v1746_v55, %v2476_v51 }
 0x1bb   :  { %2655 = vrot.lane.b32.xlu1 %v1836_v43, %s10527_s26  ;;  %v4507_v32 = vrot.slane %v3472_v1, %v11316_v12  ;;  %v4521_v15 = vrot.slane %v3479_v49, %v11316_v12  ;;  %v12245_v1 = vld [vmem:[#allocation2 + $0xe0] sm:$0xff] }
 0x1bc   :  { %2019 = vrot.lane.b32.xlu0 %v1638_v35, %s10526_s25 }
 0x1bd   :  { %v2798_v33 = vpop.permute.xlu1 %2797  ;;  %v4530_v18 = vcombine.high %v4507_v32, %v4521_v15  ;;  %v4529_v24 = vcombine.low %v4507_v32, %v4521_v15 }
 0x1be   :  { %v3109_v25 = vsel %vm2978_vm5, %v3069_v40, %v2798_v33  ;;  %v12213_v29 = vpop.permute.xlu0 %2159 }
 0x1bf   :  { %v3514_v30 = vcombine.low %v2989_v41, %v3109_v25  ;;  %v3515_v58 = vcombine.high %v2989_v41, %v3109_v25  ;;  %2335 = vrot.lane.b32.xlu1 %v1716_v31, %s10530_s19  ;;  %5386 = vmatprep.mubr.f32.mxu0 %v4530_v18  ;;  %v12219_v50 = vpop.f32.mrf.mxu1  ;;  %v1798_v18 = vld [vmem:[#allocation2 + $0xda] sm:$0x3]  ;;  %v1718_v31 = vld [vmem:[#allocation2 + $0xd8] sm:$0x3] }
 0x1c0   :  { %5387 = vmatmul.mubr.f32.gmra.mxu0 %v4529_v24  ;;  %2337 = vrot.lane.b32.xlu0 %v1717_v9, %s10530_s19  ;;  %v1588_v9 = vld [vmem:[#allocation2 + $0x58] sm:$0x3] }
 0x1c1   :  { %v3523_v48 = vrot.slane %v3514_v30, %v11316_v12  ;;  %v12226_v57 = vrot.slane %v3515_v58, %v11316_v12  ;;  %v2636_v2 = vpop.permute.xlu1 %2635  ;;  %v10346_v34 = vpop.f32.mrf.mxu1  ;;  %v12272_v30 = vld [vmem:[#allocation2 + $0xe1] sm:$0xff] }
 0x1c2   :  { %v12228_v6 = vpop.permute.xlu0 %2001  ;;  %v3068_v10 = vsel %vm2937_vm4, %v3028_v19, %v2636_v2  ;;  %v2908_v2 = vsel %vm39_vm0, %v1588_v9, %v12198_v27  ;;  %v1640_v27 = vld [vmem:[#allocation2 + $0xd9] sm:$0x3] }
 0x1c3   :  { %v3547_v44 = vcombine.low %v12226_v57, %v12222_v42  ;;  %2815 = vrot.lane.b32.xlu1 %v1876_v37, %s10530_s19  ;;  %v3546_v23 = vcombine.high %v3523_v48, %v3537_v63  ;;  %v1748_v37 = vld [vmem:[#allocation2 + $0x69] sm:$0x3]  ;;  %v2949_v34 = vsel %vm2937_vm4, %v2908_v2, %v12213_v29  ;;  %v12293_v29 = vrot.slane %v12069_v60, %v11316_v12 }
 0x1c4   :  { %2501 = vrot.lane.b32.xlu0 %v12233_v8, %s10526_s25  ;;  %v3548_v9 = vcombine.high %v12226_v57, %v12222_v42 }
 0x1c5   :  { %v10085_v45 = vcombine.high %v3537_v63, %v3547_v44  ;;  %v2796_v14 = vpop.permute.xlu1 %2795  ;;  %v10084_v20 = vcombine.low %v3546_v23, %v12226_v57 }
 0x1c6   :  { %v3108_v43 = vsel %vm2978_vm5, %v3068_v10, %v2796_v14  ;;  %v12247_v26 = vpop.permute.xlu0 %2481  ;;  %v12295_v10 = vld [vmem:[#allocation2 + $0xf0] sm:$0xff] }
 0x1c7   :  { %v3498_v49 = vcombine.low %v2988_v17, %v3108_v43  ;;  %2657 = vrot.lane.b32.xlu1 %v12245_v1, %s10527_s26  ;;  %v4563_v51 = vrot.slane %v10085_v45, %v11316_v12  ;;  %v4556_v33 = vrot.slane %v10084_v20, %v11316_v12  ;;  %v10054_v45 = vld.sshfl [vmem:[#allocation2 + $0x7a] sm:$0x3 pattern:$0x76325410]  ;;  %v3588_v17 = vrot.slane %v11975_v46, %v11316_v12 }
 0x1c8   :  { %2179 = vrot.lane.b32.xlu0 %v1678_v54, %s10527_s26  ;;  %v3567_v43 = vcombine.high %v11975_v46, %v11975_v46 }
 0x1c9   :  { %v3505_v35 = vrot.slane %v3498_v49, %v11316_v12  ;;  %v2480_v28 = vpop.permute.xlu1 %2479  ;;  %v4566_v0 = vcombine.low %v4549_v52, %v4563_v51  ;;  %v10055_v49 = vld.sshfl [vmem:[#allocation2 + $0x8a] sm:$0x3 pattern:$0x76325410] }
 0x1ca   :  { %v12258_v32 = vpop.permute.xlu0 %2161  ;;  %v3030_v59 = vsel %vm39_vm0, %v1748_v37, %v2480_v28  ;;  %v3595_v46 = vrot.slane %v3567_v43, %v11316_v12  ;;  %v1590_v43 = vld [vmem:[#allocation2 + $0x68] sm:$0x3] }
 0x1cb   :  { %v10082_v15 = vcombine.low %v3505_v35, %v3523_v48  ;;  %2021 = vrot.lane.b32.xlu1 %v12256_v5, %s10526_s25  ;;  %10363 = vmatmul.mubr.msk.f32.gmra.mxu1 %vm39_vm0, %v4566_v0  ;;  %v1878_v48 = vld [vmem:[#allocation2 + $0xe9] sm:$0x3]  ;;  %v10089_v35 = vcombine.low %v10055_v49, %v12293_v29 }
 0x1cc   :  { %2659 = vrot.lane.b32.xlu0 %v1838_v38, %s10527_s26  ;;  %10365 = vmatprep.mubr.msk.f32.mxu1 %vm10528_vm2, %v10525_v3  ;;  %v1720_v0 = vld [vmem:[#allocation2 + $0xe8] sm:$0x3] }
 0x1cd   :  { %v2640_v40 = vpop.permute.xlu1 %2639  ;;  %v4542_v53 = vrot.slane %v10082_v15, %v11316_v12  ;;  %v4598_v15 = vrot.slane %v3588_v17, %v11316_v12  ;;  %v1841_v17 = vld [vmem:[#allocation2 + $0x100] sm:$0xff] }
 0x1ce   :  { %v12268_v24 = vpop.permute.xlu0 %2003  ;;  %v3070_v11 = vsel %vm2937_vm4, %v3030_v59, %v2640_v40 }
 0x1cf   :  { %2499 = vrot.lane.b32.xlu1 %v1798_v18, %s10526_s25  ;;  %v4565_v41 = vcombine.high %v4542_v53, %v4556_v33  ;;  %v4564_v25 = vcombine.low %v4542_v53, %v4556_v33  ;;  %v4633_v53 = vrot.slane %v10089_v35, %v11316_v12  ;;  %v12319_v33 = vld [vmem:[#allocation2 + $0xf1] sm:$0xff]  ;;  %v2910_v35 = vsel %vm39_vm0, %v1590_v43, %v12268_v24 }
 0x1d0   :  { %2339 = vrot.lane.b32.xlu0 %v1718_v31, %s10530_s19  ;;  %v3031_v31 = vsel %vm39_vm0, %v11884_v56, %v12247_v26  ;;  %v1800_v26 = vld [vmem:[#allocation2 + $0xea] sm:$0x3] }
 0x1d1   :  { %v2320_v63 = vpop.permute.xlu1 %2319  ;;  %5391 = vmatprep.mubr.f32.mxu0 %v4565_v41  ;;  %v1589_v41 = vld [vmem:[#allocation2 + $0x60] sm:$0xff] }
 0x1d2   :  { %5392 = vmatmul.mubr.f32.gmra.mxu0 %v4564_v25  ;;  %v2322_v58 = vpop.permute.xlu0 %2321  ;;  %v2990_v44 = vsel %vm2978_vm5, %v2949_v34, %v2320_v63  ;;  %v2909_v25 = vsel %vm39_vm0, %v1589_v41, %v12228_v6 }
 0x1d3   :  { %2817 = vrot.lane.b32.xlu1 %v12272_v30, %s10530_s19  ;;  %v2950_v63 = vsel %vm2937_vm4, %v2909_v25, %v12258_v32 }
 0x1d4   :  { %2819 = vrot.lane.b32.xlu0 %v1878_v48, %s10530_s19  ;;  %v12342_v2 = vsel %vm2978_vm5, %v2950_v63, %v2322_v58  ;;  %v1840_v58 = vld [vmem:[#allocation2 + $0xf8] sm:$0x3] }
 0x1d5   :  { %v2800_v55 = vpop.permute.xlu1 %2799 }
 0x1d6   :  { %v3110_v62 = vsel %vm2978_vm5, %v3070_v11, %v2800_v55  ;;  %v12285_v39 = vpop.permute.xlu0 %2485 }
 0x1d7   :  { %v3549_v19 = vcombine.low %v2990_v44, %v3110_v62  ;;  %2181 = vrot.lane.b32.xlu1 %v12176_v61, %s10527_s26  ;;  %v1680_v61 = vld [vmem:[#allocation2 + $0xda] sm:$0x3] }
 0x1d8   :  { %2023 = vrot.lane.b32.xlu0 %v1640_v27, %s10526_s25 }
 0x1d9   :  { %v3556_v4 = vrot.slane %v3549_v19, %v11316_v12  ;;  %v2642_v23 = vpop.permute.xlu1 %2641  ;;  %v1750_v19 = vld [vmem:[#allocation2 + $0x79] sm:$0x3] }
 0x1da   :  { %v12297_v14 = vpop.permute.xlu0 %2163  ;;  %v3071_v37 = vsel %vm2937_vm4, %v3031_v31, %v2642_v23 }
 0x1db   :  { %v3564_v54 = vcombine.low %v3556_v4, %v10054_v45  ;;  %2661 = vrot.lane.b32.xlu1 %v12295_v10, %s10527_s26  ;;  %v10086_v34 = vcombine.low %v3548_v9, %v3556_v4 }
 0x1dc   :  { %2183 = vrot.lane.b32.xlu0 %v1680_v61, %s10527_s26 }
 0x1dd   :  { %v10087_v52 = vcombine.high %v12222_v42, %v3564_v54  ;;  %v12307_v51 = vpop.permute.xlu1 %2005  ;;  %v12351_v42 = vld [vmem:[#allocation2 + $0xf2] sm:$0xff]  ;;  %v4577_v44 = vrot.slane %v10086_v34, %v11316_v12 }
 0x1de   :  { %v12310_v28 = vpop.permute.xlu0 %2643  ;;  %v1880_v54 = vld [vmem:[#allocation2 + $0xf9] sm:$0x3] }
 0x1df   :  { %2341 = vrot.lane.b32.xlu1 %v12245_v1, %s10530_s19  ;;  %v4584_v20 = vrot.slane %v10087_v52, %v11316_v12  ;;  %v4619_v1 = vrot.slane %v3595_v46, %v11316_v12  ;;  %v1591_v46 = vld [vmem:[#allocation2 + $0x70] sm:$0xff] }
 0x1e0   :  { %2343 = vrot.lane.b32.xlu0 %v1720_v0, %s10530_s19 }
 0x1e1   :  { %v2484_v38 = vpop.permute.xlu1 %2483  ;;  %v4601_v40 = vcombine.low %v4584_v20, %v4598_v15  ;;  %v4636_v6 = vcombine.low %v4619_v1, %v4633_v53  ;;  %v2951_v15 = vsel %vm2937_vm4, %v2910_v35, %v12297_v14 }
 0x1e2   :  { %v12321_v18 = vpop.permute.xlu0 %2323  ;;  %v3032_v45 = vsel %vm39_vm0, %v1750_v19, %v2484_v38  ;;  %v1642_v38 = vld [vmem:[#allocation2 + $0xe9] sm:$0x3] }
 0x1e3   :  { %2821 = vrot.lane.b32.xlu1 %v12319_v33, %s10530_s19  ;;  %10366 = vmatmul.mubr.msk.f32.gmra.mxu1 %vm39_vm0, %v4601_v40  ;;  %v3072_v49 = vsel %vm2937_vm4, %v3032_v45, %v12310_v28  ;;  %v3033_v40 = vsel %vm39_vm0, %v12012_v36, %v12285_v39  ;;  %v2911_v28 = vsel %vm39_vm0, %v1591_v46, %v12307_v51  ;;  %v12419_v39 = vld [vmem:[#allocation2 + $0x102] sm:$0xff] }
 0x1e4   :  { %10368 = vmatprep.mubr.msk.f32.mxu1 %vm10528_vm2, %v10525_v3  ;;  %2025 = vrot.lane.b32.xlu0 %v12272_v30, %s10526_s25  ;;  %v2992_v24 = vsel %vm2978_vm5, %v2951_v15, %v12321_v18 }
 0x1e5   :  { %v2802_v48 = vpop.permute.xlu1 %2801 }
 0x1e6   :  { %v12345_v56 = vsel %vm2978_vm5, %v3071_v37, %v2802_v48  ;;  %v2804_v59 = vpop.permute.xlu0 %2803 }
 0x1e7   :  { %v3565_v11 = vcombine.low %v12342_v2, %v12345_v56  ;;  %2503 = vrot.lane.b32.xlu1 %v1800_v26, %s10526_s25  ;;  %10369 = vmatmul.mubr.msk.f32.gmra.mxu1 %vm39_vm0, %v4636_v6  ;;  %v3112_v0 = vsel %vm2978_vm5, %v3072_v49, %v2804_v59  ;;  %v3566_v14 = vcombine.high %v12342_v2, %v12345_v56  ;;  %v12433_v56 = vld [vmem:[#allocation2 + $0x101] sm:$0xff] }
 0x1e8   :  { %2505 = vrot.lane.b32.xlu0 %v12351_v42, %s10526_s25  ;;  %10371 = vmatprep.mubr.msk.f32.mxu1 %vm10528_vm2, %v10525_v3  ;;  %v3600_v53 = vcombine.low %v2992_v24, %v3112_v0  ;;  %v3618_v26 = vcombine.high %v12069_v60, %v12069_v60  ;;  %v10056_v24 = vld.sshfl [vmem:[#allocation2 + $0x9a] sm:$0x3 pattern:$0x76325410] }
 0x1e9   :  { %v3574_v57 = vrot.slane %v3565_v11, %v11316_v12  ;;  %v2166_v32 = vpop.permute.xlu1 %2165  ;;  %v3581_v31 = vrot.slane %v3566_v14, %v11316_v12  ;;  %v1802_v14 = vld [vmem:[#allocation2 + $0xfa] sm:$0x3] }
 0x1ea   :  { %v12358_v55 = vpop.permute.xlu0 %2007  ;;  %v2952_v41 = vsel %vm2937_vm4, %v2911_v28, %v2166_v32  ;;  %v3607_v63 = vrot.slane %v3600_v53, %v11316_v12 }
 0x1eb   :  { %2663 = vrot.lane.b32.xlu1 %v1840_v58, %s10527_s26  ;;  %v4591_v62 = vrot.slane %v3574_v57, %v11316_v12  ;;  %v4612_v34 = vrot.slane %v3581_v31, %v11316_v12  ;;  %v12441_v57 = vld [vmem:[#allocation2 + $0x110] sm:$0xff]  ;;  %v1592_v58 = vld [vmem:[#allocation2 + $0x78] sm:$0x3] }
 0x1ec   :  { %2185 = vrot.lane.b32.xlu0 %v12233_v8, %s10527_s26  ;;  %v2912_v60 = vsel %vm39_vm0, %v1592_v58, %v12358_v55 }
 0x1ed   :  { %v2646_v27 = vpop.permute.xlu1 %2645  ;;  %v4600_v4 = vcombine.high %v4577_v44, %v4591_v62  ;;  %v4599_v23 = vcombine.low %v4577_v44, %v4591_v62  ;;  %v1752_v62 = vld [vmem:[#allocation2 + $0x89] sm:$0x3] }
 0x1ee   :  { %v2168_v61 = vpop.permute.xlu0 %2167 }
 0x1ef   :  { %2823 = vrot.lane.b32.xlu1 %v1880_v54, %s10530_s19  ;;  %5396 = vmatprep.mubr.f32.mxu0 %v4600_v4  ;;  %v1682_v4 = vld [vmem:[#allocation2 + $0xea] sm:$0x3]  ;;  %v2953_v45 = vsel %vm2937_vm4, %v2912_v60, %v2168_v61  ;;  %v3646_v54 = vrot.slane %v3618_v26, %v11316_v12  ;;  %v1722_v61 = vld [vmem:[#allocation2 + $0xf8] sm:$0x3]  ;;  %v1684_v26 = vld [vmem:[#allocation2 + $0xfa] sm:$0x3] }
 0x1f0   :  { %5397 = vmatmul.mubr.f32.gmra.mxu0 %v4599_v23  ;;  %2665 = vrot.lane.b32.xlu0 %v1841_v17, %s10527_s26  ;;  %v1882_v60 = vld [vmem:[#allocation2 + $0x109] sm:$0x3] }
 0x1f1   :  { %v2326_v52 = vpop.permute.xlu1 %2325 }
 0x1f2   :  { %v2328_v20 = vpop.permute.xlu0 %2327  ;;  %v2993_v25 = vsel %vm2978_vm5, %v2952_v41, %v2326_v52 }
 0x1f3   :  { %2029 = vrot.lane.b32.xlu1 %v12319_v33, %s10526_s25  ;;  %v3073_v33 = vsel %vm2937_vm4, %v3033_v40, %v2646_v27  ;;  %v2994_v52 = vsel %vm2978_vm5, %v2953_v45, %v2328_v20  ;;  %v3669_v20 = vcombine.high %v12104_v47, %v12104_v47  ;;  %v1593_v45 = vld [vmem:[#allocation2 + $0x80] sm:$0xff] }
 0x1f4   :  { %2027 = vrot.lane.b32.xlu0 %v1642_v38, %s10526_s25 }
 0x1f5   :  { %v2806_v1 = vpop.permute.xlu1 %2805 }
 0x1f6   :  { %v3113_v36 = vsel %vm2978_vm5, %v3073_v33, %v2806_v1  ;;  %v12421_v51 = vpop.permute.xlu0 %2009  ;;  %v1644_v1 = vld [vmem:[#allocation2 + $0xf9] sm:$0x3] }
 0x1f7   :  { %v3616_v18 = vcombine.low %v2993_v25, %v3113_v36  ;;  %2509 = vrot.lane.b32.xlu1 %v12419_v39, %s10526_s25  ;;  %v3617_v6 = vcombine.high %v2993_v25, %v3113_v36 }
 0x1f8   :  { %2349 = vrot.lane.b32.xlu0 %v1841_v17, %s10530_s19 }
 0x1f9   :  { %v3625_v9 = vrot.slane %v3616_v18, %v11316_v12  ;;  %v2488_v37 = vpop.permute.xlu1 %2487  ;;  %v3632_v44 = vrot.slane %v3617_v6, %v11316_v12 }
 0x1fa   :  { %v12429_v48 = vpop.permute.xlu0 %2489  ;;  %v3034_v23 = vsel %vm39_vm0, %v1752_v62, %v2488_v37  ;;  %v1842_v62 = vld [vmem:[#allocation2 + $0x108] sm:$0x3] }
 0x1fb   :  { %v10088_v2 = vcombine.low %v3607_v63, %v3625_v9  ;;  %2189 = vrot.lane.b32.xlu1 %v12351_v42, %s10527_s26  ;;  %v3648_v17 = vcombine.high %v3625_v9, %v12293_v29  ;;  %v3649_v0 = vcombine.low %v3632_v44, %v3646_v54  ;;  %v3650_v46 = vcombine.high %v3632_v44, %v3646_v54  ;;  %v12476_v9 = vld [vmem:[#allocation2 + $0x111] sm:$0xff] }
 0x1fc   :  { %2825 = vrot.lane.b32.xlu0 %v12433_v56, %s10530_s19  ;;  %v3697_v63 = vrot.slane %v3669_v20, %v11316_v12 }
 0x1fd   :  { %v2648_v59 = vpop.permute.xlu1 %2647  ;;  %v4626_v11 = vrot.slane %v10088_v2, %v11316_v12  ;;  %v10090_v28 = vcombine.low %v3648_v17, %v3632_v44  ;;  %v10091_v41 = vcombine.high %v12293_v29, %v3649_v0  ;;  %v3690_v29 = vrot.slane %v12104_v47, %v11316_v12  ;;  %v1804_v0 = vld [vmem:[#allocation2 + $0x10a] sm:$0x3] }
 0x1fe   :  { %v12443_v32 = vpop.permute.xlu0 %2169  ;;  %v3074_v43 = vsel %vm2937_vm4, %v3034_v23, %v2648_v59  ;;  %v4703_v44 = vrot.slane %v3697_v63, %v11316_v12  ;;  %v2913_v17 = vsel %vm39_vm0, %v1593_v45, %v12421_v51 }
 0x1ff   :  { %2669 = vrot.lane.b32.xlu1 %v12441_v57, %s10527_s26  ;;  %v4635_v19 = vcombine.high %v4612_v34, %v4626_v11  ;;  %v4634_v27 = vcombine.low %v4612_v34, %v4626_v11  ;;  %v4647_v18 = vrot.slane %v10090_v28, %v11316_v12  ;;  %v4654_v59 = vrot.slane %v10091_v41, %v11316_v12  ;;  %v1844_v28 = vld [vmem:[#allocation2 + $0x118] sm:$0x3] }
 0x200   :  { %2187 = vrot.lane.b32.xlu0 %v1682_v4, %s10527_s26 }
 0x201   :  { %v2808_v49 = vpop.permute.xlu1 %2807  ;;  %5401 = vmatprep.mubr.f32.mxu0 %v4635_v19  ;;  %v4689_v19 = vrot.slane %v3690_v29, %v11316_v12 }
 0x202   :  { %v3114_v35 = vsel %vm2978_vm5, %v3074_v43, %v2808_v49  ;;  %5402 = vmatmul.mubr.f32.gmra.mxu0 %v4634_v27  ;;  %v2650_v55 = vpop.permute.xlu0 %2649  ;;  %v3035_v43 = vsel %vm39_vm0, %v12046_v21, %v12429_v48 }
 0x203   :  { %v3651_v15 = vcombine.low %v2994_v52, %v3114_v35  ;;  %2345 = vrot.lane.b32.xlu1 %v12295_v10, %s10530_s19  ;;  %v4706_v4 = vcombine.low %v4689_v19, %v4703_v44  ;;  %v3075_v49 = vsel %vm2937_vm4, %v3035_v43, %v2650_v55  ;;  %v10494_v55 = vld [vmem:[#allocation2 + $0x90] sm:$0xff]  ;;  %v1884_v44 = vld [vmem:[#allocation2 + $0x119] sm:$0x3] }
 0x204   :  { %2347 = vrot.lane.b32.xlu0 %v1722_v61, %s10530_s19  ;;  %v1754_v19 = vld [vmem:[#allocation2 + $0x99] sm:$0x3] }
 0x205   :  { %v3658_v38 = vrot.slane %v3651_v15, %v11316_v12  ;;  %v12462_v40 = vpop.permute.xlu1 %2013 }
 0x206   :  { %v12466_v53 = vpop.permute.xlu0 %2011 }
 0x207   :  { %v3666_v33 = vcombine.low %v3658_v38, %v10056_v24  ;;  %v10092_v10 = vcombine.low %v3650_v46, %v3658_v38  ;;  %2507 = vrot.lane.b32.xlu1 %v1802_v14, %s10526_s25  ;;  %v2915_v38 = vsel %vm39_vm0, %v10494_v55, %v12462_v40  ;;  %v1915_v24 = vld [vmem:[#allocation2 + $0xb2] sm:$0xff] }
 0x208   :  { %2031 = vrot.lane.b32.xlu0 %v1644_v1, %s10526_s25  ;;  %v3720_v41 = vcombine.high %v1915_v24, %v1915_v24  ;;  %v3741_v29 = vrot.slane %v1915_v24, %v11316_v12 }
 0x209   :  { %v10093_v25 = vcombine.high %v3646_v54, %v3666_v33  ;;  %v12471_v36 = vpop.permute.xlu1 %2493  ;;  %v4661_v31 = vrot.slane %v10092_v10, %v11316_v12  ;;  %v12499_v54 = vld [vmem:[#allocation2 + $0x112] sm:$0xff]  ;;  %v1646_v33 = vld [vmem:[#allocation2 + $0x109] sm:$0x3] }
 0x20a   :  { %v12478_v37 = vpop.permute.xlu0 %2333  ;;  %v3037_v1 = vsel %vm39_vm0, %v12118_v7, %v12471_v36 }
 0x20b   :  { %2829 = vrot.lane.b32.xlu1 %v12476_v9, %s10530_s19  ;;  %v4670_v6 = vcombine.high %v4647_v18, %v4661_v31  ;;  %v4669_v2 = vcombine.low %v4647_v18, %v4661_v31  ;;  %v4668_v34 = vrot.slane %v10093_v25, %v11316_v12 }
 0x20c   :  { %2191 = vrot.lane.b32.xlu0 %v1684_v26, %s10527_s26 }
 0x20d   :  { %v2174_v11 = vpop.permute.xlu1 %2173  ;;  %5406 = vmatprep.mubr.f32.mxu0 %v4670_v6  ;;  %v4671_v58 = vcombine.low %v4654_v59, %v4668_v34  ;;  %v12540_v59 = vrot.slane %v3720_v41, %v11316_v12 }
 0x20e   :  { %5407 = vmatmul.mubr.f32.gmra.mxu0 %v4669_v2  ;;  %v2810_v47 = vpop.permute.xlu0 %2809  ;;  %v2956_v14 = vsel %vm2937_vm4, %v2915_v38, %v2174_v11  ;;  %v1724_v2 = vld [vmem:[#allocation2 + $0x108] sm:$0x3] }
 0x20f   :  { %2667 = vrot.lane.b32.xlu1 %v1842_v62, %s10527_s26  ;;  %10372 = vmatmul.mubr.msk.f32.gmra.mxu1 %vm39_vm0, %v4671_v58  ;;  %v3115_v35 = vsel %vm2978_vm5, %v3075_v49, %v2810_v47  ;;  %v2997_v63 = vsel %vm2978_vm5, %v2956_v14, %v12478_v37  ;;  %v10057_v37 = vld.sshfl [vmem:[#allocation2 + $0xaa] sm:$0x3 pattern:$0x76325410]  ;;  %v1594_v47 = vld [vmem:[#allocation2 + $0x88] sm:$0x3] }
 0x210   :  { %10374 = vmatprep.mubr.msk.f32.mxu1 %vm10528_vm2, %v10525_v3  ;;  %2033 = vrot.lane.b32.xlu0 %v12433_v56, %s10526_s25  ;;  %v2954_v56 = vsel %vm2937_vm4, %v2913_v17, %v12443_v32 }
 0x211   :  { %v2654_v27 = vpop.permute.xlu1 %2653 }
 0x212   :  { %v12495_v23 = vpop.permute.xlu0 %2171  ;;  %v3077_v40 = vsel %vm2937_vm4, %v3037_v1, %v2654_v27 }
 0x213   :  { %2827 = vrot.lane.b32.xlu1 %v1882_v60, %s10530_s19  ;;  %10375 = vmatmul.mubr.msk.f32.gmra.mxu1 %vm39_vm0, %v4706_v4  ;;  %v12554_v4 = vld [vmem:[#allocation2 + $0x122] sm:$0xff]  ;;  %v2914_v60 = vsel %vm39_vm0, %v1594_v47, %v12466_v53 }
 0x214   :  { %2513 = vrot.lane.b32.xlu0 %v12499_v54, %s10526_s25  ;;  %10377 = vmatprep.mubr.msk.f32.mxu1 %vm10528_vm2, %v10525_v3  ;;  %v2955_v17 = vsel %vm2937_vm4, %v2914_v60, %v12495_v23  ;;  %v1886_v60 = vld [vmem:[#allocation2 + $0x129] sm:$0x3] }
 0x215   :  { %v2330_v52 = vpop.permute.xlu1 %2329 }
 0x216   :  { %v2995_v51 = vsel %vm2978_vm5, %v2954_v56, %v2330_v52  ;;  %v2332_v15 = vpop.permute.xlu0 %2331 }
 0x217   :  { %v3667_v61 = vcombine.low %v2995_v51, %v3115_v35  ;;  %v3668_v21 = vcombine.high %v2995_v51, %v3115_v35  ;;  %2511 = vrot.lane.b32.xlu1 %v1804_v0, %s10526_s25  ;;  %v2996_v35 = vsel %vm2978_vm5, %v2955_v17, %v2332_v15  ;;  %v12566_v0 = vld [vmem:[#allocation2 + $0x120] sm:$0xff] }
 0x218   :  { %2193 = vrot.lane.b32.xlu0 %v12419_v39, %s10527_s26 }
 0x219   :  { %v3676_v48 = vrot.slane %v3667_v61, %v11316_v12  ;;  %v3683_v32 = vrot.slane %v3668_v21, %v11316_v12  ;;  %v2492_v46 = vpop.permute.xlu1 %2491  ;;  %v1686_v21 = vld [vmem:[#allocation2 + $0x10a] sm:$0x3] }
 0x21a   :  { %v12522_v20 = vpop.permute.xlu0 %2015  ;;  %v3036_v45 = vsel %vm39_vm0, %v1754_v19, %v2492_v46  ;;  %v1756_v19 = vld [vmem:[#allocation2 + $0xa9] sm:$0x3] }
 0x21b   :  { %2671 = vrot.lane.b32.xlu1 %v1844_v28, %s10527_s26  ;;  %v4682_v39 = vrot.slane %v3676_v48, %v11316_v12  ;;  %v4696_v10 = vrot.slane %v3683_v32, %v11316_v12  ;;  %v12577_v32 = vld [vmem:[%s14899_s4] ss:$0 sm:$0xff] }
 0x21c   :  { %2035 = vrot.lane.b32.xlu0 %v1646_v33, %s10526_s25 }
 0x21d   :  { %v2814_v25 = vpop.permute.xlu1 %2813  ;;  %v4705_v18 = vcombine.high %v4682_v39, %v4696_v10  ;;  %v4704_v31 = vcombine.low %v4682_v39, %v4696_v10  ;;  %v1846_v10 = vld [vmem:[#allocation2 + $0x128] sm:$0x3] }
 0x21e   :  { %v3117_v6 = vsel %vm2978_vm5, %v3077_v40, %v2814_v25  ;;  %v12537_v26 = vpop.permute.xlu0 %2175 }
 0x21f   :  { %v3718_v7 = vcombine.low %v2997_v63, %v3117_v6  ;;  %v3719_v36 = vcombine.high %v2997_v63, %v3117_v6  ;;  %2351 = vrot.lane.b32.xlu1 %v1724_v2, %s10530_s19  ;;  %5411 = vmatprep.mubr.f32.mxu0 %v4705_v18 }
 0x220   :  { %5412 = vmatmul.mubr.f32.gmra.mxu0 %v4704_v31  ;;  %2353 = vrot.lane.b32.xlu0 %v12441_v57, %s10530_s19  ;;  %v10095_v57 = vcombine.low %v10057_v37, %v3741_v29 }
 0x221   :  { %v3727_v34 = vrot.slane %v3718_v7, %v11316_v12  ;;  %v12547_v11 = vrot.slane %v3719_v36, %v11316_v12  ;;  %v2652_v58 = vpop.permute.xlu1 %2651 }
 0x222   :  { %v12549_v62 = vpop.permute.xlu0 %2017  ;;  %v3076_v49 = vsel %vm2937_vm4, %v3036_v45, %v2652_v58  ;;  %v4724_v23 = vrot.slane %v10095_v57, %v11316_v12  ;;  %v1596_v45 = vld [vmem:[#allocation2 + $0x98] sm:$0x3] }
 0x223   :  { %v3751_v27 = vcombine.low %v12547_v11, %v12540_v59  ;;  %2831 = vrot.lane.b32.xlu1 %v1884_v44, %s10530_s19  ;;  %v3750_v43 = vcombine.high %v3727_v34, %v3741_v29  ;;  %v12599_v44 = vld [vmem:[#allocation2 + $0x121] sm:$0xff] }
 0x224   :  { %2517 = vrot.lane.b32.xlu0 %v12554_v4, %s10526_s25 }
 0x225   :  { %v10097_v56 = vcombine.high %v3741_v29, %v3751_v27  ;;  %v2812_v52 = vpop.permute.xlu1 %2811  ;;  %v10096_v28 = vcombine.low %v3750_v43, %v12547_v11 }
 0x226   :  { %v3116_v51 = vsel %vm2978_vm5, %v3076_v49, %v2812_v52  ;;  %v12568_v53 = vpop.permute.xlu0 %2497 }
 0x227   :  { %v3702_v61 = vcombine.low %v2996_v35, %v3116_v51  ;;  %2673 = vrot.lane.b32.xlu1 %v12566_v0, %s10527_s26  ;;  %v4738_v48 = vrot.slane %v10097_v56, %v11316_v12  ;;  %v4731_v31 = vrot.slane %v10096_v28, %v11316_v12  ;;  %v2916_v56 = vsel %vm39_vm0, %v1596_v45, %v12522_v20  ;;  %v1648_v20 = vld [vmem:[#allocation2 + $0x119] sm:$0x3] }
 0x228   :  { %2195 = vrot.lane.b32.xlu0 %v1686_v21, %s10527_s26  ;;  %v5363_v38 = vpop.f32.mrf.mxu0 }
 0x229   :  { %v3709_v15 = vrot.slane %v3702_v61, %v11316_v12  ;;  %v2496_v46 = vpop.permute.xlu1 %2495  ;;  %v4741_v55 = vcombine.low %v4724_v23, %v4738_v48  ;;  %v5364_v24 = vadd.f32 %v12577_v32, %v5363_v38  ;;  %v2957_v61 = vsel %vm2937_vm4, %v2916_v56, %v12537_v26  ;;  %v1728_v56 = vld [vmem:[#allocation2 + $0x128] sm:$0x3] }
 0x22a   :  { %v12583_v14 = vpop.permute.xlu0 %2177  ;;  %v5558_v33 = vpop.f32.mrf.mxu1  ;;  %v3038_v17 = vsel %vm39_vm0, %v1756_v19, %v2496_v46 }
 0x22b   :  { %v10094_v41 = vcombine.low %v3709_v15, %v3727_v34  ;;  %2037 = vrot.lane.b32.xlu1 %v12476_v9, %s10526_s25  ;;  %10378 = vmatmul.mubr.msk.f32.gmra.mxu1 %vm39_vm0, %v4741_v55  ;;  %v5365_v39 = vpop.f32.mrf.mxu0  ;;  %v5554_v1 = vadd.f32 %v12219_v50, %v5364_v24  ;;  %v1806_v9 = vld [vmem:[#allocation2 + $0x11a] sm:$0x3]  ;;  %v1726_v50 = vld [vmem:[#allocation2 + $0x118] sm:$0x3] }
 0x22c   :  { %2675 = vrot.lane.b32.xlu0 %v1846_v10, %s10527_s26  ;;  %10380 = vmatprep.mubr.msk.f32.mxu1 %vm10528_vm2, %v10525_v3  ;;  %v10349_v25 = vpop.f32.mrf.mxu1 }
 0x22d   :  { %v2656_v40 = vpop.permute.xlu1 %2655  ;;  %v4717_v18 = vrot.slane %v10094_v41, %v11316_v12  ;;  %v5677_v63 = vmax.f32 %v5554_v1, 0.0  ;;  %v3792_v41 = vrot.slane %v12233_v8, %v11316_v12  ;;  %v12631_v1 = vld [vmem:[#allocation2 + $0x130] sm:$0xff]  ;;  %v12637_v25 = vrot.slane %v12351_v42, %v11316_v12 }
 0x22e   :  { %v12594_v29 = vpop.permute.xlu0 %2019  ;;  %v3078_v52 = vsel %vm2937_vm4, %v3038_v17, %v2656_v40 }
 0x22f   :  { %2515 = vrot.lane.b32.xlu1 %v1806_v9, %s10526_s25  ;;  %v4740_v6 = vcombine.high %v4717_v18, %v4731_v31  ;;  %v4739_v2 = vcombine.low %v4717_v18, %v4731_v31  ;;  %v5727_v7 = vcombine.high %v5677_v63, %v5677_v63  ;;  %v5734_v36 = vrot.slane %v5677_v63, %v11316_v12 }
 0x230   :  { %2355 = vrot.lane.b32.xlu0 %v1726_v50, %s10530_s19  ;;  %v12647_v50 = vld [vmem:[#allocation2 + $0x102] sm:$0xff] }
 0x231   :  { %v2336_v37 = vpop.permute.xlu1 %2335  ;;  %5416 = vmatprep.mubr.f32.mxu0 %v4740_v6  ;;  %v5742_v34 = vcombine.high %v5734_v36, %v5734_v36  ;;  %v5368_v58 = vpop.f32.mrf.mxu0  ;;  %v5741_v27 = vrot.slane %v5727_v7, %v11316_v12  ;;  %v6252_v49 = vsel %vm331_vm3, %v5734_v36, -inf }
 0x232   :  { %5417 = vmatmul.mubr.f32.gmra.mxu0 %v4739_v2  ;;  %v12601_v47 = vpop.permute.xlu0 %2337  ;;  %v5369_v57 = vadd.f32 %v12577_v32, %v5368_v58  ;;  %v2998_v46 = vsel %vm2978_vm5, %v2957_v61, %v2336_v37  ;;  %v6253_v55 = vrot.slane %v6252_v49, 4  ;;  %v10058_v2 = vld.sshfl [vmem:[#allocation2 + $0xba] sm:$0x3 pattern:$0x76325410] }
 0x233   :  { %2833 = vrot.lane.b32.xlu1 %v12599_v44, %s10530_s19  ;;  %v5370_v43 = vpop.f32.mrf.mxu0  ;;  %v6259_v21 = vsel %vm331_vm3, %v5742_v34, -inf  ;;  %v5743_v15 = vcombine.high %v5741_v27, %v5741_v27  ;;  %v6266_v39 = vsel %vm331_vm3, %v5741_v27, -inf  ;;  %v4773_v34 = vrot.slane %v3792_v41, %v11316_v12  ;;  %v10059_v58 = vld.sshfl [vmem:[#allocation2 + $0xea] sm:$0x3 pattern:$0x76325410] }
 0x234   :  { %2835 = vrot.lane.b32.xlu0 %v1886_v60, %s10530_s19  ;;  %v5559_v35 = vadd.f32 %v5558_v33, %v5369_v57  ;;  %v6260_v24 = vrot.slane %v6259_v21, 4  ;;  %v3771_v33 = vcombine.high %v12233_v8, %v12233_v8  ;;  %v1688_v8 = vld [vmem:[#allocation2 + $0x11a] sm:$0x3]  ;;  %v6254_v63 = vmax.f32 %v6252_v49, %v6253_v55 }
 0x235   :  { %v2816_v51 = vpop.permute.xlu1 %2815  ;;  %v6273_v18 = vsel %vm331_vm3, %v5743_v15, -inf  ;;  %v6267_v36 = vrot.slane %v6266_v39, 4  ;;  %v10101_v45 = vcombine.low %v10059_v58, %v12637_v25  ;;  %v3822_v49 = vcombine.high %v12351_v42, %v12351_v42 }
 0x236   :  { %v3118_v23 = vsel %vm2978_vm5, %v3078_v52, %v2816_v51  ;;  %v12617_v48 = vpop.permute.xlu0 %2501  ;;  %v5678_v38 = vmax.f32 %v5559_v35, 0.0  ;;  %v6261_v7 = vmax.f32 %v6259_v21, %v6260_v24  ;;  %v6274_v19 = vrot.slane %v6273_v18, 4  ;;  %v10495_v35 = vld [vmem:[#allocation2 + $0xc0] sm:$0xff]  ;;  %v12676_v24 = vld [vmem:[#allocation2 + $0x131] sm:$0xff] }
 0x237   :  { %2197 = vrot.lane.b32.xlu1 %v12499_v54, %s10527_s26  ;;  %v3753_v28 = vcombine.low %v2998_v46, %v3118_v23  ;;  %v12655_v60 = vrot.slane %v3771_v33, %v11316_v12  ;;  %v3873_v52 = vcombine.high %v12647_v50, %v12647_v50  ;;  %v2917_v51 = vsel %vm39_vm0, %v10495_v35, %v12549_v62 }
 0x238   :  { %2039 = vrot.lane.b32.xlu0 %v1648_v20, %s10526_s25  ;;  %v5744_v10 = vcombine.high %v5678_v38, %v5678_v38  ;;  %v5751_v54 = vrot.slane %v5678_v38, %v11316_v12  ;;  %v6255_v61 = vrot.slane %v6254_v63, 2  ;;  %v3894_v23 = vrot.slane %v12647_v50, %v11316_v12 }
 0x239   :  { %v12623_v26 = vpop.permute.xlu1 %2657  ;;  %v12641_v31 = vrot.slane %v3753_v28, %v11316_v12  ;;  %v6268_v15 = vmax.f32 %v6266_v39, %v6267_v36  ;;  %v6275_v38 = vmax.f32 %v6273_v18, %v6274_v19  ;;  %v4794_v41 = vrot.slane %v12655_v60, %v11316_v12  ;;  %v1923_v19 = vld [vmem:[#allocation2 + $0x112] sm:$0xff] }
 0x23a   :  { %v12633_v40 = vpop.permute.xlu0 %2179  ;;  %v5758_v9 = vrot.slane %v5744_v10, %v11316_v12  ;;  %v5759_v6 = vcombine.high %v5751_v54, %v5751_v54  ;;  %v6280_v46 = vsel %vm331_vm3, %v5751_v54, -inf  ;;  %v4808_v33 = vrot.slane %v10101_v45, %v11316_v12 }
 0x23b   :  { %2677 = vrot.lane.b32.xlu1 %v12631_v1, %s10527_s26  ;;  %v3768_v43 = vcombine.low %v12641_v31, %v10058_v2  ;;  %v3039_v39 = vsel %vm39_vm0, %v12256_v5, %v12568_v53  ;;  %v3752_v54 = vcombine.high %v12547_v11, %v12540_v59  ;;  %v6281_v2 = vrot.slane %v6280_v46, 4 }
 0x23c   :  { %2199 = vrot.lane.b32.xlu0 %v1688_v8, %s10527_s26  ;;  %v5760_v27 = vcombine.high %v5758_v9, %v5758_v9  ;;  %v6287_v17 = vsel %vm331_vm3, %v5759_v6, -inf  ;;  %v6294_v21 = vsel %vm331_vm3, %v5758_v9, -inf  ;;  %v6256_v9 = vmax.f32 %v6254_v63, %v6255_v61 }
 0x23d   :  { %v12649_v37 = vpop.permute.xlu1 %2021  ;;  %v6288_v28 = vrot.slane %v6287_v17, 4  ;;  %v6295_v10 = vrot.slane %v6294_v21, 4  ;;  %v10099_v18 = vcombine.high %v12540_v59, %v3768_v43  ;;  %v2958_v6 = vsel %vm2937_vm4, %v2917_v51, %v12583_v14 }
 0x23e   :  { %v12652_v57 = vpop.permute.xlu0 %2659  ;;  %v6301_v20 = vsel %vm331_vm3, %v5760_v27, -inf  ;;  %v6269_v53 = vrot.slane %v6268_v15, 2  ;;  %v3079_v11 = vsel %vm2937_vm4, %v3039_v39, %v12623_v26  ;;  %v6276_v27 = vrot.slane %v6275_v38, 2 }
 0x23f   :  { %2357 = vrot.lane.b32.xlu1 %v12566_v0, %s10530_s19  ;;  %v6262_v0 = vrot.slane %v6261_v7, 2  ;;  %v6302_v50 = vrot.slane %v6301_v20, 4  ;;  %v4759_v59 = vrot.slane %v10099_v18, %v11316_v12  ;;  %v6289_v63 = vmax.f32 %v6287_v17, %v6288_v28  ;;  %v12714_v17 = vld [vmem:[#allocation2 + $0x132] sm:$0xff] }
 0x240   :  { %2359 = vrot.lane.b32.xlu0 %v1728_v56, %s10530_s19  ;;  %v12702_v14 = vsel %vm2978_vm5, %v2958_v6, %v12601_v47  ;;  %v6296_v45 = vmax.f32 %v6294_v21, %v6295_v10  ;;  %v3901_v47 = vrot.slane %v3873_v52, %v11316_v12  ;;  %v6282_v35 = vmax.f32 %v6280_v46, %v6281_v2 }
 0x241   :  { %v12674_v55 = vpop.permute.xlu1 %2499  ;;  %v6263_v5 = vmax.f32 %v6261_v7, %v6262_v0  ;;  %v4776_v43 = vcombine.low %v4759_v59, %v4773_v34  ;;  %v6303_v51 = vmax.f32 %v6301_v20, %v6302_v50  ;;  %v10098_v61 = vcombine.low %v3752_v54, %v12641_v31  ;;  %v1848_v31 = vld [vmem:[#allocation2 + $0x138] sm:$0x3]  ;;  %v12744_v59 = vld.sshfl [vmem:[#allocation2 + $0x10a] sm:$0x3 pattern:$0x76325410] }
 0x242   :  { %v12678_v62 = vpop.permute.xlu0 %2339  ;;  %v12691_v8 = vpop.f32.mrf.mxu1  ;;  %v3924_v21 = vcombine.high %v1923_v19, %v1923_v19  ;;  %v6257_v34 = vrot.slane %v6256_v9, 1  ;;  %v6270_v28 = vmax.f32 %v6268_v15, %v6269_v53  ;;  %v6277_v6 = vmax.f32 %v6275_v38, %v6276_v27 }
 0x243   :  { %2837 = vrot.lane.b32.xlu1 %v12676_v24, %s10530_s19  ;;  %v6264_v0 = vrot.slane %v6263_v5, 1  ;;  %10381 = vmatmul.mubr.msk.f32.gmra.mxu1 %vm39_vm0, %v4776_v43  ;;  %v6290_v52 = vrot.slane %v6289_v63, 2  ;;  %v12732_v15 = vrot.slane %v3822_v49, %v11316_v12  ;;  %v4864_v20 = vrot.slane %v3894_v23, %v11316_v12  ;;  %v1758_v43 = vld [vmem:[#allocation2 + $0xd9] sm:$0x3] }
 0x244   :  { %2041 = vrot.lane.b32.xlu0 %v12599_v44, %s10526_s25  ;;  %v10352_v58 = vpop.f32.mrf.mxu1  ;;  %v1808_v44 = vld [vmem:[#allocation2 + $0x12a] sm:$0x3]  ;;  %10383 = vmatprep.mubr.msk.f32.mxu1 %vm10528_vm2, %v10525_v3  ;;  %v6297_v54 = vrot.slane %v6296_v45, 2  ;;  %v4811_v2 = vcombine.low %v4794_v41, %v4808_v33  ;;  %v4878_v38 = vrot.slane %v3901_v47, %v11316_v12  ;;  %v12738_v50 = vrot.slane %v1923_v19, %v11316_v12 }
 0x245   :  { %v2818_v36 = vpop.permute.xlu1 %2817  ;;  %v6283_v53 = vrot.slane %v6282_v35, 2  ;;  %v4752_v42 = vrot.slane %v10098_v61, %v11316_v12  ;;  %v6258_v23 = vmax.f32 %v6256_v9, %v6257_v34  ;;  %v6265_v41 = vmax.f32 %v6263_v5, %v6264_v0  ;;  %v1849_v34 = vld [vmem:[#allocation2 + $0x140] sm:$0xff] }
 0x246   :  { %v12705_v60 = vsel %vm2978_vm5, %v3079_v11, %v2818_v36  ;;  %v12707_v7 = vpop.permute.xlu0 %2819  ;;  %v12712_v56 = vpop.f32.mrf.mxu1  ;;  %v6304_v11 = vrot.slane %v6303_v51, 2  ;;  %v6271_v33 = vrot.slane %v6270_v28, 1  ;;  %v1598_v36 = vld [vmem:[#allocation2 + $0xc8] sm:$0x3]  ;;  %v12748_v19 = vrot.slane %v3924_v21, %v11316_v12 }
 0x247   :  { %v3769_v26 = vcombine.low %v12702_v14, %v12705_v60  ;;  %2519 = vrot.lane.b32.xlu1 %v1808_v44, %s10526_s25  ;;  %10384 = vmatmul.mubr.msk.f32.gmra.mxu1 %vm39_vm0, %v4811_v2  ;;  %v6278_v27 = vrot.slane %v6277_v6, 1  ;;  %v6291_v44 = vmax.f32 %v6289_v63, %v6290_v52  ;;  %v6298_v9 = vmax.f32 %v6296_v45, %v6297_v54 }
 0x248   :  { %2521 = vrot.lane.b32.xlu0 %v12714_v17, %s10526_s25  ;;  %v10355_v18 = vpop.f32.mrf.mxu1  ;;  %10386 = vmatprep.mubr.msk.f32.mxu1 %vm10528_vm2, %v10525_v3  ;;  %v3040_v5 = vsel %vm39_vm0, %v1758_v43, %v12674_v55  ;;  %v12757_v21 = vcombine.low %v4864_v20, %v4878_v38  ;;  %v10107_v63 = vcombine.low %v12744_v59, %v12738_v50  ;;  %v12765_v55 = vsel %vm39_vm0, %v6258_v23, -inf  ;;  %v10496_v23 = vld [vmem:[#allocation2 + $0xd0] sm:$0xff] }
 0x249   :  { %v3778_v39 = vrot.slane %v3769_v26, %v11316_v12  ;;  %v12722_v10 = vpop.permute.xlu1 %2181  ;;  %v2918_v0 = vsel %vm39_vm0, %v1598_v36, %v12594_v29  ;;  %v6305_v18 = vmax.f32 %v6303_v51, %v6304_v11  ;;  %v6272_v45 = vmax.f32 %v6270_v28, %v6271_v33  ;;  %v1650_v11 = vld [vmem:[#allocation2 + $0x129] sm:$0x3] }
 0x24a   :  { %v12726_v46 = vpop.permute.xlu0 %2023  ;;  %v12771_v2 = vmax.f32 %v6277_v6, %v6278_v27  ;;  %v12774_v29 = vsel %vm39_vm0, %v6265_v41, -inf  ;;  %v3080_v51 = vsel %vm2937_vm4, %v3040_v5, %v12652_v57  ;;  %v2919_v57 = vsel %vm39_vm0, %v10496_v23, %v12649_v37 }
 0x24b   :  { %2679 = vrot.lane.b32.xlu1 %v1848_v31, %s10527_s26  ;;  %v4766_v49 = vrot.slane %v3778_v39, %v11316_v12  ;;  %v6284_v39 = vmax.f32 %v6282_v35, %v6283_v53  ;;  %v3041_v31 = vsel %vm39_vm0, %v12272_v30, %v12617_v48  ;;  %v6292_v35 = vrot.slane %v6291_v44, 1 }
 0x24c   :  { %2201 = vrot.lane.b32.xlu0 %v12554_v4, %s10527_s26  ;;  %v1888_v4 = vld [vmem:[#allocation2 + $0x139] sm:$0x3]  ;;  %v6299_v53 = vrot.slane %v6298_v9, 1  ;;  %v2959_v30 = vsel %vm2937_vm4, %v2918_v0, %v12633_v40  ;;  %v3120_v48 = vsel %vm2978_vm5, %v3080_v51, %v12707_v7  ;;  %v3770_v40 = vcombine.high %v12702_v14, %v12705_v60 }
 0x24d   :  { %v2662_v58 = vpop.permute.xlu1 %2661  ;;  %v4775_v26 = vcombine.high %v4752_v42, %v4766_v49  ;;  %v4774_v47 = vcombine.low %v4752_v42, %v4766_v49  ;;  %v6285_v42 = vrot.slane %v6284_v39, 1  ;;  %v6306_v49 = vrot.slane %v6305_v18, 1 }
 0x24e   :  { %v12750_v61 = vpop.permute.xlu0 %2183  ;;  %v3000_v41 = vsel %vm2978_vm5, %v2959_v30, %v12678_v62  ;;  %v6293_v36 = vmax.f32 %v6291_v44, %v6292_v35  ;;  %v12831_v30 = vld [vmem:[#allocation2 + $0x141] sm:$0xff] }
 0x24f   :  { %2839 = vrot.lane.b32.xlu1 %v1888_v4, %s10530_s19  ;;  %5421 = vmatprep.mubr.f32.mxu0 %v4775_v26  ;;  %v5373_v52 = vpop.f32.mrf.mxu0  ;;  %v3804_v27 = vcombine.low %v3000_v41, %v3120_v48  ;;  %v12799_v4 = vld [vmem:[#allocation2 + $0x142] sm:$0xff]  ;;  %v6300_v26 = vmax.f32 %v6298_v9, %v6299_v53  ;;  %v6307_v44 = vmax.f32 %v6305_v18, %v6306_v49 }
 0x250   :  { %2681 = vrot.lane.b32.xlu0 %v1849_v34, %s10527_s26  ;;  %v5374_v20 = vadd.f32 %v12577_v32, %v5373_v52  ;;  %5422 = vmatmul.mubr.f32.gmra.mxu0 %v4774_v47 }
 0x251   :  { %v2342_v54 = vpop.permute.xlu1 %2341  ;;  %v5375_v28 = vpop.f32.mrf.mxu0  ;;  %v3811_v18 = vrot.slane %v3804_v27, %v11316_v12  ;;  %v12834_v48 = vsel %vm39_vm0, %v6307_v44, -inf }
 0x252   :  { %v12778_v38 = vpop.permute.xlu0 %2343  ;;  %v5564_v6 = vadd.f32 %v12691_v8, %v5374_v20  ;;  %v2960_v8 = vsel %vm2937_vm4, %v2919_v57, %v12722_v10  ;;  %v12807_v10 = vsel %vm39_vm0, %v6272_v45, -inf }
 0x253   :  { %2045 = vrot.lane.b32.xlu1 %v12676_v24, %s10526_s25  ;;  %v3081_v24 = vsel %vm2937_vm4, %v3041_v31, %v2662_v58  ;;  %v3001_v43 = vsel %vm2978_vm5, %v2960_v8, %v2342_v54  ;;  %v12809_v58 = vmax.f32 %v6284_v39, %v6285_v42  ;;  %v12818_v54 = vsel %vm39_vm0, %v6293_v36, -inf  ;;  %v12847_v36 = vld [vmem:[#allocation2 + $0x150] sm:$0xff] }
 0x254   :  { %2043 = vrot.lane.b32.xlu0 %v1650_v11, %s10526_s25  ;;  %v5679_v7 = vmax.f32 %v5564_v6, 0.0  ;;  %v3785_v39 = vrot.slane %v3770_v40, %v11316_v12  ;;  %v1600_v6 = vld [vmem:[#allocation2 + $0xd8] sm:$0x3]  ;;  %v6954_v8 = vmax.f32 %v12765_v55, %v12818_v54 }
 0x255   :  { %v2822_v33 = vpop.permute.xlu1 %2821  ;;  %v2920_v23 = vsel %vm39_vm0, %v1600_v6, %v12726_v46 }
 0x256   :  { %v3121_v37 = vsel %vm2978_vm5, %v3081_v24, %v2822_v33  ;;  %v12801_v62 = vpop.permute.xlu0 %2025  ;;  %v5761_v47 = vcombine.high %v5679_v7, %v5679_v7  ;;  %v5768_v14 = vrot.slane %v5679_v7, %v11316_v12  ;;  %v2961_v44 = vsel %vm2937_vm4, %v2920_v23, %v12750_v61 }
 0x257   :  { %v3820_v60 = vcombine.low %v3001_v43, %v3121_v37  ;;  %2525 = vrot.lane.b32.xlu1 %v12799_v4, %s10526_s25  ;;  %v3821_v5 = vcombine.high %v3001_v43, %v3121_v37  ;;  %v6960_v43 = vmax.f32 %v12807_v10, %v12834_v48  ;;  %v4787_v37 = vrot.slane %v3785_v39, %v11316_v12  ;;  %v1730_v48 = vld [vmem:[#allocation2 + $0x138] sm:$0x3] }
 0x258   :  { %2365 = vrot.lane.b32.xlu0 %v1849_v34, %s10530_s19  ;;  %v5775_v0 = vrot.slane %v5761_v47, %v11316_v12  ;;  %v5776_v52 = vcombine.high %v5768_v14, %v5768_v14  ;;  %v6308_v9 = vsel %vm331_vm3, %v5768_v14, -inf  ;;  %v12825_v34 = vsel %vm39_vm0, %v6300_v26, -inf  ;;  %v1690_v26 = vld [vmem:[#allocation2 + $0x12a] sm:$0x3] }
 0x259   :  { %v12815_v31 = vrot.slane %v3820_v60, %v11316_v12  ;;  %v2504_v20 = vpop.permute.xlu1 %2503  ;;  %v6309_v45 = vrot.slane %v6308_v9, 4  ;;  %v6957_v46 = vmax.f32 %v12774_v29, %v12825_v34  ;;  %v6961_v61 = vsel %vm39_vm0, %v12771_v2, -inf }
 0x25a   :  { %v12822_v35 = vpop.permute.xlu0 %2505  ;;  %v5777_v51 = vcombine.high %v5775_v0, %v5775_v0  ;;  %v6315_v28 = vsel %vm331_vm3, %v5776_v52, -inf  ;;  %v6322_v53 = vsel %vm331_vm3, %v5775_v0, -inf }
 0x25b   :  { %2205 = vrot.lane.b32.xlu1 %v12714_v17, %s10527_s26  ;;  %v6310_v11 = vmax.f32 %v6308_v9, %v6309_v45  ;;  %v6316_v42 = vrot.slane %v6315_v28, 4  ;;  %v6323_v49 = vrot.slane %v6322_v53, 4  ;;  %v12842_v17 = vrot.slane %v3821_v5, %v11316_v12  ;;  %v1760_v5 = vld [vmem:[#allocation2 + $0xe9] sm:$0x3] }
 0x25c   :  { %2841 = vrot.lane.b32.xlu0 %v12831_v30, %s10530_s19  ;;  %v6329_v57 = vsel %vm331_vm3, %v5777_v51, -inf  ;;  %v10100_v41 = vcombine.low %v3811_v18, %v12815_v31  ;;  %v3042_v10 = vsel %vm39_vm0, %v1760_v5, %v2504_v20  ;;  %v10060_v5 = vld.sshfl [vmem:[#allocation2 + $0xfa] sm:$0x3 pattern:$0x76325410] }
 0x25d   :  { %v2664_v40 = vpop.permute.xlu1 %2663  ;;  %v6311_v24 = vrot.slane %v6310_v11, 2  ;;  %v6317_v7 = vmax.f32 %v6315_v28, %v6316_v42  ;;  %v6330_v33 = vrot.slane %v6329_v57, 4  ;;  %v6324_v60 = vmax.f32 %v6322_v53, %v6323_v49 }
 0x25e   :  { %v12849_v27 = vpop.permute.xlu0 %2185  ;;  %v4801_v55 = vrot.slane %v10100_v41, %v11316_v12  ;;  %v3853_v29 = vcombine.low %v12842_v17, %v12732_v15  ;;  %v3082_v45 = vsel %vm2937_vm4, %v3042_v10, %v2664_v40  ;;  %v3852_v28 = vcombine.high %v12815_v31, %v12637_v25 }
 0x25f   :  { %2685 = vrot.lane.b32.xlu1 %v12847_v36, %s10527_s26  ;;  %v6312_v47 = vmax.f32 %v6310_v11, %v6311_v24  ;;  %v6318_v14 = vrot.slane %v6317_v7, 2  ;;  %v6331_v18 = vmax.f32 %v6329_v57, %v6330_v33  ;;  %v6325_v42 = vrot.slane %v6324_v60, 2  ;;  %v1810_v33 = vld [vmem:[#allocation2 + $0x13a] sm:$0x3] }
 0x260   :  { %2203 = vrot.lane.b32.xlu0 %v1690_v26, %s10527_s26  ;;  %v4810_v52 = vcombine.high %v4787_v37, %v4801_v55  ;;  %v4809_v9 = vcombine.low %v4787_v37, %v4801_v55  ;;  %v3002_v49 = vsel %vm2978_vm5, %v2961_v44, %v12778_v38  ;;  %v7168_v31 = vsel %vm7167_vm7, %v6957_v46, %v6954_v8  ;;  %v1652_v26 = vld [vmem:[#allocation2 + $0x139] sm:$0x3] }
 0x261   :  { %v2824_v0 = vpop.permute.xlu1 %2823  ;;  %v6313_v54 = vrot.slane %v6312_v47, 1  ;;  %v6319_v39 = vmax.f32 %v6317_v7, %v6318_v14  ;;  %v5378_v34 = vpop.f32.mrf.mxu0  ;;  %v3854_v23 = vcombine.high %v12842_v17, %v12732_v15  ;;  %v6332_v24 = vrot.slane %v6331_v18, 2 }
 0x262   :  { %v12866_v51 = vpop.permute.xlu0 %2665  ;;  %v3122_v53 = vsel %vm2978_vm5, %v3082_v45, %v2824_v0  ;;  %5426 = vmatprep.mubr.f32.mxu0 %v4810_v52  ;;  %v5379_v20 = vadd.f32 %v12577_v32, %v5378_v34  ;;  %v12887_v38 = vcombine.high %v12637_v25, %v3853_v29  ;;  %v6326_v14 = vmax.f32 %v6324_v60, %v6325_v42 }
 0x263   :  { %2361 = vrot.lane.b32.xlu1 %v12631_v1, %s10530_s19  ;;  %v6314_v6 = vmax.f32 %v6312_v47, %v6313_v54  ;;  %v6320_v11 = vrot.slane %v6319_v39, 1  ;;  %5427 = vmatmul.mubr.f32.gmra.mxu0 %v4809_v9  ;;  %v5380_v2 = vpop.f32.mrf.mxu0  ;;  %v3855_v57 = vcombine.low %v3002_v49, %v3122_v53  ;;  %v6964_v47 = vsel %vm39_vm0, %v12809_v58, -inf  ;;  %v12903_v58 = vld [vmem:[#allocation2 + $0x151] sm:$0xff] }
 0x264   :  { %2363 = vrot.lane.b32.xlu0 %v1730_v48, %s10530_s19  ;;  %v5569_v41 = vadd.f32 %v12712_v56, %v5379_v20  ;;  %v10102_v56 = vcombine.low %v3852_v28, %v12842_v17  ;;  %v7170_v25 = vsel %vm7169_vm8, %v6960_v43, %v7168_v31  ;;  %v6333_v54 = vmax.f32 %v6331_v18, %v6332_v24  ;;  %v1692_v28 = vld [vmem:[#allocation2 + $0x13a] sm:$0x3]  ;;  %v1850_v24 = vld [vmem:[#allocation2 + $0x148] sm:$0x3] }
 0x265   :  { %v12883_v1 = vpop.permute.xlu1 %2029  ;;  %v6321_v40 = vmax.f32 %v6319_v39, %v6320_v11  ;;  %v6962_v7 = vsel %vm39_vm0, %v6314_v6, -inf  ;;  %v3862_v8 = vrot.slane %v3855_v57, %v11316_v12  ;;  %v4829_v43 = vrot.slane %v12887_v38, %v11316_v12  ;;  %v1601_v38 = vld [vmem:[#allocation2 + $0xe0] sm:$0xff] }
 0x266   :  { %v12889_v37 = vpop.permute.xlu0 %2027  ;;  %v6963_v55 = vmax.f32 %v6961_v61, %v6962_v7  ;;  %v5680_v46 = vmax.f32 %v5569_v41, 0.0  ;;  %v4822_v61 = vrot.slane %v10102_v56, %v11316_v12  ;;  %v6327_v53 = vrot.slane %v6326_v14, 1 }
 0x267   :  { %2523 = vrot.lane.b32.xlu1 %v1810_v33, %s10526_s25  ;;  %v6965_v44 = vsel %vm39_vm0, %v6321_v40, -inf  ;;  %v3870_v0 = vcombine.low %v3862_v8, %v10060_v5  ;;  %v10104_v52 = vcombine.low %v3854_v23, %v3862_v8  ;;  %v6334_v31 = vrot.slane %v6333_v54, 1 }
 0x268   :  { %2047 = vrot.lane.b32.xlu0 %v1652_v26, %s10526_s25  ;;  %v6966_v29 = vmax.f32 %v6964_v47, %v6965_v44  ;;  %v7172_v10 = vsel %vm7171_vm9, %v6963_v55, %v7170_v25  ;;  %v5778_v17 = vcombine.high %v5680_v46, %v5680_v46  ;;  %v5785_v39 = vrot.slane %v5680_v46, %v11316_v12 }
 0x269   :  { %v12900_v9 = vpop.permute.xlu1 %2509  ;;  %v10105_v34 = vcombine.high %v12732_v15, %v3870_v0  ;;  %v4836_v18 = vrot.slane %v10104_v52, %v11316_v12  ;;  %v6328_v56 = vmax.f32 %v6326_v14, %v6327_v53  ;;  %v2921_v47 = vsel %vm39_vm0, %v1601_v38, %v12801_v62 }
 0x26a   :  { %v12905_v60 = vpop.permute.xlu0 %2349  ;;  %v7174_v45 = vsel %vm7173_vm10, %v6966_v29, %v7172_v10  ;;  %v5792_v20 = vrot.slane %v5778_v17, %v11316_v12  ;;  %v5793_v48 = vcombine.high %v5785_v39, %v5785_v39  ;;  %v6336_v6 = vsel %vm331_vm3, %v5785_v39, -inf  ;;  %v1761_v29 = vld [vmem:[#allocation2 + $0xf1] sm:$0xff] }
 0x26b   :  { %2845 = vrot.lane.b32.xlu1 %v12903_v58, %s10530_s19  ;;  %7223 = vst.msk [vmem:[#allocation3 + $0x9] sm:$0x1f] %vm7222_vm11, %v7174_v45  ;;  %v6337_v11 = vrot.slane %v6336_v6, 4  ;;  %v4845_v42 = vcombine.high %v4822_v61, %v4836_v18  ;;  %v4844_v49 = vcombine.low %v4822_v61, %v4836_v18  ;;  %v4843_v2 = vrot.slane %v10105_v34, %v11316_v12  ;;  %v1890_v34 = vld [vmem:[#allocation2 + $0x149] sm:$0x3] }
 0x26c   :  { %2207 = vrot.lane.b32.xlu0 %v1692_v28, %s10527_s26  ;;  %v5794_v23 = vcombine.high %v5792_v20, %v5792_v20  ;;  %v6343_v57 = vsel %vm331_vm3, %v5793_v48, -inf  ;;  %v6350_v41 = vsel %vm331_vm3, %v5792_v20, -inf  ;;  %v3043_v14 = vsel %vm39_vm0, %v1761_v29, %v12822_v35  ;;  %v1603_v20 = vld [vmem:[#allocation2 + $0xf0] sm:$0xff] }
 0x26d   :  { %v12919_v15 = vpop.permute.xlu1 %2189  ;;  %v6338_v33 = vmax.f32 %v6336_v6, %v6337_v11  ;;  %v6344_v55 = vrot.slane %v6343_v57, 4  ;;  %v6351_v8 = vrot.slane %v6350_v41, 4  ;;  %5431 = vmatprep.mubr.f32.mxu0 %v4845_v42  ;;  %v4846_v25 = vcombine.low %v4829_v43, %v4843_v2  ;;  %v1602_v11 = vld [vmem:[#allocation2 + $0xe8] sm:$0x3] }
 0x26e   :  { %v5383_v40 = vpop.f32.mrf.mxu0  ;;  %v12924_v7 = vpop.permute.xlu0 %2825  ;;  %v6357_v44 = vsel %vm331_vm3, %v5794_v23, -inf  ;;  %5432 = vmatmul.mubr.f32.gmra.mxu0 %v4844_v49  ;;  %v2962_v62 = vsel %vm2937_vm4, %v2921_v47, %v12849_v27  ;;  %v6335_v43 = vmax.f32 %v6333_v54, %v6334_v31  ;;  %v12947_v27 = vld [vmem:[#allocation2 + $0x152] sm:$0xff]  ;;  %v12950_v54 = vsel %vm39_vm0, %v6328_v56, -inf  ;;  %v1763_v42 = vld [vmem:[#allocation2 + $0x101] sm:$0xff] }
 0x26f   :  { %v5384_v46 = vadd.f32 %v12577_v32, %v5383_v40  ;;  %2683 = vrot.lane.b32.xlu1 %v1850_v24, %s10527_s26  ;;  %v5573_v26 = vpop.f32.mrf.mxu1  ;;  %v6339_v10 = vrot.slane %v6338_v33, 2  ;;  %v6345_v0 = vmax.f32 %v6343_v57, %v6344_v55  ;;  %v6352_v52 = vmax.f32 %v6350_v41, %v6351_v8  ;;  %10387 = vmatmul.mubr.msk.f32.gmra.mxu1 %vm39_vm0, %v4846_v25 }
 0x270   :  { %v5385_v5 = vpop.f32.mrf.mxu0  ;;  %2049 = vrot.lane.b32.xlu0 %v12831_v30, %s10526_s25  ;;  %v6358_v32 = vrot.slane %v6357_v44, 4  ;;  %10389 = vmatprep.mubr.msk.f32.mxu1 %vm10528_vm2, %v10525_v3  ;;  %v3083_v48 = vsel %vm2937_vm4, %v3043_v14, %v12866_v51  ;;  %v2923_v6 = vsel %vm39_vm0, %v1603_v20, %v12883_v1  ;;  %v12960_v23 = vsel %vm39_vm0, %v1602_v11, %v12889_v37 }
 0x271   :  { %v12933_v17 = vpop.permute.xlu1 %2669  ;;  %v10358_v39 = vpop.f32.mrf.mxu1  ;;  %v5574_v45 = vadd.f32 %v5573_v26, %v5384_v46  ;;  %v6340_v61 = vmax.f32 %v6338_v33, %v6339_v10  ;;  %v6346_v18 = vrot.slane %v6345_v0, 2  ;;  %v6353_v28 = vrot.slane %v6352_v52, 2  ;;  %v1812_v33 = vld [vmem:[#allocation2 + $0x14a] sm:$0x3] }
 0x272   :  { %v12940_v30 = vpop.permute.xlu0 %2187  ;;  %v6359_v53 = vmax.f32 %v6357_v44, %v6358_v32  ;;  %v3045_v57 = vsel %vm39_vm0, %v1763_v42, %v12900_v9  ;;  %v2964_v1 = vsel %vm2937_vm4, %v2923_v6, %v12919_v15  ;;  %v12973_v9 = vsel %vm39_vm0, %v6335_v43, -inf  ;;  %v1852_v39 = vld [vmem:[#allocation2 + $0x158] sm:$0x3]  ;;  %v1654_v43 = vld [vmem:[#allocation2 + $0x149] sm:$0x3] }
 0x273   :  { %2843 = vrot.lane.b32.xlu1 %v1890_v34, %s10530_s19  ;;  %v12945_v35 = vpop.f32.mrf.mxu1  ;;  %v5681_v49 = vmax.f32 %v5574_v45, 0.0  ;;  %v6347_v2 = vmax.f32 %v6345_v0, %v6346_v18  ;;  %10390 = vmatmul.mubr.msk.f32.gmra.mxu1 %vm39_vm0, %v12757_v21  ;;  %v6341_v37 = vrot.slane %v6340_v61, 1  ;;  %v6354_v8 = vmax.f32 %v6352_v52, %v6353_v28 }
 0x274   :  { %2529 = vrot.lane.b32.xlu0 %v12947_v27, %s10526_s25  ;;  %v6360_v31 = vrot.slane %v6359_v53, 2  ;;  %10392 = vmatprep.mubr.msk.f32.mxu1 %vm10528_vm2, %v10525_v3  ;;  %v3123_v56 = vsel %vm2978_vm5, %v3083_v48, %v12924_v7  ;;  %v12988_v29 = vsel %vm2978_vm5, %v2964_v1, %v12905_v60 }
 0x275   :  { %v2346_v41 = vpop.permute.xlu1 %2345  ;;  %v10361_v51 = vpop.f32.mrf.mxu1  ;;  %v5795_v40 = vcombine.high %v5681_v49, %v5681_v49  ;;  %v5802_v24 = vrot.slane %v5681_v49, %v11316_v12  ;;  %v6348_v47 = vrot.slane %v6347_v2, 1  ;;  %v6342_v14 = vmax.f32 %v6340_v61, %v6341_v37 }
 0x276   :  { %v3003_v38 = vsel %vm2978_vm5, %v2962_v62, %v2346_v41  ;;  %v12970_v55 = vpop.permute.xlu0 %2347  ;;  %v6361_v46 = vmax.f32 %v6359_v53, %v6360_v31  ;;  %v3085_v61 = vsel %vm2937_vm4, %v3045_v57, %v12933_v17  ;;  %v1732_v41 = vld [vmem:[#allocation2 + $0x148] sm:$0x3] }
 0x277   :  { %2527 = vrot.lane.b32.xlu1 %v1812_v33, %s10526_s25  ;;  %v5809_v15 = vrot.slane %v5795_v40, %v11316_v12  ;;  %v5810_v26 = vcombine.high %v5802_v24, %v5802_v24  ;;  %v6364_v21 = vsel %vm331_vm3, %v5802_v24, -inf  ;;  %v3871_v25 = vcombine.low %v3003_v38, %v3123_v56 }
 0x278   :  { %2209 = vrot.lane.b32.xlu0 %v12799_v4, %s10527_s26  ;;  %v6362_v44 = vrot.slane %v6361_v46, 1  ;;  %v6365_v0 = vrot.slane %v6364_v21, 4  ;;  %v6355_v4 = vrot.slane %v6354_v8, 1  ;;  %v3872_v28 = vcombine.high %v3003_v38, %v3123_v56 }
 0x279   :  { %v12984_v5 = vpop.permute.xlu1 %2507  ;;  %v5811_v10 = vcombine.high %v5809_v15, %v5809_v15  ;;  %v6371_v52 = vsel %vm331_vm3, %v5810_v26, -inf  ;;  %v6378_v32 = vsel %vm331_vm3, %v5809_v15, -inf  ;;  %v6349_v53 = vmax.f32 %v6347_v2, %v6348_v47 }
 0x27a   :  { %v12992_v7 = vpop.permute.xlu0 %2031  ;;  %v6372_v62 = vrot.slane %v6371_v52, 4  ;;  %v6379_v45 = vrot.slane %v6378_v32, 4  ;;  %v6363_v34 = vmax.f32 %v6361_v46, %v6362_v44  ;;  %v6366_v18 = vmax.f32 %v6364_v21, %v6365_v0  ;;  %v1892_v0 = vld [vmem:[#allocation2 + $0x159] sm:$0x3] }
 0x27b   :  { %2687 = vrot.lane.b32.xlu1 %v1852_v39, %s10527_s26  ;;  %v6385_v60 = vsel %vm331_vm3, %v5811_v10, -inf  ;;  %v3880_v49 = vrot.slane %v3871_v25, %v11316_v12  ;;  %v3887_v31 = vrot.slane %v3872_v28, %v11316_v12  ;;  %v6356_v1 = vmax.f32 %v6354_v8, %v6355_v4  ;;  %v1815_v4 = vld [vmem:[#allocation2 + $0x162] sm:$0xff] }
 0x27c   :  { %2051 = vrot.lane.b32.xlu0 %v1654_v43, %s10526_s25  ;;  %v6373_v20 = vmax.f32 %v6371_v52, %v6372_v62  ;;  %v6380_v48 = vmax.f32 %v6378_v32, %v6379_v45  ;;  %v6386_v6 = vrot.slane %v6385_v60, 4  ;;  %v6367_v42 = vrot.slane %v6366_v18, 2 }
 0x27d   :  { %v2830_v11 = vpop.permute.xlu1 %2829  ;;  %v6968_v2 = vsel %vm39_vm0, %v6363_v34, -inf  ;;  %v6973_v33 = vsel %vm39_vm0, %v6342_v14, -inf  ;;  %v6976_v8 = vsel %vm39_vm0, %v6349_v53, -inf  ;;  %v4857_v44 = vrot.slane %v3880_v49, %v11316_v12  ;;  %v13023_v34 = vld [vmem:[%s14899_s4] ss:$0 sm:$0xff] }
 0x27e   :  { %v13001_v51 = vpop.permute.xlu0 %2191  ;;  %v6374_v40 = vrot.slane %v6373_v20, 2  ;;  %v6381_v24 = vrot.slane %v6380_v48, 2  ;;  %v6387_v38 = vmax.f32 %v6385_v60, %v6386_v6  ;;  %v6368_v37 = vmax.f32 %v6366_v18, %v6367_v42 }
 0x27f   :  { %2367 = vrot.lane.b32.xlu1 %v1732_v41, %s10530_s19  ;;  %v3125_v17 = vsel %vm2978_vm5, %v3085_v61, %v2830_v11  ;;  %v4871_v25 = vrot.slane %v3887_v31, %v11316_v12  ;;  %v6969_v32 = vmax.f32 %v12950_v54, %v6968_v2  ;;  %v13032_v61 = vld [vmem:[#allocation2 + $0x160] sm:$0xff]  ;;  %v6979_v2 = vsel %vm39_vm0, %v6356_v1, -inf }
 0x280   :  { %v5388_v57 = vpop.f32.mrf.mxu0  ;;  %2369 = vrot.lane.b32.xlu0 %v12847_v36, %s10530_s19  ;;  %v6375_v46 = vmax.f32 %v6373_v20, %v6374_v40  ;;  %v6382_v15 = vmax.f32 %v6380_v48, %v6381_v24  ;;  %v6388_v26 = vrot.slane %v6387_v38, 2  ;;  %v6369_v56 = vrot.slane %v6368_v37, 1  ;;  %v1762_v24 = vld [vmem:[#allocation2 + $0xf9] sm:$0x3] }
 0x281   :  { %v2668_v21 = vpop.permute.xlu1 %2667  ;;  %v3923_v47 = vcombine.high %v12988_v29, %v3125_v17  ;;  %v4880_v43 = vcombine.high %v4857_v44, %v4871_v25  ;;  %v5389_v18 = vadd.f32 %v13023_v34, %v5388_v57  ;;  %v3922_v53 = vcombine.low %v12988_v29, %v3125_v17 }
 0x282   :  { %v5390_v10 = vpop.f32.mrf.mxu0  ;;  %v13013_v52 = vpop.permute.xlu0 %2033  ;;  %v6376_v36 = vrot.slane %v6375_v46, 1  ;;  %v6383_v39 = vrot.slane %v6382_v15, 1  ;;  %v6389_v14 = vmax.f32 %v6387_v38, %v6388_v26  ;;  %v6370_v62 = vmax.f32 %v6368_v37, %v6369_v56  ;;  %v1694_v38 = vld [vmem:[#allocation2 + $0x14a] sm:$0x3] }
 0x283   :  { %2847 = vrot.lane.b32.xlu1 %v1892_v0, %s10530_s19  ;;  %v13018_v45 = vrot.slane %v3923_v47, %v11316_v12  ;;  %5436 = vmatprep.mubr.f32.mxu0 %v4880_v43  ;;  %v5579_v11 = vadd.f32 %v12945_v35, %v5389_v18  ;;  %v4879_v42 = vcombine.low %v4857_v44, %v4871_v25  ;;  %v1854_v0 = vld [vmem:[#allocation2 + $0x168] sm:$0x3] }
 0x284   :  { %2533 = vrot.lane.b32.xlu0 %v1815_v4, %s10526_s25  ;;  %v6377_v54 = vmax.f32 %v6375_v46, %v6376_v36  ;;  %v6384_v60 = vmax.f32 %v6382_v15, %v6383_v39  ;;  %v6390_v28 = vrot.slane %v6389_v14, 1  ;;  %v6971_v48 = vsel %vm39_vm0, %v6370_v62, -inf  ;;  %v1814_v62 = vld [vmem:[#allocation2 + $0x15a] sm:$0x3] }
 0x285   :  { %v2828_v20 = vpop.permute.xlu1 %2827  ;;  %v3955_v6 = vcombine.low %v13018_v45, %v12748_v19  ;;  %v6972_v41 = vmax.f32 %v12973_v9, %v6971_v48  ;;  %v3044_v17 = vsel %vm39_vm0, %v1762_v24, %v12984_v5  ;;  %5437 = vmatmul.mubr.f32.gmra.mxu0 %v4879_v42  ;;  %v5682_v15 = vmax.f32 %v5579_v11, 0.0 }
 0x286   :  { %v13034_v49 = vpop.permute.xlu0 %2513  ;;  %v6391_v31 = vmax.f32 %v6389_v14, %v6390_v28  ;;  %v6974_v40 = vsel %vm39_vm0, %v6377_v54, -inf  ;;  %v6977_v29 = vsel %vm39_vm0, %v6384_v60, -inf  ;;  %v3931_v1 = vrot.slane %v3922_v53, %v11316_v12  ;;  %v1734_v54 = vld [vmem:[#allocation2 + $0x158] sm:$0x3] }
 0x287   :  { %2689 = vrot.lane.b32.xlu1 %v13032_v61, %s10527_s26  ;;  %v6975_v35 = vmax.f32 %v6973_v33, %v6974_v40  ;;  %v6978_v37 = vmax.f32 %v6976_v8, %v6977_v29  ;;  %v7175_v57 = vsel %vm7167_vm7, %v6972_v41, %v6969_v32  ;;  %v10109_v46 = vcombine.high %v12738_v50, %v3955_v6  ;;  %v1894_v41 = vld [vmem:[#allocation2 + $0x169] sm:$0x3] }
 0x288   :  { %2211 = vrot.lane.b32.xlu0 %v1694_v38, %s10527_s26  ;;  %v6980_v9 = vsel %vm39_vm0, %v6391_v31, -inf  ;;  %v3084_v33 = vsel %vm2937_vm4, %v3044_v17, %v2668_v21  ;;  %v2963_v44 = vsel %vm2937_vm4, %v12960_v23, %v12940_v30  ;;  %v5819_v36 = vrot.slane %v5682_v15, %v11316_v12  ;;  %v1764_v31 = vld [vmem:[#allocation2 + $0x109] sm:$0x3] }
 0x289   :  { %v2512_v26 = vpop.permute.xlu1 %2511  ;;  %v6981_v56 = vmax.f32 %v6979_v2, %v6980_v9  ;;  %v7176_v47 = vsel %vm7169_vm8, %v6975_v35, %v7175_v57  ;;  %v3124_v25 = vsel %vm2978_vm5, %v3084_v33, %v2828_v20  ;;  %v3004_v21 = vsel %vm2978_vm5, %v2963_v44, %v12970_v55  ;;  %v1604_v20 = vld [vmem:[#allocation2 + $0xf8] sm:$0x3] }
 0x28a   :  { %v13051_v8 = vpop.permute.xlu0 %2193  ;;  %v7177_v5 = vsel %vm7171_vm9, %v6978_v37, %v7176_v47  ;;  %v3906_v39 = vcombine.low %v3004_v21, %v3124_v25  ;;  %v4913_v30 = vrot.slane %v10109_v46, %v11316_v12  ;;  %v4899_v4 = vrot.slane %v10107_v63, %v11316_v12  ;;  %v1893_v63 = vld [vmem:[#allocation2 + $0x161] sm:$0xff]  ;;  %v13092_v35 = vld [vmem:[#allocation2 + $0x132] sm:$0xff] }
 0x28b   :  { %2053 = vrot.lane.b32.xlu1 %v12903_v58, %s10526_s25  ;;  %v5583_v10 = vpop.f32.mrf.mxu1  ;;  %v7178_v32 = vsel %vm7173_vm10, %v6981_v56, %v7177_v5  ;;  %v3954_v58 = vcombine.high %v3931_v1, %v12738_v50  ;;  %v5812_v43 = vcombine.high %v5682_v15, %v5682_v15  ;;  %v5827_v28 = vcombine.high %v5819_v36, %v5819_v36  ;;  %v1656_v44 = vld [vmem:[#allocation2 + $0x159] sm:$0x3]  ;;  %v1855_v21 = vld [vmem:[#allocation2 + $0x170] sm:$0xff] }
 0x28c   :  { %2691 = vrot.lane.b32.xlu0 %v1854_v0, %s10527_s26  ;;  %7224 = vst.msk [vmem:[#allocation3 + $0x11] sm:$0x1f] %vm7222_vm11, %v7178_v32  ;;  %v3913_v18 = vrot.slane %v3906_v39, %v11316_v12  ;;  %v4916_v60 = vcombine.low %v4899_v4, %v4913_v30  ;;  %v2924_v11 = vsel %vm39_vm0, %v1604_v20, %v12992_v7  ;;  %v1925_v7 = vld [vmem:[#allocation2 + $0x122] sm:$0xff]  ;;  %v6392_v37 = vsel %vm331_vm3, %v5819_v36, -inf }
 0x28d   :  { %v2672_v23 = vpop.permute.xlu1 %2671  ;;  %v10364_v14 = vpop.f32.mrf.mxu1  ;;  %v10108_v50 = vcombine.low %v3954_v58, %v13018_v45  ;;  %v5826_v42 = vrot.slane %v5812_v43, %v11316_v12  ;;  %v3046_v40 = vsel %vm39_vm0, %v1764_v31, %v2512_v26  ;;  %v6399_v17 = vsel %vm331_vm3, %v5827_v28, -inf  ;;  %v10062_v39 = vld.sshfl [vmem:[#allocation2 + $0x11a] sm:$0x3 pattern:$0x76325410] }
 0x28e   :  { %v13072_v55 = vpop.permute.xlu0 %2035  ;;  %v10106_v48 = vcombine.low %v3913_v18, %v3931_v1  ;;  %10393 = vmatmul.mubr.msk.f32.gmra.mxu1 %vm39_vm0, %v4916_v60  ;;  %v2965_v9 = vsel %vm2937_vm4, %v2924_v11, %v13001_v51  ;;  %v3086_v57 = vsel %vm2937_vm4, %v3046_v40, %v2672_v23  ;;  %v3975_v25 = vcombine.high %v1925_v7, %v1925_v7  ;;  %v1696_v18 = vld [vmem:[#allocation2 + $0x15a] sm:$0x3] }
 0x28f   :  { %2531 = vrot.lane.b32.xlu1 %v1814_v62, %s10526_s25  ;;  %10395 = vmatprep.mubr.msk.f32.mxu1 %vm10528_vm2, %v10525_v3  ;;  %v4906_v24 = vrot.slane %v10108_v50, %v11316_v12  ;;  %v5828_v33 = vcombine.high %v5826_v42, %v5826_v42  ;;  %v13107_v51 = vrot.slane %v13092_v35, %v11316_v12  ;;  %v6393_v0 = vrot.slane %v6392_v37, 4  ;;  %v10063_v62 = vld.sshfl [vmem:[#allocation2 + $0x12a] sm:$0x3 pattern:$0x76325410] }
 0x290   :  { %2371 = vrot.lane.b32.xlu0 %v1734_v54, %s10530_s19  ;;  %v4892_v29 = vrot.slane %v10106_v48, %v11316_v12  ;;  %v6400_v36 = vrot.slane %v6399_v17, 4  ;;  %v3996_v54 = vrot.slane %v1925_v7, %v11316_v12  ;;  %v4003_v60 = vrot.slane %v3975_v25, %v11316_v12 }
 0x291   :  { %v2352_v53 = vpop.permute.xlu1 %2351  ;;  %v6413_v43 = vsel %vm331_vm3, %v5828_v33, -inf  ;;  %v10113_v28 = vcombine.low %v10063_v62, %v13107_v51 }
 0x292   :  { %v5393_v59 = vpop.f32.mrf.mxu0  ;;  %v13079_v6 = vpop.permute.xlu0 %2353  ;;  %v4915_v15 = vcombine.high %v4892_v29, %v4906_v24  ;;  %v4914_v56 = vcombine.low %v4892_v29, %v4906_v24  ;;  %v3006_v5 = vsel %vm2978_vm5, %v2965_v9, %v2352_v53  ;;  %v6394_v53 = vmax.f32 %v6392_v37, %v6393_v0  ;;  %v1736_v24 = vld [vmem:[#allocation2 + $0x168] sm:$0x3]  ;;  %v1895_v37 = vld [vmem:[#allocation2 + $0x171] sm:$0xff] }
 0x293   :  { %2849 = vrot.lane.b32.xlu1 %v1893_v63, %s10530_s19  ;;  %v5394_v38 = vadd.f32 %v13023_v34, %v5393_v59  ;;  %v6401_v59 = vmax.f32 %v6399_v17, %v6400_v36  ;;  %v4948_v9 = vrot.slane %v3996_v54, %v11316_v12 }
 0x294   :  { %v5395_v2 = vpop.f32.mrf.mxu0  ;;  %2851 = vrot.lane.b32.xlu0 %v1894_v41, %s10530_s19  ;;  %5441 = vmatprep.mubr.f32.mxu0 %v4915_v15  ;;  %v6395_v7 = vrot.slane %v6394_v53, 2 }
 0x295   :  { %v2832_v46 = vpop.permute.xlu1 %2831  ;;  %v5584_v26 = vadd.f32 %v5583_v10, %v5394_v38  ;;  %5442 = vmatmul.mubr.f32.gmra.mxu0 %v4914_v56  ;;  %v4983_v38 = vrot.slane %v10113_v28, %v11316_v12  ;;  %v4026_v2 = vcombine.high %v13092_v35, %v13092_v35  ;;  %v6402_v15 = vrot.slane %v6401_v59, 2 }
 0x296   :  { %v3126_v47 = vsel %vm2978_vm5, %v3086_v57, %v2832_v46  ;;  %v13100_v1 = vpop.permute.xlu0 %2517  ;;  %v4969_v57 = vrot.slane %v4003_v60, %v11316_v12  ;;  %v13142_v46 = vld [vmem:[#allocation2 + $0x142] sm:$0xff] }
 0x297   :  { %2213 = vrot.lane.b32.xlu1 %v12947_v27, %s10527_s26  ;;  %v5683_v10 = vmax.f32 %v5584_v26, 0.0  ;;  %v3957_v32 = vcombine.low %v3006_v5, %v3126_v47  ;;  %v6406_v27 = vsel %vm331_vm3, %v5826_v42, -inf  ;;  %v6414_v42 = vrot.slane %v6413_v43, 4  ;;  %v1605_v5 = vld [vmem:[#allocation2 + $0x100] sm:$0xff] }
 0x298   :  { %2055 = vrot.lane.b32.xlu0 %v1656_v44, %s10526_s25  ;;  %v6407_v63 = vrot.slane %v6406_v27, 4  ;;  %v1765_v44 = vld [vmem:[#allocation2 + $0x111] sm:$0xff]  ;;  %v4077_v62 = vcombine.high %v13142_v46, %v13142_v46 }
 0x299   :  { %v13110_v30 = vpop.permute.xlu1 %2673  ;;  %v5829_v23 = vcombine.high %v5683_v10, %v5683_v10  ;;  %v5836_v14 = vrot.slane %v5683_v10, %v11316_v12  ;;  %v13115_v58 = vrot.slane %v3957_v32, %v11316_v12  ;;  %v6415_v33 = vmax.f32 %v6413_v43, %v6414_v42 }
 0x29a   :  { %v13117_v4 = vpop.permute.xlu0 %2195  ;;  %v3047_v36 = vsel %vm39_vm0, %v1765_v44, %v13034_v49  ;;  %v6396_v49 = vmax.f32 %v6394_v53, %v6395_v7 }
 0x29b   :  { %2693 = vrot.lane.b32.xlu1 %v1855_v21, %s10527_s26  ;;  %v5843_v20 = vrot.slane %v5829_v23, %v11316_v12  ;;  %v5844_v48 = vcombine.high %v5836_v14, %v5836_v14  ;;  %v3972_v50 = vcombine.low %v13115_v58, %v10062_v39  ;;  %v6420_v25 = vsel %vm331_vm3, %v5836_v14, -inf  ;;  %v7244_v23 = vld [vmem:[#allocation3 + $0x9] sm:$0x1f] }
 0x29c   :  { %2215 = vrot.lane.b32.xlu0 %v1696_v18, %s10527_s26  ;;  %v2925_v21 = vsel %vm39_vm0, %v1605_v5, %v13013_v52  ;;  %v3956_v52 = vcombine.high %v13018_v45, %v12748_v19  ;;  %v6421_v60 = vrot.slane %v6420_v25, 4  ;;  %v3087_v28 = vsel %vm2937_vm4, %v3047_v36, %v13110_v30  ;;  %v1816_v45 = vld [vmem:[#allocation2 + $0x16a] sm:$0x3] }
 0x29d   :  { %v13127_v11 = vpop.permute.xlu1 %2037  ;;  %v5845_v31 = vcombine.high %v5843_v20, %v5843_v20  ;;  %v10111_v41 = vcombine.high %v12748_v19, %v3972_v50  ;;  %v6427_v29 = vsel %vm331_vm3, %v5844_v48, -inf  ;;  %v6434_v26 = vsel %vm331_vm3, %v5843_v20, -inf }
 0x29e   :  { %v13130_v40 = vpop.permute.xlu0 %2675  ;;  %v6428_v0 = vrot.slane %v6427_v29, 4  ;;  %v2966_v14 = vsel %vm2937_vm4, %v2925_v21, %v13051_v8  ;;  %v6435_v43 = vrot.slane %v6434_v26, 4  ;;  %v6403_v8 = vmax.f32 %v6401_v59, %v6402_v15 }
 0x29f   :  { %2373 = vrot.lane.b32.xlu1 %v13032_v61, %s10530_s19  ;;  %v4934_v17 = vrot.slane %v10111_v41, %v11316_v12  ;;  %v6408_v61 = vmax.f32 %v6406_v27, %v6407_v63  ;;  %v6441_v56 = vsel %vm331_vm3, %v5845_v31, -inf  ;;  %v4986_v27 = vcombine.low %v4969_v57, %v4983_v38  ;;  %v7254_v41 = vld [vmem:[#allocation3 + $0xa] sm:$0x1f] }
 0x2a0   :  { %2375 = vrot.lane.b32.xlu0 %v1736_v24, %s10530_s19  ;;  %v6442_v18 = vrot.slane %v6441_v56, 4  ;;  %v6416_v50 = vrot.slane %v6415_v33, 2  ;;  %v6429_v63 = vmax.f32 %v6427_v29, %v6428_v0  ;;  %v13177_v53 = vsel %vm2978_vm5, %v2966_v14, %v13079_v6  ;;  %v1856_v6 = vld [vmem:[#allocation2 + $0x178] sm:$0x3] }
 0x2a1   :  { %v13146_v47 = vpop.permute.xlu1 %2515  ;;  %v4951_v10 = vcombine.low %v4934_v17, %v4948_v9  ;;  %v6409_v54 = vrot.slane %v6408_v61, 2  ;;  %v10110_v30 = vcombine.low %v3956_v52, %v13115_v58  ;;  %v4098_v59 = vrot.slane %v13142_v46, %v11316_v12  ;;  %v1931_v58 = vld [vmem:[#allocation2 + $0x152] sm:$0xff]  ;;  %v7243_v46 = vld [vmem:[#allocation3 + $0x1] sm:$0x1f] }
 0x2a2   :  { %v13149_v32 = vpop.permute.xlu0 %2355  ;;  %v4105_v29 = vrot.slane %v4077_v62, %v11316_v12  ;;  %v6436_v24 = vmax.f32 %v6434_v26, %v6435_v43  ;;  %v6443_v38 = vmax.f32 %v6441_v56, %v6442_v18  ;;  %v6422_v9 = vmax.f32 %v6420_v25, %v6421_v60  ;;  %v1606_v60 = vld [vmem:[#allocation2 + $0x108] sm:$0x3] }
 0x2a3   :  { %2853 = vrot.lane.b32.xlu1 %v1895_v37, %s10530_s19  ;;  %v13156_v39 = vpop.f32.mrf.mxu1  ;;  %10396 = vmatmul.mubr.msk.f32.gmra.mxu1 %vm39_vm0, %v4951_v10  ;;  %v6397_v37 = vrot.slane %v6396_v49, 1  ;;  %v6410_v17 = vmax.f32 %v6408_v61, %v6409_v54  ;;  %v6404_v26 = vrot.slane %v6403_v8, 1  ;;  %v6417_v56 = vmax.f32 %v6415_v33, %v6416_v50 }
 0x2a4   :  { %7336 = vrot.lane.b32.xlu0 %v7244_v23, %s10526_s25  ;;  %10398 = vmatprep.mubr.msk.f32.mxu1 %vm10528_vm2, %v10525_v3  ;;  %v6430_v5 = vrot.slane %v6429_v63, 2  ;;  %v13202_v61 = vrot.slane %v4026_v2, %v11316_v12  ;;  %v5039_v25 = vrot.slane %v4098_v59, %v11316_v12  ;;  %v5053_v10 = vrot.slane %v4105_v29, %v11316_v12 }
 0x2a5   :  { %v2834_v20 = vpop.permute.xlu1 %2833  ;;  %v10367_v48 = vpop.f32.mrf.mxu1  ;;  %v4128_v21 = vcombine.high %v1931_v58, %v1931_v58  ;;  %v6437_v36 = vrot.slane %v6436_v24, 2  ;;  %v6444_v33 = vrot.slane %v6443_v38, 2  ;;  %v4927_v23 = vrot.slane %v10110_v30, %v11316_v12  ;;  %v7283_v30 = vld [vmem:[#allocation3 + $0xa] sm:$0x1f] }
 0x2a6   :  { %v13171_v19 = vsel %vm2978_vm5, %v3087_v28, %v2834_v20  ;;  %v13173_v42 = vpop.permute.xlu0 %2835  ;;  %v6398_v14 = vmax.f32 %v6396_v49, %v6397_v37  ;;  %v6411_v43 = vrot.slane %v6410_v17, 1  ;;  %v6423_v18 = vrot.slane %v6422_v9, 2 }
 0x2a7   :  { %2535 = vrot.lane.b32.xlu1 %v1816_v45, %s10526_s25  ;;  %v13181_v31 = vpop.f32.mrf.mxu1  ;;  %v3973_v7 = vcombine.low %v13177_v53, %v13171_v19  ;;  %10399 = vmatmul.mubr.msk.f32.gmra.mxu1 %vm39_vm0, %v4986_v27  ;;  %v1896_v27 = vld [vmem:[#allocation2 + $0x179] sm:$0x3]  ;;  %v13210_v2 = vrot.slane %v1931_v58, %v11316_v12  ;;  %v6405_v52 = vmax.f32 %v6403_v8, %v6404_v26  ;;  %v6418_v54 = vrot.slane %v6417_v56, 1  ;;  %v7253_v26 = vld [vmem:[#allocation3 + $0x2] sm:$0x1f] }
 0x2a8   :  { %7376 = vrot.lane.b32.xlu0 %v7254_v41, %s10527_s26  ;;  %10401 = vmatprep.mubr.msk.f32.mxu1 %vm10528_vm2, %v10525_v3  ;;  %v6431_v28 = vmax.f32 %v6429_v63, %v6430_v5  ;;  %v2926_v50 = vsel %vm39_vm0, %v1606_v60, %v13072_v55  ;;  %v1766_v45 = vld [vmem:[#allocation2 + $0x119] sm:$0x3]  ;;  %v13217_v41 = vcombine.low %v5039_v25, %v5053_v10 }
 0x2a9   :  { %v13190_v57 = vpop.permute.xlu1 %2197  ;;  %v10370_v15 = vpop.f32.mrf.mxu1  ;;  %v3982_v44 = vrot.slane %v3973_v7, %v11316_v12  ;;  %v13220_v59 = vrot.slane %v4128_v21, %v11316_v12  ;;  %v6438_v8 = vmax.f32 %v6436_v24, %v6437_v36  ;;  %v6445_v29 = vmax.f32 %v6443_v38, %v6444_v33  ;;  %v1767_v7 = vld [vmem:[#allocation2 + $0x121] sm:$0xff] }
 0x2aa   :  { %v13195_v0 = vpop.permute.xlu0 %2039  ;;  %v3048_v63 = vsel %vm39_vm0, %v1766_v45, %v13146_v47  ;;  %v6412_v55 = vmax.f32 %v6410_v17, %v6411_v43  ;;  %v6424_v58 = vmax.f32 %v6422_v9, %v6423_v18  ;;  %v3049_v37 = vsel %vm39_vm0, %v1767_v7, %v13100_v1  ;;  %v7284_v17 = vld [vmem:[#allocation3 + $0x12] sm:$0x1f] }
 0x2ab   :  { %2695 = vrot.lane.b32.xlu1 %v1856_v6, %s10527_s26  ;;  %v4941_v62 = vrot.slane %v3982_v44, %v11316_v12  ;;  %v6419_v24 = vmax.f32 %v6417_v56, %v6418_v54  ;;  %v13229_v38 = vsel %vm39_vm0, %v6398_v14, -inf  ;;  %v13232_v47 = vsel %vm39_vm0, %v6405_v52, -inf  ;;  %v1607_v44 = vld [vmem:[#allocation2 + $0x110] sm:$0xff] }
 0x2ac   :  { %7334 = vrot.lane.b32.xlu0 %v7243_v46, %s10526_s25  ;;  %v6432_v5 = vrot.slane %v6431_v28, 1  ;;  %v2967_v1 = vsel %vm2937_vm4, %v2926_v50, %v13117_v4  ;;  %v2927_v10 = vsel %vm39_vm0, %v1607_v44, %v13127_v11  ;;  %v3088_v56 = vsel %vm2937_vm4, %v3048_v63, %v13130_v40 }
 0x2ad   :  { %v2678_v35 = vpop.permute.xlu1 %2677  ;;  %v4950_v20 = vcombine.high %v4927_v23, %v4941_v62  ;;  %v4949_v49 = vcombine.low %v4927_v23, %v4941_v62  ;;  %v6439_v36 = vrot.slane %v6438_v8, 1  ;;  %v6446_v33 = vrot.slane %v6445_v29, 1 }
 0x2ae   :  { %v13212_v48 = vpop.permute.xlu0 %2199  ;;  %v3128_v23 = vsel %vm2978_vm5, %v3088_v56, %v13173_v42  ;;  %v6425_v4 = vrot.slane %v6424_v58, 1  ;;  %v2968_v11 = vsel %vm2937_vm4, %v2927_v10, %v13190_v57  ;;  %v3089_v40 = vsel %vm2937_vm4, %v3049_v37, %v2678_v35  ;;  %v7263_v57 = vld [vmem:[#allocation3 + $0x8] sm:$0x1f] }
 0x2af   :  { %2855 = vrot.lane.b32.xlu1 %v1896_v27, %s10530_s19  ;;  %5446 = vmatprep.mubr.f32.mxu0 %v4950_v20  ;;  %v3008_v27 = vsel %vm2978_vm5, %v2967_v1, %v13149_v32  ;;  %v6433_v14 = vmax.f32 %v6431_v28, %v6432_v5  ;;  %v3974_v43 = vcombine.high %v13177_v53, %v13171_v19  ;;  %v13260_v35 = vsel %vm39_vm0, %v6412_v55, -inf  ;;  %v1608_v1 = vld [vmem:[#allocation2 + $0x118] sm:$0x3] }
 0x2b0   :  { %v5398_v6 = vpop.f32.mrf.mxu0  ;;  %7454 = vrot.lane.b32.xlu0 %v7283_v30, %s10526_s25  ;;  %5447 = vmatmul.mubr.f32.gmra.mxu0 %v4949_v49  ;;  %v4008_v42 = vcombine.low %v3008_v27, %v3128_v23  ;;  %v6440_v50 = vmax.f32 %v6438_v8, %v6439_v36  ;;  %v6447_v28 = vmax.f32 %v6445_v29, %v6446_v33  ;;  %v13263_v45 = vsel %vm39_vm0, %v6419_v24, -inf  ;;  %v7245_v24 = vld [vmem:[#allocation3 + $0x11] sm:$0x1f] }
 0x2b1   :  { %v5399_v15 = vadd.f32 %v13023_v34, %v5398_v6  ;;  %v2358_v46 = vpop.permute.xlu1 %2357  ;;  %v13271_v63 = vmax.f32 %v6424_v58, %v6425_v4  ;;  %v6983_v6 = vsel %vm39_vm0, %v6433_v14, -inf  ;;  %v3989_v8 = vrot.slane %v3974_v43, %v11316_v12 }
 0x2b2   :  { %v5400_v25 = vpop.f32.mrf.mxu0  ;;  %v13234_v9 = vpop.permute.xlu0 %2359  ;;  %v3009_v18 = vsel %vm2978_vm5, %v2968_v11, %v2358_v46  ;;  %v4015_v37 = vrot.slane %v4008_v42, %v11316_v12  ;;  %v6986_v5 = vsel %vm39_vm0, %v6440_v50, -inf  ;;  %v6984_v33 = vmax.f32 %v13229_v38, %v6983_v6  ;;  %v1768_v38 = vld [vmem:[#allocation2 + $0x129] sm:$0x3] }
 0x2b3   :  { %v5589_v21 = vadd.f32 %v13156_v39, %v5399_v15  ;;  %7456 = vrot.lane.b32.xlu1 %v7284_v17, %s10526_s25  ;;  %v6989_v17 = vsel %vm39_vm0, %v6447_v28, -inf  ;;  %v2928_v27 = vsel %vm39_vm0, %v1608_v1, %v13195_v0 }
 0x2b4   :  { %7374 = vrot.lane.b32.xlu0 %v7253_v26, %s10527_s26  ;;  %v6990_v43 = vmax.f32 %v13260_v35, %v6989_v17  ;;  %v2969_v6 = vsel %vm2937_vm4, %v2928_v27, %v13212_v48 }
 0x2b5   :  { %v5684_v62 = vmax.f32 %v5589_v21, 0.0  ;;  %v2838_v39 = vpop.permute.xlu1 %2837 }
 0x2b6   :  { %v3129_v32 = vsel %vm2978_vm5, %v3089_v40, %v2838_v39  ;;  %v13256_v52 = vpop.permute.xlu0 %2041  ;;  %v6987_v40 = vmax.f32 %v13232_v47, %v6986_v5  ;;  %v4962_v39 = vrot.slane %v3989_v8, %v11316_v12 }
 0x2b7   :  { %v5846_v54 = vcombine.high %v5684_v62, %v5684_v62  ;;  %v5853_v60 = vrot.slane %v5684_v62, %v11316_v12  ;;  %v4024_v20 = vcombine.low %v3009_v18, %v3129_v32  ;;  %v4025_v56 = vcombine.high %v3009_v18, %v3129_v32 }
 0x2b8   :  { %7414 = vrot.lane.b32.xlu0 %v7263_v57, %s10530_s19 }
 0x2b9   :  { %v5860_v19 = vrot.slane %v5846_v54, %v11316_v12  ;;  %v5861_v53 = vcombine.high %v5853_v60, %v5853_v60  ;;  %v6448_v49 = vsel %vm331_vm3, %v5853_v60, -inf  ;;  %v13269_v30 = vrot.slane %v4024_v20, %v11316_v12  ;;  %v2520_v7 = vpop.permute.xlu1 %2519 }
 0x2ba   :  { %v6449_v29 = vrot.slane %v6448_v49, 4  ;;  %v13275_v55 = vpop.permute.xlu0 %2521  ;;  %v4040_v54 = vrot.slane %v4025_v56, %v11316_v12  ;;  %v3050_v0 = vsel %vm39_vm0, %v1768_v38, %v2520_v7 }
 0x2bb   :  { %v5862_v15 = vcombine.high %v5860_v19, %v5860_v19  ;;  %v6455_v46 = vsel %vm331_vm3, %v5861_v53, -inf  ;;  %v6462_v26 = vsel %vm331_vm3, %v5860_v19, -inf  ;;  %v10112_v21 = vcombine.low %v4015_v37, %v13269_v30 }
 0x2bc   :  { %v6450_v44 = vmax.f32 %v6448_v49, %v6449_v29  ;;  %v6456_v58 = vrot.slane %v6455_v46, 4  ;;  %v6463_v25 = vrot.slane %v6462_v26, 4  ;;  %7338 = vrot.lane.b32.xlu0 %v7245_v24, %s10526_s25  ;;  %v4056_v28 = vcombine.high %v13269_v30, %v13107_v51 }
 0x2bd   :  { %v6469_v10 = vsel %vm331_vm3, %v5862_v15, -inf  ;;  %v2680_v36 = vpop.permute.xlu1 %2679  ;;  %v4976_v14 = vrot.slane %v10112_v21, %v11316_v12  ;;  %v3010_v30 = vsel %vm2978_vm5, %v2969_v6, %v13234_v9  ;;  %v4057_v24 = vcombine.low %v4040_v54, %v13202_v61  ;;  %v10064_v21 = vld.sshfl [vmem:[#allocation2 + $0x13a] sm:$0x3 pattern:$0x76325410] }
 0x2be   :  { %v6451_v23 = vrot.slane %v6450_v44, 2  ;;  %v6457_v4 = vmax.f32 %v6455_v46, %v6456_v58  ;;  %v13288_v11 = vpop.permute.xlu0 %2201  ;;  %v6464_v62 = vmax.f32 %v6462_v26, %v6463_v25  ;;  %v6470_v42 = vrot.slane %v6469_v10, 4 }
 0x2bf   :  { %v4985_v20 = vcombine.high %v4962_v39, %v4976_v14  ;;  %v4984_v57 = vcombine.low %v4962_v39, %v4976_v14  ;;  %v3090_v19 = vsel %vm2937_vm4, %v3050_v0, %v2680_v36  ;;  %v7179_v26 = vsel %vm7167_vm7, %v6987_v40, %v6984_v33 }
 0x2c0   :  { %v6452_v18 = vmax.f32 %v6450_v44, %v6451_v23  ;;  %v6458_v32 = vrot.slane %v6457_v4, 2  ;;  %v6465_v49 = vrot.slane %v6464_v62, 2  ;;  %v6471_v15 = vmax.f32 %v6469_v10, %v6470_v42 }
 0x2c1   :  { %v2840_v60 = vpop.permute.xlu1 %2839  ;;  %5451 = vmatprep.mubr.f32.mxu0 %v4985_v20  ;;  %v4058_v17 = vcombine.high %v4040_v54, %v13202_v61  ;;  %v10114_v10 = vcombine.low %v4056_v28, %v4040_v54 }
 0x2c2   :  { %v6453_v50 = vrot.slane %v6452_v18, 1  ;;  %v6459_v47 = vmax.f32 %v6457_v4, %v6458_v32  ;;  %v5403_v53 = vpop.f32.mrf.mxu0  ;;  %v13299_v35 = vpop.permute.xlu0 %2681  ;;  %v3130_v8 = vsel %vm2978_vm5, %v3090_v19, %v2840_v60  ;;  %5452 = vmatmul.mubr.f32.gmra.mxu0 %v4984_v57  ;;  %v6466_v9 = vmax.f32 %v6464_v62, %v6465_v49 }
 0x2c3   :  { %v5404_v7 = vadd.f32 %v13023_v34, %v5403_v53  ;;  %v4059_v5 = vcombine.low %v3010_v30, %v3130_v8  ;;  %v6472_v27 = vrot.slane %v6471_v15, 2  ;;  %v7180_v4 = vsel %vm7169_vm8, %v6990_v43, %v7179_v26 }
 0x2c4   :  { %v6454_v29 = vmax.f32 %v6452_v18, %v6453_v50  ;;  %v6460_v37 = vrot.slane %v6459_v47, 1  ;;  %v5405_v46 = vpop.f32.mrf.mxu0  ;;  %v6467_v54 = vrot.slane %v6466_v9, 1 }
 0x2c5   :  { %v5594_v48 = vadd.f32 %v13181_v31, %v5404_v7  ;;  %v13310_v44 = vpop.permute.xlu1 %2045  ;;  %v4066_v36 = vrot.slane %v4059_v5, %v11316_v12  ;;  %v6994_v31 = vsel %vm39_vm0, %v13271_v63, -inf  ;;  %v4997_v63 = vrot.slane %v10114_v10, %v11316_v12 }
 0x2c6   :  { %v6461_v58 = vmax.f32 %v6459_v47, %v6460_v37  ;;  %v6992_v25 = vsel %vm39_vm0, %v6454_v29, -inf  ;;  %v13314_v1 = vpop.permute.xlu0 %2043  ;;  %v13333_v20 = vmax.f32 %v6471_v15, %v6472_v27  ;;  %v1609_v15 = vld [vmem:[#allocation2 + $0x120] sm:$0xff] }
 0x2c7   :  { %v6993_v56 = vmax.f32 %v13263_v45, %v6992_v25  ;;  %v5685_v33 = vmax.f32 %v5594_v48, 0.0  ;;  %v4074_v14 = vcombine.low %v4066_v36, %v10064_v21  ;;  %v10116_v18 = vcombine.low %v4058_v17, %v4066_v36  ;;  %v1769_v25 = vld [vmem:[#allocation2 + $0x131] sm:$0xff] }
 0x2c8   :  { %v6995_v23 = vsel %vm39_vm0, %v6461_v58, -inf  ;;  %v10115_v45 = vcombine.high %v13107_v51, %v4057_v24  ;;  %v6468_v48 = vmax.f32 %v6466_v9, %v6467_v54  ;;  %v2929_v58 = vsel %vm39_vm0, %v1609_v15, %v13256_v52 }
 0x2c9   :  { %v6996_v40 = vmax.f32 %v6994_v31, %v6995_v23  ;;  %v7181_v39 = vsel %vm7171_vm9, %v6993_v56, %v7180_v4  ;;  %v13323_v62 = vpop.permute.xlu1 %2525  ;;  %v5863_v32 = vcombine.high %v5685_v33, %v5685_v33  ;;  %v5870_v42 = vrot.slane %v5685_v33, %v11316_v12  ;;  %v1611_v4 = vld [vmem:[#allocation2 + $0x130] sm:$0xff] }
 0x2ca   :  { %v13327_v38 = vpop.permute.xlu0 %2365  ;;  %v10117_v43 = vcombine.high %v13202_v61, %v4074_v14  ;;  %v5011_v60 = vrot.slane %v10116_v18, %v11316_v12  ;;  %v5004_v29 = vrot.slane %v10115_v45, %v11316_v12  ;;  %v6474_v21 = vrot.slane %v13333_v20, 1 }
 0x2cb   :  { %v7182_v0 = vsel %vm7173_vm10, %v6996_v40, %v7181_v39  ;;  %v5877_v51 = vrot.slane %v5863_v32, %v11316_v12  ;;  %v5878_v57 = vcombine.high %v5870_v42, %v5870_v42  ;;  %v6476_v50 = vsel %vm331_vm3, %v5870_v42, -inf }
 0x2cc   :  { %7225 = vst.msk [vmem:[#allocation3 + $0x19] sm:$0x1f] %vm7222_vm11, %v7182_v0  ;;  %v6477_v47 = vrot.slane %v6476_v50, 4  ;;  %v5020_v19 = vcombine.high %v4997_v63, %v5011_v60  ;;  %v5019_v53 = vcombine.low %v4997_v63, %v5011_v60  ;;  %v5018_v49 = vrot.slane %v10117_v43, %v11316_v12  ;;  %v1610_v60 = vld [vmem:[#allocation2 + $0x128] sm:$0x3] }
 0x2cd   :  { %v2206_v28 = vpop.permute.xlu1 %2205  ;;  %v5879_v6 = vcombine.high %v5877_v51, %v5877_v51  ;;  %v6483_v61 = vsel %vm331_vm3, %v5878_v57, -inf  ;;  %v6490_v8 = vsel %vm331_vm3, %v5877_v51, -inf  ;;  %v3051_v9 = vsel %vm39_vm0, %v1769_v25, %v13275_v55  ;;  %v1771_v51 = vld [vmem:[#allocation2 + $0x141] sm:$0xff] }
 0x2ce   :  { %v5408_v7 = vpop.f32.mrf.mxu0  ;;  %v2842_v37 = vpop.permute.xlu0 %2841  ;;  %v6478_v30 = vmax.f32 %v6476_v50, %v6477_v47  ;;  %v6484_v46 = vrot.slane %v6483_v61, 4  ;;  %v6491_v26 = vrot.slane %v6490_v8, 4  ;;  %5456 = vmatprep.mubr.f32.mxu0 %v5020_v19  ;;  %v5021_v10 = vcombine.low %v5004_v29, %v5018_v49 }
 0x2cf   :  { %v5409_v24 = vadd.f32 %v13023_v34, %v5408_v7  ;;  %v5598_v5 = vpop.f32.mrf.mxu1  ;;  %v6497_v17 = vsel %vm331_vm3, %v5879_v6, -inf  ;;  %5457 = vmatmul.mubr.f32.gmra.mxu0 %v5019_v53  ;;  %v13349_v34 = vld.sshfl [vmem:[#allocation2 + $0x14a] sm:$0x3 pattern:$0x76325410]  ;;  %v2970_v52 = vsel %vm2937_vm4, %v2929_v58, %v13288_v11  ;;  %v3091_v42 = vsel %vm2937_vm4, %v3051_v9, %v13299_v35 }
 0x2d0   :  { %v5410_v56 = vpop.f32.mrf.mxu0  ;;  %v6485_v36 = vmax.f32 %v6483_v61, %v6484_v46  ;;  %v6492_v33 = vmax.f32 %v6490_v8, %v6491_v26  ;;  %v6498_v31 = vrot.slane %v6497_v17, 4  ;;  %10402 = vmatmul.mubr.msk.f32.gmra.mxu1 %vm39_vm0, %v5021_v10  ;;  %v10119_v14 = vcombine.low %v13349_v34, %v13210_v2  ;;  %v7255_v46 = vld [vmem:[#allocation3 + $0x12] sm:$0x1f]  ;;  %v1772_v34 = vld [vmem:[#allocation2 + $0x149] sm:$0x3] }
 0x2d1   :  { %v13347_v27 = vpop.permute.xlu1 %2685  ;;  %v10373_v23 = vpop.f32.mrf.mxu1  ;;  %v5599_v40 = vadd.f32 %v5598_v5, %v5409_v24  ;;  %v6479_v18 = vrot.slane %v6478_v30, 2  ;;  %10404 = vmatprep.mubr.msk.f32.mxu1 %vm10528_vm2, %v10525_v3  ;;  %v13367_v54 = vsel %vm39_vm0, %v6468_v48, -inf  ;;  %v2931_v43 = vsel %vm39_vm0, %v1611_v4, %v13310_v44 }
 0x2d2   :  { %v13356_v39 = vpop.permute.xlu0 %2203  ;;  %v6486_v45 = vrot.slane %v6485_v36, 2  ;;  %v6499_v32 = vmax.f32 %v6497_v17, %v6498_v31  ;;  %v6493_v0 = vrot.slane %v6492_v33, 2  ;;  %v13375_v50 = vsel %vm39_vm0, %v1610_v60, %v13314_v1 }
 0x2d3   :  { %v13364_v55 = vpop.f32.mrf.mxu1  ;;  %v7295_v11 = vld [vmem:[#allocation3 + $0x18] sm:$0x1f]  ;;  %v5686_v57 = vmax.f32 %v5599_v40, 0.0  ;;  %v3053_v47 = vsel %vm39_vm0, %v1771_v51, %v13323_v62  ;;  %v6475_v19 = vmax.f32 %v13333_v20, %v6474_v21  ;;  %v2972_v44 = vsel %vm2937_vm4, %v2931_v43, %v2206_v28  ;;  %v7264_v20 = vld [vmem:[#allocation3 + $0x10] sm:$0x1f] }
 0x2d4   :  { %v7285_v63 = vld [vmem:[#allocation3 + $0x1a] sm:$0x1f]  ;;  %7496 = vrot.lane.b32.xlu1 %v7295_v11, %s10527_s26  ;;  %v6500_v35 = vrot.slane %v6499_v32, 2  ;;  %10405 = vmatmul.mubr.msk.f32.gmra.mxu1 %vm39_vm0, %v13217_v41  ;;  %v6480_v1 = vmax.f32 %v6478_v30, %v6479_v18  ;;  %v6487_v29 = vmax.f32 %v6485_v36, %v6486_v45  ;;  %v3131_v62 = vsel %vm2978_vm5, %v3091_v42, %v2842_v37 }
 0x2d5   :  { %7458 = vrot.lane.b32.xlu0 %v7285_v63, %s10526_s25  ;;  %v2362_v53 = vpop.permute.xlu1 %2361  ;;  %v10376_v49 = vpop.f32.mrf.mxu1  ;;  %v5880_v6 = vcombine.high %v5686_v57, %v5686_v57  ;;  %v5887_v61 = vrot.slane %v5686_v57, %v11316_v12  ;;  %10407 = vmatprep.mubr.msk.f32.mxu1 %vm10528_vm2, %v10525_v3  ;;  %v6494_v28 = vmax.f32 %v6492_v33, %v6493_v0  ;;  %v13395_v5 = vsel %vm39_vm0, %v6475_v19, -inf  ;;  %v7305_v9 = vld [vmem:[#allocation3 + $0x19] sm:$0x1f] }
 0x2d6   :  { %v3011_v8 = vsel %vm2978_vm5, %v2970_v52, %v2362_v53  ;;  %v13385_v7 = vpop.permute.xlu0 %2363  ;;  %v6501_v15 = vmax.f32 %v6499_v32, %v6500_v35  ;;  %v13401_v58 = vsel %vm2978_vm5, %v2972_v44, %v13327_v38  ;;  %v6481_v36 = vrot.slane %v6480_v1, 1  ;;  %v7294_v49 = vld [vmem:[#allocation3 + $0x10] sm:$0x1f] }
 0x2d7   :  { %v5894_v26 = vrot.slane %v5880_v6, %v11316_v12  ;;  %v5895_v24 = vcombine.high %v5887_v61, %v5887_v61  ;;  %v6504_v41 = vsel %vm331_vm3, %v5887_v61, -inf  ;;  %v4075_v37 = vcombine.low %v3011_v8, %v3131_v62 }
 0x2d8   :  { %7416 = vrot.lane.b32.xlu1 %v7264_v20, %s10530_s19  ;;  %v6502_v30 = vrot.slane %v6501_v15, 1  ;;  %v6505_v17 = vrot.slane %v6504_v41, 4  ;;  %v6488_v33 = vrot.slane %v6487_v29, 1  ;;  %v6495_v52 = vrot.slane %v6494_v28, 1 }
 0x2d9   :  { %7378 = vrot.lane.b32.xlu0 %v7255_v46, %s10527_s26  ;;  %v13397_v48 = vpop.permute.xlu1 %2523  ;;  %v5896_v25 = vcombine.high %v5894_v26, %v5894_v26  ;;  %v6511_v10 = vsel %vm331_vm3, %v5895_v24, -inf  ;;  %v6518_v56 = vsel %vm331_vm3, %v5894_v26, -inf  ;;  %v4076_v18 = vcombine.high %v3011_v8, %v3131_v62 }
 0x2da   :  { %v13405_v21 = vpop.permute.xlu0 %2047  ;;  %v6512_v31 = vrot.slane %v6511_v10, 4  ;;  %v6519_v23 = vrot.slane %v6518_v56, 4  ;;  %v6506_v4 = vmax.f32 %v6504_v41, %v6505_v17  ;;  %v6503_v38 = vmax.f32 %v6501_v15, %v6502_v30 }
 0x2db   :  { %v6525_v40 = vsel %vm331_vm3, %v5896_v25, -inf  ;;  %v3093_v0 = vsel %vm2937_vm4, %v3053_v47, %v13347_v27  ;;  %v4084_v43 = vrot.slane %v4075_v37, %v11316_v12  ;;  %v4091_v60 = vrot.slane %v4076_v18, %v11316_v12  ;;  %v8254_v25 = vld [vmem:[%s14900_s5 + $0xf0] sm:$0xff] }
 0x2dc   :  { %7536 = vrot.lane.b32.xlu1 %v7305_v9, %s10530_s19  ;;  %v6513_v45 = vmax.f32 %v6511_v10, %v6512_v31  ;;  %v6520_v32 = vmax.f32 %v6518_v56, %v6519_v23  ;;  %v6526_v42 = vrot.slane %v6525_v40, 4  ;;  %v6507_v63 = vrot.slane %v6506_v4, 2  ;;  %v8238_v31 = vld [vmem:[%s14900_s5 + $0x70] sm:$0xff] }
 0x2dd   :  { %v2846_v11 = vpop.permute.xlu1 %2845  ;;  %v6482_v57 = vmax.f32 %v6480_v1, %v6481_v36  ;;  %v6489_v44 = vmax.f32 %v6487_v29, %v6488_v33  ;;  %v6496_v6 = vmax.f32 %v6494_v28, %v6495_v52  ;;  %v6998_v27 = vsel %vm39_vm0, %v6503_v38, -inf  ;;  %v8255_v1 = vld [vmem:[%s14900_s5 + $0xf8] sm:$0xff]  ;;  %v7304_v33 = vld [vmem:[#allocation3 + $0x11] sm:$0x1f] }
 0x2de   :  { %v13413_v51 = vpop.permute.xlu0 %2207  ;;  %v6514_v35 = vrot.slane %v6513_v45, 2  ;;  %v6521_v19 = vrot.slane %v6520_v32, 2  ;;  %v6527_v53 = vmax.f32 %v6525_v40, %v6526_v42  ;;  %v6508_v61 = vmax.f32 %v6506_v4, %v6507_v63  ;;  %v8239_v29 = vld [vmem:[%s14900_s5 + $0x78] sm:$0xff]  ;;  %10202 = vmatprep.subr.mxu1 %v8255_v1  ;;  %v8253_v40 = vld [vmem:[%s14900_s5 + $0xe8] sm:$0xff]  ;;  %v13476_v1 = vld [vmem:[%s14899_s4] ss:$0 sm:$0xff] }
 0x2df   :  { %v13416_v8 = vsel %vm2978_vm5, %v3093_v0, %v2846_v11  ;;  %v5032_v24 = vrot.slane %v4084_v43, %v11316_v12  ;;  %v5046_v41 = vrot.slane %v4091_v60, %v11316_v12  ;;  %v7003_v17 = vsel %vm39_vm0, %v6482_v57, -inf  ;;  %10203 = vmatpush3.msra.mxu1 %v8239_v29  ;;  %v1770_v63 = vld [vmem:[#allocation2 + $0x139] sm:$0x3] }
 0x2e0   :  { %v5413_v15 = vpop.f32.mrf.mxu0  ;;  %7494 = vrot.lane.b32.xlu1 %v7294_v49, %s10527_s26  ;;  %v6515_v47 = vmax.f32 %v6513_v45, %v6514_v35  ;;  %v6522_v62 = vmax.f32 %v6520_v32, %v6521_v19  ;;  %v6528_v20 = vrot.slane %v6527_v53, 2  ;;  %v6509_v28 = vrot.slane %v6508_v61, 1  ;;  %10204 = vmatprep.subr.mxu1 %v8254_v25 }
 0x2e1   :  { %v13420_v46 = vpop.permute.xlu1 %2683  ;;  %v4127_v26 = vcombine.high %v13401_v58, %v13416_v8  ;;  %v7006_v9 = vsel %vm39_vm0, %v6489_v44, -inf  ;;  %v5055_v4 = vcombine.high %v5032_v24, %v5046_v41  ;;  %v6999_v18 = vmax.f32 %v13367_v54, %v6998_v27  ;;  %10205 = vmatpush3.msra.mxu1 %v8238_v31  ;;  %v8237_v54 = vld [vmem:[%s14900_s5 + $0x68] sm:$0xff]  ;;  %v8252_v44 = vld [vmem:[%s14900_s5 + $0xe0] sm:$0xff] }
 0x2e2   :  { %v5415_v30 = vpop.f32.mrf.mxu0  ;;  %v13432_v37 = vpop.permute.xlu0 %2049  ;;  %v6516_v10 = vrot.slane %v6515_v47, 1  ;;  %v6523_v56 = vrot.slane %v6522_v62, 1  ;;  %v6529_v36 = vmax.f32 %v6527_v53, %v6528_v20  ;;  %v6510_v23 = vmax.f32 %v6508_v61, %v6509_v28  ;;  %10206 = vmatprep.subr.mxu1 %v8253_v40 }
 0x2e3   :  { %v13443_v52 = vrot.slane %v4127_v26, %v11316_v12  ;;  %v4126_v0 = vcombine.low %v13401_v58, %v13416_v8  ;;  %5461 = vmatprep.mubr.f32.mxu0 %v5055_v4  ;;  %v5054_v60 = vcombine.low %v5032_v24, %v5046_v41  ;;  %v7246_v58 = vld [vmem:[#allocation3 + $0x19] sm:$0x1f]  ;;  %v7009_v61 = vsel %vm39_vm0, %v6496_v6, -inf  ;;  %10207 = vmatpush3.msra.mxu1 %v8237_v54 }
 0x2e4   :  { %7534 = vrot.lane.b32.xlu1 %v7304_v33, %s10530_s19  ;;  %v6517_v38 = vmax.f32 %v6515_v47, %v6516_v10  ;;  %v6524_v45 = vmax.f32 %v6522_v62, %v6523_v56  ;;  %v6530_v32 = vrot.slane %v6529_v36, 1  ;;  %v7001_v11 = vsel %vm39_vm0, %v6510_v23, -inf  ;;  %10208 = vmatprep.subr.mxu1 %v8252_v44 }
 0x2e5   :  { %v2844_v42 = vpop.permute.xlu1 %2843  ;;  %v4159_v43 = vcombine.low %v13443_v52, %v13220_v59  ;;  %v7002_v19 = vmax.f32 %v13395_v5, %v7001_v11  ;;  %v3052_v47 = vsel %vm39_vm0, %v1770_v63, %v13397_v48  ;;  %5462 = vmatmul.mubr.f32.gmra.mxu0 %v5054_v60  ;;  %v5414_v6 = vadd.f32 %v13476_v1, %v5413_v15 }
 0x2e6   :  { %v13455_v57 = vpop.permute.xlu0 %2529  ;;  %v6531_v35 = vmax.f32 %v6529_v36, %v6530_v32  ;;  %v7004_v53 = vsel %vm39_vm0, %v6517_v38, -inf  ;;  %v7007_v49 = vsel %vm39_vm0, %v6524_v45, -inf  ;;  %v4135_v26 = vrot.slane %v4126_v0, %v11316_v12 }
 0x2e7   :  { %v7005_v8 = vmax.f32 %v7003_v17, %v7004_v53  ;;  %v7008_v27 = vmax.f32 %v7006_v9, %v7007_v49  ;;  %v7183_v62 = vsel %vm7167_vm7, %v7002_v19, %v6999_v18  ;;  %v10121_v20 = vcombine.high %v13210_v2, %v4159_v43 }
 0x2e8   :  { %7340 = vrot.lane.b32.xlu1 %v7246_v58, %s10526_s25  ;;  %v7010_v5 = vsel %vm39_vm0, %v6531_v35, -inf  ;;  %v3092_v24 = vsel %vm2937_vm4, %v3052_v47, %v13420_v46  ;;  %v2971_v25 = vsel %vm2937_vm4, %v13375_v50, %v13356_v39  ;;  %v5604_v46 = vadd.f32 %v13364_v55, %v5414_v6  ;;  %v1612_v55 = vld [vmem:[#allocation2 + $0x138] sm:$0x3]  ;;  %v13516_v35 = vld [vmem:[#allocation2 + $0x162] sm:$0xff] }
 0x2e9   :  { %v2528_v29 = vpop.permute.xlu1 %2527  ;;  %v7011_v28 = vmax.f32 %v7009_v61, %v7010_v5  ;;  %v7184_v48 = vsel %vm7169_vm8, %v7005_v8, %v7183_v62  ;;  %v3132_v15 = vsel %vm2978_vm5, %v3092_v24, %v2844_v42  ;;  %v3012_v56 = vsel %vm2978_vm5, %v2971_v25, %v13385_v7  ;;  %v13524_v58 = vld [vmem:[#allocation2 + $0x172] sm:$0xff]  ;;  %v10067_v6 = vld.sshfl [vmem:[#allocation2 + $0x16a] sm:$0x3 pattern:$0x76325410] }
 0x2ea   :  { %v13483_v41 = vpop.permute.xlu0 %2209  ;;  %v7185_v30 = vsel %vm7171_vm9, %v7008_v27, %v7184_v48  ;;  %v4110_v36 = vcombine.low %v3012_v56, %v3132_v15  ;;  %v5088_v33 = vrot.slane %v10121_v20, %v11316_v12  ;;  %v4158_v9 = vcombine.high %v4135_v26, %v13210_v2  ;;  %v8251_v5 = vld [vmem:[%s14900_s5 + $0xd8] sm:$0xff] }
 0x2eb   :  { %v5608_v17 = vpop.f32.mrf.mxu1  ;;  %v7186_v10 = vsel %vm7173_vm10, %v7011_v28, %v7185_v30  ;;  %v5074_v39 = vrot.slane %v10119_v14, %v11316_v12  ;;  %v5687_v40 = vmax.f32 %v5604_v46, 0.0  ;;  %v2932_v2 = vsel %vm39_vm0, %v1612_v55, %v13405_v21  ;;  %v8235_v30 = vld [vmem:[%s14900_s5 + $0x58] sm:$0xff] }
 0x2ec   :  { %7226 = vst.msk [vmem:[#allocation3 + $0x21] sm:$0x1f] %vm7222_vm11, %v7186_v10  ;;  %v4117_v7 = vrot.slane %v4110_v36, %v11316_v12  ;;  %v10120_v45 = vcombine.low %v4158_v9, %v13443_v52  ;;  %v3054_v14 = vsel %vm39_vm0, %v1772_v34, %v2528_v29  ;;  %v2973_v21 = vsel %vm2937_vm4, %v2932_v2, %v13413_v51  ;;  %v8236_v51 = vld [vmem:[%s14900_s5 + $0x60] sm:$0xff]  ;;  %v7265_v15 = vld [vmem:[#allocation3 + $0x18] sm:$0x1f]  ;;  %v8250_v10 = vld [vmem:[%s14900_s5 + $0xd0] sm:$0xff] }
 0x2ed   :  { %v2688_v31 = vpop.permute.xlu1 %2687  ;;  %v10379_v23 = vpop.f32.mrf.mxu1  ;;  %v5091_v4 = vcombine.low %v5074_v39, %v5088_v33  ;;  %v5904_v19 = vrot.slane %v5687_v40, %v11316_v12  ;;  %v5897_v62 = vcombine.high %v5687_v40, %v5687_v40  ;;  %v4179_v29 = vcombine.high %v13516_v35, %v13516_v35  ;;  %10209 = vmatpush3.msra.mxu1 %v8236_v51  ;;  %v10066_v39 = vld.sshfl [vmem:[#allocation2 + $0x15a] sm:$0x3 pattern:$0x76325410] }
 0x2ee   :  { %v13501_v50 = vpop.permute.xlu0 %2051  ;;  %v10118_v38 = vcombine.low %v4117_v7, %v4135_v26  ;;  %v5081_v63 = vrot.slane %v10120_v45, %v11316_v12  ;;  %v3094_v53 = vsel %vm2937_vm4, %v3054_v14, %v2688_v31  ;;  %v7256_v26 = vld [vmem:[#allocation3 + $0x1a] sm:$0x1f]  ;;  %v13540_v24 = vrot.slane %v13524_v58, %v11316_v12  ;;  %10210 = vmatprep.subr.mxu1 %v8251_v5  ;;  %v8234_v23 = vld [vmem:[%s14900_s5 + $0x50] sm:$0xff] }
 0x2ef   :  { %10408 = vmatmul.mubr.msk.f32.gmra.mxu1 %vm39_vm0, %v5091_v4  ;;  %v5912_v25 = vcombine.high %v5904_v19, %v5904_v19  ;;  %v6532_v56 = vsel %vm331_vm3, %v5904_v19, -inf  ;;  %v5911_v9 = vrot.slane %v5897_v62, %v11316_v12  ;;  %v4207_v7 = vrot.slane %v4179_v29, %v11316_v12  ;;  %v8249_v4 = vld [vmem:[%s14900_s5 + $0xc8] sm:$0xff]  ;;  %v8247_v19 = vld [vmem:[%s14900_s5 + $0xb8] sm:$0xff] }
 0x2f0   :  { %10410 = vmatprep.mubr.msk.f32.mxu1 %vm10528_vm2, %v10525_v3  ;;  %v5067_v11 = vrot.slane %v10118_v38, %v11316_v12  ;;  %10211 = vmatpush3.msra.mxu1 %v8235_v30  ;;  %v10125_v55 = vcombine.low %v10067_v6, %v13540_v24  ;;  %v8233_v38 = vld [vmem:[%s14900_s5 + $0x48] sm:$0xff]  ;;  %v6533_v45 = vrot.slane %v6532_v56, 4  ;;  %v8246_v6 = vld [vmem:[%s14900_s5 + $0xb0] sm:$0xff] }
 0x2f1   :  { %v2368_v18 = vpop.permute.xlu1 %2367  ;;  %10212 = vmatprep.subr.mxu1 %v8250_v10 }
 0x2f2   :  { %v5418_v32 = vpop.f32.mrf.mxu0  ;;  %v13506_v42 = vpop.permute.xlu0 %2369  ;;  %v5090_v44 = vcombine.high %v5067_v11, %v5081_v63  ;;  %v5089_v8 = vcombine.low %v5067_v11, %v5081_v63  ;;  %v3014_v20 = vsel %vm2978_vm5, %v2973_v21, %v2368_v18  ;;  %v4200_v18 = vrot.slane %v13516_v35, %v11316_v12  ;;  %10213 = vmatpush3.msra.mxu1 %v8234_v23  ;;  %v8248_v11 = vld [vmem:[%s14900_s5 + $0xc0] sm:$0xff]  ;;  %v8245_v23 = vld [vmem:[%s14900_s5 + $0xa8] sm:$0xff] }
 0x2f3   :  { %v5419_v0 = vadd.f32 %v13476_v1, %v5418_v32  ;;  %v7286_v60 = vld [vmem:[#allocation3 + $0x22] sm:$0x1f]  ;;  %v6539_v63 = vsel %vm331_vm3, %v5912_v25, -inf  ;;  %10214 = vmatprep.subr.mxu1 %v8249_v4  ;;  %v5144_v35 = vrot.slane %v4207_v7, %v11316_v12  ;;  %v8230_v25 = vld [vmem:[%s14900_s5 + $0x30] sm:$0xff] }
 0x2f4   :  { %v5420_v43 = vpop.f32.mrf.mxu0  ;;  %v7296_v54 = vld [vmem:[#allocation3 + $0x20] sm:$0x1f]  ;;  %7460 = vrot.lane.b32.xlu1 %v7286_v60, %s10526_s25  ;;  %5466 = vmatprep.mubr.f32.mxu0 %v5090_v44  ;;  %v5913_v60 = vcombine.high %v5911_v9, %v5911_v9  ;;  %v5158_v44 = vrot.slane %v10125_v55, %v11316_v12 }
 0x2f5   :  { %7498 = vrot.lane.b32.xlu0 %v7296_v54, %s10527_s26  ;;  %v2848_v49 = vpop.permute.xlu1 %2847  ;;  %v5609_v61 = vadd.f32 %v5608_v17, %v5419_v0  ;;  %5467 = vmatmul.mubr.f32.gmra.mxu0 %v5089_v8  ;;  %v7306_v34 = vld [vmem:[#allocation3 + $0x21] sm:$0x1f]  ;;  %v6546_v54 = vsel %vm331_vm3, %v5911_v9, -inf  ;;  %v6534_v8 = vmax.f32 %v6532_v56, %v6533_v45 }
 0x2f6   :  { %v3134_v27 = vsel %vm2978_vm5, %v3094_v53, %v2848_v49  ;;  %v13527_v47 = vpop.permute.xlu0 %2533  ;;  %v8232_v43 = vld [vmem:[%s14900_s5 + $0x40] sm:$0xff]  ;;  %10215 = vmatpush3.msra.mxu1 %v8233_v38  ;;  %v5123_v49 = vrot.slane %v4200_v18, %v11316_v12  ;;  %v6547_v29 = vrot.slane %v6546_v54, 4  ;;  %v4160_v18 = vcombine.high %v13443_v52, %v13220_v59 }
 0x2f7   :  { %v5688_v28 = vmax.f32 %v5609_v61, 0.0  ;;  %v4161_v48 = vcombine.low %v3014_v20, %v3134_v27  ;;  %10216 = vmatprep.subr.mxu1 %v8248_v11  ;;  %v8231_v61 = vld [vmem:[%s14900_s5 + $0x38] sm:$0xff]  ;;  %v6540_v27 = vrot.slane %v6539_v63, 4  ;;  %v7247_v62 = vld [vmem:[#allocation3 + $0x21] sm:$0x1f] }
 0x2f8   :  { %7380 = vrot.lane.b32.xlu1 %v7256_v26, %s10527_s26  ;;  %10217 = vmatpush3.msra.mxu1 %v8232_v43  ;;  %v6548_v45 = vmax.f32 %v6546_v54, %v6547_v29 }
 0x2f9   :  { %v13546_v17 = vpop.permute.xlu1 %2689  ;;  %v5914_v46 = vcombine.high %v5688_v28, %v5688_v28  ;;  %v5921_v36 = vrot.slane %v5688_v28, %v11316_v12  ;;  %v13554_v33 = vrot.slane %v4161_v48, %v11316_v12  ;;  %7418 = vrot.lane.b32.xlu0 %v7265_v15, %s10530_s19  ;;  %v1613_v28 = vld [vmem:[#allocation2 + $0x140] sm:$0xff]  ;;  %v1773_v48 = vld [vmem:[#allocation2 + $0x151] sm:$0xff]  ;;  %10218 = vmatprep.subr.mxu1 %v8247_v19  ;;  %v6553_v15 = vsel %vm331_vm3, %v5913_v60, -inf }
 0x2fa   :  { %v13557_v31 = vpop.permute.xlu0 %2211  ;;  %v2933_v10 = vsel %vm39_vm0, %v1613_v28, %v13432_v37  ;;  %v3055_v56 = vsel %vm39_vm0, %v1773_v48, %v13455_v57  ;;  %10219 = vmatpush3.msra.mxu1 %v8231_v61  ;;  %v8229_v37 = vld [vmem:[%s14900_s5 + $0x28] sm:$0xff]  ;;  %v6535_v57 = vrot.slane %v6534_v8, 2  ;;  %v6549_v61 = vrot.slane %v6548_v45, 2 }
 0x2fb   :  { %v4176_v40 = vcombine.low %v13554_v33, %v10066_v39  ;;  %v13575_v32 = vrot.slane %v5914_v46, %v11316_v12  ;;  %v5929_v2 = vcombine.high %v5921_v36, %v5921_v36  ;;  %v5161_v46 = vcombine.low %v5144_v35, %v5158_v44  ;;  %10220 = vmatprep.subr.mxu1 %v8246_v6  ;;  %v8243_v35 = vld [vmem:[%s14900_s5 + $0x98] sm:$0xff]  ;;  %v8226_v6 = vld [vmem:[%s14900_s5 + $0x10] sm:$0xff] }
 0x2fc   :  { %v2974_v9 = vsel %vm2937_vm4, %v2933_v10, %v13483_v41  ;;  %v6560_v39 = vsel %vm331_vm3, %v5921_v36, -inf  ;;  %v3095_v55 = vsel %vm2937_vm4, %v3055_v56, %v13546_v17  ;;  %v7257_v41 = vld [vmem:[#allocation3 + $0x22] sm:$0x1f]  ;;  %10221 = vmatpush3.msra.mxu1 %v8230_v25  ;;  %v6536_v19 = vmax.f32 %v6534_v8, %v6535_v57  ;;  %v8227_v44 = vld [vmem:[%s14900_s5 + $0x18] sm:$0xff]  ;;  %v8242_v8 = vld [vmem:[%s14900_s5 + $0x90] sm:$0xff] }
 0x2fd   :  { %v13577_v14 = vpop.permute.xlu1 %2053  ;;  %v10123_v0 = vcombine.high %v13220_v59, %v4176_v40  ;;  %7538 = vrot.lane.b32.xlu0 %v7306_v34, %s10530_s19  ;;  %v6567_v51 = vsel %vm331_vm3, %v5929_v2, -inf  ;;  %v6574_v5 = vsel %vm331_vm3, %v13575_v32, -inf  ;;  %v5930_v26 = vcombine.high %v13575_v32, %v13575_v32  ;;  %v8244_v36 = vld [vmem:[%s14900_s5 + $0xa0] sm:$0xff]  ;;  %10222 = vmatprep.subr.mxu1 %v8245_v23  ;;  %v8241_v25 = vld [vmem:[%s14900_s5 + $0x88] sm:$0xff] }
 0x2fe   :  { %v13593_v21 = vpop.permute.xlu0 %2691  ;;  %v6568_v7 = vrot.slane %v6567_v51, 4  ;;  %v6575_v4 = vrot.slane %v6574_v5, 4  ;;  %v6541_v40 = vmax.f32 %v6539_v63, %v6540_v27  ;;  %v6554_v32 = vrot.slane %v6553_v15, 4  ;;  %v8228_v17 = vld [vmem:[%s14900_s5 + $0x20] sm:$0xff]  ;;  %10223 = vmatpush3.msra.mxu1 %v8229_v37 }
 0x2ff   :  { %v5109_v53 = vrot.slane %v10123_v0, %v11316_v12  ;;  %v6581_v2 = vsel %vm331_vm3, %v5930_v26, -inf  ;;  %v6561_v34 = vrot.slane %v6560_v39, 4  ;;  %v13651_v11 = vsel %vm2978_vm5, %v2974_v9, %v13506_v42  ;;  %v7248_v0 = vld [vmem:[#allocation3 + $0x39] sm:$0x1f]  ;;  %10224 = vmatprep.subr.mxu1 %v8244_v36 }
 0x300   :  { %v10122_v63 = vcombine.low %v4160_v18, %v13554_v33  ;;  %v6569_v43 = vmax.f32 %v6567_v51, %v6568_v7  ;;  %v6576_v60 = vmax.f32 %v6574_v5, %v6575_v4  ;;  %v6582_v42 = vrot.slane %v6581_v2, 4  ;;  %10225 = vmatpush3.msra.mxu1 %v8228_v17  ;;  %v1614_v18 = vld [vmem:[#allocation2 + $0x148] sm:$0x3] }
 0x301   :  { %v13604_v20 = vpop.permute.xlu1 %2531  ;;  %7342 = vrot.lane.b32.xlu0 %v7247_v62, %s10526_s25  ;;  %v5126_v30 = vcombine.low %v5109_v53, %v5123_v49  ;;  %v6542_v53 = vrot.slane %v6541_v40, 2  ;;  %v6555_v27 = vmax.f32 %v6553_v15, %v6554_v32  ;;  %v6562_v5 = vmax.f32 %v6560_v39, %v6561_v34  ;;  %10226 = vmatprep.subr.mxu1 %v8243_v35  ;;  %v8225_v39 = vld [vmem:[%s14900_s5 + $0x8] sm:$0xff] }
 0x302   :  { %v13641_v59 = vpop.permute.xlu0 %2371  ;;  %v6570_v29 = vrot.slane %v6569_v43, 2  ;;  %v6577_v28 = vrot.slane %v6576_v60, 2  ;;  %v5102_v26 = vrot.slane %v10122_v63, %v11316_v12  ;;  %10227 = vmatpush3.msra.mxu1 %v8227_v44  ;;  %v6537_v15 = vrot.slane %v6536_v19, 1  ;;  %v1615_v44 = vld [vmem:[#allocation2 + $0x150] sm:$0xff] }
 0x303   :  { %10411 = vmatmul.mubr.msk.f32.gmra.mxu1 %vm39_vm0, %v5126_v30  ;;  %v13660_v49 = vpop.f32.mrf.mxu1  ;;  %v6543_v10 = vmax.f32 %v6541_v40, %v6542_v53  ;;  %v6583_v56 = vmax.f32 %v6581_v2, %v6582_v42  ;;  %10228 = vmatprep.subr.mxu1 %v8242_v8  ;;  %v6550_v7 = vmax.f32 %v6548_v45, %v6549_v61  ;;  %v6556_v4 = vrot.slane %v6555_v27, 2  ;;  %v8240_v40 = vld [vmem:[%s14900_s5 + $0x80] sm:$0xff] }
 0x304   :  { %10413 = vmatprep.mubr.msk.f32.mxu1 %vm10528_vm2, %v10525_v3  ;;  %10229 = vmatpush3.msra.mxu1 %v8226_v6  ;;  %v4230_v36 = vcombine.high %v13524_v58, %v13524_v58  ;;  %v8224_v45 = vld [vmem:[%s14900_s5] sm:$0xff]  ;;  %v6571_v32 = vmax.f32 %v6569_v43, %v6570_v29  ;;  %v6578_v2 = vmax.f32 %v6576_v60, %v6577_v28 }
 0x305   :  { %v2850_v38 = vpop.permute.xlu1 %2849  ;;  %7382 = vrot.lane.b32.xlu0 %v7257_v41, %s10527_s26  ;;  %v10382_v62 = vpop.f32.mrf.mxu1  ;;  %10230 = vmatprep.subr.mxu1 %v8241_v25  ;;  %v6538_v17 = vmax.f32 %v6536_v19, %v6537_v15  ;;  %v6544_v34 = vrot.slane %v6543_v10, 1  ;;  %v6584_v63 = vrot.slane %v6583_v56, 2  ;;  %v6551_v35 = vrot.slane %v6550_v7, 1  ;;  %v1775_v42 = vld [vmem:[#allocation2 + $0x161] sm:$0xff] }
 0x306   :  { %v13644_v52 = vsel %vm2978_vm5, %v3095_v55, %v2850_v38  ;;  %v2852_v48 = vpop.permute.xlu0 %2851  ;;  %v6563_v55 = vrot.slane %v6562_v5, 2  ;;  %10231 = vmatpush3.msra.mxu1 %v8225_v39  ;;  %v6557_v53 = vmax.f32 %v6555_v27, %v6556_v4  ;;  %v3057_v19 = vsel %vm39_vm0, %v1775_v42, %v13527_v47 }
 0x307   :  { %v4177_v54 = vcombine.low %v13651_v11, %v13644_v52  ;;  %10414 = vmatmul.mubr.msk.f32.gmra.mxu1 %vm39_vm0, %v5161_v46  ;;  %v1774_v46 = vld [vmem:[#allocation2 + $0x159] sm:$0x3]  ;;  %v13682_v23 = vpop.f32.mrf.mxu1  ;;  %10232 = vmatprep.subr.mxu1 %v8240_v40  ;;  %v2935_v61 = vsel %vm39_vm0, %v1615_v44, %v13577_v14  ;;  %v6572_v27 = vrot.slane %v6571_v32, 1  ;;  %v6579_v62 = vrot.slane %v6578_v2, 1 }
 0x308   :  { %10416 = vmatprep.mubr.msk.f32.mxu1 %vm10528_vm2, %v10525_v3  ;;  %v3056_v37 = vsel %vm39_vm0, %v1774_v46, %v13604_v20  ;;  %v2934_v20 = vsel %vm39_vm0, %v1614_v18, %v13501_v50  ;;  %10233 = vmatpush3.msra.mxu1 %v8224_v45  ;;  %v6564_v60 = vmax.f32 %v6562_v5, %v6563_v55  ;;  %v13725_v4 = vsel %vm39_vm0, %v6538_v17, -inf }
 0x309   :  { %v13662_v33 = vpop.permute.xlu1 %2213  ;;  %v4186_v51 = vrot.slane %v4177_v54, %v11316_v12  ;;  %7344 = vrot.lane.b32.xlu0 %v7248_v0, %s10526_s25  ;;  %v10385_v41 = vpop.f32.mrf.mxu1  ;;  %v3096_v0 = vsel %vm2937_vm4, %v3056_v37, %v13593_v21  ;;  %v2975_v21 = vsel %vm2937_vm4, %v2934_v20, %v13557_v31  ;;  %10419 = vmatprep.subr.mxu1 %v10525_v3 }
 0x30a   :  { %v3136_v50 = vsel %vm2978_vm5, %v3096_v0, %v2852_v48  ;;  %v3016_v6 = vsel %vm2978_vm5, %v2975_v21, %v13641_v59  ;;  %v6585_v29 = vmax.f32 %v6583_v56, %v6584_v63  ;;  %v2976_v47 = vsel %vm2937_vm4, %v2935_v61, %v13662_v33  ;;  %v1616_v0 = vld [vmem:[#allocation2 + $0x158] sm:$0x3] }
 0x30b   :  { %v5116_v30 = vrot.slane %v4186_v51, %v11316_v12  ;;  %v2056_v51 = vpop.permute.xlu0 %2055  ;;  %v4212_v28 = vcombine.low %v3016_v6, %v3136_v50  ;;  %v4178_v14 = vcombine.high %v13651_v11, %v13644_v52  ;;  %v6545_v15 = vmax.f32 %v6543_v10, %v6544_v34 }
 0x30c   :  { %v6558_v59 = vrot.slane %v6557_v53, 1  ;;  %v6552_v46 = vmax.f32 %v6550_v7, %v6551_v35  ;;  %v6565_v39 = vrot.slane %v6564_v60, 1  ;;  %v6573_v33 = vmax.f32 %v6571_v32, %v6572_v27 }
 0x30d   :  { %v2694_v9 = vpop.permute.xlu1 %2693  ;;  %v5125_v57 = vcombine.high %v5102_v26, %v5116_v30  ;;  %v5124_v38 = vcombine.low %v5102_v26, %v5116_v30  ;;  %v6586_v52 = vrot.slane %v6585_v29, 1  ;;  %v4219_v11 = vrot.slane %v4212_v28, %v11316_v12 }
 0x30e   :  { %v3097_v31 = vsel %vm2937_vm4, %v3057_v19, %v2694_v9  ;;  %v6580_v40 = vmax.f32 %v6578_v2, %v6579_v62  ;;  %v4193_v18 = vrot.slane %v4178_v14, %v11316_v12  ;;  %v6559_v41 = vmax.f32 %v6557_v53, %v6558_v59 }
 0x30f   :  { %5471 = vmatprep.mubr.f32.mxu0 %v5125_v57  ;;  %v2216_v37 = vpop.permute.xlu0 %2215  ;;  %v7015_v20 = vsel %vm39_vm0, %v6545_v15, -inf  ;;  %v6566_v32 = vmax.f32 %v6564_v60, %v6565_v39  ;;  %v7013_v17 = vsel %vm39_vm0, %v6573_v33, -inf  ;;  %v6587_v63 = vmax.f32 %v6585_v29, %v6586_v52 }
 0x310   :  { %v5423_v54 = vpop.f32.mrf.mxu0  ;;  %5472 = vmatmul.mubr.f32.gmra.mxu0 %v5124_v38  ;;  %v7016_v42 = vsel %vm39_vm0, %v6580_v40, -inf  ;;  %v2936_v53 = vsel %vm39_vm0, %v1616_v0, %v2056_v51  ;;  %v5137_v44 = vrot.slane %v4193_v18, %v11316_v12  ;;  %v7018_v39 = vsel %vm39_vm0, %v6552_v46, -inf  ;;  %v10068_v18 = vld.sshfl [vmem:[#allocation2 + $0x17a] sm:$0x3 pattern:$0x76325410] }
 0x311   :  { %v2374_v58 = vpop.permute.xlu1 %2373  ;;  %v5424_v43 = vadd.f32 %v13476_v1, %v5423_v54  ;;  %v2977_v27 = vsel %vm2937_vm4, %v2936_v53, %v2216_v37  ;;  %v7019_v14 = vsel %vm39_vm0, %v6587_v63, -inf  ;;  %v7024_v33 = vsel %vm39_vm0, %v6566_v32, -inf }
 0x312   :  { %v5425_v8 = vpop.f32.mrf.mxu0  ;;  %v3017_v30 = vsel %vm2978_vm5, %v2976_v47, %v2374_v58 }
 0x313   :  { %v5614_v5 = vadd.f32 %v13660_v49, %v5424_v43  ;;  %v13721_v49 = vrot.slane %v4230_v36, %v11316_v12  ;;  %v7014_v43 = vmax.f32 %v13725_v4, %v7013_v17  ;;  %v2376_v21 = vpop.permute.xlu0 %2375  ;;  %v1776_v8 = vld [vmem:[#allocation2 + $0x169] sm:$0x3] }
 0x315   :  { %v2854_v48 = vpop.permute.xlu1 %2853  ;;  %v5689_v26 = vmax.f32 %v5614_v5, 0.0 }
 0x316   :  { %v3137_v25 = vsel %vm2978_vm5, %v3097_v31, %v2854_v48  ;;  %v7017_v48 = vmax.f32 %v7015_v20, %v7016_v42 }
 0x317   :  { %v4228_v56 = vcombine.low %v3017_v30, %v3137_v25  ;;  %v5938_v9 = vrot.slane %v5689_v26, %v11316_v12  ;;  %v4229_v36 = vcombine.high %v3017_v30, %v3137_v25  ;;  %v5931_v2 = vcombine.high %v5689_v26, %v5689_v26 }
 0x318   :  { %v3018_v26 = vsel %vm2978_vm5, %v2977_v27, %v2376_v21 }
 0x319   :  { %v13729_v57 = vrot.slane %v4228_v56, %v11316_v12  ;;  %v2536_v10 = vpop.permute.xlu1 %2535  ;;  %v5946_v55 = vcombine.high %v5938_v9, %v5938_v9  ;;  %v6588_v7 = vsel %vm331_vm3, %v5938_v9, -inf  ;;  %v4244_v61 = vrot.slane %v4229_v36, %v11316_v12 }
 0x31a   :  { %v6589_v38 = vrot.slane %v6588_v7, 4  ;;  %v3058_v62 = vsel %vm39_vm0, %v1776_v8, %v2536_v10  ;;  %v5945_v51 = vrot.slane %v5931_v2, %v11316_v12  ;;  %v7021_v9 = vsel %vm39_vm0, %v6559_v41, -inf }
 0x31b   :  { %v10124_v45 = vcombine.low %v4219_v11, %v13729_v57  ;;  %v6595_v34 = vsel %vm331_vm3, %v5946_v55, -inf  ;;  %v4260_v59 = vcombine.high %v13729_v57, %v13540_v24  ;;  %v4261_v56 = vcombine.low %v4244_v61, %v13721_v49 }
 0x31c   :  { %v6590_v54 = vmax.f32 %v6588_v7, %v6589_v38  ;;  %v6596_v58 = vrot.slane %v6595_v34, 4  ;;  %v7020_v11 = vmax.f32 %v7018_v39, %v7019_v14  ;;  %v5947_v37 = vcombine.high %v5945_v51, %v5945_v51 }
 0x31d   :  { %v2696_v35 = vpop.permute.xlu1 %2695  ;;  %v5151_v50 = vrot.slane %v10124_v45, %v11316_v12  ;;  %v7187_v55 = vsel %vm7167_vm7, %v7017_v48, %v7014_v43  ;;  %v4262_v57 = vcombine.high %v4244_v61, %v13721_v49  ;;  %v10127_v41 = vcombine.high %v13540_v24, %v4261_v56 }
 0x31e   :  { %v6591_v60 = vrot.slane %v6590_v54, 2  ;;  %v6597_v19 = vmax.f32 %v6595_v34, %v6596_v58  ;;  %v3098_v47 = vsel %vm2937_vm4, %v3058_v62, %v2696_v35  ;;  %v10126_v20 = vcombine.low %v4260_v59, %v4244_v61 }
 0x31f   :  { %v5160_v6 = vcombine.high %v5137_v44, %v5151_v50  ;;  %v5159_v5 = vcombine.low %v5137_v44, %v5151_v50  ;;  %v6602_v0 = vsel %vm331_vm3, %v5945_v51, -inf  ;;  %v6609_v2 = vsel %vm331_vm3, %v5947_v37, -inf }
 0x320   :  { %v6592_v29 = vmax.f32 %v6590_v54, %v6591_v60  ;;  %v6598_v28 = vrot.slane %v6597_v19, 2  ;;  %v7188_v58 = vsel %vm7169_vm8, %v7020_v11, %v7187_v55  ;;  %v5172_v44 = vrot.slane %v10126_v20, %v11316_v12 }
 0x321   :  { %v2856_v31 = vpop.permute.xlu1 %2855  ;;  %5476 = vmatprep.mubr.f32.mxu0 %v5160_v6  ;;  %v6603_v61 = vrot.slane %v6602_v0, 4  ;;  %v6610_v8 = vrot.slane %v6609_v2, 4 }
 0x322   :  { %v3138_v30 = vsel %vm2978_vm5, %v3098_v47, %v2856_v31  ;;  %v6593_v25 = vrot.slane %v6592_v29, 1  ;;  %v6599_v15 = vmax.f32 %v6597_v19, %v6598_v28  ;;  %5477 = vmatmul.mubr.f32.gmra.mxu0 %v5159_v5 }
 0x323   :  { %v4263_v4 = vcombine.low %v3018_v26, %v3138_v30  ;;  %v5428_v52 = vpop.f32.mrf.mxu0  ;;  %v6604_v14 = vmax.f32 %v6602_v0, %v6603_v61 }
 0x324   :  { %v6594_v10 = vmax.f32 %v6592_v29, %v6593_v25  ;;  %v6600_v40 = vrot.slane %v6599_v15, 1  ;;  %v5429_v38 = vadd.f32 %v13476_v1, %v5428_v52  ;;  %v6611_v25 = vmax.f32 %v6609_v2, %v6610_v8 }
 0x325   :  { %v4270_v7 = vrot.slane %v4263_v4, %v11316_v12  ;;  %v5430_v46 = vpop.f32.mrf.mxu0 }
 0x326   :  { %v6601_v36 = vmax.f32 %v6599_v15, %v6600_v40  ;;  %v7022_v45 = vsel %vm39_vm0, %v6594_v10, -inf  ;;  %v5619_v63 = vadd.f32 %v13682_v23, %v5429_v38  ;;  %v5179_v23 = vrot.slane %v10127_v41, %v11316_v12 }
 0x327   :  { %v7023_v32 = vmax.f32 %v7021_v9, %v7022_v45  ;;  %v4278_v17 = vcombine.low %v4270_v7, %v10068_v18  ;;  %v10128_v34 = vcombine.low %v4262_v57, %v4270_v7  ;;  %v6605_v10 = vrot.slane %v6604_v14, 2  ;;  %v13787_v57 = vpop.permute.xlu0 %7336 }
 0x328   :  { %v7025_v54 = vsel %vm39_vm0, %v6601_v36, -inf  ;;  %v5690_v24 = vmax.f32 %v5619_v63, 0.0  ;;  %v6612_v18 = vrot.slane %v6611_v25, 2 }
 0x329   :  { %v7026_v35 = vmax.f32 %v7024_v33, %v7025_v54  ;;  %v7189_v42 = vsel %vm7171_vm9, %v7023_v32, %v7188_v58  ;;  %v10129_v53 = vcombine.high %v13721_v49, %v4278_v17  ;;  %v5186_v50 = vrot.slane %v10128_v34, %v11316_v12  ;;  %v7266_v32 = vld [vmem:[#allocation3 + $0x20] sm:$0x1f] }
 0x32a   :  { %v5948_v60 = vcombine.high %v5690_v24, %v5690_v24  ;;  %v5955_v19 = vrot.slane %v5690_v24, %v11316_v12  ;;  %v6606_v17 = vmax.f32 %v6604_v14, %v6605_v10  ;;  %v6613_v63 = vmax.f32 %v6611_v25, %v6612_v18 }
 0x32b   :  { %v7190_v43 = vsel %vm7173_vm10, %v7026_v35, %v7189_v42  ;;  %v5193_v21 = vrot.slane %v10129_v53, %v11316_v12  ;;  %v5195_v27 = vcombine.high %v5172_v44, %v5186_v50  ;;  %v5194_v49 = vcombine.low %v5172_v44, %v5186_v50 }
 0x32c   :  { %7227 = vst.msk [vmem:[#allocation3 + $0x29] sm:$0x1f] %vm7222_vm11, %v7190_v43  ;;  %v5962_v62 = vrot.slane %v5948_v60, %v11316_v12  ;;  %v5963_v6 = vcombine.high %v5955_v19, %v5955_v19  ;;  %v6616_v5 = vsel %vm331_vm3, %v5955_v19, -inf  ;;  %v13795_v43 = vpop.permute.xlu0 %7376  ;;  %v6607_v61 = vrot.slane %v6606_v17, 1 }
 0x32d   :  { %v5196_v51 = vcombine.low %v5179_v23, %v5193_v21  ;;  %v6617_v29 = vrot.slane %v6616_v5, 4  ;;  %5481 = vmatprep.mubr.f32.mxu0 %v5195_v27  ;;  %v6614_v8 = vrot.slane %v6613_v63, 1 }
 0x32e   :  { %v5964_v28 = vcombine.high %v5962_v62, %v5962_v62  ;;  %v6623_v47 = vsel %vm331_vm3, %v5963_v6, -inf  ;;  %v6630_v31 = vsel %vm331_vm3, %v5962_v62, -inf  ;;  %v5433_v48 = vpop.f32.mrf.mxu0  ;;  %5482 = vmatmul.mubr.f32.gmra.mxu0 %v5194_v49  ;;  %v6608_v25 = vmax.f32 %v6606_v17, %v6607_v61 }
 0x32f   :  { %10417 = vmatmul.mubr.msk.f32.gmra.mxu1 %vm39_vm0, %v5196_v51  ;;  %v6624_v26 = vrot.slane %v6623_v47, 4  ;;  %v5434_v30 = vadd.f32 %v13476_v1, %v5433_v48  ;;  %9738 = vmatprep.mubr.f32.mxu0 %v10525_v3  ;;  %v5623_v59 = vpop.f32.mrf.mxu1  ;;  %v6618_v39 = vmax.f32 %v6616_v5, %v6617_v29  ;;  %v6631_v9 = vrot.slane %v6630_v31, 4 }
 0x330   :  { %v6637_v15 = vsel %vm331_vm3, %v5964_v28, -inf  ;;  %v5435_v56 = vpop.f32.mrf.mxu0 }
 0x331   :  { %v6625_v33 = vmax.f32 %v6623_v47, %v6624_v26  ;;  %v6638_v4 = vrot.slane %v6637_v15, 4  ;;  %v5624_v52 = vadd.f32 %v5623_v59, %v5434_v30  ;;  %v10388_v11 = vpop.f32.mrf.mxu1  ;;  %v6619_v7 = vrot.slane %v6618_v39, 2 }
 0x332   :  { %v6632_v46 = vmax.f32 %v6630_v31, %v6631_v9  ;;  %v6615_v59 = vmax.f32 %v6613_v63, %v6614_v8 }
 0x333   :  { %v7297_v37 = vld [vmem:[#allocation3 + $0x28] sm:$0x1f]  ;;  %v6639_v40 = vmax.f32 %v6637_v15, %v6638_v4  ;;  %v5691_v1 = vmax.f32 %v5624_v52, 0.0  ;;  %v13785_v55 = vpop.f32.mrf.mxu1  ;;  %v6626_v38 = vrot.slane %v6625_v33, 2  ;;  %v6620_v58 = vmax.f32 %v6618_v39, %v6619_v7  ;;  %v7457_v15 = vpop.permute.xlu1 %7456  ;;  %v7298_v39 = vld [vmem:[#allocation3 + $0x30] sm:$0x1f] }
 0x334   :  { %7500 = vrot.lane.b32.xlu1 %v7297_v37, %s10527_s26  ;;  %v6633_v42 = vrot.slane %v6632_v46, 2  ;;  %v7307_v23 = vld [vmem:[#allocation3 + $0x29] sm:$0x1f] }
 0x335   :  { %v6640_v36 = vrot.slane %v6639_v40, 2  ;;  %v5965_v45 = vcombine.high %v5691_v1, %v5691_v1  ;;  %v5972_v41 = vrot.slane %v5691_v1, %v11316_v12  ;;  %v10391_v20 = vpop.f32.mrf.mxu1  ;;  %v6627_v35 = vmax.f32 %v6625_v33, %v6626_v38  ;;  %v7287_v31 = vld [vmem:[#allocation3 + $0x2a] sm:$0x1f]  ;;  %v13800_v33 = vpop.permute.xlu0 %7334 }
 0x336   :  { %v6634_v62 = vmax.f32 %v6632_v46, %v6633_v42  ;;  %v6621_v29 = vrot.slane %v6620_v58, 1  ;;  %v10531_v46 = vmov 1966171168   ;;  %v7030_v20 = vsel %vm39_vm0, %v6615_v59, -inf }
 0x337   :  { %v6641_v34 = vmax.f32 %v6639_v40, %v6640_v36  ;;  %v5979_v0 = vrot.slane %v5965_v45, %v11316_v12  ;;  %v5980_v2 = vcombine.high %v5972_v41, %v5972_v41  ;;  %v6644_v54 = vsel %vm331_vm3, %v5972_v41, -inf }
 0x338   :  { %7420 = vrot.lane.b32.xlu1 %v7266_v32, %s10530_s19  ;;  %v6645_v24 = vrot.slane %v6644_v54, 4  ;;  %v6628_v28 = vrot.slane %v6627_v35, 1  ;;  %v6635_v9 = vrot.slane %v6634_v62, 1  ;;  %v6622_v37 = vmax.f32 %v6620_v58, %v6621_v29  ;;  %v7274_v29 = vld [vmem:[#allocation3 + $0x11] sm:$0x1f] }
 0x339   :  { %v5981_v53 = vcombine.high %v5979_v0, %v5979_v0  ;;  %v6651_v44 = vsel %vm331_vm3, %v5980_v2, -inf  ;;  %v6658_v50 = vsel %vm331_vm3, %v5979_v0, -inf  ;;  %v6642_v60 = vrot.slane %v6641_v34, 1 }
 0x33a   :  { %v6652_v19 = vrot.slane %v6651_v44, 4  ;;  %v6659_v21 = vrot.slane %v6658_v50, 4  ;;  %v6646_v27 = vmax.f32 %v6644_v54, %v6645_v24  ;;  %v6629_v10 = vmax.f32 %v6627_v35, %v6628_v28  ;;  %v7455_v24 = vpop.permute.xlu0 %7454 }
 0x33b   :  { %v6665_v49 = vsel %vm331_vm3, %v5981_v53, -inf  ;;  %v6643_v48 = vmax.f32 %v6641_v34, %v6642_v60  ;;  %v7658_v36 = vunpack.c.l.s4 %v10531_v46  ;;  %v7027_v45 = vsel %vm39_vm0, %v6608_v25, -inf  ;;  %v7267_v53 = vld [vmem:[#allocation3 + $0x28] sm:$0x1f] }
 0x33c   :  { %7540 = vrot.lane.b32.xlu1 %v7307_v23, %s10530_s19  ;;  %v6653_v6 = vmax.f32 %v6651_v44, %v6652_v19  ;;  %v6660_v5 = vmax.f32 %v6658_v50, %v6659_v21  ;;  %v6666_v51 = vrot.slane %v6665_v49, 4  ;;  %v6647_v47 = vrot.slane %v6646_v27, 2 }
 0x33d   :  { %v7028_v18 = vsel %vm39_vm0, %v6643_v48, -inf  ;;  %v6636_v17 = vmax.f32 %v6634_v62, %v6635_v9  ;;  %v7033_v54 = vsel %vm39_vm0, %v6622_v37, -inf  ;;  %v7036_v35 = vsel %vm39_vm0, %v6629_v10, -inf  ;;  %v7233_v9 = vld [vmem:[#allocation3] sm:$0x1f] }
 0x33e   :  { %v6654_v14 = vrot.slane %v6653_v6, 2  ;;  %v6661_v26 = vrot.slane %v6660_v5, 2  ;;  %v6667_v30 = vmax.f32 %v6665_v49, %v6666_v51  ;;  %v6648_v56 = vmax.f32 %v6646_v27, %v6647_v47  ;;  %v7308_v27 = vld [vmem:[#allocation3 + $0x31] sm:$0x1f]  ;;  %v7234_v51 = vld [vmem:[#allocation3 + $0x8] sm:$0x1f] }
 0x33f   :  { %v7029_v2 = vmax.f32 %v7027_v45, %v7028_v18  ;;  %v7039_v49 = vsel %vm39_vm0, %v6636_v17, -inf  ;;  %v7595_v48 = vsel %vm39_vm0, %v7274_v29, %v7457_v15 }
 0x340   :  { %7462 = vrot.lane.b32.xlu1 %v7287_v31, %s10526_s25  ;;  %v6655_v4 = vmax.f32 %v6653_v6, %v6654_v14  ;;  %v6662_v52 = vmax.f32 %v6660_v5, %v6661_v26  ;;  %v6668_v11 = vrot.slane %v6667_v30, 2  ;;  %v6649_v40 = vrot.slane %v6648_v56, 1  ;;  %v7315_v26 = vld [vmem:[#allocation3 + $0x1a] sm:$0x1f] }
 0x341   :  { %v7659_v5 = vunpack.c.0.s8 %v7658_v36  ;;  %v7565_v31 = vsel %vm39_vm0, %v7234_v51, %v13787_v57 }
 0x342   :  { %v6656_v1 = vrot.slane %v6655_v4, 1  ;;  %v6663_v7 = vrot.slane %v6662_v52, 1  ;;  %v6669_v38 = vmax.f32 %v6667_v30, %v6668_v11  ;;  %v6650_v41 = vmax.f32 %v6648_v56, %v6649_v40 }
 0x343   :  { %v7575_v30 = vsel %vm2937_vm4, %v7565_v31, %v13795_v43  ;;  %v13829_v15 = vsub.s32 %v7659_v5, %v10721_v13  ;;  %v13834_v43 = vld [vmem:[%s14899_s4] ss:$0 sm:$0xff] }
 0x344   :  { %7502 = vrot.lane.b32.xlu1 %v7298_v39, %s10527_s26  ;;  %v6657_v34 = vmax.f32 %v6655_v4, %v6656_v1  ;;  %v6664_v63 = vmax.f32 %v6662_v52, %v6663_v7  ;;  %v6670_v0 = vrot.slane %v6669_v38, 1  ;;  %v7031_v58 = vsel %vm39_vm0, %v6650_v41, -inf  ;;  %v7375_v4 = vpop.permute.xlu0 %7374  ;;  %v7273_v41 = vld [vmem:[#allocation3 + $0x9] sm:$0x1f] }
 0x345   :  { %v5438_v42 = vpop.f32.mrf.mxu0  ;;  %v7032_v50 = vmax.f32 %v7030_v20, %v7031_v58  ;;  %v7713_v52 = vcombine.high %v7315_v26, %v7315_v26  ;;  %v7564_v7 = vsel %vm39_vm0, %v7233_v9, %v13800_v33  ;;  %v7594_v17 = vsel %vm39_vm0, %v7273_v41, %v7455_v24 }
 0x346   :  { %v7497_v32 = vpop.permute.xlu1 %7496  ;;  %v6671_v44 = vmax.f32 %v6669_v38, %v6670_v0  ;;  %v7034_v23 = vsel %vm39_vm0, %v6657_v34, -inf  ;;  %v7037_v60 = vsel %vm39_vm0, %v6664_v63, -inf  ;;  %v5439_v10 = vadd.f32 %v13834_v43, %v5438_v42 }
 0x347   :  { %v7035_v19 = vmax.f32 %v7033_v54, %v7034_v23  ;;  %v7038_v21 = vmax.f32 %v7036_v35, %v7037_v60  ;;  %v5440_v61 = vpop.f32.mrf.mxu0  ;;  %v7191_v6 = vsel %vm7167_vm7, %v7032_v50, %v7029_v2  ;;  %v7605_v59 = vsel %vm2937_vm4, %v7595_v48, %v7497_v32  ;;  %v7314_v54 = vld [vmem:[#allocation3 + $0x12] sm:$0x1f] }
 0x348   :  { %7422 = vrot.lane.b32.xlu1 %v7267_v53, %s10530_s19  ;;  %v7040_v62 = vsel %vm39_vm0, %v6671_v44, -inf  ;;  %v7734_v38 = vrot.slane %v7315_v26, %v13829_v15  ;;  %v7741_v45 = vrot.slane %v7713_v52, %v13829_v15  ;;  %v5629_v20 = vadd.f32 %v13785_v55, %v5439_v10  ;;  %v7415_v63 = vpop.permute.xlu0 %7414  ;;  %v7258_v55 = vld [vmem:[#allocation3 + $0x3a] sm:$0x1f] }
 0x349   :  { %v7041_v28 = vmax.f32 %v7039_v49, %v7040_v62  ;;  %v7192_v47 = vsel %vm7169_vm8, %v7035_v19, %v7191_v6  ;;  %v7574_v34 = vsel %vm2937_vm4, %v7564_v7, %v7375_v4  ;;  %v7656_v23 = vcombine.high %v7314_v54, %v7314_v54 }
 0x34a   :  { %v7417_v8 = vpop.permute.xlu1 %7416  ;;  %v7193_v14 = vsel %vm7171_vm9, %v7038_v21, %v7192_v47  ;;  %v7584_v44 = vsel %vm2978_vm5, %v7574_v34, %v7415_v63  ;;  %v5692_v24 = vmax.f32 %v5629_v20, 0.0  ;;  %v7677_v49 = vrot.slane %v7314_v54, %v13829_v15 }
 0x34b   :  { %v7194_v25 = vsel %vm7173_vm10, %v7041_v28, %v7193_v14  ;;  %v7585_v39 = vsel %vm2978_vm5, %v7575_v30, %v7417_v8  ;;  %v7684_v28 = vrot.slane %v7656_v23, %v13829_v15 }
 0x34c   :  { %7542 = vrot.lane.b32.xlu1 %v7308_v27, %s10530_s19  ;;  %7228 = vst.msk [vmem:[#allocation3 + $0x41] sm:$0x1f] %vm7222_vm11, %v7194_v25  ;;  %v5989_v29 = vrot.slane %v5692_v24, %v11316_v12  ;;  %v5982_v30 = vcombine.high %v5692_v24, %v5692_v24 }
 0x34e   :  { %v7537_v56 = vpop.permute.xlu1 %7536  ;;  %v5633_v40 = vpop.f32.mrf.mxu1  ;;  %v5997_v4 = vcombine.high %v5989_v29, %v5989_v29  ;;  %v5996_v10 = vrot.slane %v5982_v30, %v11316_v12  ;;  %v6672_v20 = vsel %vm331_vm3, %v5989_v29, -inf }
 0x34f   :  { %v7615_v57 = vsel %vm2978_vm5, %v7605_v59, %v7537_v56 }
 0x350   :  { %v7711_v11 = vcombine.low %v7585_v39, %v7615_v57  ;;  %v7712_v37 = vcombine.high %v7585_v39, %v7615_v57  ;;  %v10394_v36 = vpop.f32.mrf.mxu1  ;;  %v6686_v24 = vsel %vm331_vm3, %v5996_v10, -inf }
 0x351   :  { %v6687_v29 = vrot.slane %v6686_v24, 4 }
 0x352   :  { %v7720_v18 = vrot.slane %v7711_v11, %v13829_v15  ;;  %v7495_v1 = vpop.permute.xlu1 %7494  ;;  %v7727_v46 = vrot.slane %v7712_v37, %v13829_v15 }
 0x353   :  { %v7288_v2 = vld [vmem:[#allocation3 + $0x42] sm:$0x1f]  ;;  %v7604_v35 = vsel %vm2937_vm4, %v7594_v17, %v7495_v1 }
 0x354   :  { %v7743_v32 = vcombine.high %v7720_v18, %v7734_v38  ;;  %v7744_v0 = vcombine.low %v7727_v46, %v7741_v45  ;;  %v7742_v58 = vcombine.low %v7720_v18, %v7734_v38  ;;  %7464 = vrot.lane.b32.xlu0 %v7288_v2, %s10526_s25  ;;  %v7249_v26 = vld [vmem:[#allocation3 + $0x41] sm:$0x1f] }
 0x355   :  { %v5443_v50 = vpop.f32.mrf.mxu0 }
 0x356   :  { %v7535_v33 = vpop.permute.xlu1 %7534  ;;  %v7765_v42 = vrot.slane %v7743_v32, %v13829_v15  ;;  %v7758_v60 = vrot.slane %v7744_v0, %v13829_v15  ;;  %v5444_v21 = vadd.f32 %v13834_v43, %v5443_v50  ;;  %v7751_v8 = vrot.slane %v7742_v58, %v13829_v15 }
 0x357   :  { %v7614_v53 = vsel %vm2978_vm5, %v7604_v35, %v7535_v33  ;;  %v5445_v27 = vpop.f32.mrf.mxu0  ;;  %v6679_v32 = vsel %vm331_vm3, %v5997_v4, -inf  ;;  %v5998_v0 = vcombine.high %v5996_v10, %v5996_v10 }
 0x358   :  { %v7767_v19 = vcombine.high %v7765_v42, %v7765_v42  ;;  %v7654_v61 = vcombine.low %v7584_v44, %v7614_v53  ;;  %7384 = vrot.lane.b32.xlu0 %v7258_v55, %s10527_s26  ;;  %v5634_v6 = vadd.f32 %v5633_v40, %v5444_v21  ;;  %v7655_v5 = vcombine.high %v7584_v44, %v7614_v53 }
 0x359   :  { %v7766_v25 = vcombine.high %v7751_v8, %v7751_v8  ;;  %v6673_v55 = vrot.slane %v6672_v20, 4  ;;  %v6680_v44 = vrot.slane %v6679_v32, 4 }
 0x35a   :  { %v13856_v62 = vcombine.low %v7767_v19, %v7758_v60  ;;  %v7663_v51 = vrot.slane %v7654_v61, %v13829_v15  ;;  %v5693_v47 = vmax.f32 %v5634_v6, 0.0  ;;  %v7670_v31 = vrot.slane %v7655_v5, %v13829_v15 }
 0x35b   :  { %v8270_v40 = vcombine.low %v7765_v42, %v7766_v25  ;;  %v6693_v61 = vsel %vm331_vm3, %v5998_v0, -inf }
 0x35c   :  { %v7685_v48 = vcombine.low %v7663_v51, %v7677_v49  ;;  %v7686_v14 = vcombine.high %v7663_v51, %v7677_v49  ;;  %7346 = vrot.lane.b32.xlu0 %v7249_v26, %s10526_s25  ;;  %v5999_v59 = vcombine.high %v5693_v47, %v5693_v47  ;;  %v6006_v56 = vrot.slane %v5693_v47, %v11316_v12 }
 0x35d   :  { %v7687_v39 = vcombine.low %v7670_v31, %v7684_v28  ;;  %v8298_v35 = vrot.slane %v8270_v40, %v13829_v15  ;;  %v6674_v51 = vmax.f32 %v6672_v20, %v6673_v55  ;;  %v6681_v28 = vmax.f32 %v6679_v32, %v6680_v44 }
 0x35e   :  { %v7694_v57 = vrot.slane %v7685_v48, %v13829_v15  ;;  %v7708_v9 = vrot.slane %v7686_v14, %v13829_v15  ;;  %v6013_v52 = vrot.slane %v5999_v59, %v11316_v12  ;;  %v6014_v11 = vcombine.high %v6006_v56, %v6006_v56 }
 0x35f   :  { %v7701_v37 = vrot.slane %v7687_v39, %v13829_v15  ;;  %v6694_v14 = vrot.slane %v6693_v61, 4  ;;  %v6700_v26 = vsel %vm331_vm3, %v6006_v56, -inf  ;;  %v6675_v39 = vrot.slane %v6674_v51, 2 }
 0x360   :  { %v8267_v18 = vcombine.low %v7694_v57, %v7708_v9  ;;  %v10156_v1 = vcombine.high %v7694_v57, %v7708_v9  ;;  %v6015_v7 = vcombine.high %v6013_v52, %v6013_v52  ;;  %v6707_v38 = vsel %vm331_vm3, %v6014_v11, -inf }
 0x361   :  { %v6714_v46 = vsel %vm331_vm3, %v6013_v52, -inf  ;;  %v8269_v36 = vcombine.low %v7701_v37, %v7751_v8  ;;  %v6708_v2 = vrot.slane %v6707_v38, 4  ;;  %v6688_v57 = vmax.f32 %v6686_v24, %v6687_v29 }
 0x362   :  { %v8277_v41 = vrot.slane %v8267_v18, %v13829_v15  ;;  %v8284_v34 = vrot.slane %v10156_v1, %v13829_v15  ;;  %v6715_v54 = vrot.slane %v6714_v46, 4  ;;  %v6721_v33 = vsel %vm331_vm3, %v6015_v7, -inf }
 0x363   :  { %v5638_v45 = vpop.f32.mrf.mxu1  ;;  %v8291_v63 = vrot.slane %v8269_v36, %v13829_v15  ;;  %v6722_v8 = vrot.slane %v6721_v33, 4  ;;  %v6709_v27 = vmax.f32 %v6707_v38, %v6708_v2  ;;  %v6682_v4 = vrot.slane %v6681_v28, 2 }
 0x364   :  { %v8299_v42 = vcombine.low %v8277_v41, %v8284_v34  ;;  %v8300_v53 = vcombine.high %v8277_v41, %v8284_v34  ;;  %v6716_v49 = vmax.f32 %v6714_v46, %v6715_v54  ;;  %v6701_v52 = vrot.slane %v6700_v26, 4  ;;  %v13897_v54 = vpop.permute.xlu0 %7338 }
 0x365   :  { %v10397_v17 = vpop.f32.mrf.mxu1  ;;  %v8301_v23 = vcombine.low %v8291_v63, %v8298_v35  ;;  %v8302_v60 = vcombine.high %v8291_v63, %v8298_v35  ;;  %v6723_v30 = vmax.f32 %v6721_v33, %v6722_v8  ;;  %v6710_v25 = vrot.slane %v6709_v27, 2 }
 0x366   :  { %v8316_v19 = vrot.slane %v8300_v53, %v13829_v15  ;;  %v13883_v21 = vrot.slane %v8299_v42, %v13829_v15  ;;  %v6717_v59 = vrot.slane %v6716_v49, 2  ;;  %v6695_v11 = vmax.f32 %v6693_v61, %v6694_v14 }
 0x367   :  { %v13877_v58 = vpop.f32.mrf.mxu1  ;;  %v8330_v6 = vrot.slane %v8302_v60, %v13829_v15  ;;  %v13888_v5 = vrot.slane %v8301_v23, %v13829_v15  ;;  %v6724_v37 = vrot.slane %v6723_v30, 2  ;;  %v6711_v18 = vmax.f32 %v6709_v27, %v6710_v25 }
 0x368   :  { %v6718_v1 = vmax.f32 %v6716_v49, %v6717_v59  ;;  %v6676_v7 = vmax.f32 %v6674_v51, %v6675_v39  ;;  %v6689_v38 = vrot.slane %v6688_v57, 2  ;;  %v6683_v46 = vmax.f32 %v6681_v28, %v6682_v4  ;;  %v13901_v27 = vpop.permute.xlu0 %7458 }
 0x369   :  { %v10400_v50 = vpop.f32.mrf.mxu1  ;;  %v8333_v47 = vcombine.low %v8316_v19, %v8330_v6  ;;  %v8331_v31 = vcombine.low %v13883_v21, %v13888_v5  ;;  %v8332_v48 = vcombine.high %v13883_v21, %v13888_v5  ;;  %v6702_v36 = vmax.f32 %v6700_v26, %v6701_v52 }
 0x36a   :  { %v6696_v41 = vrot.slane %v6695_v11, 2  ;;  %v6725_v20 = vmax.f32 %v6723_v30, %v6724_v37  ;;  %v6712_v17 = vrot.slane %v6711_v18, 1  ;;  %v6719_v34 = vrot.slane %v6718_v1, 1 }
 0x36b   :  { %8785 = vmatprep.mubr.f32.mxu1 %v8333_v47  ;;  %v6677_v63 = vrot.slane %v6676_v7, 1  ;;  %v6690_v0 = vmax.f32 %v6688_v57, %v6689_v38  ;;  %v6684_v33 = vrot.slane %v6683_v46, 1  ;;  %v6703_v35 = vrot.slane %v6702_v36, 2 }
 0x36c   :  { %8786 = vmatmul.mubr.f32.vlgmr.msra.gmra.mxu1 %v8331_v31  ;;  %v6697_v42 = vmax.f32 %v6695_v11, %v6696_v41  ;;  %v6726_v53 = vrot.slane %v6725_v20, 1  ;;  %v6713_v44 = vmax.f32 %v6711_v18, %v6712_v17  ;;  %v6720_v24 = vmax.f32 %v6718_v1, %v6719_v34 }
 0x36d   :  { %v6678_v23 = vmax.f32 %v6676_v7, %v6677_v63  ;;  %v6691_v60 = vrot.slane %v6690_v0, 1  ;;  %v6685_v8 = vmax.f32 %v6683_v46, %v6684_v33  ;;  %v6704_v49 = vmax.f32 %v6702_v36, %v6703_v35 }
 0x36e   :  { %v6698_v29 = vrot.slane %v6697_v42, 1  ;;  %v6727_v28 = vmax.f32 %v6725_v20, %v6726_v53  ;;  %v7043_v47 = vsel %vm39_vm0, %v6713_v44, -inf  ;;  %v7046_v31 = vsel %vm39_vm0, %v6720_v24, -inf }
 0x36f   :  { %v6692_v30 = vmax.f32 %v6690_v0, %v6691_v60  ;;  %v7042_v25 = vsel %vm39_vm0, %v6678_v23, -inf  ;;  %v7045_v39 = vsel %vm39_vm0, %v6685_v8, -inf  ;;  %v6705_v57 = vrot.slane %v6704_v49, 1 }
 0x370   :  { %v5448_v9 = vpop.f32.mrf.mxu0  ;;  %v7044_v52 = vmax.f32 %v7042_v25, %v7043_v47  ;;  %v7047_v11 = vmax.f32 %v7045_v39, %v7046_v31  ;;  %v7049_v37 = vsel %vm39_vm0, %v6727_v28, -inf }
 0x371   :  { %v5449_v10 = vadd.f32 %v13834_v43, %v5448_v9  ;;  %v7048_v38 = vsel %vm39_vm0, %v6692_v30, -inf  ;;  %v6706_v36 = vmax.f32 %v6704_v49, %v6705_v57 }
 0x372   :  { %v5450_v40 = vpop.f32.mrf.mxu0  ;;  %v7050_v41 = vmax.f32 %v7048_v38, %v7049_v37  ;;  %v7195_v34 = vsel %vm7167_vm7, %v7047_v11, %v7044_v52  ;;  %v7235_v38 = vld [vmem:[#allocation3 + $0x10] sm:$0x1f] }
 0x373   :  { %v5639_v56 = vadd.f32 %v5638_v45, %v5449_v10  ;;  %v6699_v10 = vmax.f32 %v6697_v42, %v6698_v29  ;;  %v13909_v40 = vpop.permute.xlu0 %7378  ;;  %v7054_v44 = vsel %vm39_vm0, %v6706_v36, -inf }
 0x375   :  { %v5694_v32 = vmax.f32 %v5639_v56, 0.0  ;;  %v7051_v33 = vsel %vm39_vm0, %v6699_v10, -inf }
 0x377   :  { %v6023_v2 = vrot.slane %v5694_v32, %v11316_v12  ;;  %v6016_v19 = vcombine.high %v5694_v32, %v5694_v32  ;;  %v7499_v0 = vpop.permute.xlu0 %7498 }
 0x379   :  { %v6031_v55 = vcombine.high %v6023_v2, %v6023_v2  ;;  %v6728_v45 = vsel %vm331_vm3, %v6023_v2, -inf  ;;  %v6030_v59 = vrot.slane %v6016_v19, %v11316_v12 }
 0x37a   :  { %v6729_v50 = vrot.slane %v6728_v45, 4 }
 0x37b   :  { %v6735_v61 = vsel %vm331_vm3, %v6031_v55, -inf  ;;  %v6032_v56 = vcombine.high %v6030_v59, %v6030_v59  ;;  %v6742_v42 = vsel %vm331_vm3, %v6030_v59, -inf  ;;  %v7419_v28 = vpop.permute.xlu0 %7418 }
 0x37c   :  { %v6730_v6 = vmax.f32 %v6728_v45, %v6729_v50  ;;  %v6736_v51 = vrot.slane %v6735_v61, 4  ;;  %v7196_v50 = vsel %vm7169_vm8, %v7050_v41, %v7195_v34 }
 0x37d   :  { %v6749_v53 = vsel %vm331_vm3, %v6032_v56, -inf }
 0x37e   :  { %v6731_v14 = vrot.slane %v6730_v6, 2  ;;  %v6737_v26 = vmax.f32 %v6735_v61, %v6736_v51  ;;  %v6743_v61 = vrot.slane %v6742_v42, 4  ;;  %v6750_v8 = vrot.slane %v6749_v53, 4 }
 0x380   :  { %v6732_v9 = vmax.f32 %v6730_v6, %v6731_v14  ;;  %v6738_v4 = vrot.slane %v6737_v26, 2  ;;  %v6744_v30 = vmax.f32 %v6742_v42, %v6743_v61  ;;  %v6751_v39 = vmax.f32 %v6749_v53, %v6750_v8 }
 0x382   :  { %v6733_v18 = vrot.slane %v6732_v9, 1  ;;  %v6739_v1 = vmax.f32 %v6737_v26, %v6738_v4  ;;  %v5453_v7 = vpop.f32.mrf.mxu0  ;;  %v6745_v36 = vrot.slane %v6744_v30, 2  ;;  %v6752_v34 = vrot.slane %v6751_v39, 2 }
 0x383   :  { %v5454_v46 = vadd.f32 %v13834_v43, %v5453_v7 }
 0x384   :  { %v6734_v20 = vmax.f32 %v6732_v9, %v6733_v18  ;;  %v6740_v32 = vrot.slane %v6739_v1, 1  ;;  %v5455_v17 = vpop.f32.mrf.mxu0 }
 0x385   :  { %v5644_v63 = vadd.f32 %v13877_v58, %v5454_v46  ;;  %v7539_v46 = vpop.permute.xlu0 %7538 }
 0x386   :  { %v6741_v2 = vmax.f32 %v6739_v1, %v6740_v32  ;;  %v7052_v35 = vsel %vm39_vm0, %v6734_v20, -inf  ;;  %v7275_v1 = vld [vmem:[#allocation3 + $0x19] sm:$0x1f]  ;;  %v7566_v32 = vsel %vm39_vm0, %v7235_v38, %v13897_v54 }
 0x387   :  { %v7053_v55 = vmax.f32 %v7051_v33, %v7052_v35  ;;  %v5695_v45 = vmax.f32 %v5644_v63, 0.0  ;;  %v7596_v56 = vsel %vm39_vm0, %v7275_v1, %v13901_v27  ;;  %v7576_v27 = vsel %vm2937_vm4, %v7566_v32, %v13909_v40 }
 0x388   :  { %v7055_v24 = vsel %vm39_vm0, %v6741_v2, -inf  ;;  %v7606_v17 = vsel %vm2937_vm4, %v7596_v56, %v7499_v0 }
 0x389   :  { %v7056_v23 = vmax.f32 %v7054_v44, %v7055_v24  ;;  %v7197_v58 = vsel %vm7171_vm9, %v7053_v55, %v7196_v50  ;;  %v6033_v60 = vcombine.high %v5695_v45, %v5695_v45  ;;  %v6040_v19 = vrot.slane %v5695_v45, %v11316_v12 }
 0x38a   :  { %v13944_v54 = vsel %vm2978_vm5, %v7606_v17, %v7539_v46  ;;  %v13948_v24 = vsel %vm2978_vm5, %v7576_v27, %v7419_v28  ;;  %v6746_v50 = vmax.f32 %v6744_v30, %v6745_v36 }
 0x38b   :  { %v7198_v49 = vsel %vm7173_vm10, %v7056_v23, %v7197_v58  ;;  %v6047_v6 = vrot.slane %v6033_v60, %v11316_v12  ;;  %v6048_v51 = vcombine.high %v6040_v19, %v6040_v19  ;;  %v6756_v29 = vsel %vm331_vm3, %v6040_v19, -inf  ;;  %v13950_v60 = vpop.permute.xlu1 %7340 }
 0x38c   :  { %7229 = vst.msk [vmem:[#allocation3 + $0x49] sm:$0x1f] %vm7222_vm11, %v7198_v49  ;;  %v6757_v47 = vrot.slane %v6756_v29, 4  ;;  %v6753_v19 = vmax.f32 %v6751_v39, %v6752_v34  ;;  %v7268_v49 = vld [vmem:[#allocation3 + $0x40] sm:$0x1f] }
 0x38d   :  { %v6049_v31 = vcombine.high %v6047_v6, %v6047_v6  ;;  %v6763_v14 = vsel %vm331_vm3, %v6048_v51, -inf  ;;  %v6770_v26 = vsel %vm331_vm3, %v6047_v6, -inf  ;;  %v7259_v6 = vld [vmem:[#allocation3 + $0x42] sm:$0x1f]  ;;  %v7768_v51 = vcombine.low %v13948_v24, %v13944_v54 }
 0x38e   :  { %v6764_v25 = vrot.slane %v6763_v14, 4  ;;  %v6758_v4 = vmax.f32 %v6756_v29, %v6757_v47  ;;  %v6771_v11 = vrot.slane %v6770_v26, 4 }
 0x38f   :  { %v5458_v59 = vpop.f32.mrf.mxu0  ;;  %v6777_v57 = vsel %vm331_vm3, %v6049_v31, -inf  ;;  %v7777_v46 = vrot.slane %v7768_v51, %v13829_v15 }
 0x390   :  { %v5459_v9 = vadd.f32 %v13834_v43, %v5458_v59  ;;  %v6765_v52 = vmax.f32 %v6763_v14, %v6764_v25  ;;  %v6778_v37 = vrot.slane %v6777_v57, 4  ;;  %v5648_v10 = vpop.f32.mrf.mxu1  ;;  %v6759_v35 = vrot.slane %v6758_v4, 2 }
 0x391   :  { %v5460_v18 = vpop.f32.mrf.mxu0  ;;  %v6772_v53 = vmax.f32 %v6770_v26, %v6771_v11  ;;  %v6747_v25 = vrot.slane %v6746_v50, 1  ;;  %v6754_v11 = vrot.slane %v6753_v19, 1 }
 0x392   :  { %v5649_v7 = vadd.f32 %v5648_v10, %v5459_v9  ;;  %v6779_v41 = vmax.f32 %v6777_v57, %v6778_v37  ;;  %v10403_v20 = vpop.f32.mrf.mxu1  ;;  %v6766_v42 = vrot.slane %v6765_v52, 2  ;;  %v6760_v29 = vmax.f32 %v6758_v4, %v6759_v35  ;;  %v13960_v9 = vpop.permute.xlu1 %7460  ;;  %v13963_v18 = vld [vmem:[#allocation3 + $0x22] sm:$0x1f] }
 0x393   :  { %v7299_v2 = vld [vmem:[#allocation3 + $0x48] sm:$0x1f]  ;;  %v6773_v28 = vrot.slane %v6772_v53, 2  ;;  %v6755_v35 = vmax.f32 %v6753_v19, %v6754_v11 }
 0x394   :  { %v5696_v63 = vmax.f32 %v5649_v7, 0.0  ;;  %v7289_v33 = vld [vmem:[#allocation3 + $0x4a] sm:$0x1f]  ;;  %v6780_v55 = vrot.slane %v6779_v41, 2  ;;  %v13937_v45 = vpop.f32.mrf.mxu1  ;;  %7504 = vrot.lane.b32.xlu1 %v7299_v2, %s10527_s26  ;;  %v6767_v47 = vmax.f32 %v6765_v52, %v6766_v42  ;;  %v6761_v36 = vrot.slane %v6760_v29, 1 }
 0x395   :  { %7466 = vrot.lane.b32.xlu0 %v7289_v33, %s10526_s25  ;;  %v7309_v37 = vld [vmem:[#allocation3 + $0x49] sm:$0x1f]  ;;  %v6774_v1 = vmax.f32 %v6772_v53, %v6773_v28  ;;  %v7791_v2 = vrot.slane %v13963_v18, %v13829_v15  ;;  %v6748_v33 = vmax.f32 %v6746_v50, %v6747_v25  ;;  %v7060_v19 = vsel %vm39_vm0, %v6755_v35, -inf  ;;  %v7276_v35 = vld [vmem:[#allocation3 + $0x21] sm:$0x1f] }
 0x396   :  { %v6050_v0 = vcombine.high %v5696_v63, %v5696_v63  ;;  %v6057_v44 = vrot.slane %v5696_v63, %v11316_v12  ;;  %v6781_v23 = vmax.f32 %v6779_v41, %v6780_v55  ;;  %v10406_v58 = vpop.f32.mrf.mxu1  ;;  %v7250_v10 = vld [vmem:[#allocation3 + $0x49] sm:$0x1f]  ;;  %v6768_v41 = vrot.slane %v6767_v47, 1 }
 0x397   :  { %v6775_v53 = vrot.slane %v6774_v1, 1  ;;  %v7799_v58 = vcombine.low %v7777_v46, %v7791_v2  ;;  %v7800_v28 = vcombine.high %v7777_v46, %v7791_v2 }
 0x398   :  { %v6064_v61 = vrot.slane %v6050_v0, %v11316_v12  ;;  %v6065_v8 = vcombine.high %v6057_v44, %v6057_v44  ;;  %v6784_v40 = vsel %vm331_vm3, %v6057_v44, -inf  ;;  %7424 = vrot.lane.b32.xlu1 %v7268_v49, %s10530_s19  ;;  %v6782_v59 = vrot.slane %v6781_v23, 1  ;;  %v7381_v44 = vpop.permute.xlu1 %7380 }
 0x399   :  { %7386 = vrot.lane.b32.xlu0 %v7259_v6, %s10527_s26  ;;  %v6785_v14 = vrot.slane %v6784_v40, 4 }
 0x39a   :  { %v6066_v31 = vcombine.high %v6064_v61, %v6064_v61  ;;  %v6791_v26 = vsel %vm331_vm3, %v6065_v8, -inf  ;;  %v6798_v30 = vsel %vm331_vm3, %v6064_v61, -inf  ;;  %v6783_v32 = vmax.f32 %v6781_v23, %v6782_v59 }
 0x39b   :  { %v6792_v39 = vrot.slane %v6791_v26, 4  ;;  %v6799_v57 = vrot.slane %v6798_v30, 4  ;;  %v6786_v4 = vmax.f32 %v6784_v40, %v6785_v14  ;;  %v6762_v61 = vmax.f32 %v6760_v29, %v6761_v36 }
 0x39c   :  { %v6805_v52 = vsel %vm331_vm3, %v6066_v31, -inf  ;;  %7544 = vrot.lane.b32.xlu1 %v7309_v37, %s10530_s19  ;;  %v6769_v8 = vmax.f32 %v6767_v47, %v6768_v41  ;;  %v7058_v23 = vsel %vm39_vm0, %v6783_v32, -inf  ;;  %v7057_v31 = vsel %vm39_vm0, %v6748_v33, -inf  ;;  %v7236_v33 = vld [vmem:[#allocation3 + $0x18] sm:$0x1f] }
 0x39d   :  { %v6793_v7 = vmax.f32 %v6791_v26, %v6792_v39  ;;  %v6800_v38 = vmax.f32 %v6798_v30, %v6799_v57  ;;  %v6806_v56 = vrot.slane %v6805_v52, 4  ;;  %7348 = vrot.lane.b32.xlu0 %v7250_v10, %s10526_s25  ;;  %v6787_v20 = vrot.slane %v6786_v4, 2 }
 0x39e   :  { %v6776_v14 = vmax.f32 %v6774_v1, %v6775_v53  ;;  %v7059_v59 = vmax.f32 %v7057_v31, %v7058_v23  ;;  %v7063_v29 = vsel %vm39_vm0, %v6762_v61, -inf  ;;  %v7066_v39 = vsel %vm39_vm0, %v6769_v8, -inf }
 0x39f   :  { %v6794_v17 = vrot.slane %v6793_v7, 2  ;;  %v6801_v34 = vrot.slane %v6800_v38, 2  ;;  %v6807_v63 = vmax.f32 %v6805_v52, %v6806_v56  ;;  %v6788_v42 = vmax.f32 %v6786_v4, %v6787_v20 }
 0x3a0   :  { %v7769_v41 = vcombine.high %v13948_v24, %v13944_v54  ;;  %v7567_v24 = vsel %vm39_vm0, %v7236_v33, %v13950_v60 }
 0x3a1   :  { %v6795_v55 = vmax.f32 %v6793_v7, %v6794_v17  ;;  %v6802_v27 = vmax.f32 %v6800_v38, %v6801_v34  ;;  %v6808_v0 = vrot.slane %v6807_v63, 2  ;;  %v6789_v40 = vrot.slane %v6788_v42, 1 }
 0x3a2   :  { %v7069_v38 = vsel %vm39_vm0, %v6776_v14, -inf  ;;  %v13985_v34 = vrot.slane %v7799_v58, %v13829_v15  ;;  %v7318_v14 = vld [vmem:[#allocation3 + $0x32] sm:$0x1f] }
 0x3a3   :  { %v6796_v49 = vrot.slane %v6795_v55, 1  ;;  %v6803_v6 = vrot.slane %v6802_v27, 1  ;;  %v6809_v51 = vmax.f32 %v6807_v63, %v6808_v0  ;;  %v6790_v50 = vmax.f32 %v6788_v42, %v6789_v40  ;;  %v7317_v40 = vld [vmem:[#allocation3 + $0x2a] sm:$0x1f] }
 0x3a4   :  { %v13988_v63 = vrot.slane %v7800_v28, %v13829_v15  ;;  %v7770_v42 = vcombine.high %v13963_v18, %v13963_v18  ;;  %v7784_v0 = vrot.slane %v7769_v41, %v13829_v15  ;;  %v7848_v28 = vrot.slane %v7317_v40, %v13829_v15  ;;  %v7269_v41 = vld [vmem:[#allocation3 + $0x48] sm:$0x1f] }
 0x3a5   :  { %v6797_v26 = vmax.f32 %v6795_v55, %v6796_v49  ;;  %v6804_v30 = vmax.f32 %v6802_v27, %v6803_v6  ;;  %v6810_v25 = vrot.slane %v6809_v51, 1  ;;  %v7061_v47 = vsel %vm39_vm0, %v6790_v50, -inf  ;;  %v5463_v10 = vpop.f32.mrf.mxu0  ;;  %v7343_v6 = vpop.permute.xlu0 %7342 }
 0x3a6   :  { %v7501_v57 = vpop.permute.xlu1 %7500  ;;  %v7062_v4 = vmax.f32 %v7060_v19, %v7061_v47  ;;  %v5464_v54 = vadd.f32 %v13834_v43, %v5463_v10  ;;  %v7597_v55 = vsel %vm39_vm0, %v7276_v35, %v13960_v9  ;;  %v7577_v27 = vsel %vm2937_vm4, %v7567_v24, %v7381_v44 }
 0x3a7   :  { %v6811_v11 = vmax.f32 %v6809_v51, %v6810_v25  ;;  %v7064_v52 = vsel %vm39_vm0, %v6797_v26, -inf  ;;  %v7067_v37 = vsel %vm39_vm0, %v6804_v30, -inf  ;;  %v5465_v36 = vpop.f32.mrf.mxu0  ;;  %v7607_v58 = vsel %vm2937_vm4, %v7597_v55, %v7501_v57 }
 0x3a8   :  { %v7065_v7 = vmax.f32 %v7063_v29, %v7064_v52  ;;  %v7068_v1 = vmax.f32 %v7066_v39, %v7067_v37  ;;  %v7199_v46 = vsel %vm7167_vm7, %v7062_v4, %v7059_v59  ;;  %v8335_v18 = vcombine.low %v13985_v34, %v13988_v63 }
 0x3a9   :  { %v7070_v56 = vsel %vm39_vm0, %v6811_v11, -inf  ;;  %v7798_v23 = vrot.slane %v7770_v42, %v13829_v15  ;;  %v5654_v9 = vadd.f32 %v13937_v45, %v5464_v54  ;;  %v7827_v47 = vcombine.high %v7317_v40, %v7317_v40  ;;  %v7383_v10 = vpop.permute.xlu0 %7382 }
 0x3aa   :  { %v7071_v20 = vmax.f32 %v7069_v38, %v7070_v56  ;;  %v7200_v32 = vsel %vm7169_vm8, %v7065_v7, %v7199_v46  ;;  %v7421_v17 = vpop.permute.xlu1 %7420  ;;  %v8351_v26 = vrot.slane %v8335_v18, %v13829_v15  ;;  %v8344_v45 = vrot.slane %v13856_v62, %v13829_v15  ;;  %v7237_v38 = vld [vmem:[#allocation3 + $0x20] sm:$0x1f] }
 0x3ab   :  { %v7201_v2 = vsel %vm7171_vm9, %v7068_v1, %v7200_v32  ;;  %v7587_v8 = vsel %vm2978_vm5, %v7577_v27, %v7421_v17  ;;  %v7801_v51 = vcombine.low %v7784_v0, %v7798_v23  ;;  %v5697_v30 = vmax.f32 %v5654_v9, 0.0 }
 0x3ac   :  { %v7202_v53 = vsel %vm7173_vm10, %v7071_v20, %v7201_v2  ;;  %v7884_v52 = vcombine.high %v7318_v14, %v7318_v14  ;;  %v10157_v37 = vcombine.high %v13985_v34, %v13988_v63  ;;  %v8367_v1 = vcombine.high %v8344_v45, %v8351_v26  ;;  %v7260_v20 = vld [vmem:[#allocation3 + $0x4a] sm:$0x1f] }
 0x3ad   :  { %7230 = vst.msk [vmem:[#allocation3 + $0x51] sm:$0x1f] %vm7222_vm11, %v7202_v53  ;;  %v7815_v57 = vrot.slane %v7801_v51, %v13829_v15  ;;  %v6067_v56 = vcombine.high %v5697_v30, %v5697_v30  ;;  %v8366_v32 = vcombine.low %v8344_v45, %v8351_v26  ;;  %v7568_v62 = vsel %vm39_vm0, %v7237_v38, %v7343_v6 }
 0x3ae   :  { %v7541_v61 = vpop.permute.xlu1 %7540  ;;  %v7855_v17 = vrot.slane %v7827_v47, %v13829_v15  ;;  %v7578_v34 = vsel %vm2937_vm4, %v7568_v62, %v7383_v10  ;;  %v7905_v42 = vrot.slane %v7318_v14, %v13829_v15  ;;  %v14029_v53 = vrot.slane %v7884_v52, %v13829_v15 }
 0x3af   :  { %v7617_v60 = vsel %vm2978_vm5, %v7607_v58, %v7541_v61  ;;  %v5658_v44 = vpop.f32.mrf.mxu1  ;;  %v6074_v54 = vrot.slane %v5697_v30, %v11316_v12  ;;  %v8358_v55 = vrot.slane %v10157_v37, %v13829_v15  ;;  %v8383_v27 = vrot.slane %v8367_v1, %v13829_v15  ;;  %v7277_v61 = vld [vmem:[#allocation3 + $0x29] sm:$0x1f] }
 0x3b0   :  { %v7825_v49 = vcombine.low %v7587_v8, %v7617_v60  ;;  %v7826_v39 = vcombine.high %v7587_v8, %v7617_v60  ;;  %v6081_v0 = vrot.slane %v6067_v56, %v11316_v12  ;;  %v14038_v60 = vrot.slane %v8366_v32, %v13829_v15 }
 0x3b1   :  { %v10409_v19 = vpop.f32.mrf.mxu1  ;;  %v6812_v47 = vsel %vm331_vm3, %v6074_v54, -inf }
 0x3b2   :  { %v7834_v31 = vrot.slane %v7825_v49, %v13829_v15  ;;  %v7463_v50 = vpop.permute.xlu1 %7462  ;;  %v7841_v2 = vrot.slane %v7826_v39, %v13829_v15  ;;  %v6082_v19 = vcombine.high %v6074_v54, %v6074_v54 }
 0x3b3   :  { %v7598_v49 = vsel %vm39_vm0, %v7277_v61, %v7463_v50 }
 0x3b4   :  { %v7856_v25 = vcombine.low %v7834_v31, %v7848_v28  ;;  %v7300_v59 = vld [vmem:[#allocation3 + $0x50] sm:$0x1f]  ;;  %v7857_v7 = vcombine.high %v7834_v31, %v7848_v28  ;;  %v7858_v23 = vcombine.low %v7841_v2, %v7855_v17  ;;  %v6083_v17 = vcombine.high %v6081_v0, %v6081_v0 }
 0x3b5   :  { %v7290_v29 = vld [vmem:[#allocation3 + $0x52] sm:$0x1f]  ;;  %7506 = vrot.lane.b32.xlu1 %v7300_v59, %s10527_s26  ;;  %v5468_v36 = vpop.f32.mrf.mxu0  ;;  %v6819_v2 = vsel %vm331_vm3, %v6082_v19, -inf }
 0x3b6   :  { %7468 = vrot.lane.b32.xlu0 %v7290_v29, %s10526_s25  ;;  %v7865_v11 = vrot.slane %v7856_v25, %v13829_v15  ;;  %v7503_v4 = vpop.permute.xlu1 %7502  ;;  %v5469_v63 = vadd.f32 %v13834_v43, %v5468_v36  ;;  %v7879_v24 = vrot.slane %v7857_v7, %v13829_v15  ;;  %v7310_v18 = vld [vmem:[#allocation3 + $0x51] sm:$0x1f]  ;;  %v7872_v39 = vrot.slane %v7858_v23, %v13829_v15 }
 0x3b7   :  { %v5470_v33 = vpop.f32.mrf.mxu0  ;;  %v7270_v8 = vld [vmem:[#allocation3 + $0x50] sm:$0x1f]  ;;  %v7608_v51 = vsel %vm2937_vm4, %v7598_v49, %v7503_v4  ;;  %v6820_v61 = vrot.slane %v6819_v2, 4 }
 0x3b8   :  { %v8337_v46 = vcombine.low %v7815_v57, %v7865_v11  ;;  %v5659_v58 = vadd.f32 %v5658_v44, %v5469_v63  ;;  %v7880_v9 = vcombine.high %v7865_v11, %v7865_v11  ;;  %v7881_v14 = vcombine.high %v7879_v24, %v7879_v24 }
 0x3b9   :  { %7426 = vrot.lane.b32.xlu1 %v7269_v41, %s10530_s19  ;;  %v6813_v33 = vrot.slane %v6812_v47, 4 }
 0x3ba   :  { %7388 = vrot.lane.b32.xlu0 %v7260_v20, %s10527_s26  ;;  %v7423_v35 = vpop.permute.xlu1 %7422  ;;  %v8365_v40 = vrot.slane %v8337_v46, %v13829_v15  ;;  %v5698_v6 = vmax.f32 %v5659_v58, 0.0  ;;  %v8401_v11 = vcombine.low %v7879_v24, %v7880_v9  ;;  %v8402_v10 = vcombine.low %v7881_v14, %v7872_v39 }
 0x3bb   :  { %v7588_v26 = vsel %vm2978_vm5, %v7578_v34, %v7423_v35 }
 0x3bc   :  { %v8369_v28 = vcombine.high %v8358_v55, %v8365_v40  ;;  %v8368_v31 = vcombine.low %v8358_v55, %v8365_v40  ;;  %v6084_v25 = vcombine.high %v5698_v6, %v5698_v6  ;;  %v6091_v59 = vrot.slane %v5698_v6, %v11316_v12 }
 0x3bd   :  { %7546 = vrot.lane.b32.xlu1 %v7310_v18, %s10530_s19  ;;  %v8418_v58 = vrot.slane %v8402_v10, %v13829_v15  ;;  %v6826_v18 = vsel %vm331_vm3, %v6081_v0, -inf  ;;  %v6833_v40 = vsel %vm331_vm3, %v6083_v17, -inf  ;;  %v6814_v6 = vmax.f32 %v6812_v47, %v6813_v33 }
 0x3be   :  { %7428 = vrot.lane.b32.xlu0 %v7270_v8, %s10530_s19  ;;  %v7543_v44 = vpop.permute.xlu1 %7542  ;;  %v8397_v45 = vrot.slane %v8369_v28, %v13829_v15  ;;  %v14051_v57 = vrot.slane %v8368_v31, %v13829_v15  ;;  %v6098_v4 = vrot.slane %v6084_v25, %v11316_v12  ;;  %v6099_v52 = vcombine.high %v6091_v59, %v6091_v59 }
 0x3bf   :  { %v7618_v30 = vsel %vm2978_vm5, %v7608_v51, %v7543_v44  ;;  %v6827_v28 = vrot.slane %v6826_v18, 4  ;;  %v6840_v25 = vsel %vm331_vm3, %v6091_v59, -inf  ;;  %v6815_v47 = vrot.slane %v6814_v6, 2 }
 0x3c0   :  { %v7882_v50 = vcombine.low %v7588_v26, %v7618_v30  ;;  %v7883_v29 = vcombine.high %v7588_v26, %v7618_v30  ;;  %v8400_v1 = vcombine.low %v8383_v27, %v8397_v45  ;;  %v8398_v56 = vcombine.low %v14038_v60, %v14051_v57 }
 0x3c1   :  { %v6100_v46 = vcombine.high %v6098_v4, %v6098_v4  ;;  %v6847_v36 = vsel %vm331_vm3, %v6099_v52, -inf  ;;  %v6854_v41 = vsel %vm331_vm3, %v6098_v4, -inf  ;;  %v8411_v27 = vrot.slane %v8401_v11, %v13829_v15 }
 0x3c2   :  { %v7891_v37 = vrot.slane %v7882_v50, %v13829_v15  ;;  %v14056_v7 = vrot.slane %v7883_v29, %v13829_v15  ;;  %8790 = vmatprep.mubr.f32.mxu1 %v8400_v1  ;;  %v6848_v35 = vrot.slane %v6847_v36, 4  ;;  %v6855_v54 = vrot.slane %v6854_v41, 4 }
 0x3c3   :  { %v14058_v38 = vpop.f32.mrf.mxu1  ;;  %8791 = vmatmul.mubr.f32.gmra.mxu1 %v8398_v56  ;;  %v6861_v24 = vsel %vm331_vm3, %v6100_v46, -inf  ;;  %v8434_v14 = vcombine.high %v8411_v27, %v8418_v58  ;;  %v6821_v26 = vmax.f32 %v6819_v2, %v6820_v61  ;;  %v6834_v30 = vrot.slane %v6833_v40, 4 }
 0x3c4   :  { %v7913_v20 = vcombine.low %v7891_v37, %v7905_v42  ;;  %v7914_v32 = vcombine.high %v7891_v37, %v7905_v42  ;;  %v7915_v34 = vcombine.low %v14056_v7, %v14029_v53  ;;  %v6862_v23 = vrot.slane %v6861_v24, 4 }
 0x3c5   :  { %v10412_v62 = vpop.f32.mrf.mxu1  ;;  %v6849_v51 = vmax.f32 %v6847_v36, %v6848_v35  ;;  %v6856_v44 = vmax.f32 %v6854_v41, %v6855_v54  ;;  %v8433_v0 = vcombine.low %v8411_v27, %v8418_v58  ;;  %v8399_v45 = vcombine.high %v14038_v60, %v14051_v57  ;;  %v9648_v60 = vld [vmem:[%s14902_s7 + $0x1e0] sm:$0xff]  ;;  %v9645_v57 = vld [vmem:[%s14902_s7 + $0x1c8] sm:$0xff] }
 0x3c6   :  { %v7922_v63 = vrot.slane %v7913_v20, %v13829_v15  ;;  %v7936_v42 = vrot.slane %v7914_v32, %v13829_v15  ;;  %v6863_v50 = vmax.f32 %v6861_v24, %v6862_v23  ;;  %v6828_v52 = vmax.f32 %v6826_v18, %v6827_v28 }
 0x3c7   :  { %v14069_v55 = vpop.f32.mrf.mxu1  ;;  %v6850_v11 = vrot.slane %v6849_v51, 2  ;;  %v6857_v4 = vrot.slane %v6856_v44, 2  ;;  %v8450_v10 = vrot.slane %v8434_v14, %v13829_v15  ;;  %v6822_v59 = vrot.slane %v6821_v26, 2 }
 0x3c8   :  { %v8403_v9 = vcombine.low %v7922_v63, %v7936_v42  ;;  %v10158_v49 = vcombine.high %v7922_v63, %v7936_v42  ;;  %v6841_v46 = vrot.slane %v6840_v25, 4  ;;  %v14087_v36 = vrot.slane %v8433_v0, %v13829_v15 }
 0x3c9   :  { %v10415_v8 = vpop.f32.mrf.mxu1  ;;  %v6835_v41 = vmax.f32 %v6833_v40, %v6834_v30  ;;  %v6864_v20 = vrot.slane %v6863_v50, 2  ;;  %v6851_v2 = vmax.f32 %v6849_v51, %v6850_v11  ;;  %v6858_v63 = vmax.f32 %v6856_v44, %v6857_v4 }
 0x3ca   :  { %v8425_v31 = vrot.slane %v8403_v9, %v13829_v15  ;;  %v8432_v19 = vrot.slane %v10158_v49, %v13829_v15  ;;  %v6816_v54 = vmax.f32 %v6814_v6, %v6815_v47  ;;  %v6829_v24 = vrot.slane %v6828_v52, 2 }
 0x3cb   :  { %v6823_v27 = vmax.f32 %v6821_v26, %v6822_v59  ;;  %v6842_v58 = vmax.f32 %v6840_v25, %v6841_v46  ;;  %v6836_v61 = vrot.slane %v6835_v41, 2  ;;  %v6852_v8 = vrot.slane %v6851_v2, 1 }
 0x3cc   :  { %v8436_v29 = vcombine.high %v8425_v31, %v8432_v19  ;;  %v8435_v39 = vcombine.low %v8425_v31, %v8432_v19  ;;  %v6859_v40 = vrot.slane %v6858_v63, 1  ;;  %v6817_v23 = vrot.slane %v6816_v54, 1 }
 0x3cd   :  { %v6830_v9 = vmax.f32 %v6828_v52, %v6829_v24  ;;  %v6824_v51 = vrot.slane %v6823_v27, 1  ;;  %v6843_v44 = vrot.slane %v6842_v58, 2  ;;  %v6837_v28 = vmax.f32 %v6835_v41, %v6836_v61 }
 0x3ce   :  { %v8464_v1 = vrot.slane %v8436_v29, %v13829_v15  ;;  %v14084_v56 = vrot.slane %v8435_v39, %v13829_v15  ;;  %v6853_v19 = vmax.f32 %v6851_v2, %v6852_v8  ;;  %v6860_v14 = vmax.f32 %v6858_v63, %v6859_v40 }
 0x3cf   :  { %v6818_v30 = vmax.f32 %v6816_v54, %v6817_v23  ;;  %v6831_v25 = vrot.slane %v6830_v9, 1  ;;  %v6825_v29 = vmax.f32 %v6823_v27, %v6824_v51  ;;  %v6844_v39 = vmax.f32 %v6842_v58, %v6843_v44 }
 0x3d0   :  { %v5473_v37 = vpop.f32.mrf.mxu0  ;;  %v8467_v17 = vcombine.low %v8450_v10, %v8464_v1  ;;  %v8465_v33 = vcombine.low %v14087_v36, %v14084_v56  ;;  %v8466_v35 = vcombine.high %v14087_v36, %v14084_v56  ;;  %v6838_v4 = vrot.slane %v6837_v28, 1  ;;  %v9640_v56 = vld [vmem:[%s14902_s7 + $0x1a0] sm:$0xff]  ;;  %v9637_v36 = vld [vmem:[%s14902_s7 + $0x188] sm:$0xff] }
 0x3d1   :  { %v5474_v32 = vadd.f32 %v13834_v43, %v5473_v37  ;;  %v6865_v43 = vmax.f32 %v6863_v50, %v6864_v20  ;;  %v7073_v37 = vsel %vm39_vm0, %v6853_v19, -inf  ;;  %v7076_v10 = vsel %vm39_vm0, %v6860_v14, -inf }
 0x3d2   :  { %v5475_v62 = vpop.f32.mrf.mxu0  ;;  %8795 = vmatprep.mubr.f32.mxu1 %v8467_v17  ;;  %v6832_v46 = vmax.f32 %v6830_v9, %v6831_v25  ;;  %v7072_v41 = vsel %vm39_vm0, %v6818_v30, -inf }
 0x3d3   :  { %v5664_v42 = vadd.f32 %v14058_v38, %v5474_v32  ;;  %8796 = vmatmul.mubr.f32.gmra.mxu1 %v8465_v33  ;;  %v6866_v6 = vrot.slane %v6865_v43, 1  ;;  %v7075_v32 = vsel %vm39_vm0, %v6825_v29, -inf  ;;  %v6845_v62 = vrot.slane %v6844_v39, 1 }
 0x3d4   :  { %v7074_v63 = vmax.f32 %v7072_v41, %v7073_v37  ;;  %v7077_v33 = vmax.f32 %v7075_v32, %v7076_v10  ;;  %v7078_v61 = vsel %vm39_vm0, %v6832_v46, -inf }
 0x3d5   :  { %v5699_v18 = vmax.f32 %v5664_v42, 0.0  ;;  %v6867_v52 = vmax.f32 %v6865_v43, %v6866_v6  ;;  %v6839_v42 = vmax.f32 %v6837_v28, %v6838_v4  ;;  %v6846_v23 = vmax.f32 %v6844_v39, %v6845_v62 }
 0x3d6   :  { %v7203_v44 = vsel %vm7167_vm7, %v7077_v33, %v7074_v63 }
 0x3d7   :  { %v6108_v49 = vrot.slane %v5699_v18, %v11316_v12  ;;  %v6101_v0 = vcombine.high %v5699_v18, %v5699_v18  ;;  %v7079_v54 = vsel %vm39_vm0, %v6867_v52, -inf  ;;  %v10500_v18 = vld [vmem:[%s14899_s4] ss:$0 sm:$0xff]  ;;  %v7084_v25 = vsel %vm39_vm0, %v6846_v23, -inf  ;;  %s10532_s4 = smov [#allocation4]  }
 0x3d8   :  { %v7080_v9 = vmax.f32 %v7078_v61, %v7079_v54 }
 0x3d9   :  { %v6116_v31 = vcombine.high %v6108_v49, %v6108_v49  ;;  %v6868_v38 = vsel %vm331_vm3, %v6108_v49, -inf  ;;  %v6115_v20 = vrot.slane %v6101_v0, %v11316_v12 }
 0x3da   :  { %v6869_v26 = vrot.slane %v6868_v38, 4 }
 0x3db   :  { %v6875_v50 = vsel %vm331_vm3, %v6116_v31, -inf  ;;  %v6117_v43 = vcombine.high %v6115_v20, %v6115_v20  ;;  %v7081_v31 = vsel %vm39_vm0, %v6839_v42, -inf  ;;  %v6882_v19 = vsel %vm331_vm3, %v6115_v20, -inf }
 0x3dc   :  { %v6870_v47 = vmax.f32 %v6868_v38, %v6869_v26  ;;  %v6876_v11 = vrot.slane %v6875_v50, 4 }
 0x3dd   :  { %v6889_v14 = vsel %vm331_vm3, %v6117_v43, -inf }
 0x3de   :  { %v6871_v1 = vrot.slane %v6870_v47, 2  ;;  %v6877_v59 = vmax.f32 %v6875_v50, %v6876_v11  ;;  %v7204_v50 = vsel %vm7169_vm8, %v7080_v9, %v7203_v44  ;;  %v6883_v11 = vrot.slane %v6882_v19, 4 }
 0x3df   :  { %v6890_v4 = vrot.slane %v6889_v14, 4 }
 0x3e0   :  { %v6872_v17 = vmax.f32 %v6870_v47, %v6871_v1  ;;  %v6878_v2 = vrot.slane %v6877_v59, 2  ;;  %v6884_v32 = vmax.f32 %v6882_v19, %v6883_v11 }
 0x3e1   :  { %v6891_v63 = vmax.f32 %v6889_v14, %v6890_v4 }
 0x3e2   :  { %v5478_v24 = vpop.f32.mrf.mxu0  ;;  %v6873_v27 = vrot.slane %v6872_v17, 1  ;;  %v6879_v58 = vmax.f32 %v6877_v59, %v6878_v2 }
 0x3e3   :  { %v5479_v8 = vadd.f32 %v10500_v18, %v5478_v24  ;;  %v6892_v9 = vrot.slane %v6891_v63, 2 }
 0x3e4   :  { %v5480_v40 = vpop.f32.mrf.mxu0  ;;  %v6874_v49 = vmax.f32 %v6872_v17, %v6873_v27  ;;  %v6880_v51 = vrot.slane %v6879_v58, 1 }
 0x3e5   :  { %v5669_v6 = vadd.f32 %v14069_v55, %v5479_v8  ;;  %v6885_v40 = vrot.slane %v6884_v32, 2 }
 0x3e6   :  { %v6881_v28 = vmax.f32 %v6879_v58, %v6880_v51  ;;  %v7082_v38 = vsel %vm39_vm0, %v6874_v49, -inf }
 0x3e7   :  { %v7083_v26 = vmax.f32 %v7081_v31, %v7082_v38  ;;  %v5700_v30 = vmax.f32 %v5669_v6, 0.0  ;;  %v6886_v14 = vmax.f32 %v6884_v32, %v6885_v40 }
 0x3e8   :  { %v7085_v0 = vsel %vm39_vm0, %v6881_v28, -inf }
 0x3e9   :  { %v7086_v29 = vmax.f32 %v7084_v25, %v7085_v0  ;;  %v7205_v55 = vsel %vm7171_vm9, %v7083_v26, %v7204_v50  ;;  %v6118_v39 = vcombine.high %v5700_v30, %v5700_v30  ;;  %v6125_v47 = vrot.slane %v5700_v30, %v11316_v12 }
 0x3ea   :  { %v6893_v30 = vmax.f32 %v6891_v63, %v6892_v9 }
 0x3eb   :  { %v7206_v52 = vsel %vm7173_vm10, %v7086_v29, %v7205_v55  ;;  %v6132_v37 = vrot.slane %v6118_v39, %v11316_v12  ;;  %v6133_v10 = vcombine.high %v6125_v47, %v6125_v47  ;;  %v6896_v1 = vsel %vm331_vm3, %v6125_v47, -inf }
 0x3ec   :  { %7231 = vst.msk [vmem:[#allocation3 + $0x59] sm:$0x1f] %vm7222_vm11, %v7206_v52  ;;  %v6897_v59 = vrot.slane %v6896_v1, 4 }
 0x3ed   :  { %v6134_v46 = vcombine.high %v6132_v37, %v6132_v37  ;;  %v6903_v41 = vsel %vm331_vm3, %v6133_v10, -inf  ;;  %v6910_v20 = vsel %vm331_vm3, %v6132_v37, -inf }
 0x3ee   :  { %v6904_v62 = vrot.slane %v6903_v41, 4  ;;  %v5483_v17 = vpop.f32.mrf.mxu0  ;;  %v6898_v24 = vmax.f32 %v6896_v1, %v6897_v59  ;;  %v6911_v27 = vrot.slane %v6910_v20, 4 }
 0x3ef   :  { %v5673_v2 = vpop.f32.mrf.mxu1  ;;  %v6917_v33 = vsel %vm331_vm3, %v6134_v46, -inf  ;;  %v5484_v54 = vadd.f32 %v10500_v18, %v5483_v17  ;;  %v6887_v46 = vrot.slane %v6886_v14, 1 }
 0x3f0   :  { %v6905_v42 = vmax.f32 %v6903_v41, %v6904_v62  ;;  %v6918_v58 = vrot.slane %v6917_v33, 4  ;;  %v5485_v61 = vpop.f32.mrf.mxu0  ;;  %v6899_v6 = vrot.slane %v6898_v24, 2  ;;  %v6912_v31 = vmax.f32 %v6910_v20, %v6911_v27  ;;  %v7251_v62 = vld [vmem:[#allocation3 + $0x51] sm:$0x1f] }
 0x3f1   :  { %v10418_v43 = vpop.f32.mrf.mxu1  ;;  %v5674_v8 = vadd.f32 %v5673_v2, %v5484_v54  ;;  %v6894_v41 = vrot.slane %v6893_v30, 1 }
 0x3f2   :  { %v6919_v23 = vmax.f32 %v6917_v33, %v6918_v58  ;;  %v6906_v28 = vrot.slane %v6905_v42, 2  ;;  %v6900_v39 = vmax.f32 %v6898_v24, %v6899_v6  ;;  %v6913_v11 = vrot.slane %v6912_v31, 2 }
 0x3f3   :  { %v5701_v49 = vmax.f32 %v5674_v8, 0.0  ;;  %v7301_v51 = vld [vmem:[#allocation3 + $0x58] sm:$0x1f]  ;;  %v6888_v8 = vmax.f32 %v6886_v14, %v6887_v46  ;;  %v6895_v40 = vmax.f32 %v6893_v30, %v6894_v41 }
 0x3f4   :  { %v7252_v44 = vld [vmem:[#allocation3 + $0x59] sm:$0x1f]  ;;  %v6920_v38 = vrot.slane %v6919_v23, 2  ;;  %7508 = vrot.lane.b32.xlu1 %v7301_v51, %s10527_s26  ;;  %v6907_v47 = vmax.f32 %v6905_v42, %v6906_v28  ;;  %v6914_v17 = vmax.f32 %v6912_v31, %v6913_v11  ;;  %v6901_v54 = vrot.slane %v6900_v39, 1 }
 0x3f5   :  { %7352 = vrot.lane.b32.xlu0 %v7252_v44, %s10526_s25  ;;  %v6135_v18 = vcombine.high %v5701_v49, %v5701_v49  ;;  %v6142_v19 = vrot.slane %v5701_v49, %v11316_v12  ;;  %v7311_v29 = vld [vmem:[#allocation3 + $0x59] sm:$0x1f]  ;;  %v7090_v30 = vsel %vm39_vm0, %v6895_v40, -inf }
 0x3f6   :  { %v6921_v26 = vmax.f32 %v6919_v23, %v6920_v38  ;;  %v7262_v55 = vld [vmem:[#allocation3 + $0x5a] sm:$0x1f]  ;;  %v6908_v24 = vrot.slane %v6907_v47, 1  ;;  %v6915_v49 = vrot.slane %v6914_v17, 1  ;;  %v6902_v28 = vmax.f32 %v6900_v39, %v6901_v54 }
 0x3f7   :  { %v6149_v25 = vrot.slane %v6135_v18, %v11316_v12  ;;  %v6150_v0 = vcombine.high %v6142_v19, %v6142_v19  ;;  %v6924_v50 = vsel %vm331_vm3, %v6142_v19, -inf  ;;  %v7291_v9 = vld [vmem:[#allocation3 + $0x5a] sm:$0x1f] }
 0x3f8   :  { %7548 = vrot.lane.b32.xlu1 %v7311_v29, %s10530_s19  ;;  %v6925_v52 = vrot.slane %v6924_v50, 4  ;;  %v6922_v1 = vrot.slane %v6921_v26, 1  ;;  %v6909_v31 = vmax.f32 %v6907_v47, %v6908_v24  ;;  %v6916_v29 = vmax.f32 %v6914_v17, %v6915_v49 }
 0x3f9   :  { %7392 = vrot.lane.b32.xlu0 %v7262_v55, %s10527_s26  ;;  %v6151_v4 = vcombine.high %v6149_v25, %v6149_v25  ;;  %v6931_v37 = vsel %vm331_vm3, %v6150_v0, -inf  ;;  %v6938_v10 = vsel %vm331_vm3, %v6149_v25, -inf  ;;  %v7087_v0 = vsel %vm39_vm0, %v6888_v8, -inf  ;;  %v7303_v8 = vld [vmem:[#allocation3 + $0x68] sm:$0x1f] }
 0x3fa   :  { %v6932_v12 = vrot.slane %v6931_v37, 4  ;;  %v6939_v59 = vrot.slane %v6938_v10, 4  ;;  %v6926_v20 = vmax.f32 %v6924_v50, %v6925_v52  ;;  %v6923_v27 = vmax.f32 %v6921_v26, %v6922_v1  ;;  %v7261_v50 = vld [vmem:[#allocation3 + $0x52] sm:$0x1f] }
 0x3fb   :  { %v6945_v32 = vsel %vm331_vm3, %v6151_v4, -inf  ;;  %v7093_v47 = vsel %vm39_vm0, %v6902_v28, -inf }
 0x3fc   :  { %v6933_v2 = vmax.f32 %v6931_v37, %v6932_v12  ;;  %v6940_v63 = vmax.f32 %v6938_v10, %v6939_v59  ;;  %v6946_v33 = vrot.slane %v6945_v32, 4  ;;  %v6927_v42 = vrot.slane %v6926_v20, 2 }
 0x3fd   :  { %7350 = vrot.lane.b32.xlu0 %v7251_v62, %s10526_s25  ;;  %v7088_v18 = vsel %vm39_vm0, %v6923_v27, -inf  ;;  %v7096_v37 = vsel %vm39_vm0, %v6909_v31, -inf }
 0x3fe   :  { %v6934_v58 = vrot.slane %v6933_v2, 2  ;;  %v6941_v61 = vrot.slane %v6940_v63, 2  ;;  %v6947_v43 = vmax.f32 %v6945_v32, %v6946_v33  ;;  %v6928_v23 = vmax.f32 %v6926_v20, %v6927_v42  ;;  %v7271_v20 = vld [vmem:[#allocation3 + $0x58] sm:$0x1f]  ;;  %v7345_v42 = vpop.permute.xlu0 %7344 }
 0x3ff   :  { %v7089_v39 = vmax.f32 %v7087_v0, %v7088_v18  ;;  %v7099_v32 = vsel %vm39_vm0, %v6916_v29, -inf  ;;  %v7313_v18 = vld [vmem:[#allocation3 + $0x69] sm:$0x1f]  ;;  %v8258_v29 = vld [vmem:[%s14900_s5 + $0x110] sm:$0xff] }
 0x400   :  { %v6935_v51 = vmax.f32 %v6933_v2, %v6934_v58  ;;  %v6942_v44 = vmax.f32 %v6940_v63, %v6941_v61  ;;  %v6948_v6 = vrot.slane %v6947_v43, 2  ;;  %v6929_v38 = vrot.slane %v6928_v23, 1 }
 0x401   :  { %7470 = vrot.lane.b32.xlu0 %v7291_v9, %s10526_s25 }
 0x402   :  { %v6936_v19 = vrot.slane %v6935_v51, 1  ;;  %v6943_v26 = vrot.slane %v6942_v44, 1  ;;  %v6949_v25 = vmax.f32 %v6947_v43, %v6948_v6  ;;  %v6930_v14 = vmax.f32 %v6928_v23, %v6929_v38  ;;  %v7465_v58 = vpop.permute.xlu0 %7464  ;;  %v7238_v43 = vld [vmem:[#allocation3 + $0x38] sm:$0x1f]  ;;  %v7278_v23 = vld [vmem:[#allocation3 + $0x41] sm:$0x1f] }
 0x403   :  { %v7569_v40 = vsel %vm39_vm0, %v7238_v43, %v7345_v42  ;;  %v7599_v49 = vsel %vm39_vm0, %v7278_v23, %v7465_v58 }
 0x404   :  { %v6937_v55 = vmax.f32 %v6935_v51, %v6936_v19  ;;  %v6944_v11 = vmax.f32 %v6942_v44, %v6943_v26  ;;  %v6950_v4 = vrot.slane %v6949_v25, 1  ;;  %v7091_v52 = vsel %vm39_vm0, %v6930_v14, -inf }
 0x405   :  { %7390 = vrot.lane.b32.xlu0 %v7261_v50, %s10527_s26  ;;  %v7092_v1 = vmax.f32 %v7090_v30, %v7091_v52  ;;  %v8259_v50 = vld [vmem:[%s14900_s5 + $0x118] sm:$0xff] }
 0x406   :  { %v6951_v10 = vmax.f32 %v6949_v25, %v6950_v4  ;;  %v7094_v12 = vsel %vm39_vm0, %v6937_v55, -inf  ;;  %v7097_v59 = vsel %vm39_vm0, %v6944_v11, -inf  ;;  %v7505_v24 = vpop.permute.xlu1 %7504  ;;  %v7385_v51 = vpop.permute.xlu0 %7384  ;;  %v7319_v25 = vld [vmem:[#allocation3 + $0x4a] sm:$0x1f]  ;;  %10420 = vmatpush3.msra.mxu1 %v8259_v50 }
 0x407   :  { %v7095_v46 = vmax.f32 %v7093_v47, %v7094_v12  ;;  %v7098_v41 = vmax.f32 %v7096_v37, %v7097_v59  ;;  %v7207_v17 = vsel %vm7167_vm7, %v7092_v1, %v7089_v39  ;;  %v7579_v44 = vsel %vm2937_vm4, %v7569_v40, %v7385_v51  ;;  %10421 = vmatprep.subr.mxu1 %v10525_v3  ;;  %v8257_v39 = vld [vmem:[%s14900_s5 + $0x108] sm:$0xff] }
 0x408   :  { %v7100_v62 = vsel %vm39_vm0, %v6951_v10, -inf  ;;  %v7609_v6 = vsel %vm2937_vm4, %v7599_v49, %v7505_v24  ;;  %v7962_v30 = vrot.slane %v7319_v25, %v13829_v15  ;;  %10422 = vmatpush3.msra.mxu1 %v8258_v29  ;;  %v7941_v37 = vcombine.high %v7319_v25, %v7319_v25 }
 0x409   :  { %7430 = vrot.lane.b32.xlu0 %v7271_v20, %s10530_s19  ;;  %v7101_v2 = vmax.f32 %v7099_v32, %v7100_v62  ;;  %v7208_v63 = vsel %vm7169_vm8, %v7095_v46, %v7207_v17  ;;  %10423 = vmatprep.subr.mxu1 %v10525_v3  ;;  %v7239_v46 = vld [vmem:[#allocation3 + $0x40] sm:$0x1f]  ;;  %v7929_v40 = vrot.slane %v7915_v34, %v13829_v15 }
 0x40a   :  { %v7209_v33 = vsel %vm7171_vm9, %v7098_v41, %v7208_v63  ;;  %v7425_v27 = vpop.permute.xlu1 %7424  ;;  %v7347_v26 = vpop.permute.xlu0 %7346  ;;  %10424 = vmatpush3.msra.mxu1 %v8257_v39  ;;  %v7279_v41 = vld [vmem:[#allocation3 + $0x49] sm:$0x1f]  ;;  %v7969_v17 = vrot.slane %v7941_v37, %v13829_v15 }
 0x40b   :  { %v7210_v54 = vsel %vm7173_vm10, %v7101_v2, %v7209_v33  ;;  %v7589_v38 = vsel %vm2978_vm5, %v7579_v44, %v7425_v27  ;;  %10425 = vmatprep.subr.mxu1 %v10525_v3  ;;  %v7570_v32 = vsel %vm39_vm0, %v7239_v46, %v7347_v26  ;;  %v7320_v27 = vld [vmem:[#allocation3 + $0x52] sm:$0x1f]  ;;  %v7321_v46 = vld [vmem:[#allocation3 + $0x5a] sm:$0x1f] }
 0x40c   :  { %7232 = vst.msk [vmem:[#allocation3 + $0x61] sm:$0x1f] %vm7222_vm11, %v7210_v54  ;;  %v8019_v49 = vrot.slane %v7320_v27, %v13829_v15 }
 0x40e   :  { %v7545_v9 = vpop.permute.xlu1 %7544  ;;  %v7467_v55 = vpop.permute.xlu0 %7466 }
 0x40f   :  { %v7619_v28 = vsel %vm2978_vm5, %v7609_v6, %v7545_v9  ;;  %v7600_v62 = vsel %vm39_vm0, %v7279_v41, %v7467_v55  ;;  %v7240_v41 = vld [vmem:[#allocation3 + $0x48] sm:$0x1f] }
 0x410   :  { %v7939_v19 = vcombine.low %v7589_v38, %v7619_v28  ;;  %v7940_v52 = vcombine.high %v7589_v38, %v7619_v28 }
 0x412   :  { %v7948_v0 = vrot.slane %v7939_v19, %v13829_v15  ;;  %v7387_v59 = vpop.permute.xlu0 %7386  ;;  %v7955_v20 = vrot.slane %v7940_v52, %v13829_v15 }
 0x413   :  { %v7292_v61 = vld [vmem:[#allocation3 + $0x62] sm:$0x1f]  ;;  %v7580_v2 = vsel %vm2937_vm4, %v7570_v32, %v7387_v59  ;;  %v7998_v32 = vcombine.high %v7320_v27, %v7320_v27 }
 0x414   :  { %7472 = vrot.lane.b32.xlu1 %v7292_v61, %s10526_s25  ;;  %v7272_v31 = vld [vmem:[#allocation3 + $0x60] sm:$0x1f]  ;;  %v7970_v11 = vcombine.low %v7948_v0, %v7962_v30  ;;  %v7971_v10 = vcombine.high %v7948_v0, %v7962_v30  ;;  %v7972_v61 = vcombine.low %v7955_v20, %v7969_v17  ;;  %v7280_v20 = vld [vmem:[#allocation3 + $0x51] sm:$0x1f] }
 0x415   :  { %v7302_v14 = vld [vmem:[#allocation3 + $0x60] sm:$0x1f] }
 0x416   :  { %v7312_v47 = vld [vmem:[#allocation3 + $0x61] sm:$0x1f]  ;;  %v7979_v1 = vrot.slane %v7970_v11, %v13829_v15  ;;  %v7993_v63 = vrot.slane %v7971_v10, %v13829_v15  ;;  %v7986_v44 = vrot.slane %v7972_v61, %v13829_v15  ;;  %v7349_v37 = vpop.permute.xlu0 %7348 }
 0x417   :  { %v7571_v17 = vsel %vm39_vm0, %v7240_v41, %v7349_v37 }
 0x418   :  { %7512 = vrot.lane.b32.xlu1 %v7303_v8, %s10527_s26  ;;  %v7994_v33 = vcombine.high %v7979_v1, %v7979_v1  ;;  %v8256_v8 = vld [vmem:[%s14900_s5 + $0x100] sm:$0xff]  ;;  %v7995_v23 = vcombine.high %v7993_v63, %v7993_v63  ;;  %v8468_v6 = vcombine.low %v7929_v40, %v7979_v1  ;;  %v8076_v40 = vrot.slane %v7321_v46, %v13829_v15 }
 0x419   :  { %10426 = vmatpush3.msra.mxu1 %v8256_v8 }
 0x41a   :  { %v8469_v9 = vcombine.low %v7993_v63, %v7994_v33  ;;  %v8470_v38 = vcombine.low %v7995_v23, %v7986_v44  ;;  %v8478_v34 = vrot.slane %v8468_v6, %v13829_v15 }
 0x41c   :  { %7432 = vrot.lane.b32.xlu1 %v7272_v31, %s10530_s19  ;;  %v8485_v53 = vrot.slane %v8469_v9, %v13829_v15  ;;  %v8492_v26 = vrot.slane %v8470_v38, %v13829_v15 }
 0x41e   :  { %v8501_v0 = vcombine.high %v8478_v34, %v8485_v53 }
 0x420   :  { %7552 = vrot.lane.b32.xlu1 %v7313_v18, %s10530_s19  ;;  %v8517_v29 = vrot.slane %v8501_v0, %v13829_v15 }
 0x424   :  { %7510 = vrot.lane.b32.xlu1 %v7302_v14, %s10527_s26  ;;  %v8500_v14 = vcombine.low %v8478_v34, %v8485_v53 }
 0x426   :  { %v14210_v11 = vrot.slane %v8500_v14, %v13829_v15 }
 0x427   :  { %v7507_v4 = vpop.permute.xlu1 %7506 }
 0x428   :  { %7550 = vrot.lane.b32.xlu1 %v7312_v47, %s10530_s19  ;;  %v7610_v54 = vsel %vm2937_vm4, %v7600_v62, %v7507_v4  ;;  %v7469_v10 = vpop.permute.xlu0 %7468 }
 0x42b   :  { %v7427_v12 = vpop.permute.xlu1 %7426 }
 0x42c   :  { %v7590_v42 = vsel %vm2978_vm5, %v7580_v2, %v7427_v12  ;;  %v7389_v1 = vpop.permute.xlu0 %7388  ;;  %v7601_v2 = vsel %vm39_vm0, %v7280_v20, %v7469_v10 }
 0x42d   :  { %v7581_v63 = vsel %vm2937_vm4, %v7571_v17, %v7389_v1 }
 0x42f   :  { %v7547_v24 = vpop.permute.xlu1 %7546 }
 0x430   :  { %v7620_v58 = vsel %vm2978_vm5, %v7610_v54, %v7547_v24  ;;  %v7429_v62 = vpop.permute.xlu0 %7428  ;;  %v8055_v24 = vcombine.high %v7321_v46, %v7321_v46 }
 0x431   :  { %v7996_v43 = vcombine.low %v7590_v42, %v7620_v58  ;;  %v7997_v12 = vcombine.high %v7590_v42, %v7620_v58  ;;  %v7591_v42 = vsel %vm2978_vm5, %v7581_v63, %v7429_v62 }
 0x432   :  { %v8083_v9 = vrot.slane %v8055_v24, %v13829_v15  ;;  %v7242_v24 = vld [vmem:[#allocation3 + $0x58] sm:$0x1f] }
 0x433   :  { %v8005_v51 = vrot.slane %v7996_v43, %v13829_v15  ;;  %v8012_v33 = vrot.slane %v7997_v12, %v13829_v15  ;;  %v8026_v43 = vrot.slane %v7998_v32, %v13829_v15 }
 0x435   :  { %v8027_v28 = vcombine.low %v8005_v51, %v8019_v49  ;;  %v8028_v31 = vcombine.high %v8005_v51, %v8019_v49  ;;  %v8029_v23 = vcombine.low %v8012_v33, %v8026_v43 }
 0x437   :  { %v8036_v18 = vrot.slane %v8027_v28, %v13829_v15  ;;  %v8050_v19 = vrot.slane %v8028_v31, %v13829_v15  ;;  %v8043_v31 = vrot.slane %v8029_v23, %v13829_v15 }
 0x439   :  { %v8471_v7 = vcombine.low %v8036_v18, %v8050_v19  ;;  %v10159_v38 = vcombine.high %v8036_v18, %v8050_v19 }
 0x43b   :  { %v8499_v25 = vrot.slane %v8471_v7, %v13829_v15 }
 0x43d   :  { %v8503_v30 = vcombine.high %v8492_v26, %v8499_v25  ;;  %v8502_v50 = vcombine.low %v8492_v26, %v8499_v25 }
 0x43f   :  { %v8531_v55 = vrot.slane %v8503_v30, %v13829_v15  ;;  %v14213_v4 = vrot.slane %v8502_v50, %v13829_v15  ;;  %v8545_v50 = vrot.slane %v10159_v38, %v13829_v15 }
 0x441   :  { %v8534_v39 = vcombine.low %v8517_v29, %v8531_v55  ;;  %v8532_v47 = vcombine.low %v14210_v11, %v14213_v4  ;;  %v8533_v52 = vcombine.high %v14210_v11, %v14213_v4  ;;  %v9633_v11 = vld [vmem:[%s14902_s7 + $0x168] sm:$0xff]  ;;  %v9632_v4 = vld [vmem:[%s14902_s7 + $0x160] sm:$0xff] }
 0x443   :  { %8800 = vmatprep.mubr.f32.mxu1 %v8534_v39 }
 0x444   :  { %8801 = vmatmul.mubr.f32.gmra.mxu1 %v8532_v47 }
 0x466   :  { %v7509_v59 = vpop.permute.xlu1 %7508 }
 0x467   :  { %v7611_v54 = vsel %vm2937_vm4, %v7601_v2, %v7509_v59  ;;  %v7353_v47 = vpop.permute.xlu0 %7352 }
 0x46a   :  { %v7549_v61 = vpop.permute.xlu1 %7548 }
 0x46b   :  { %v7621_v58 = vsel %vm2978_vm5, %v7611_v54, %v7549_v61  ;;  %v7393_v62 = vpop.permute.xlu0 %7392  ;;  %v7282_v61 = vld [vmem:[#allocation3 + $0x61] sm:$0x1f] }
 0x46c   :  { %v8053_v27 = vcombine.low %v7591_v42, %v7621_v58  ;;  %v8054_v8 = vcombine.high %v7591_v42, %v7621_v58  ;;  %v7323_v42 = vld [vmem:[#allocation3 + $0x6a] sm:$0x1f]  ;;  %v7573_v58 = vsel %vm39_vm0, %v7242_v24, %v7353_v47 }
 0x46e   :  { %v8062_v49 = vrot.slane %v8053_v27, %v13829_v15  ;;  %v8069_v51 = vrot.slane %v8054_v8, %v13829_v15  ;;  %v7583_v27 = vsel %vm2937_vm4, %v7573_v58, %v7393_v62 }
 0x46f   :  { %v7351_v17 = vpop.permute.xlu0 %7350 }
 0x470   :  { %v8084_v44 = vcombine.low %v8062_v49, %v8076_v40  ;;  %v8085_v6 = vcombine.high %v8062_v49, %v8076_v40  ;;  %v8086_v28 = vcombine.low %v8069_v51, %v8083_v9  ;;  %v8169_v49 = vcombine.high %v7323_v42, %v7323_v42 }
 0x472   :  { %v8093_v53 = vrot.slane %v8084_v44, %v13829_v15  ;;  %v8107_v7 = vrot.slane %v8085_v6, %v13829_v15  ;;  %v8100_v34 = vrot.slane %v8086_v28, %v13829_v15  ;;  %v8190_v44 = vrot.slane %v7323_v42, %v13829_v15 }
 0x473   :  { %v7471_v33 = vpop.permute.xlu0 %7470 }
 0x474   :  { %v8108_v26 = vcombine.high %v8093_v53, %v8093_v53  ;;  %v8109_v25 = vcombine.high %v8107_v7, %v8107_v7  ;;  %v8536_v0 = vcombine.low %v8043_v31, %v8093_v53  ;;  %v7322_v53 = vld [vmem:[#allocation3 + $0x62] sm:$0x1f] }
 0x476   :  { %v8537_v14 = vcombine.low %v8107_v7, %v8108_v26  ;;  %v8538_v30 = vcombine.low %v8109_v25, %v8100_v34  ;;  %v8552_v29 = vrot.slane %v8536_v0, %v13829_v15  ;;  %v8197_v7 = vrot.slane %v8169_v49, %v13829_v15  ;;  %v7241_v26 = vld [vmem:[#allocation3 + $0x50] sm:$0x1f]  ;;  %v7281_v25 = vld [vmem:[#allocation3 + $0x59] sm:$0x1f] }
 0x477   :  { %v7391_v8 = vpop.permute.xlu0 %7390 }
 0x478   :  { %v8559_v55 = vrot.slane %v8537_v14, %v13829_v15  ;;  %v8566_v39 = vrot.slane %v8538_v30, %v13829_v15  ;;  %v8568_v18 = vcombine.high %v8545_v50, %v8552_v29  ;;  %v8567_v19 = vcombine.low %v8545_v50, %v8552_v29 }
 0x479   :  { %v7572_v50 = vsel %vm39_vm0, %v7241_v26, %v7351_v17  ;;  %v7602_v29 = vsel %vm39_vm0, %v7281_v25, %v7471_v33  ;;  %v8133_v17 = vrot.slane %v7322_v53, %v13829_v15 }
 0x47a   :  { %v8570_v37 = vcombine.high %v8559_v55, %v8566_v39  ;;  %v8569_v10 = vcombine.low %v8559_v55, %v8566_v39  ;;  %v8584_v1 = vrot.slane %v8568_v18, %v13829_v15  ;;  %v14242_v59 = vrot.slane %v8567_v19, %v13829_v15 }
 0x47b   :  { %v7431_v0 = vpop.permute.xlu0 %7430  ;;  %v8112_v55 = vcombine.high %v7322_v53, %v7322_v53  ;;  %v7582_v39 = vsel %vm2937_vm4, %v7572_v50, %v7391_v8 }
 0x47c   :  { %v8598_v12 = vrot.slane %v8570_v37, %v13829_v15  ;;  %v14245_v46 = vrot.slane %v8569_v10, %v13829_v15  ;;  %v7592_v10 = vsel %vm2978_vm5, %v7582_v39, %v7431_v0 }
 0x47e   :  { %v8601_v41 = vcombine.low %v8584_v1, %v8598_v12  ;;  %v8599_v20 = vcombine.low %v14242_v59, %v14245_v46  ;;  %v8600_v32 = vcombine.high %v14242_v59, %v14245_v46  ;;  %v9629_v59 = vld [vmem:[%s14902_s7 + $0x148] sm:$0xff]  ;;  %v9650_v46 = vld [vmem:[%s14902_s7 + $0x1f0] sm:$0xff] }
 0x480   :  { %8805 = vmatprep.mubr.f32.mxu1 %v8601_v41 }
 0x481   :  { %8806 = vmatmul.mubr.f32.gmra.mxu1 %v8599_v20 }
 0x486   :  { %v7473_v2 = vpop.permute.xlu1 %7472 }
 0x487   :  { %v7603_v43 = vsel %vm39_vm0, %v7282_v61, %v7473_v2 }
 0x48a   :  { %v7513_v63 = vpop.permute.xlu1 %7512 }
 0x48b   :  { %v7613_v40 = vsel %vm2937_vm4, %v7603_v43, %v7513_v63  ;;  %v8140_v63 = vrot.slane %v8112_v55, %v13829_v15 }
 0x48e   :  { %v7433_v54 = vpop.permute.xlu1 %7432 }
 0x48f   :  { %v7593_v9 = vsel %vm2978_vm5, %v7583_v27, %v7433_v54 }
 0x492   :  { %v7553_v23 = vpop.permute.xlu1 %7552 }
 0x493   :  { %v7623_v51 = vsel %vm2978_vm5, %v7613_v40, %v7553_v23 }
 0x494   :  { %v8167_v6 = vcombine.low %v7593_v9, %v7623_v51  ;;  %v8168_v28 = vcombine.high %v7593_v9, %v7623_v51 }
 0x496   :  { %v8176_v31 = vrot.slane %v8167_v6, %v13829_v15  ;;  %v7511_v38 = vpop.permute.xlu1 %7510  ;;  %v8183_v34 = vrot.slane %v8168_v28, %v13829_v15 }
 0x497   :  { %v7612_v47 = vsel %vm2937_vm4, %v7602_v29, %v7511_v38 }
 0x498   :  { %v8198_v14 = vcombine.low %v8176_v31, %v8190_v44  ;;  %v8199_v30 = vcombine.high %v8176_v31, %v8190_v44  ;;  %v8200_v1 = vcombine.low %v8183_v34, %v8197_v7 }
 0x49a   :  { %v8207_v18 = vrot.slane %v8198_v14, %v13829_v15  ;;  %v8221_v19 = vrot.slane %v8199_v30, %v13829_v15  ;;  %v7551_v37 = vpop.permute.xlu1 %7550  ;;  %v8214_v24 = vrot.slane %v8200_v1, %v13829_v15  ;;  %v9642_v1 = vld [vmem:[%s14902_s7 + $0x1b0] sm:$0xff] }
 0x49b   :  { %v7622_v12 = vsel %vm2978_vm5, %v7612_v47, %v7551_v37  ;;  %v9646_v47 = vld [vmem:[%s14902_s7 + $0x1d0] sm:$0xff]  ;;  %v9643_v37 = vld [vmem:[%s14902_s7 + $0x1b8] sm:$0xff] }
 0x49c   :  { %v8110_v41 = vcombine.low %v7592_v10, %v7622_v12  ;;  %v8111_v20 = vcombine.high %v7592_v10, %v7622_v12  ;;  %v8223_v62 = vcombine.high %v8221_v19, %v8221_v19  ;;  %v8222_v2 = vcombine.high %v8207_v18, %v8207_v18  ;;  %v9625_v10 = vld [vmem:[%s14902_s7 + $0x128] sm:$0xff]  ;;  %v9624_v12 = vld [vmem:[%s14902_s7 + $0x120] sm:$0xff] }
 0x49e   :  { %v8119_v33 = vrot.slane %v8110_v41, %v13829_v15  ;;  %v8126_v54 = vrot.slane %v8111_v20, %v13829_v15  ;;  %v8669_v43 = vcombine.low %v8223_v62, %v8214_v24  ;;  %v8605_v27 = vcombine.low %v8221_v19, %v8222_v2  ;;  %v9628_v19 = vld [vmem:[%s14902_s7 + $0x140] sm:$0xff]  ;;  %v9639_v41 = vld [vmem:[%s14902_s7 + $0x198] sm:$0xff]  ;;  %v9621_v20 = vld [vmem:[%s14902_s7 + $0x108] sm:$0xff] }
 0x49f   :  { %v9638_v62 = vld [vmem:[%s14902_s7 + $0x190] sm:$0xff]  ;;  %v9635_v2 = vld [vmem:[%s14902_s7 + $0x178] sm:$0xff] }
 0x4a0   :  { %v8141_v61 = vcombine.low %v8119_v33, %v8133_v17  ;;  %v8142_v42 = vcombine.high %v8119_v33, %v8133_v17  ;;  %v8143_v58 = vcombine.low %v8126_v54, %v8140_v63  ;;  %v8676_v44 = vrot.slane %v8669_v43, %v13829_v15  ;;  %v9620_v17 = vld [vmem:[%s14902_s7 + $0x100] sm:$0xff]  ;;  %v9617_v63 = vld [vmem:[%s14902_s7 + $0xe8] sm:$0xff]  ;;  %v9634_v33 = vld [vmem:[%s14902_s7 + $0x170] sm:$0xff] }
 0x4a1   :  { %v8633_v38 = vrot.slane %v8605_v27, %v13829_v15  ;;  %v9616_v54 = vld [vmem:[%s14902_s7 + $0xe0] sm:$0xff]  ;;  %v9631_v24 = vld [vmem:[%s14902_s7 + $0x158] sm:$0xff] }
 0x4a2   :  { %v8150_v8 = vrot.slane %v8141_v61, %v13829_v15  ;;  %v8157_v40 = vrot.slane %v8143_v58, %v13829_v15  ;;  %v8164_v23 = vrot.slane %v8142_v42, %v13829_v15  ;;  %v8677_v25 = vcombine.high %v8676_v44, %v8676_v44  ;;  %v9613_v61 = vld [vmem:[%s14902_s7 + $0xc8] sm:$0xff]  ;;  %v9630_v42 = vld [vmem:[%s14902_s7 + $0x150] sm:$0xff]  ;;  %v14418_v58 = vpop.f32.mrf.mxu1  ;;  %v9612_v43 = vld [vmem:[%s14902_s7 + $0xc0] sm:$0xff] }
 0x4a3   :  { %v9627_v27 = vld [vmem:[%s14902_s7 + $0x138] sm:$0xff] }
 0x4a4   :  { %v8602_v9 = vcombine.low %v8150_v8, %v8164_v23  ;;  %v10160_v49 = vcombine.high %v8150_v8, %v8164_v23  ;;  %v8604_v51 = vcombine.low %v8157_v40, %v8207_v18  ;;  %v8691_v39 = vrot.slane %v8677_v25, %v13829_v15  ;;  %v9609_v8 = vld [vmem:[%s14902_s7 + $0xa8] sm:$0xff]  ;;  %v9626_v40 = vld [vmem:[%s14902_s7 + $0x130] sm:$0xff]  ;;  %v9608_v23 = vld [vmem:[%s14902_s7 + $0xa0] sm:$0xff] }
 0x4a5   :  { %v8684_v18 = vrot.slane %v8676_v44, %v13829_v15  ;;  %v10235_v44 = vpop.f32.mrf.mxu1  ;;  %v9614_v25 = vld [vmem:[%s14902_s7 + $0xd0] sm:$0xff] }
 0x4a6   :  { %v8612_v6 = vrot.slane %v8602_v9, %v13829_v15  ;;  %v8619_v28 = vrot.slane %v10160_v49, %v13829_v15  ;;  %v8626_v31 = vrot.slane %v8604_v51, %v13829_v15  ;;  %v9623_v9 = vld [vmem:[%s14902_s7 + $0x118] sm:$0xff]  ;;  %v9605_v49 = vld [vmem:[%s14902_s7 + $0x88] sm:$0xff]  ;;  %v9622_v51 = vld [vmem:[%s14902_s7 + $0x110] sm:$0xff] }
 0x4a7   :  { %v8692_v5 = vcombine.high %v8684_v18, %v8684_v18 }
 0x4a8   :  { %v8635_v53 = vcombine.high %v8612_v6, %v8619_v28  ;;  %v8637_v7 = vcombine.high %v8626_v31, %v8633_v38  ;;  %v8634_v34 = vcombine.low %v8612_v6, %v8619_v28  ;;  %v8636_v26 = vcombine.low %v8626_v31, %v8633_v38  ;;  %v9604_v6 = vld [vmem:[%s14902_s7 + $0x80] sm:$0xff]  ;;  %v9619_v28 = vld [vmem:[%s14902_s7 + $0xf8] sm:$0xff]  ;;  %v9601_v31 = vld [vmem:[%s14902_s7 + $0x68] sm:$0xff] }
 0x4a9   :  { %v9618_v38 = vld [vmem:[%s14902_s7 + $0xf0] sm:$0xff] }
 0x4aa   :  { %v8651_v0 = vrot.slane %v8635_v53, %v13829_v15  ;;  %v8665_v14 = vrot.slane %v8637_v7, %v13829_v15  ;;  %v8644_v30 = vrot.slane %v8634_v34, %v13829_v15  ;;  %v8658_v50 = vrot.slane %v8636_v26, %v13829_v15  ;;  %v10237_v53 = vpop.f32.mrf.mxu1  ;;  %v9600_v7 = vld [vmem:[%s14902_s7 + $0x60] sm:$0xff]  ;;  %v9615_v34 = vld [vmem:[%s14902_s7 + $0xd8] sm:$0xff]  ;;  %v9597_v26 = vld [vmem:[%s14902_s7 + $0x48] sm:$0xff] }
 0x4ac   :  { %v8668_v29 = vcombine.low %v8651_v0, %v8665_v14  ;;  %v8666_v55 = vcombine.low %v8644_v30, %v8658_v50  ;;  %v8667_v21 = vcombine.high %v8644_v30, %v8658_v50  ;;  %v9596_v0 = vld [vmem:[%s14902_s7 + $0x40] sm:$0xff]  ;;  %v9611_v14 = vld [vmem:[%s14902_s7 + $0xb8] sm:$0xff]  ;;  %v9593_v30 = vld [vmem:[%s14902_s7 + $0x28] sm:$0xff] }
 0x4ad   :  { %v9610_v50 = vld [vmem:[%s14902_s7 + $0xb0] sm:$0xff] }
 0x4ae   :  { %8810 = vmatprep.mubr.f32.mxu1 %v8668_v29  ;;  %v10238_v29 = vpop.f32.mrf.mxu1 }
 0x4af   :  { %8811 = vmatmul.mubr.f32.gmra.mxu1 %v8666_v55  ;;  %v9592_v55 = vld [vmem:[%s14902_s7 + $0x20] sm:$0xff] }
 0x4b0   :  { %8815 = vmatprep.mubr.f32.mxu1 %v8691_v39  ;;  %v9607_v39 = vld [vmem:[%s14902_s7 + $0x98] sm:$0xff] }
 0x4b3   :  { %8816 = vmatmul.mubr.f32.gmra.mxu1 %v8684_v18  ;;  %v9606_v18 = vld [vmem:[%s14902_s7 + $0x90] sm:$0xff] }
 0x4b4   :  { %10427 = vmatprep.mubr.msk.f32.mxu1 %vm10528_vm2, %v10525_v3 }
 0x4b7   :  { %10428 = vmatmul.mubr.msk.f32.vlgmr.msra.gmra.mxu1 %vm39_vm0, %v8332_v48  ;;  %v9649_v48 = vld [vmem:[%s14902_s7 + $0x1e8] sm:$0xff] }
 0x4b8   :  { %10430 = vmatprep.mubr.msk.f32.mxu1 %vm10528_vm2, %v10525_v3  ;;  %9674 = vmatprep.subr.mxu0 %v9649_v48  ;;  %v9603_v48 = vld [vmem:[%s14902_s7 + $0x78] sm:$0xff] }
 0x4b9   :  { %9675 = vmatpush1.msra.mxu0 %v9648_v60  ;;  %v9602_v60 = vld [vmem:[%s14902_s7 + $0x70] sm:$0xff] }
 0x4ba   :  { %9676 = vmatprep.subr.mxu0 %v9645_v57 }
 0x4bb   :  { %10431 = vmatmul.mubr.msk.f32.gmra.mxu1 %vm39_vm0, %v8399_v45  ;;  %v9644_v45 = vld [vmem:[%s14902_s7 + $0x1c0] sm:$0xff] }
 0x4bc   :  { %10433 = vmatprep.mubr.msk.f32.mxu1 %vm10528_vm2, %v10525_v3  ;;  %9677 = vmatpush1.msra.mxu0 %v9644_v45 }
 0x4bf   :  { %10434 = vmatmul.mubr.msk.f32.gmra.mxu1 %vm39_vm0, %v8466_v35  ;;  %v9636_v35 = vld [vmem:[%s14902_s7 + $0x180] sm:$0xff] }
 0x4c0   :  { %10436 = vmatprep.mubr.msk.f32.mxu1 %vm10528_vm2, %v10525_v3 }
 0x4c3   :  { %10437 = vmatmul.mubr.msk.f32.gmra.mxu1 %vm39_vm0, %v8533_v52  ;;  %v9651_v52 = vld [vmem:[%s14902_s7 + $0x1f8] sm:$0xff] }
 0x4c4   :  { %10439 = vmatprep.mubr.msk.f32.mxu1 %vm10528_vm2, %v10525_v3  ;;  %9745 = vmatprep.subr.mxu1 %v9651_v52 }
 0x4c5   :  { %9746 = vmatpush1.msra.mxu1 %v9650_v46 }
 0x4c7   :  { %10440 = vmatmul.mubr.msk.f32.gmra.mxu1 %vm39_vm0, %v8600_v32  ;;  %v9647_v32 = vld [vmem:[%s14902_s7 + $0x1d8] sm:$0xff] }
 0x4c8   :  { %10442 = vmatprep.mubr.msk.f32.mxu1 %vm10528_vm2, %v10525_v3  ;;  %9747 = vmatprep.subr.mxu1 %v9647_v32  ;;  %v10239_v32 = vadd.f32 %v10238_v29, %v10237_v53 }
 0x4c9   :  { %9748 = vmatpush1.msra.mxu1 %v9646_v47 }
 0x4ca   :  { %9749 = vmatprep.subr.mxu1 %v9643_v37 }
 0x4cb   :  { %10443 = vmatmul.mubr.msk.f32.gmra.mxu1 %vm39_vm0, %v8667_v21  ;;  %v9589_v21 = vld [vmem:[%s14902_s7 + $0x8] sm:$0xff] }
 0x4cc   :  { %10445 = vmatprep.mubr.msk.f32.mxu1 %vm10528_vm2, %v10525_v3  ;;  %9750 = vmatpush1.msra.mxu1 %v9642_v1 }
 0x4cd   :  { %9751 = vmatprep.subr.mxu1 %v9639_v41 }
 0x4ce   :  { %9752 = vmatpush1.msra.mxu1 %v9638_v62 }
 0x4cf   :  { %10446 = vmatmul.mubr.msk.f32.gmra.mxu1 %vm39_vm0, %v8692_v5  ;;  %9753 = vmatprep.subr.mxu1 %v9635_v2  ;;  %v10240_v5 = vpop.f32.mrf.mxu1 }
 0x4d0   :  { %9809 = vmatprep.mubr.f32.mxu1 %v10525_v3  ;;  %v9641_v3 = vld [vmem:[%s14902_s7 + $0x1a8] sm:$0xff]  ;;  %9754 = vmatpush1.msra.mxu1 %v9634_v33 }
 0x4d1   :  { %9678 = vmatprep.subr.mxu0 %v9641_v3  ;;  %9755 = vmatprep.subr.mxu1 %v9631_v24  ;;  %v10241_v57 = vpop.f32.mrf.mxu1 }
 0x4d2   :  { %9679 = vmatpush1.msra.mxu0 %v9640_v56  ;;  %9756 = vmatpush1.msra.mxu1 %v9630_v42  ;;  %v10242_v41 = vadd.f32 %v10241_v57, %v10240_v5 }
 0x4d3   :  { %9680 = vmatprep.subr.mxu0 %v9637_v36  ;;  %9757 = vmatprep.subr.mxu1 %v9627_v27 }
 0x4d4   :  { %9681 = vmatpush1.msra.mxu0 %v9636_v35  ;;  %9758 = vmatpush1.msra.mxu1 %v9626_v40 }
 0x4d5   :  { %9682 = vmatprep.subr.mxu0 %v9633_v11  ;;  %9759 = vmatprep.subr.mxu1 %v9623_v9 }
 0x4d6   :  { %9683 = vmatpush1.msra.mxu0 %v9632_v4  ;;  %9760 = vmatpush1.msra.mxu1 %v9622_v51  ;;  %v10236_v4 = vadd.f32 %v10235_v44, %v14418_v58 }
 0x4d7   :  { %9684 = vmatprep.subr.mxu0 %v9629_v59  ;;  %9761 = vmatprep.subr.mxu1 %v9619_v28  ;;  %v14502_v59 = vld [vmem:[%s14901_s6] ss:$0 sm:$0xff] }
 0x4d8   :  { %9685 = vmatpush1.msra.mxu0 %v9628_v19  ;;  %9762 = vmatpush1.msra.mxu1 %v9618_v38  ;;  %v8788_v19 = vadd.f32 %v10236_v4, %v14502_v59 }
 0x4d9   :  { %9686 = vmatprep.subr.mxu0 %v9625_v10  ;;  %9763 = vmatprep.subr.mxu1 %v9615_v34 }
 0x4da   :  { %9687 = vmatpush1.msra.mxu0 %v9624_v12  ;;  %9764 = vmatpush1.msra.mxu1 %v9614_v25  ;;  %v8793_v12 = vadd.f32 %v10239_v32, %v14502_v59 }
 0x4db   :  { %9688 = vmatprep.subr.mxu0 %v9621_v20  ;;  %9765 = vmatprep.subr.mxu1 %v9611_v14 }
 0x4dc   :  { %9689 = vmatpush1.msra.mxu0 %v9620_v17  ;;  %9766 = vmatpush1.msra.mxu1 %v9610_v50 }
 0x4dd   :  { %9690 = vmatprep.subr.mxu0 %v9617_v63  ;;  %9767 = vmatprep.subr.mxu1 %v9607_v39 }
 0x4de   :  { %9691 = vmatpush1.msra.mxu0 %v9616_v54  ;;  %9768 = vmatpush1.msra.mxu1 %v9606_v18 }
 0x4df   :  { %9692 = vmatprep.subr.mxu0 %v9613_v61  ;;  %9769 = vmatprep.subr.mxu1 %v9603_v48 }
 0x4e0   :  { %9693 = vmatpush1.msra.mxu0 %v9612_v43  ;;  %9770 = vmatpush1.msra.mxu1 %v9602_v60  ;;  %v8798_v43 = vadd.f32 %v10242_v41, %v14502_v59 }
 0x4e1   :  { %9694 = vmatprep.subr.mxu0 %v9609_v8 }
 0x4e2   :  { %9695 = vmatpush1.msra.mxu0 %v9608_v23 }
 0x4e3   :  { %9696 = vmatprep.subr.mxu0 %v9605_v49 }
 0x4e4   :  { %9697 = vmatpush1.msra.mxu0 %v9604_v6 }
 0x4e5   :  { %9698 = vmatprep.subr.mxu0 %v9601_v31 }
 0x4e6   :  { %9699 = vmatpush1.msra.mxu0 %v9600_v7 }
 0x4e7   :  { %9700 = vmatprep.subr.mxu0 %v9597_v26 }
 0x4e8   :  { %9701 = vmatpush1.msra.mxu0 %v9596_v0 }
 0x4e9   :  { %9702 = vmatprep.subr.mxu0 %v9593_v30 }
 0x4ea   :  { %9703 = vmatpush1.msra.mxu0 %v9592_v55 }
 0x4eb   :  { %9704 = vmatprep.subr.mxu0 %v9589_v21 }
 0x504   :  { %v10243_v45 = vpop.f32.mrf.mxu1 }
 0x506   :  { %v10244_v3 = vpop.f32.mrf.mxu1 }
 0x507   :  { %v10245_v20 = vadd.f32 %v10244_v3, %v10243_v45 }
 0x509   :  { %v8803_v8 = vadd.f32 %v10245_v20, %v14502_v59 }
 0x541   :  { %v10246_v56 = vpop.f32.mrf.mxu1 }
 0x543   :  { %v10247_v36 = vpop.f32.mrf.mxu1 }
 0x544   :  { %v10248_v33 = vadd.f32 %v10247_v36, %v10246_v56 }
 0x546   :  { %v8808_v31 = vadd.f32 %v10248_v33, %v14502_v59 }
 0x56f   :  { %v10249_v35 = vpop.f32.mrf.mxu1 }
 0x571   :  { %v10250_v11 = vpop.f32.mrf.mxu1 }
 0x572   :  { %v10251_v51 = vadd.f32 %v10250_v11, %v10249_v35 }
 0x573   :  { %v10252_v52 = vpop.f32.mrf.mxu1 }
 0x575   :  { %v10253_v46 = vpop.f32.mrf.mxu1 }
 0x577   :  { %v8886_v47 = vpop.f32.mrf.mxu1 }
 0x578   :  { %v8887_v37 = vadd.f32 %v8886_v47, %v8788_v19 }
 0x579   :  { %v10429_v10 = vpop.f32.mrf.mxu1 }
 0x57a   :  { %v8919_v1 = vmax.f32 %v8887_v37, 0.0 }
 0x57b   :  { %v8891_v62 = vpop.f32.mrf.mxu1 }
 0x57c   :  { %v8931_v17 = vcombine.high %v8919_v1, %v8919_v1  ;;  %v8938_v2 = vrot.slane %v8919_v1, %v13829_v15  ;;  %v8892_v63 = vadd.f32 %v8891_v62, %v8793_v12 }
 0x57d   :  { %v10432_v54 = vpop.f32.mrf.mxu1 }
 0x57e   :  { %v8945_v24 = vrot.slane %v8931_v17, %v13829_v15  ;;  %v8946_v61 = vcombine.high %v8938_v2, %v8938_v2  ;;  %v8920_v42 = vmax.f32 %v8892_v63, 0.0  ;;  %v8954_v58 = vrot.slane %v8938_v2, %v13829_v15 }
 0x57f   :  { %v8896_v27 = vpop.f32.mrf.mxu1  ;;  %v8813_v2 = vadd.f32 %v10251_v51, %v14502_v59 }
 0x580   :  { %v8947_v40 = vcombine.high %v8945_v24, %v8945_v24  ;;  %v8961_v23 = vrot.slane %v8945_v24, %v13829_v15  ;;  %v8968_v9 = vrot.slane %v8946_v61, %v13829_v15  ;;  %v8980_v49 = vcombine.high %v8920_v42, %v8920_v42 }
 0x581   :  { %v8987_v44 = vrot.slane %v8920_v42, %v13829_v15  ;;  %v8897_v6 = vadd.f32 %v8896_v27, %v8798_v43  ;;  %v10435_v28 = vpop.f32.mrf.mxu1 }
 0x582   :  { %v8975_v38 = vrot.slane %v8947_v40, %v13829_v15  ;;  %v8977_v53 = vcombine.high %v8961_v23, %v8961_v23  ;;  %v9171_v7 = vcombine.low %v8954_v58, %v8968_v9  ;;  %v10168_v34 = vcombine.high %v8954_v58, %v8968_v9 }
 0x583   :  { %v8994_v26 = vrot.slane %v8980_v49, %v13829_v15  ;;  %v8995_v25 = vcombine.high %v8987_v44, %v8987_v44  ;;  %v9003_v0 = vrot.slane %v8987_v44, %v13829_v15  ;;  %v8921_v14 = vmax.f32 %v8897_v6, 0.0  ;;  %v8901_v30 = vpop.f32.mrf.mxu1 }
 0x584   :  { %v9178_v50 = vrot.slane %v9171_v7, %v13829_v15  ;;  %v9193_v29 = vrot.slane %v10168_v34, %v13829_v15  ;;  %v9201_v55 = vcombine.low %v8975_v38, %v8977_v53  ;;  %v8979_v39 = vcombine.high %v8975_v38, %v8975_v38 }
 0x585   :  { %v8996_v18 = vcombine.high %v8994_v26, %v8994_v26  ;;  %v9010_v21 = vrot.slane %v8994_v26, %v13829_v15  ;;  %v9017_v5 = vrot.slane %v8995_v25, %v13829_v15  ;;  %v9034_v48 = vrot.slane %v8921_v14, %v13829_v15  ;;  %v10438_v60 = vpop.f32.mrf.mxu1 }
 0x586   :  { %v9185_v57 = vrot.slane %v9178_v50, %v13829_v15  ;;  %v9200_v45 = vrot.slane %v9193_v29, %v13829_v15  ;;  %v9208_v3 = vrot.slane %v9201_v55, %v13829_v15  ;;  %v9216_v56 = vcombine.low %v8979_v39, %v9003_v0 }
 0x587   :  { %v9024_v36 = vrot.slane %v8996_v18, %v13829_v15  ;;  %v10169_v35 = vcombine.high %v9003_v0, %v9017_v5  ;;  %v9035_v11 = vcombine.high %v9034_v48, %v9034_v48  ;;  %v9042_v4 = vrot.slane %v9034_v48, %v13829_v15  ;;  %v8906_v52 = vpop.f32.mrf.mxu1 }
 0x588   :  { %v9215_v46 = vrot.slane %v9208_v3, %v13829_v15  ;;  %v9427_v32 = vsel %vm331_vm3, %v9185_v57, -inf  ;;  %v9434_v19 = vsel %vm331_vm3, %v9200_v45, -inf  ;;  %v9223_v47 = vrot.slane %v9216_v56, %v13829_v15 }
 0x589   :  { %v9428_v37 = vrot.slane %v9427_v32, 4  ;;  %v9435_v10 = vrot.slane %v9434_v19, 4  ;;  %v9238_v1 = vrot.slane %v10169_v35, %v13829_v15  ;;  %v9246_v12 = vcombine.low %v9010_v21, %v9024_v36  ;;  %v10441_v41 = vpop.f32.mrf.mxu1 }
 0x58a   :  { %v9230_v20 = vrot.slane %v9223_v47, %v13829_v15  ;;  %v9027_v62 = vcombine.high %v9024_v36, %v9024_v36  ;;  %v9049_v17 = vrot.slane %v9035_v11, %v13829_v15  ;;  %v14541_v54 = vsel %vm331_vm3, %v9215_v46, -inf }
 0x58b   :  { %v14536_v63 = vmax.f32 %v9427_v32, %v9428_v37  ;;  %v14538_v33 = vmax.f32 %v9434_v19, %v9435_v10  ;;  %v9245_v24 = vrot.slane %v9238_v1, %v13829_v15  ;;  %v8911_v61 = vpop.f32.mrf.mxu1  ;;  %v9253_v42 = vrot.slane %v9246_v12, %v13829_v15 }
 0x58c   :  { %v9448_v58 = vsel %vm331_vm3, %v9230_v20, -inf  ;;  %v9050_v43 = vcombine.high %v9042_v4, %v9042_v4  ;;  %v9261_v27 = vcombine.low %v9027_v62, %v9042_v4  ;;  %v8902_v59 = vadd.f32 %v8901_v30, %v8803_v8 }
 0x58d   :  { %v9449_v40 = vrot.slane %v9448_v58, 4  ;;  %v9455_v23 = vsel %vm331_vm3, %v9245_v24, -inf  ;;  %v8907_v9 = vadd.f32 %v8906_v52, %v8808_v31  ;;  %v10444_v49 = vpop.f32.mrf.mxu1  ;;  %v9260_v51 = vrot.slane %v9253_v42, %v13829_v15 }
 0x58e   :  { %v9456_v44 = vrot.slane %v9455_v23, 4  ;;  %v9268_v6 = vrot.slane %v9261_v27, %v13829_v15  ;;  %v9276_v28 = vcombine.low %v9049_v17, %v9050_v43  ;;  %v9442_v38 = vrot.slane %v14541_v54, 4 }
 0x58f   :  { %v8922_v53 = vmax.f32 %v8902_v59, 0.0  ;;  %v8923_v7 = vmax.f32 %v8907_v9, 0.0  ;;  %v8912_v34 = vadd.f32 %v8911_v61, %v8813_v2  ;;  %v8916_v26 = vpop.f32.mrf.mxu1  ;;  %v14550_v25 = vmax.f32 %v9448_v58, %v9449_v40 }
 0x590   :  { %v14552_v0 = vmax.f32 %v9455_v23, %v9456_v44  ;;  %v9275_v8 = vrot.slane %v9268_v6, %v13829_v15  ;;  %v9283_v31 = vrot.slane %v9276_v28, %v13829_v15  ;;  %v14557_v14 = vsel %vm331_vm3, %v9260_v51, -inf }
 0x591   :  { %v9051_v30 = vcombine.high %v8922_v53, %v8922_v53  ;;  %v9058_v50 = vrot.slane %v8922_v53, %v13829_v15  ;;  %v9100_v29 = vcombine.high %v8923_v7, %v8923_v7  ;;  %v10447_v55 = vpop.f32.mrf.mxu1  ;;  %v9107_v21 = vrot.slane %v8923_v7, %v13829_v15 }
 0x592   :  { %v9290_v39 = vrot.slane %v9283_v31, %v13829_v15  ;;  %v9469_v18 = vsel %vm331_vm3, %v9275_v8, -inf  ;;  %v8924_v5 = vmax.f32 %v8912_v34, 0.0  ;;  %v9463_v3 = vrot.slane %v14557_v14, 4 }
 0x593   :  { %v9470_v48 = vrot.slane %v9469_v18, 4  ;;  %v9065_v60 = vrot.slane %v9051_v30, %v13829_v15  ;;  %v9066_v57 = vcombine.high %v9058_v50, %v9058_v50  ;;  %v9074_v45 = vrot.slane %v9058_v50, %v13829_v15 }
 0x594   :  { %v14567_v56 = vsel %vm331_vm3, %v9290_v39, -inf  ;;  %v9114_v36 = vrot.slane %v9100_v29, %v13829_v15  ;;  %v9115_v35 = vcombine.high %v9107_v21, %v9107_v21  ;;  %v9123_v46 = vrot.slane %v9107_v21, %v13829_v15 }
 0x595   :  { %v14570_v11 = vmax.f32 %v9469_v18, %v9470_v48  ;;  %v9067_v4 = vcombine.high %v9065_v60, %v9065_v60  ;;  %v9081_v52 = vrot.slane %v9065_v60, %v13829_v15  ;;  %v9088_v32 = vrot.slane %v9066_v57, %v13829_v15 }
 0x596   :  { %v9096_v19 = vcombine.high %v9074_v45, %v9074_v45  ;;  %v9116_v47 = vcombine.high %v9114_v36, %v9114_v36  ;;  %v9130_v37 = vrot.slane %v9114_v36, %v13829_v15  ;;  %v9137_v1 = vrot.slane %v9115_v35, %v13829_v15 }
 0x597   :  { %v9095_v10 = vrot.slane %v9067_v4, %v13829_v15  ;;  %v9153_v12 = vrot.slane %v8924_v5, %v13829_v15  ;;  %v9437_v41 = vrot.slane %v14538_v33, 2  ;;  %v9098_v20 = vcombine.high %v9088_v32, %v9088_v32 }
 0x598   :  { %v9291_v62 = vcombine.low %v9088_v32, %v9096_v19  ;;  %v9144_v17 = vrot.slane %v9116_v47, %v13829_v15  ;;  %v9145_v2 = vcombine.high %v9130_v37, %v9130_v37  ;;  %v9146_v61 = vcombine.high %v9137_v1, %v9137_v1 }
 0x599   :  { %v10170_v24 = vcombine.high %v9081_v52, %v9095_v10  ;;  %v9336_v42 = vcombine.low %v9123_v46, %v9137_v1  ;;  %v9154_v58 = vcombine.high %v9153_v12, %v9153_v12  ;;  %v9306_v27 = vcombine.low %v9098_v20, %v9081_v52 }
 0x59a   :  { %v9298_v43 = vrot.slane %v9291_v62, %v13829_v15  ;;  %v9366_v40 = vcombine.low %v9144_v17, %v9145_v2  ;;  %v9161_v23 = vrot.slane %v9153_v12, %v13829_v15  ;;  %v9351_v49 = vcombine.low %v9146_v61, %v9130_v37  ;;  %v9588_v62 = vld [vmem:[%s14902_s7] sm:$0xff]  ;;  %v9599_v17 = vld [vmem:[%s14902_s7 + $0x58] sm:$0xff] }
 0x59b   :  { %v9328_v59 = vrot.slane %v10170_v24, %v13829_v15  ;;  %v9343_v9 = vrot.slane %v9336_v42, %v13829_v15  ;;  %v9168_v51 = vrot.slane %v9154_v58, %v13829_v15  ;;  %v9477_v44 = vrot.slane %v14567_v56, 4  ;;  %9705 = vmatpush1.msra.mxu0 %v9588_v62  ;;  %9771 = vmatprep.subr.mxu1 %v9599_v17  ;;  %v9595_v58 = vld [vmem:[%s14902_s7 + $0x38] sm:$0xff] }
 0x59c   :  { %v9305_v6 = vrot.slane %v9298_v43, %v13829_v15  ;;  %v9313_v28 = vrot.slane %v9306_v27, %v13829_v15  ;;  %v9373_v53 = vrot.slane %v9366_v40, %v13829_v15  ;;  %v9358_v26 = vrot.slane %v9351_v49, %v13829_v15  ;;  %v9594_v43 = vld [vmem:[%s14902_s7 + $0x30] sm:$0xff] }
 0x59d   :  { %v9335_v7 = vrot.slane %v9328_v59, %v13829_v15  ;;  %v9350_v34 = vrot.slane %v9343_v9, %v13829_v15  ;;  %v9381_v8 = vcombine.low %v9161_v23, %v9168_v51  ;;  %v10171_v50 = vcombine.high %v9161_v23, %v9168_v51 }
 0x59e   :  { %v9320_v31 = vrot.slane %v9313_v28, %v13829_v15  ;;  %v14595_v30 = vsel %vm331_vm3, %v9305_v6, -inf  ;;  %v9438_v29 = vmax.f32 %v14538_v33, %v9437_v41  ;;  %v9365_v39 = vrot.slane %v9358_v26, %v13829_v15 }
 0x59f   :  { %v14599_v55 = vsel %vm331_vm3, %v9335_v7, -inf  ;;  %v14603_v18 = vrot.slane %v9373_v53, %v13829_v15  ;;  %v9504_v21 = vsel %vm331_vm3, %v9350_v34, -inf  ;;  %v9484_v5 = vrot.slane %v14595_v30, 4 }
 0x5a0   :  { %v9490_v48 = vsel %vm331_vm3, %v9320_v31, -inf  ;;  %v9505_v60 = vrot.slane %v9504_v21, 4  ;;  %v9388_v57 = vrot.slane %v9381_v8, %v13829_v15  ;;  %v9498_v33 = vrot.slane %v14599_v55, 4 }
 0x5a1   :  { %v9491_v45 = vrot.slane %v9490_v48, 4  ;;  %v9511_v36 = vsel %vm331_vm3, %v9365_v39, -inf  ;;  %v9403_v35 = vrot.slane %v10171_v50, %v13829_v15  ;;  %v9439_v32 = vrot.slane %v9438_v29, 1 }
 0x5a2   :  { %v9506_v4 = vmax.f32 %v9504_v21, %v9505_v60  ;;  %v9512_v52 = vrot.slane %v9511_v36, 4  ;;  %v9395_v46 = vrot.slane %v9388_v57, %v13829_v15  ;;  %v9451_v47 = vrot.slane %v14550_v25, 2 }
 0x5a3   :  { %v9410_v19 = vrot.slane %v9403_v35, %v13829_v15  ;;  %v9492_v37 = vmax.f32 %v9490_v48, %v9491_v45  ;;  %v9458_v10 = vrot.slane %v14552_v0, 2  ;;  %v9440_v12 = vmax.f32 %v9438_v29, %v9439_v32  ;;  %v9598_v15 = vld [vmem:[%s14902_s7 + $0x50] sm:$0xff] }
 0x5a4   :  { %v9525_v1 = vsel %vm331_vm3, %v9395_v46, -inf  ;;  %v9507_v41 = vrot.slane %v9506_v4, 2  ;;  %v9472_v20 = vrot.slane %v14570_v11, 2  ;;  %v9452_v61 = vmax.f32 %v14550_v25, %v9451_v47  ;;  %9772 = vmatpush1.msra.mxu1 %v9598_v15 }
 0x5a5   :  { %v9526_v2 = vrot.slane %v9525_v1, 4  ;;  %v9532_v24 = vsel %vm331_vm3, %v9410_v19, -inf  ;;  %v9493_v42 = vrot.slane %v9492_v37, 2  ;;  %v9542_v23 = vsel %vm39_vm0, %v9440_v12, -inf  ;;  %9773 = vmatprep.subr.mxu1 %v9595_v58 }
 0x5a6   :  { %v9533_v27 = vrot.slane %v9532_v24, 4  ;;  %v9508_v40 = vmax.f32 %v9506_v4, %v9507_v41  ;;  %v9459_v59 = vmax.f32 %v14552_v0, %v9458_v10  ;;  %v9453_v25 = vrot.slane %v9452_v61, 1  ;;  %9774 = vmatpush1.msra.mxu1 %v9594_v43 }
 0x5a7   :  { %v9527_v9 = vmax.f32 %v9525_v1, %v9526_v2  ;;  %v9494_v49 = vmax.f32 %v9492_v37, %v9493_v42  ;;  %v9473_v51 = vmax.f32 %v14570_v11, %v9472_v20  ;;  %v9513_v7 = vmax.f32 %v9511_v36, %v9512_v52 }
 0x5a8   :  { %v9534_v6 = vmax.f32 %v9532_v24, %v9533_v27  ;;  %v9509_v28 = vrot.slane %v9508_v40, 1  ;;  %v9460_v53 = vrot.slane %v9459_v59, 1  ;;  %v9454_v34 = vmax.f32 %v9452_v61, %v9453_v25  ;;  %v9591_v27 = vld [vmem:[%s14902_s7 + $0x18] sm:$0xff] }
 0x5a9   :  { %v9495_v26 = vrot.slane %v9494_v49, 1  ;;  %v9474_v8 = vrot.slane %v9473_v51, 1  ;;  %v9528_v31 = vrot.slane %v9527_v9, 2  ;;  %v9514_v39 = vrot.slane %v9513_v7, 2  ;;  %9775 = vmatprep.subr.mxu1 %v9591_v27  ;;  %v9864_v27 = vld [vmem:[%s14904_s9 + $0x160] sm:$0xff] }
 0x5aa   :  { %v9510_v50 = vmax.f32 %v9508_v40, %v9509_v28  ;;  %v9461_v29 = vmax.f32 %v9459_v59, %v9460_v53  ;;  %v9464_v0 = vmax.f32 %v14557_v14, %v9463_v3  ;;  %v9543_v11 = vsel %vm39_vm0, %v9454_v34, -inf  ;;  %v9590_v40 = vld [vmem:[%s14902_s7 + $0x10] sm:$0xff] }
 0x5ab   :  { %v9496_v21 = vmax.f32 %v9494_v49, %v9495_v26  ;;  %v9475_v48 = vmax.f32 %v9473_v51, %v9474_v8  ;;  %v9529_v60 = vmax.f32 %v9527_v9, %v9528_v31  ;;  %v9485_v57 = vmax.f32 %v14595_v30, %v9484_v5  ;;  %9776 = vmatpush1.msra.mxu1 %v9590_v40  ;;  %v9847_v40 = vld [vmem:[%s14904_s9 + $0xd8] sm:$0xff] }
 0x5ac   :  { %v9544_v45 = vmax.f32 %v9542_v23, %v9543_v11  ;;  %v9555_v36 = vsel %vm39_vm0, %v9510_v50, -inf  ;;  %v9515_v35 = vmax.f32 %v9513_v7, %v9514_v39  ;;  %v9545_v46 = vsel %vm39_vm0, %v9461_v29, -inf }
 0x5ad   :  { %v9554_v4 = vsel %vm39_vm0, %v9496_v21, -inf  ;;  %v9530_v52 = vrot.slane %v9529_v60, 1  ;;  %v9465_v32 = vrot.slane %v9464_v0, 2  ;;  %v9546_v14 = vsel %vm39_vm0, %v9475_v48, -inf }
 0x5ae   :  { %v9556_v19 = vmax.f32 %v9554_v4, %v9555_v36  ;;  %v9516_v47 = vrot.slane %v9515_v35, 1  ;;  %v9478_v3 = vmax.f32 %v14567_v56, %v9477_v44  ;;  %v9518_v5 = vsel %vm331_vm3, %v14603_v18, -inf }
 0x5af   :  { %v9531_v37 = vmax.f32 %v9529_v60, %v9530_v52  ;;  %v9466_v30 = vmax.f32 %v9464_v0, %v9465_v32  ;;  %v9535_v10 = vrot.slane %v9534_v6, 2  ;;  %v9519_v20 = vrot.slane %v9518_v5, 4 }
 0x5b0   :  { %v9569_v1 = vsel %vm7167_vm7, %v9556_v19, %v9544_v45  ;;  %v9517_v12 = vmax.f32 %v9515_v35, %v9516_v47  ;;  %v9479_v41 = vrot.slane %v9478_v3, 2  ;;  %v9547_v62 = vmax.f32 %v9545_v46, %v9546_v14 }
 0x5b1   :  { %9570 = vrot.lane.b32.xlu0 %v9569_v1, %s10526_s25  ;;  %v9558_v17 = vsel %vm39_vm0, %v9531_v37, -inf  ;;  %v9536_v15 = vmax.f32 %v9534_v6, %v9535_v10  ;;  %v9430_v2 = vrot.slane %v14536_v63, 2  ;;  %v9520_v24 = vmax.f32 %v9518_v5, %v9519_v20  ;;  %v9867_v20 = vld [vmem:[%s14904_s9 + $0x178] sm:$0xff]  ;;  %s10039_s25 = sshll.u32 %s10532_s4, 4  ;;  %s10040_s25 = int_to_ptr.vmem [resolvable:$true] %s10039_s25 }
 0x5b2   :  { %v9557_v56 = vsel %vm39_vm0, %v9517_v12, -inf  ;;  %v9480_v44 = vmax.f32 %v9478_v3, %v9479_v41  ;;  %v9443_v18 = vmax.f32 %v14541_v54, %v9442_v38  ;;  %v9467_v42 = vrot.slane %v9466_v30, 1  ;;  %v9851_v54 = vld [vmem:[%s14904_s9 + $0xf8] sm:$0xff]  ;;  %s10502_s12 = scalar_lea.vmem %s10040_s25, 32  ;;  %p10507_p1 = scmp.lt.s32.totalorder %s10040_s25, %s10040_s25 }
 0x5b3   :  { %v9559_v61 = vmax.f32 %v9557_v56, %v9558_v17  ;;  %v9537_v58 = vrot.slane %v9536_v15, 1  ;;  %v9431_v43 = vmax.f32 %v14536_v63, %v9430_v2  ;;  %v9521_v59 = vrot.slane %v9520_v24, 2  ;;  %v9883_v63 = vld [vmem:[%s14904_s9 + $0x1f8] sm:$0xff]  ;;  %10266 = vmatprep.subr.mxu0 %v9851_v54  ;;  %v9850_v17 = vld [vmem:[%s14904_s9 + $0xf0] sm:$0xff]  ;;  %p10503_p0 = scmp.ne.s32.totalorder %s10040_s25, %s10502_s12  ;;  %p10508_p2 = scmp.lt.s32.totalorder %s10502_s12, %s10502_s12 }
 0x5b4   :  { %v9481_v23 = vrot.slane %v9480_v44, 1  ;;  %v9444_v9 = vrot.slane %v9443_v18, 2  ;;  %v9486_v25 = vrot.slane %v9485_v57, 2  ;;  %v9468_v34 = vmax.f32 %v9466_v30, %v9467_v42  ;;  %10301 = vmatprep.subr.mxu1 %v9883_v63  ;;  %v9835_v41 = vld [vmem:[%s14904_s9 + $0x78] sm:$0xff]  ;;  %v9834_v2 = vld [vmem:[%s14904_s9 + $0x70] sm:$0xff]  ;;  %v9848_v42 = vld [vmem:[%s14904_s9 + $0xe0] sm:$0xff] }
 0x5b5   :  { %v9575_v38 = vsel %vm7167_vm7, %v9559_v61, %v9547_v62  ;;  %v9538_v49 = vmax.f32 %v9536_v15, %v9537_v58  ;;  %v9432_v51 = vrot.slane %v9431_v43, 1  ;;  %v9522_v28 = vmax.f32 %v9520_v24, %v9521_v59  ;;  %v9882_v15 = vld [vmem:[%s14904_s9 + $0x1f0] sm:$0xff]  ;;  %v9881_v24 = vld [vmem:[%s14904_s9 + $0x1e8] sm:$0xff]  ;;  %v9880_v58 = vld [vmem:[%s14904_s9 + $0x1e0] sm:$0xff]  ;;  %p10509_p3 = por %p10508_p2, %p10507_p1 }
 0x5b6   :  { %9576 = vrot.lane.b32.xlu1 %v9575_v38, %s10527_s26  ;;  %v9482_v6 = vmax.f32 %v9480_v44, %v9481_v23  ;;  %v9445_v53 = vmax.f32 %v9443_v18, %v9444_v9  ;;  %v9487_v7 = vmax.f32 %v9485_v57, %v9486_v25  ;;  %v9499_v26 = vmax.f32 %v14599_v55, %v9498_v33  ;;  %v9866_v56 = vld [vmem:[%s14904_s9 + $0x170] sm:$0xff]  ;;  %v9849_v44 = vld [vmem:[%s14904_s9 + $0xe8] sm:$0xff]  ;;  %v9879_v23 = vld [vmem:[%s14904_s9 + $0x1d8] sm:$0xff] }
 0x5b7   :  { %v9523_v8 = vrot.slane %v9522_v28, 1  ;;  %v9433_v31 = vmax.f32 %v9431_v43, %v9432_v51  ;;  %v9561_v11 = vsel %vm39_vm0, %v9538_v49, -inf  ;;  %v9548_v60 = vsel %vm39_vm0, %v9468_v34, -inf  ;;  %v9833_v18 = vld [vmem:[%s14904_s9 + $0x68] sm:$0xff]  ;;  %v9832_v43 = vld [vmem:[%s14904_s9 + $0x60] sm:$0xff]  ;;  %v9831_v59 = vld [vmem:[%s14904_s9 + $0x58] sm:$0xff]  ;;  %p10510_p4 = pnand %p10509_p3, %p10503_p0 }
 0x5b8   :  { %v9446_v50 = vrot.slane %v9445_v53, 1  ;;  %v9549_v29 = vsel %vm39_vm0, %v9482_v6, -inf  ;;  %v9488_v39 = vrot.slane %v9487_v7, 1  ;;  %v9500_v0 = vrot.slane %v9499_v26, 2  ;;  %v9865_v61 = vld [vmem:[%s14904_s9 + $0x168] sm:$0xff]  ;;  %v9863_v9 = vld [vmem:[%s14904_s9 + $0x158] sm:$0xff] }
 0x5b9   :  { %v9524_v21 = vmax.f32 %v9522_v28, %v9523_v8  ;;  %v9550_v45 = vmax.f32 %v9548_v60, %v9549_v29  ;;  %v9539_v55 = vsel %vm39_vm0, %v9433_v31, -inf  ;;  %v9846_v25 = vld [vmem:[%s14904_s9 + $0xd0] sm:$0xff]  ;;  %v9845_v49 = vld [vmem:[%s14904_s9 + $0xc8] sm:$0xff]  ;;  %v9828_v34 = vld [vmem:[%s14904_s9 + $0x40] sm:$0xff] }
 0x5ba   :  { %v9447_v48 = vmax.f32 %v9445_v53, %v9446_v50  ;;  %v9501_v57 = vmax.f32 %v9499_v26, %v9500_v0  ;;  %v9489_v4 = vmax.f32 %v9487_v7, %v9488_v39  ;;  %v9878_v54 = vld [vmem:[%s14904_s9 + $0x1d0] sm:$0xff]  ;;  %v9877_v51 = vld [vmem:[%s14904_s9 + $0x1c8] sm:$0xff]  ;;  %v9844_v53 = vld [vmem:[%s14904_s9 + $0xc0] sm:$0xff] }
 0x5bb   :  { %v9560_v36 = vsel %vm39_vm0, %v9524_v21, -inf  ;;  %v9830_v63 = vld [vmem:[%s14904_s9 + $0x50] sm:$0xff]  ;;  %v9829_v6 = vld [vmem:[%s14904_s9 + $0x48] sm:$0xff]  ;;  %v9876_v7 = vld [vmem:[%s14904_s9 + $0x1c0] sm:$0xff] }
 0x5bc   :  { %v9540_v33 = vsel %vm39_vm0, %v9447_v48, -inf  ;;  %v9562_v35 = vmax.f32 %v9560_v36, %v9561_v11  ;;  %v9502_v52 = vrot.slane %v9501_v57, 1  ;;  %v9551_v47 = vsel %vm39_vm0, %v9489_v4, -inf  ;;  %v9862_v38 = vld [vmem:[%s14904_s9 + $0x150] sm:$0xff]  ;;  %v9861_v28 = vld [vmem:[%s14904_s9 + $0x148] sm:$0xff]  ;;  %v9860_v26 = vld [vmem:[%s14904_s9 + $0x140] sm:$0xff] }
 0x5bd   :  { %v9541_v46 = vmax.f32 %v9539_v55, %v9540_v33  ;;  %v9843_v8 = vld [vmem:[%s14904_s9 + $0xb8] sm:$0xff]  ;;  %v9842_v39 = vld [vmem:[%s14904_s9 + $0xb0] sm:$0xff]  ;;  %v9841_v48 = vld [vmem:[%s14904_s9 + $0xa8] sm:$0xff] }
 0x5be   :  { %v9581_v32 = vsel %vm7167_vm7, %v9562_v35, %v9550_v45  ;;  %v9503_v19 = vmax.f32 %v9501_v57, %v9502_v52  ;;  %v9875_v31 = vld [vmem:[%s14904_s9 + $0x1b8] sm:$0xff]  ;;  %v9874_v0 = vld [vmem:[%s14904_s9 + $0x1b0] sm:$0xff]  ;;  %v9873_v60 = vld [vmem:[%s14904_s9 + $0x1a8] sm:$0xff] }
 0x5bf   :  { %9582 = vrot.lane.b32.xlu0 %v9581_v32, %s10530_s19  ;;  %v9827_v50 = vld [vmem:[%s14904_s9 + $0x38] sm:$0xff]  ;;  %v9826_v21 = vld [vmem:[%s14904_s9 + $0x30] sm:$0xff]  ;;  %v9825_v57 = vld [vmem:[%s14904_s9 + $0x28] sm:$0xff] }
 0x5c0   :  { %v9552_v14 = vsel %vm39_vm0, %v9503_v19, -inf  ;;  %v9859_v29 = vld [vmem:[%s14904_s9 + $0x138] sm:$0xff]  ;;  %v9858_v11 = vld [vmem:[%s14904_s9 + $0x130] sm:$0xff]  ;;  %v9857_v45 = vld [vmem:[%s14904_s9 + $0x128] sm:$0xff] }
 0x5c1   :  { %v9553_v3 = vmax.f32 %v9551_v47, %v9552_v14  ;;  %v9840_v36 = vld [vmem:[%s14904_s9 + $0xa0] sm:$0xff]  ;;  %v9839_v4 = vld [vmem:[%s14904_s9 + $0x98] sm:$0xff]  ;;  %v9838_v19 = vld [vmem:[%s14904_s9 + $0x90] sm:$0xff] }
 0x5c2   :  { %v9872_v55 = vld [vmem:[%s14904_s9 + $0x1a0] sm:$0xff]  ;;  %v9871_v52 = vld [vmem:[%s14904_s9 + $0x198] sm:$0xff]  ;;  %v9870_v47 = vld [vmem:[%s14904_s9 + $0x190] sm:$0xff] }
 0x5c3   :  { %v9565_v37 = vsel %vm7167_vm7, %v9553_v3, %v9541_v46  ;;  %v9824_v33 = vld [vmem:[%s14904_s9 + $0x20] sm:$0xff]  ;;  %v9823_v46 = vld [vmem:[%s14904_s9 + $0x18] sm:$0xff]  ;;  %v9822_v14 = vld [vmem:[%s14904_s9 + $0x10] sm:$0xff] }
 0x5c4   :  { %v9856_v35 = vld [vmem:[%s14904_s9 + $0x120] sm:$0xff]  ;;  %v9855_v32 = vld [vmem:[%s14904_s9 + $0x118] sm:$0xff]  ;;  %v9854_v3 = vld [vmem:[%s14904_s9 + $0x110] sm:$0xff] }
 0x623   :  { %v9571_v30 = vpop.permute.xlu0 %9570 }
 0x624   :  { %v9585_v10 = vsel %vm39_vm0, %v9565_v37, %v9571_v30  ;;  %v9837_v37 = vld [vmem:[%s14904_s9 + $0x88] sm:$0xff] }
 0x625   :  { %v9869_v30 = vld [vmem:[%s14904_s9 + $0x188] sm:$0xff] }
 0x628   :  { %v9577_v5 = vpop.permute.xlu1 %9576 }
 0x629   :  { %v9586_v1 = vsel %vm2937_vm4, %v9585_v10, %v9577_v5  ;;  %v9821_v5 = vld [vmem:[%s14904_s9 + $0x8] sm:$0xff] }
 0x62a   :  { %v9853_v10 = vld [vmem:[%s14904_s9 + $0x108] sm:$0xff] }
 0x631   :  { %v9583_v12 = vpop.permute.xlu0 %9582 }
 0x632   :  { %v9587_v62 = vsel %vm2978_vm5, %v9586_v1, %v9583_v12  ;;  %v9836_v1 = vld [vmem:[%s14904_s9 + $0x80] sm:$0xff] }
 0x633   :  { %9739 = vmatmul.mubr.f32.vlgmr.msra.gmra.mxu0 %v9587_v62  ;;  %9810 = vmatmul.mubr.f32.vlgmr.msra.gmra.mxu1 %v9587_v62  ;;  %v9868_v12 = vld [vmem:[%s14904_s9 + $0x180] sm:$0xff] }
 0x634   :  { %10267 = vmatpush3.msra.mxu0 %v9835_v41  ;;  %10302 = vmatpush3.msra.mxu1 %v9867_v20  ;;  %v9820_v41 = vld [vmem:[%s14904_s9] sm:$0xff] }
 0x635   :  { %10268 = vmatprep.subr.mxu0 %v9850_v17  ;;  %10303 = vmatprep.subr.mxu1 %v9882_v15  ;;  %v9852_v20 = vld [vmem:[%s14904_s9 + $0x100] sm:$0xff] }
 0x636   :  { %10269 = vmatpush3.msra.mxu0 %v9834_v2  ;;  %10304 = vmatpush3.msra.mxu1 %v9866_v56  ;;  %v9652_v62 = vld [vmem:[%s14903_s8] sm:$0xf]  ;;  %v14909_v2 = vsub.s32 1, %v10721_v13 }
 0x637   :  { %10270 = vmatprep.subr.mxu0 %v9849_v44  ;;  %10305 = vmatprep.subr.mxu1 %v9881_v24  ;;  %v9657_v17 = vrot.slane %v9652_v62, %v422_v16  ;;  %v9665_v15 = vrot.slane %v9652_v62, %v670_v22  ;;  %v14910_v44 = vsub.s32 3, %v10721_v13  ;;  %v10172_v13 = vld [vmem:[%s14905_s10] ss:$0 sm:$0xff] }
 0x638   :  { %10271 = vmatpush3.msra.mxu0 %v9833_v18  ;;  %10306 = vmatpush3.msra.mxu1 %v9865_v61  ;;  %v9661_v56 = vrot.slane %v9652_v62, %v14909_v2 }
 0x639   :  { %10272 = vmatprep.subr.mxu0 %v9848_v42  ;;  %10307 = vmatprep.subr.mxu1 %v9880_v58  ;;  %v9669_v24 = vrot.slane %v9652_v62, %v14910_v44 }
 0x63a   :  { %10273 = vmatpush3.msra.mxu0 %v9832_v43  ;;  %10308 = vmatpush3.msra.mxu1 %v9864_v27 }
 0x63b   :  { %10274 = vmatprep.subr.mxu0 %v9847_v40  ;;  %10309 = vmatprep.subr.mxu1 %v9879_v23 }
 0x63c   :  { %10275 = vmatpush3.msra.mxu0 %v9831_v59  ;;  %10310 = vmatpush3.msra.mxu1 %v9863_v9 }
 0x63d   :  { %10276 = vmatprep.subr.mxu0 %v9846_v25  ;;  %10311 = vmatprep.subr.mxu1 %v9878_v54 }
 0x63e   :  { %10277 = vmatpush3.msra.mxu0 %v9830_v63  ;;  %10312 = vmatpush3.msra.mxu1 %v9862_v38 }
 0x63f   :  { %10278 = vmatprep.subr.mxu0 %v9845_v49  ;;  %10313 = vmatprep.subr.mxu1 %v9877_v51 }
 0x640   :  { %10279 = vmatpush3.msra.mxu0 %v9829_v6  ;;  %10314 = vmatpush3.msra.mxu1 %v9861_v28 }
 0x641   :  { %10280 = vmatprep.subr.mxu0 %v9844_v53  ;;  %10315 = vmatprep.subr.mxu1 %v9876_v7 }
 0x642   :  { %10281 = vmatpush3.msra.mxu0 %v9828_v34  ;;  %10316 = vmatpush3.msra.mxu1 %v9860_v26 }
 0x643   :  { %10282 = vmatprep.subr.mxu0 %v9843_v8  ;;  %10317 = vmatprep.subr.mxu1 %v9875_v31 }
 0x644   :  { %10283 = vmatpush3.msra.mxu0 %v9827_v50  ;;  %10318 = vmatpush3.msra.mxu1 %v9859_v29 }
 0x645   :  { %10284 = vmatprep.subr.mxu0 %v9842_v39  ;;  %10319 = vmatprep.subr.mxu1 %v9874_v0 }
 0x646   :  { %10285 = vmatpush3.msra.mxu0 %v9826_v21  ;;  %10320 = vmatpush3.msra.mxu1 %v9858_v11 }
 0x647   :  { %10286 = vmatprep.subr.mxu0 %v9841_v48  ;;  %10321 = vmatprep.subr.mxu1 %v9873_v60 }
 0x648   :  { %10287 = vmatpush3.msra.mxu0 %v9825_v57  ;;  %10322 = vmatpush3.msra.mxu1 %v9857_v45 }
 0x649   :  { %10288 = vmatprep.subr.mxu0 %v9840_v36  ;;  %10323 = vmatprep.subr.mxu1 %v9872_v55 }
 0x64a   :  { %10289 = vmatpush3.msra.mxu0 %v9824_v33  ;;  %10324 = vmatpush3.msra.mxu1 %v9856_v35 }
 0x64b   :  { %10290 = vmatprep.subr.mxu0 %v9839_v4  ;;  %10325 = vmatprep.subr.mxu1 %v9871_v52 }
 0x64c   :  { %10291 = vmatpush3.msra.mxu0 %v9823_v46  ;;  %10326 = vmatpush3.msra.mxu1 %v9855_v32 }
 0x64d   :  { %10292 = vmatprep.subr.mxu0 %v9838_v19  ;;  %10327 = vmatprep.subr.mxu1 %v9870_v47 }
 0x64e   :  { %10293 = vmatpush3.msra.mxu0 %v9822_v14  ;;  %10328 = vmatpush3.msra.mxu1 %v9854_v3 }
 0x64f   :  { %10294 = vmatprep.subr.mxu0 %v9837_v37  ;;  %10329 = vmatprep.subr.mxu1 %v9869_v30 }
 0x650   :  { %10295 = vmatpush3.msra.mxu0 %v9821_v5  ;;  %10330 = vmatpush3.msra.mxu1 %v9853_v10 }
 0x651   :  { %10296 = vmatprep.subr.mxu0 %v9836_v1  ;;  %10331 = vmatprep.subr.mxu1 %v9868_v12 }
 0x652   :  { %10297 = vmatpush3.msra.mxu0 %v9820_v41  ;;  %10332 = vmatpush3.msra.mxu1 %v9852_v20 }
 0x6f3   :  { %v9740_v18 = vpop.f32.mrf.mxu0  ;;  %v9811_v61 = vpop.f32.mrf.mxu1 }
 0x6f4   :  { %v9741_v42 = vadd.f32 %v9740_v18, %v9657_v17  ;;  %v9812_v58 = vadd.f32 %v9811_v61, %v9665_v15 }
 0x6f5   :  { %v9742_v43 = vpop.f32.mrf.mxu0  ;;  %v9813_v27 = vpop.f32.mrf.mxu1 }
 0x6f6   :  { %v9743_v40 = vadd.f32 %v9742_v43, %v9661_v56  ;;  %v9814_v23 = vadd.f32 %v9813_v27, %v9669_v24  ;;  %v9816_v16 = vmax.f32 %v9741_v42, 0.0  ;;  %v9818_v25 = vmax.f32 %v9812_v58, 0.0 }
 0x6f8   :  { %v9817_v59 = vmax.f32 %v9743_v40, 0.0  ;;  %v9819_v9 = vmax.f32 %v9814_v23, 0.0 }
 0x6fa   :  { %9955 = vmatprep.mubr.f32.mxu0 %v9817_v59  ;;  %10025 = vmatprep.mubr.f32.mxu1 %v9819_v9 }
 0x6fb   :  { %9956 = vmatmul.mubr.f32.vlgmr.msra.gmra.mxu0 %v9816_v16  ;;  %10026 = vmatmul.mubr.f32.vlgmr.msra.gmra.mxu1 %v9818_v25 }
 0x7bb   :  { %v10298_v22 = vpop.f32.mrf.mxu0  ;;  %v10333_v54 = vpop.f32.mrf.mxu1 }
 0x7bd   :  { %v10299_v63 = vpop.f32.mrf.mxu0  ;;  %v10334_v38 = vpop.f32.mrf.mxu1 }
 0x7be   :  { %v10300_v49 = vadd.f32 %v10299_v63, %v10298_v22  ;;  %v10335_v6 = vadd.f32 %v10334_v38, %v10333_v54 }
 0x7c0   :  { %v9958_v51 = vadd.f32 %v10300_v49, %v10172_v13 }
 0x7c2   :  { %v10028_v28 = vadd.f32 %v10335_v6, %v9958_v51 }
 0x7c4   :  { %10032 = vst.msk [vmem:[#allocation4] sm:$0x3] %vm10031_vm12, %v10028_v28 }
 0x7c5   :  { %10513 = shalt.err (!%p10510_p4)
}
 0x7c6   :  { %10042 = dma.vmem_to_hbm [thread:$0]  %s10040_s25, 32, %s14906_s11, [#allocation5]  }
 0x7c7   :  { %10522 = dma.done.wait [#allocation5], 32  }
 0x7c8   :  { %10523 = vsyncadd [#allocation5], 4294967264 }
 0x7c9   :  { %10046 = vsyncpa [#allocation5], 1 }

</bundles_post_ra>
